<compile_context>
chip_gen: v5e
topology: v5e:2x2
jax: 0.10.0
libtpu: 0.0.40
codegen_flags: <defaults>
</compile_context>

<pallas_src>
import math
import functools

import jax
import jax.numpy as jnp
from jax.experimental import pallas as pl
from jax.experimental.pallas import tpu as pltpu

NEG_SLOPE = 0.1  # LeakyReLU slope used throughout the network


def _round_up(x, m):
    return ((x + m - 1) // m) * m


# ----------------------------------------------------------------------------
# Kernel 1: dilated 3x3 conv (stride 1, pad = dilation = a), in-kernel tap loop
# ----------------------------------------------------------------------------
def _dil_kernel(x_ref, w_ref, *rest, a, TH, W, Cin, Cout, leaky, has_res):
    if has_res:
        r_ref, o_ref = rest
    else:
        (o_ref,) = rest
    i = pl.program_id(1)
    row0 = pl.multiple_of(i * TH, TH)

    acc = jnp.zeros((TH * W, Cout), jnp.float32)
    t = 0
    for ki in range(3):
        for kj in range(3):
            # shifted (TH, W, Cin) window of the VMEM-resident padded image
            win = x_ref[pl.ds(row0 + ki * a, TH), kj * a: kj * a + W, :]
            acc = acc + jnp.dot(win.reshape(TH * W, Cin), w_ref[t],
                                preferred_element_type=jnp.float32)
            t += 1
    if leaky:
        acc = jnp.maximum(acc, NEG_SLOPE * acc)
    if has_res:
        acc = acc + r_ref[...]
    o_ref[...] = acc.astype(o_ref.dtype)


def _pick_th(H, W, Cout, acc_budget=128 * 1024):
    """Row-tile height: divides H, keeps TH*W a multiple of 8, gives >=2 grid
    steps (v7x megacore) and a small f32 accumulator."""
    for t in (64, 32, 16, 8, 4, 2, 1):
        if (H % t == 0 and (t * W) % 8 == 0 and H // t >= 2
                and t * W * Cout * 4 <= acc_budget):
            return t
    return H  # single tile fallback (block dims = full dims, always legal)


def dilated_conv3x3(x, w9, a, *, leaky=False, residual=None,
                    out_dtype=jnp.bfloat16):
    """x: (B,H,W,Cin) NHWC (any float dtype).  w9: (9, Cin, Cout) bf16.
    Computes Conv2d(kernel=3, stride=1, dilation=a, padding=a) (+leaky)(+res)."""
    B, H, W, Cin = x.shape
    Cout = w9.shape[-1]
    xp = jnp.pad(x.astype(jnp.bfloat16), ((0, 0), (a, a), (a, a), (0, 0)))
    Hp, Wp = H + 2 * a, W + 2 * a
    TH = _pick_th(H, W, Cout)

    kernel = functools.partial(
        _dil_kernel, a=a, TH=TH, W=W, Cin=Cin, Cout=Cout,
        leaky=leaky, has_res=residual is not None)

    in_specs = [
        # full padded image per batch element, VMEM-resident across row tiles
        pl.BlockSpec((pl.Squeezed(), Hp, Wp, Cin), lambda b, i: (b, 0, 0, 0)),
        # all 9 tap weights resident
        pl.BlockSpec((9, Cin, Cout), lambda b, i: (0, 0, 0)),
    ]
    args = [xp, w9]
    if residual is not None:
        res3 = residual.reshape(B, H * W, Cout).astype(jnp.float32)
        in_specs.append(
            pl.BlockSpec((pl.Squeezed(), TH * W, Cout), lambda b, i: (b, i, 0)))
        args.append(res3)

    out = pl.pallas_call(
        kernel,
        out_shape=jax.ShapeDtypeStruct((B, H * W, Cout), out_dtype),
        grid=(B, H // TH),
        in_specs=in_specs,
        out_specs=pl.BlockSpec((pl.Squeezed(), TH * W, Cout),
                               lambda b, i: (b, i, 0)),
        compiler_params=pltpu.CompilerParams(
            dimension_semantics=("parallel", "parallel"),
            vmem_limit_bytes=64 * 1024 * 1024),
    )(*args)
    return out.reshape(B, H, W, Cout)


# ----------------------------------------------------------------------------
# Kernel 2: generic (M,K)x(K,N) matmul (+bias)(+leaky), bf16 MXU, f32 epilogue
# Kernel 3: fused two-matmul chain  leaky(leaky(x@w1)@w2)
# ----------------------------------------------------------------------------
def _mm_kernel(x_ref, w_ref, o_ref, *, leaky):
    acc = jnp.dot(x_ref[...], w_ref[...], preferred_element_type=jnp.float32)
    if leaky:
        acc = jnp.maximum(acc, NEG_SLOPE * acc)
    o_ref[...] = acc.astype(o_ref.dtype)


def _mm_bias_kernel(x_ref, w_ref, b_ref, o_ref, *, leaky):
    acc = jnp.dot(x_ref[...], w_ref[...], preferred_element_type=jnp.float32)
    acc = acc + b_ref[...]
    if leaky:
        acc = jnp.maximum(acc, NEG_SLOPE * acc)
    o_ref[...] = acc.astype(o_ref.dtype)


def _mm_chain_kernel(x_ref, w1_ref, w2_ref, o_ref):
    h = jnp.dot(x_ref[...], w1_ref[...], preferred_element_type=jnp.float32)
    h = jnp.maximum(h, NEG_SLOPE * h)
    acc = jnp.dot(h.astype(jnp.bfloat16), w2_ref[...],
                  preferred_element_type=jnp.float32)
    acc = jnp.maximum(acc, NEG_SLOPE * acc)
    o_ref[...] = acc.astype(o_ref.dtype)


def _tile_m(M, cap=512):
    """Pick TM dividing M when possible (no M pad / output slice copies)."""
    if M <= cap:
        return M, M
    for t in range(cap - cap % 8, 7, -8):
        if M % t == 0:
            return t, M
    return cap, _round_up(M, cap)


_MM_PARAMS = pltpu.CompilerParams(dimension_semantics=("parallel",),
                                  vmem_limit_bytes=64 * 1024 * 1024)


def mm(x, w, bias=None, *, leaky=False, out_dtype=jnp.float32, cap=512):
    """x: (M,K) (cast to bf16), w: (K,N) bf16, bias: (1,N) f32 -> (M,N)."""
    M, K = x.shape
    N = w.shape[1]
    TM, Mp = _tile_m(M, cap)
    if Mp != M:
        x = jnp.pad(x, ((0, Mp - M), (0, 0)))
    in_specs = [pl.BlockSpec((TM, K), lambda i: (i, 0)),
                pl.BlockSpec((K, N), lambda i: (0, 0))]
    args = [x.astype(jnp.bfloat16), w]
    if bias is not None:
        in_specs.append(pl.BlockSpec((1, N), lambda i: (0, 0)))
        args.append(bias)
        kernel = functools.partial(_mm_bias_kernel, leaky=leaky)
    else:
        kernel = functools.partial(_mm_kernel, leaky=leaky)
    out = pl.pallas_call(
        kernel,
        out_shape=jax.ShapeDtypeStruct((Mp, N), out_dtype),
        grid=(Mp // TM,),
        in_specs=in_specs,
        out_specs=pl.BlockSpec((TM, N), lambda i: (i, 0)),
        compiler_params=_MM_PARAMS,
    )(*args)
    return out if Mp == M else out[:M]


def mm_chain(x, w1, w2, *, out_dtype=jnp.bfloat16, cap=512):
    """leaky(leaky(x @ w1) @ w2) fused into one pallas_call."""
    M, K1 = x.shape
    N1 = w1.shape[1]
    N2 = w2.shape[1]
    TM, Mp = _tile_m(M, cap)
    if Mp != M:
        x = jnp.pad(x, ((0, Mp - M), (0, 0)))
    out = pl.pallas_call(
        _mm_chain_kernel,
        out_shape=jax.ShapeDtypeStruct((Mp, N2), out_dtype),
        grid=(Mp // TM,),
        in_specs=[pl.BlockSpec((TM, K1), lambda i: (i, 0)),
                  pl.BlockSpec((K1, N1), lambda i: (0, 0)),
                  pl.BlockSpec((N1, N2), lambda i: (0, 0))],
        out_specs=pl.BlockSpec((TM, N2), lambda i: (i, 0)),
        compiler_params=_MM_PARAMS,
    )(x.astype(jnp.bfloat16), w1, w2)
    return out if Mp == M else out[:M]


# ----------------------------------------------------------------------------
# Data-movement helpers (pure reshuffles, NHWC) -> plain JAX glue
# ----------------------------------------------------------------------------
def sai2macpi(x, angRes):
    b, hu, wv, c = x.shape
    h, w = hu // angRes, wv // angRes
    x = x.reshape(b, angRes, h, angRes, w, c)
    x = x.transpose(0, 2, 1, 4, 3, 5)
    return x.reshape(b, hu, wv, c)


def macpi2sai(x, angRes):
    b, hu, wv, c = x.shape
    h, w = hu // angRes, wv // angRes
    x = x.reshape(b, h, angRes, w, angRes, c)
    x = x.transpose(0, 2, 1, 4, 3, 5)
    return x.reshape(b, hu, wv, c)


def pixel_shuffle(x, r):
    b, h, w, crr = x.shape
    c = crr // (r * r)
    x = x.reshape(b, h, w, c, r, r)
    x = x.transpose(0, 1, 4, 2, 5, 3)
    return x.reshape(b, h * r, w * r, c)


def pixel_shuffle_1d(x, factor):
    b, h, w, fc = x.shape
    c = fc // factor
    # input channel index = f*c + ch (matches PyTorch PixelShuffle1D's view)
    return x.reshape(b, h, w * factor, c)


def bilinear_upsample(x, factor):
    """F.interpolate(scale_factor=factor, mode='bilinear', align_corners=False), NHWC."""
    b, H, W, c = x.shape
    Ho, Wo = H * factor, W * factor

    def src_idx(out_size, in_size):
        scale = in_size / out_size
        d = jnp.arange(out_size, dtype=jnp.float32)
        s = jnp.maximum((d + 0.5) * scale - 0.5, 0.0)
        i0 = jnp.minimum(jnp.floor(s).astype(jnp.int32), in_size - 1)
        i1 = jnp.minimum(i0 + 1, in_size - 1)
        w1 = jnp.clip(s - i0.astype(jnp.float32), 0.0, 1.0)
        return i0, i1, w1

    r0, r1, rw = src_idx(Ho, H)
    c0, c1, cw = src_idx(Wo, W)
    top = (x[:, r0, :, :] * (1.0 - rw)[None, :, None, None]
           + x[:, r1, :, :] * rw[None, :, None, None])
    out = (top[:, :, c0, :] * (1.0 - cw)[None, None, :, None]
           + top[:, :, c1, :] * cw[None, None, :, None])
    return out


# ----------------------------------------------------------------------------
# Parameter initialization (deterministic, PyTorch-like uniform bounds)
# ----------------------------------------------------------------------------
class KeyGen:
    def __init__(self, key):
        self.key = key
        self.i = 0

    def __call__(self):
        self.i += 1
        return jax.random.fold_in(self.key, self.i)


def _conv_w(kg, cout, cin, kh, kw):
    bound = 1.0 / math.sqrt(cin * kh * kw)
    return jax.random.uniform(kg(), (cout, cin, kh, kw), jnp.float32,
                              minval=-bound, maxval=bound)


def init_block_params(kg, angRes, C):
    a = angRes
    Spa, Ang, Epi = C, C // 4, C // 2
    return dict(
        spa1=_conv_w(kg, Spa, C, 3, 3),
        spa2=_conv_w(kg, Spa, Spa, 3, 3),
        ang1=_conv_w(kg, Ang, C, a, a),
        ang2=_conv_w(kg, a * a * Ang, Ang, 1, 1),
        epi1=_conv_w(kg, Epi, C, 1, a * a),
        epi2=_conv_w(kg, a * Epi, Epi, 1, 1),
        fuse1=_conv_w(kg, C, Spa + Ang + 2 * Epi, 1, 1),
        fuse2=_conv_w(kg, C, C, 3, 3),
    )


def init_group_params(kg, n_block, angRes, C):
    return dict(
        blocks=[init_block_params(kg, angRes, C) for _ in range(n_block)],
        conv=_conv_w(kg, C, C, 3, 3),
    )


def init_cascade_params(kg, n_group, n_block, angRes, C):
    return dict(
        groups=[init_group_params(kg, n_block, angRes, C)
                for _ in range(n_group)],
        conv=_conv_w(kg, C, C, 3, 3),
    )


def init_net_params(kg, angRes, factor, C=64, n_group=4, n_block=4):
    bias_bound = 1.0 / math.sqrt(C)  # fan_in of the 1x1 up-conv
    return dict(
        init_conv=_conv_w(kg, C, 1, 3, 3),
        disentg=init_cascade_params(kg, n_group, n_block, angRes, C),
        up1_w=_conv_w(kg, C * factor ** 2, C, 1, 1),
        up1_b=jax.random.uniform(kg(), (C * factor ** 2,), jnp.float32,
                                 minval=-bias_bound, maxval=bias_bound),
        up2_w=_conv_w(kg, 1, C, 1, 1),
    )


# ----------------------------------------------------------------------------
# One-time weight preprocessing (outside the jitted forward)
# ----------------------------------------------------------------------------
def _prep_3x3(w):     # OIHW (Cout,Cin,3,3) -> (9, Cin, Cout) bf16, tap-major
    Cout, Cin = w.shape[0], w.shape[1]
    return jnp.transpose(w, (2, 3, 1, 0)).reshape(9, Cin, Cout).astype(jnp.bfloat16)


def _prep_1x1(w):     # OIHW (Cout,Cin,1,1) -> (Cin, Cout) bf16
    return jnp.transpose(w.reshape(w.shape[0], w.shape[1]), (1, 0)).astype(jnp.bfloat16)


def _prep_kxk(w):     # OIHW (Cout,Cin,Kh,Kw) -> (Kh*Kw*Cin, Cout) bf16, tap-major
    Cout, Cin, Kh, Kw = w.shape
    return jnp.transpose(w, (2, 3, 1, 0)).reshape(Kh * Kw * Cin, Cout).astype(jnp.bfloat16)


def prepare_params(params, angRes, factor):
    def prep_block(p):
        return dict(
            spa1=_prep_3x3(p['spa1']), spa2=_prep_3x3(p['spa2']),
            ang1=_prep_kxk(p['ang1']), ang2=_prep_1x1(p['ang2']),
            epi1=_prep_kxk(p['epi1']), epi2=_prep_1x1(p['epi2']),
            fuse1=_prep_1x1(p['fuse1']), fuse2=_prep_3x3(p['fuse2']),
        )

    def prep_group(g):
        return dict(blocks=[prep_block(b) for b in g['blocks']],
                    conv=_prep_3x3(g['conv']))

    disentg = dict(groups=[prep_group(g) for g in params['disentg']['groups']],
                   conv=_prep_3x3(params['disentg']['conv']))

    # init conv: zero-pad Cin 1 -> 8 so the MXU contraction is not degenerate
    init_w = params['init_conv']
    cin = init_w.shape[1]
    if cin < 8:
        init_w = jnp.pad(init_w, ((0, 0), (0, 8 - cin), (0, 0), (0, 0)))

    # Fuse Conv1x1(C->C*f^2)+bias, PixelShuffle(f), Conv1x1(C->1) analytically
    # into ONE Conv1x1(C->f^2)+bias followed by a c=1 pixel shuffle.
    C = params['up1_w'].shape[1]
    f2 = factor * factor
    w1 = params['up1_w'].reshape(C * f2, C).reshape(C, f2, C)   # (c, m, k)
    w2 = params['up2_w'].reshape(C)                             # (c,)
    b1 = params['up1_b'].reshape(C, f2)                         # (c, m)
    up_w = jnp.einsum('c,cmk->km', w2, w1).astype(jnp.bfloat16)  # (C, f^2)
    up_b = jnp.einsum('c,cm->m', w2, b1).reshape(1, f2).astype(jnp.float32)

    return dict(init=_prep_3x3(init_w), disentg=disentg, up_w=up_w, up_b=up_b)


# ----------------------------------------------------------------------------
# Forward pass (NHWC internally; NCHW at the API boundary)
# ----------------------------------------------------------------------------
def disentg_block_fwd(p, x, a):
    B, H, W, C = x.shape
    xb = x.astype(jnp.bfloat16)        # one cast per block, shared by 4 consumers

    # Spa branch: two dilated 3x3 convs (+ leaky), bf16 intermediates
    fea_spa = dilated_conv3x3(xb, p['spa1'], a, leaky=True)
    fea_spa = dilated_conv3x3(fea_spa, p['spa2'], a, leaky=True)

    # Ang branch: axa/stride-a conv (im2col == reshape) fused with its 1x1 conv
    Ha, Wa = H // a, W // a
    ang_in = (xb.reshape(B, Ha, a, Wa, a, C)
                .transpose(0, 1, 3, 2, 4, 5)
                .reshape(B * Ha * Wa, a * a * C))
    t = mm_chain(ang_in, p['ang1'], p['ang2'])
    fea_ang = pixel_shuffle(t.reshape(B, Ha, Wa, -1), a)

    # EPI branches: (1,a^2)/stride-(1,a) conv fused with its 1x1 conv
    def epi(inp):
        Bi, Hh, Ww, Ci = inp.shape
        Ka = a * a
        pw = a * (a - 1) // 2
        Wo = (Ww + 2 * pw - Ka) // a + 1
        xp = jnp.pad(inp, ((0, 0), (0, 0), (pw, pw), (0, 0)))
        taps = [xp[:, :, kj: kj + a * (Wo - 1) + 1: a, :] for kj in range(Ka)]
        pat = jnp.concatenate(taps, axis=-1).reshape(Bi * Hh * Wo, Ka * Ci)
        u = mm_chain(pat, p['epi1'], p['epi2'])
        return pixel_shuffle_1d(u.reshape(Bi, Hh, Wo, -1), a)

    fea_epi_h = epi(xb)
    fea_epi_v = jnp.transpose(epi(jnp.transpose(xb, (0, 2, 1, 3))), (0, 2, 1, 3))

    buf = jnp.concatenate([fea_spa, fea_ang, fea_epi_h, fea_epi_v], axis=-1)
    fused = mm(buf.reshape(B * H * W, buf.shape[-1]), p['fuse1'],
               leaky=True, out_dtype=jnp.bfloat16).reshape(B, H, W, C)
    # fuse2 (no activation) with the residual add fused into its epilogue
    return dilated_conv3x3(fused, p['fuse2'], a, residual=x,
                           out_dtype=jnp.float32)


def disentg_group_fwd(p, x, a):
    buf = x
    for bp in p['blocks']:
        buf = disentg_block_fwd(bp, buf, a)
    return dilated_conv3x3(buf, p['conv'], a, residual=x, out_dtype=jnp.float32)


def cascade_fwd(p, x, a):
    buf = x
    for gp in p['groups']:
        buf = disentg_group_fwd(gp, buf, a)
    return dilated_conv3x3(buf, p['conv'], a, residual=x, out_dtype=jnp.float32)


def net_forward(prep, x_nchw, angRes, factor):
    a = angRes
    x = jnp.transpose(x_nchw, (0, 2, 3, 1))            # NCHW -> NHWC (once)
    x_up = bilinear_upsample(x, factor)
    xm = sai2macpi(x, a)
    cin = xm.shape[-1]
    if cin < 8:                                        # match zero-padded init weight
        xm = jnp.pad(xm, ((0, 0), (0, 0), (0, 0), (0, 8 - cin)))
    buf = dilated_conv3x3(xm, prep['init'], a, out_dtype=jnp.float32)
    buf = cascade_fwd(prep['disentg'], buf, a)
    buf_sai = macpi2sai(buf, a)

    # fused upsample head: one (C -> factor^2) matmul + bias, then c=1 shuffle
    B, Hs, Ws, C = buf_sai.shape
    z = mm(buf_sai.reshape(B * Hs * Ws, C), prep['up_w'], bias=prep['up_b'],
           out_dtype=jnp.float32)
    out = pixel_shuffle(z.reshape(B, Hs, Ws, factor * factor), factor)
    out = out + x_up
    return jnp.transpose(out, (0, 3, 1, 2))            # NHWC -> NCHW (once)


# ----------------------------------------------------------------------------
if __name__ == "__main__":
    angRes, factor = 2, 2
    key = jax.random.PRNGKey(0)
    params = init_net_params(KeyGen(key), angRes, factor)
    prep = prepare_params(params, angRes, factor)      # one-time weight prep

    # SAI light-field image: batch=2, 1 channel, 16x16 (multiple of angRes)
    x = jax.random.normal(jax.random.fold_in(key, 12345),
                          (2, 1, 16, 16), jnp.float32)

    fwd = jax.jit(functools.partial(net_forward, angRes=angRes, factor=factor))
    out = fwd(prep, x)
    out = jax.block_until_ready(out)

    assert out.shape == (2, 1, 16 * factor, 16 * factor), out.shape
    assert bool(jnp.all(jnp.isfinite(out)))
    print("KERNEL_OK")
</pallas_src>

<mosaic_0001>
module attributes {stable_mosaic.version = 11 : i64} {
  func.func @_dil_kernel(%arg0: i32, %arg1: i32, %arg2: memref<1x20x20x8xbf16, #tpu.memory_space<vmem>>, %arg3: memref<9x8x64xbf16, #tpu.memory_space<vmem>>, %arg4: memref<1x128x64xf32, #tpu.memory_space<vmem>>) attributes {dimension_semantics = [#tpu.dimension_semantics<parallel>, #tpu.dimension_semantics<parallel>], iteration_bounds = array<i64: 2, 2>, scalar_prefetch = 0 : i64, scratch_operands = 0 : i64, tpu.core_type = #tpu.core_type<tc>, window_params = [{transform_indices = @transform_0, window_bounds = array<i64: 1, 20, 20, 8>}, {pipeline_mode = #tpu.pipeline_mode<synchronous>, transform_indices = @transform_1, window_bounds = array<i64: 9, 8, 64>}, {transform_indices = @transform_2, window_bounds = array<i64: 1, 128, 64>}]} {
    %c8_i32 = arith.constant 8 : i32
    %0 = arith.muli %arg1, %c8_i32 : i32
    %1 = tpu.assume_multiple %0, 8 : i32
    %cst = arith.constant 0.000000e+00 : f32
    %2 = vector.broadcast %cst : f32 to vector<128x64xf32>
    %c0_i32 = arith.constant 0 : i32
    %3 = arith.addi %1, %c0_i32 : i32
    %c0 = arith.constant 0 : index
    %4 = arith.index_cast %3 : i32 to index
    %c0_0 = arith.constant 0 : index
    %c0_1 = arith.constant 0 : index
    %5 = vector.load %arg2[%c0, %4, %c0_0, %c0_1] : memref<1x20x20x8xbf16, #tpu.memory_space<vmem>>, vector<1x8x16x8xbf16>
    %6 = vector.shape_cast %5 : vector<1x8x16x8xbf16> to vector<8x16x8xbf16>
    %7 = vector.shape_cast %6 : vector<8x16x8xbf16> to vector<128x8xbf16>
    %c0_2 = arith.constant 0 : index
    %c0_3 = arith.constant 0 : index
    %c0_4 = arith.constant 0 : index
    %8 = vector.load %arg3[%c0_2, %c0_3, %c0_4] : memref<9x8x64xbf16, #tpu.memory_space<vmem>>, vector<1x8x64xbf16>
    %9 = vector.shape_cast %8 : vector<1x8x64xbf16> to vector<8x64xbf16>
    %cst_5 = arith.constant dense<0.000000e+00> : vector<128x64xf32>
    %10 = tpu.matmul %7, %9, %cst_5 {dimension_numbers = #tpu.dot_dimension_numbers<[1], [0], [0], [1], [0, 0, 1, 1], [], []>} : vector<128x8xbf16>, vector<8x64xbf16>, vector<128x64xf32> -> vector<128x64xf32>
    %11 = arith.addf %2, %10 : vector<128x64xf32>
    %c0_i32_6 = arith.constant 0 : i32
    %12 = arith.addi %1, %c0_i32_6 : i32
    %c0_7 = arith.constant 0 : index
    %13 = arith.index_cast %12 : i32 to index
    %c2 = arith.constant 2 : index
    %c0_8 = arith.constant 0 : index
    %14 = vector.load %arg2[%c0_7, %13, %c2, %c0_8] : memref<1x20x20x8xbf16, #tpu.memory_space<vmem>>, vector<1x8x16x8xbf16>
    %15 = vector.shape_cast %14 : vector<1x8x16x8xbf16> to vector<8x16x8xbf16>
    %16 = vector.shape_cast %15 : vector<8x16x8xbf16> to vector<128x8xbf16>
    %c1 = arith.constant 1 : index
    %c0_9 = arith.constant 0 : index
    %c0_10 = arith.constant 0 : index
    %17 = vector.load %arg3[%c1, %c0_9, %c0_10] : memref<9x8x64xbf16, #tpu.memory_space<vmem>>, vector<1x8x64xbf16>
    %18 = vector.shape_cast %17 : vector<1x8x64xbf16> to vector<8x64xbf16>
    %cst_11 = arith.constant dense<0.000000e+00> : vector<128x64xf32>
    %19 = tpu.matmul %16, %18, %cst_11 {dimension_numbers = #tpu.dot_dimension_numbers<[1], [0], [0], [1], [0, 0, 1, 1], [], []>} : vector<128x8xbf16>, vector<8x64xbf16>, vector<128x64xf32> -> vector<128x64xf32>
    %20 = arith.addf %11, %19 : vector<128x64xf32>
    %c0_i32_12 = arith.constant 0 : i32
    %21 = arith.addi %1, %c0_i32_12 : i32
    %c0_13 = arith.constant 0 : index
    %22 = arith.index_cast %21 : i32 to index
    %c4 = arith.constant 4 : index
    %c0_14 = arith.constant 0 : index
    %23 = vector.load %arg2[%c0_13, %22, %c4, %c0_14] : memref<1x20x20x8xbf16, #tpu.memory_space<vmem>>, vector<1x8x16x8xbf16>
    %24 = vector.shape_cast %23 : vector<1x8x16x8xbf16> to vector<8x16x8xbf16>
    %25 = vector.shape_cast %24 : vector<8x16x8xbf16> to vector<128x8xbf16>
    %c2_15 = arith.constant 2 : index
    %c0_16 = arith.constant 0 : index
    %c0_17 = arith.constant 0 : index
    %26 = vector.load %arg3[%c2_15, %c0_16, %c0_17] : memref<9x8x64xbf16, #tpu.memory_space<vmem>>, vector<1x8x64xbf16>
    %27 = vector.shape_cast %26 : vector<1x8x64xbf16> to vector<8x64xbf16>
    %cst_18 = arith.constant dense<0.000000e+00> : vector<128x64xf32>
    %28 = tpu.matmul %25, %27, %cst_18 {dimension_numbers = #tpu.dot_dimension_numbers<[1], [0], [0], [1], [0, 0, 1, 1], [], []>} : vector<128x8xbf16>, vector<8x64xbf16>, vector<128x64xf32> -> vector<128x64xf32>
    %29 = arith.addf %20, %28 : vector<128x64xf32>
    %c2_i32 = arith.constant 2 : i32
    %30 = arith.addi %1, %c2_i32 : i32
    %c0_19 = arith.constant 0 : index
    %31 = arith.index_cast %30 : i32 to index
    %c0_20 = arith.constant 0 : index
    %c0_21 = arith.constant 0 : index
    %32 = vector.load %arg2[%c0_19, %31, %c0_20, %c0_21] : memref<1x20x20x8xbf16, #tpu.memory_space<vmem>>, vector<1x8x16x8xbf16>
    %33 = vector.shape_cast %32 : vector<1x8x16x8xbf16> to vector<8x16x8xbf16>
    %34 = vector.shape_cast %33 : vector<8x16x8xbf16> to vector<128x8xbf16>
    %c3 = arith.constant 3 : index
    %c0_22 = arith.constant 0 : index
    %c0_23 = arith.constant 0 : index
    %35 = vector.load %arg3[%c3, %c0_22, %c0_23] : memref<9x8x64xbf16, #tpu.memory_space<vmem>>, vector<1x8x64xbf16>
    %36 = vector.shape_cast %35 : vector<1x8x64xbf16> to vector<8x64xbf16>
    %cst_24 = arith.constant dense<0.000000e+00> : vector<128x64xf32>
    %37 = tpu.matmul %34, %36, %cst_24 {dimension_numbers = #tpu.dot_dimension_numbers<[1], [0], [0], [1], [0, 0, 1, 1], [], []>} : vector<128x8xbf16>, vector<8x64xbf16>, vector<128x64xf32> -> vector<128x64xf32>
    %38 = arith.addf %29, %37 : vector<128x64xf32>
    %c2_i32_25 = arith.constant 2 : i32
    %39 = arith.addi %1, %c2_i32_25 : i32
    %c0_26 = arith.constant 0 : index
    %40 = arith.index_cast %39 : i32 to index
    %c2_27 = arith.constant 2 : index
    %c0_28 = arith.constant 0 : index
    %41 = vector.load %arg2[%c0_26, %40, %c2_27, %c0_28] : memref<1x20x20x8xbf16, #tpu.memory_space<vmem>>, vector<1x8x16x8xbf16>
    %42 = vector.shape_cast %41 : vector<1x8x16x8xbf16> to vector<8x16x8xbf16>
    %43 = vector.shape_cast %42 : vector<8x16x8xbf16> to vector<128x8xbf16>
    %c4_29 = arith.constant 4 : index
    %c0_30 = arith.constant 0 : index
    %c0_31 = arith.constant 0 : index
    %44 = vector.load %arg3[%c4_29, %c0_30, %c0_31] : memref<9x8x64xbf16, #tpu.memory_space<vmem>>, vector<1x8x64xbf16>
    %45 = vector.shape_cast %44 : vector<1x8x64xbf16> to vector<8x64xbf16>
    %cst_32 = arith.constant dense<0.000000e+00> : vector<128x64xf32>
    %46 = tpu.matmul %43, %45, %cst_32 {dimension_numbers = #tpu.dot_dimension_numbers<[1], [0], [0], [1], [0, 0, 1, 1], [], []>} : vector<128x8xbf16>, vector<8x64xbf16>, vector<128x64xf32> -> vector<128x64xf32>
    %47 = arith.addf %38, %46 : vector<128x64xf32>
    %c2_i32_33 = arith.constant 2 : i32
    %48 = arith.addi %1, %c2_i32_33 : i32
    %c0_34 = arith.constant 0 : index
    %49 = arith.index_cast %48 : i32 to index
    %c4_35 = arith.constant 4 : index
    %c0_36 = arith.constant 0 : index
    %50 = vector.load %arg2[%c0_34, %49, %c4_35, %c0_36] : memref<1x20x20x8xbf16, #tpu.memory_space<vmem>>, vector<1x8x16x8xbf16>
    %51 = vector.shape_cast %50 : vector<1x8x16x8xbf16> to vector<8x16x8xbf16>
    %52 = vector.shape_cast %51 : vector<8x16x8xbf16> to vector<128x8xbf16>
    %c5 = arith.constant 5 : index
    %c0_37 = arith.constant 0 : index
    %c0_38 = arith.constant 0 : index
    %53 = vector.load %arg3[%c5, %c0_37, %c0_38] : memref<9x8x64xbf16, #tpu.memory_space<vmem>>, vector<1x8x64xbf16>
    %54 = vector.shape_cast %53 : vector<1x8x64xbf16> to vector<8x64xbf16>
    %cst_39 = arith.constant dense<0.000000e+00> : vector<128x64xf32>
    %55 = tpu.matmul %52, %54, %cst_39 {dimension_numbers = #tpu.dot_dimension_numbers<[1], [0], [0], [1], [0, 0, 1, 1], [], []>} : vector<128x8xbf16>, vector<8x64xbf16>, vector<128x64xf32> -> vector<128x64xf32>
    %56 = arith.addf %47, %55 : vector<128x64xf32>
    %c4_i32 = arith.constant 4 : i32
    %57 = arith.addi %1, %c4_i32 : i32
    %c0_40 = arith.constant 0 : index
    %58 = arith.index_cast %57 : i32 to index
    %c0_41 = arith.constant 0 : index
    %c0_42 = arith.constant 0 : index
    %59 = vector.load %arg2[%c0_40, %58, %c0_41, %c0_42] : memref<1x20x20x8xbf16, #tpu.memory_space<vmem>>, vector<1x8x16x8xbf16>
    %60 = vector.shape_cast %59 : vector<1x8x16x8xbf16> to vector<8x16x8xbf16>
    %61 = vector.shape_cast %60 : vector<8x16x8xbf16> to vector<128x8xbf16>
    %c6 = arith.constant 6 : index
    %c0_43 = arith.constant 0 : index
    %c0_44 = arith.constant 0 : index
    %62 = vector.load %arg3[%c6, %c0_43, %c0_44] : memref<9x8x64xbf16, #tpu.memory_space<vmem>>, vector<1x8x64xbf16>
    %63 = vector.shape_cast %62 : vector<1x8x64xbf16> to vector<8x64xbf16>
    %cst_45 = arith.constant dense<0.000000e+00> : vector<128x64xf32>
    %64 = tpu.matmul %61, %63, %cst_45 {dimension_numbers = #tpu.dot_dimension_numbers<[1], [0], [0], [1], [0, 0, 1, 1], [], []>} : vector<128x8xbf16>, vector<8x64xbf16>, vector<128x64xf32> -> vector<128x64xf32>
    %65 = arith.addf %56, %64 : vector<128x64xf32>
    %c4_i32_46 = arith.constant 4 : i32
    %66 = arith.addi %1, %c4_i32_46 : i32
    %c0_47 = arith.constant 0 : index
    %67 = arith.index_cast %66 : i32 to index
    %c2_48 = arith.constant 2 : index
    %c0_49 = arith.constant 0 : index
    %68 = vector.load %arg2[%c0_47, %67, %c2_48, %c0_49] : memref<1x20x20x8xbf16, #tpu.memory_space<vmem>>, vector<1x8x16x8xbf16>
    %69 = vector.shape_cast %68 : vector<1x8x16x8xbf16> to vector<8x16x8xbf16>
    %70 = vector.shape_cast %69 : vector<8x16x8xbf16> to vector<128x8xbf16>
    %c7 = arith.constant 7 : index
    %c0_50 = arith.constant 0 : index
    %c0_51 = arith.constant 0 : index
    %71 = vector.load %arg3[%c7, %c0_50, %c0_51] : memref<9x8x64xbf16, #tpu.memory_space<vmem>>, vector<1x8x64xbf16>
    %72 = vector.shape_cast %71 : vector<1x8x64xbf16> to vector<8x64xbf16>
    %cst_52 = arith.constant dense<0.000000e+00> : vector<128x64xf32>
    %73 = tpu.matmul %70, %72, %cst_52 {dimension_numbers = #tpu.dot_dimension_numbers<[1], [0], [0], [1], [0, 0, 1, 1], [], []>} : vector<128x8xbf16>, vector<8x64xbf16>, vector<128x64xf32> -> vector<128x64xf32>
    %74 = arith.addf %65, %73 : vector<128x64xf32>
    %c4_i32_53 = arith.constant 4 : i32
    %75 = arith.addi %1, %c4_i32_53 : i32
    %c0_54 = arith.constant 0 : index
    %76 = arith.index_cast %75 : i32 to index
    %c4_55 = arith.constant 4 : index
    %c0_56 = arith.constant 0 : index
    %77 = vector.load %arg2[%c0_54, %76, %c4_55, %c0_56] : memref<1x20x20x8xbf16, #tpu.memory_space<vmem>>, vector<1x8x16x8xbf16>
    %78 = vector.shape_cast %77 : vector<1x8x16x8xbf16> to vector<8x16x8xbf16>
    %79 = vector.shape_cast %78 : vector<8x16x8xbf16> to vector<128x8xbf16>
    %c8 = arith.constant 8 : index
    %c0_57 = arith.constant 0 : index
    %c0_58 = arith.constant 0 : index
    %80 = vector.load %arg3[%c8, %c0_57, %c0_58] : memref<9x8x64xbf16, #tpu.memory_space<vmem>>, vector<1x8x64xbf16>
    %81 = vector.shape_cast %80 : vector<1x8x64xbf16> to vector<8x64xbf16>
    %cst_59 = arith.constant dense<0.000000e+00> : vector<128x64xf32>
    %82 = tpu.matmul %79, %81, %cst_59 {dimension_numbers = #tpu.dot_dimension_numbers<[1], [0], [0], [1], [0, 0, 1, 1], [], []>} : vector<128x8xbf16>, vector<8x64xbf16>, vector<128x64xf32> -> vector<128x64xf32>
    %83 = arith.addf %74, %82 : vector<128x64xf32>
    %c0_60 = arith.constant 0 : index
    %c0_61 = arith.constant 0 : index
    %c0_62 = arith.constant 0 : index
    %84 = vector.load %arg4[%c0_60, %c0_61, %c0_62] : memref<1x128x64xf32, #tpu.memory_space<vmem>>, vector<1x128x64xf32>
    %85 = vector.shape_cast %84 : vector<1x128x64xf32> to vector<128x64xf32>
    %86 = vector.shape_cast %83 : vector<128x64xf32> to vector<1x128x64xf32>
    tpu.vector_store %arg4[%c0_60, %c0_61, %c0_62], %86 {strides = array<i32>} : memref<1x128x64xf32, #tpu.memory_space<vmem>>, vector<1x128x64xf32>,
    return
  }
  func.func @transform_0(%arg0: i32, %arg1: i32) -> (i32, i32, i32, i32) {
    %c0_i32 = arith.constant 0 : i32
    %c0_i32_0 = arith.constant 0 : i32
    %c0_i32_1 = arith.constant 0 : i32
    %c0_i32_2 = arith.constant 0 : i32
    return %arg0, %c0_i32, %c0_i32_0, %c0_i32_1 : i32, i32, i32, i32
  }
  func.func @transform_1(%arg0: i32, %arg1: i32) -> (i32, i32, i32) {
    %c0_i32 = arith.constant 0 : i32
    %c0_i32_0 = arith.constant 0 : i32
    %c0_i32_1 = arith.constant 0 : i32
    %c0_i32_2 = arith.constant 0 : i32
    return %c0_i32, %c0_i32_0, %c0_i32_1 : i32, i32, i32
  }
  func.func @transform_2(%arg0: i32, %arg1: i32) -> (i32, i32, i32) {
    %c0_i32 = arith.constant 0 : i32
    %c0_i32_0 = arith.constant 0 : i32
    return %arg0, %arg1, %c0_i32 : i32, i32, i32
  }
}

module attributes {stable_mosaic.version = 11 : i64} {
  func.func @_mm_chain_kernel(%arg0: i32, %arg1: memref<256x256xbf16, #tpu.memory_space<vmem>>, %arg2: memref<256x32xbf16, #tpu.memory_space<vmem>>, %arg3: memref<32x64xbf16, #tpu.memory_space<vmem>>, %arg4: memref<256x64xbf16, #tpu.memory_space<vmem>>) attributes {dimension_semantics = [#tpu.dimension_semantics<parallel>], iteration_bounds = array<i64: 1>, scalar_prefetch = 0 : i64, scratch_operands = 0 : i64, tpu.core_type = #tpu.core_type<tc>, window_params = [{transform_indices = @transform_0, window_bounds = array<i64: 256, 256>}, {pipeline_mode = #tpu.pipeline_mode<synchronous>, transform_indices = @transform_1, window_bounds = array<i64: 256, 32>}, {pipeline_mode = #tpu.pipeline_mode<synchronous>, transform_indices = @transform_2, window_bounds = array<i64: 32, 64>}, {transform_indices = @transform_3, window_bounds = array<i64: 256, 64>}]} {
    %c0 = arith.constant 0 : index
    %c0_0 = arith.constant 0 : index
    %0 = vector.load %arg1[%c0, %c0_0] : memref<256x256xbf16, #tpu.memory_space<vmem>>, vector<256x256xbf16>
    %c0_1 = arith.constant 0 : index
    %c0_2 = arith.constant 0 : index
    %1 = vector.load %arg2[%c0_1, %c0_2] : memref<256x32xbf16, #tpu.memory_space<vmem>>, vector<256x32xbf16>
    %cst = arith.constant dense<0.000000e+00> : vector<256x32xf32>
    %2 = tpu.matmul %0, %1, %cst {dimension_numbers = #tpu.dot_dimension_numbers<[1], [0], [0], [1], [0, 0, 1, 1], [], []>} : vector<256x256xbf16>, vector<256x32xbf16>, vector<256x32xf32> -> vector<256x32xf32>
    %cst_3 = arith.constant 1.000000e-01 : f32
    %3 = vector.broadcast %cst_3 : f32 to vector<256x32xf32>
    %4 = arith.mulf %3, %2 : vector<256x32xf32>
    %5 = arith.maximumf %2, %4 : vector<256x32xf32>
    %6 = arith.truncf %5 : vector<256x32xf32> to vector<256x32xbf16>
    %c0_4 = arith.constant 0 : index
    %c0_5 = arith.constant 0 : index
    %7 = vector.load %arg3[%c0_4, %c0_5] : memref<32x64xbf16, #tpu.memory_space<vmem>>, vector<32x64xbf16>
    %cst_6 = arith.constant dense<0.000000e+00> : vector<256x64xf32>
    %8 = tpu.matmul %6, %7, %cst_6 {dimension_numbers = #tpu.dot_dimension_numbers<[1], [0], [0], [1], [0, 0, 1, 1], [], []>} : vector<256x32xbf16>, vector<32x64xbf16>, vector<256x64xf32> -> vector<256x64xf32>
    %cst_7 = arith.constant 1.000000e-01 : f32
    %9 = vector.broadcast %cst_7 : f32 to vector<256x64xf32>
    %10 = arith.mulf %9, %8 : vector<256x64xf32>
    %11 = arith.maximumf %8, %10 : vector<256x64xf32>
    %12 = arith.truncf %11 : vector<256x64xf32> to vector<256x64xbf16>
    %c0_8 = arith.constant 0 : index
    %c0_9 = arith.constant 0 : index
    %13 = vector.load %arg4[%c0_8, %c0_9] : memref<256x64xbf16, #tpu.memory_space<vmem>>, vector<256x64xbf16>
    tpu.vector_store %arg4[%c0_8, %c0_9], %12 {strides = array<i32>} : memref<256x64xbf16, #tpu.memory_space<vmem>>, vector<256x64xbf16>,
    return
  }
  func.func @transform_0(%arg0: i32) -> (i32, i32) {
    %c0_i32 = arith.constant 0 : i32
    %c0_i32_0 = arith.constant 0 : i32
    return %arg0, %c0_i32 : i32, i32
  }
  func.func @transform_1(%arg0: i32) -> (i32, i32) {
    %c0_i32 = arith.constant 0 : i32
    %c0_i32_0 = arith.constant 0 : i32
    %c0_i32_1 = arith.constant 0 : i32
    return %c0_i32, %c0_i32_0 : i32, i32
  }
  func.func @transform_2(%arg0: i32) -> (i32, i32) {
    %c0_i32 = arith.constant 0 : i32
    %c0_i32_0 = arith.constant 0 : i32
    %c0_i32_1 = arith.constant 0 : i32
    return %c0_i32, %c0_i32_0 : i32, i32
  }
  func.func @transform_3(%arg0: i32) -> (i32, i32) {
    %c0_i32 = arith.constant 0 : i32
    %c0_i32_0 = arith.constant 0 : i32
    return %arg0, %c0_i32 : i32, i32
  }
}

module attributes {stable_mosaic.version = 11 : i64} {
  func.func @_dil_kernel(%arg0: i32, %arg1: i32, %arg2: memref<1x20x20x64xbf16, #tpu.memory_space<vmem>>, %arg3: memref<9x64x64xbf16, #tpu.memory_space<vmem>>, %arg4: memref<1x128x64xbf16, #tpu.memory_space<vmem>>) attributes {dimension_semantics = [#tpu.dimension_semantics<parallel>, #tpu.dimension_semantics<parallel>], iteration_bounds = array<i64: 2, 2>, scalar_prefetch = 0 : i64, scratch_operands = 0 : i64, tpu.core_type = #tpu.core_type<tc>, window_params = [{transform_indices = @transform_0, window_bounds = array<i64: 1, 20, 20, 64>}, {pipeline_mode = #tpu.pipeline_mode<synchronous>, transform_indices = @transform_1, window_bounds = array<i64: 9, 64, 64>}, {transform_indices = @transform_2, window_bounds = array<i64: 1, 128, 64>}]} {
    %c8_i32 = arith.constant 8 : i32
    %0 = arith.muli %arg1, %c8_i32 : i32
    %1 = tpu.assume_multiple %0, 8 : i32
    %cst = arith.constant 0.000000e+00 : f32
    %2 = vector.broadcast %cst : f32 to vector<128x64xf32>
    %c0_i32 = arith.constant 0 : i32
    %3 = arith.addi %1, %c0_i32 : i32
    %c0 = arith.constant 0 : index
    %4 = arith.index_cast %3 : i32 to index
    %c0_0 = arith.constant 0 : index
    %c0_1 = arith.constant 0 : index
    %5 = vector.load %arg2[%c0, %4, %c0_0, %c0_1] : memref<1x20x20x64xbf16, #tpu.memory_space<vmem>>, vector<1x8x16x64xbf16>
    %6 = vector.shape_cast %5 : vector<1x8x16x64xbf16> to vector<8x16x64xbf16>
    %7 = vector.shape_cast %6 : vector<8x16x64xbf16> to vector<128x64xbf16>
    %c0_2 = arith.constant 0 : index
    %c0_3 = arith.constant 0 : index
    %c0_4 = arith.constant 0 : index
    %8 = vector.load %arg3[%c0_2, %c0_3, %c0_4] : memref<9x64x64xbf16, #tpu.memory_space<vmem>>, vector<1x64x64xbf16>
    %9 = vector.shape_cast %8 : vector<1x64x64xbf16> to vector<64x64xbf16>
    %cst_5 = arith.constant dense<0.000000e+00> : vector<128x64xf32>
    %10 = tpu.matmul %7, %9, %cst_5 {dimension_numbers = #tpu.dot_dimension_numbers<[1], [0], [0], [1], [0, 0, 1, 1], [], []>} : vector<128x64xbf16>, vector<64x64xbf16>, vector<128x64xf32> -> vector<128x64xf32>
    %11 = arith.addf %2, %10 : vector<128x64xf32>
    %c0_i32_6 = arith.constant 0 : i32
    %12 = arith.addi %1, %c0_i32_6 : i32
    %c0_7 = arith.constant 0 : index
    %13 = arith.index_cast %12 : i32 to index
    %c2 = arith.constant 2 : index
    %c0_8 = arith.constant 0 : index
    %14 = vector.load %arg2[%c0_7, %13, %c2, %c0_8] : memref<1x20x20x64xbf16, #tpu.memory_space<vmem>>, vector<1x8x16x64xbf16>
    %15 = vector.shape_cast %14 : vector<1x8x16x64xbf16> to vector<8x16x64xbf16>
    %16 = vector.shape_cast %15 : vector<8x16x64xbf16> to vector<128x64xbf16>
    %c1 = arith.constant 1 : index
    %c0_9 = arith.constant 0 : index
    %c0_10 = arith.constant 0 : index
    %17 = vector.load %arg3[%c1, %c0_9, %c0_10] : memref<9x64x64xbf16, #tpu.memory_space<vmem>>, vector<1x64x64xbf16>
    %18 = vector.shape_cast %17 : vector<1x64x64xbf16> to vector<64x64xbf16>
    %cst_11 = arith.constant dense<0.000000e+00> : vector<128x64xf32>
    %19 = tpu.matmul %16, %18, %cst_11 {dimension_numbers = #tpu.dot_dimension_numbers<[1], [0], [0], [1], [0, 0, 1, 1], [], []>} : vector<128x64xbf16>, vector<64x64xbf16>, vector<128x64xf32> -> vector<128x64xf32>
    %20 = arith.addf %11, %19 : vector<128x64xf32>
    %c0_i32_12 = arith.constant 0 : i32
    %21 = arith.addi %1, %c0_i32_12 : i32
    %c0_13 = arith.constant 0 : index
    %22 = arith.index_cast %21 : i32 to index
    %c4 = arith.constant 4 : index
    %c0_14 = arith.constant 0 : index
    %23 = vector.load %arg2[%c0_13, %22, %c4, %c0_14] : memref<1x20x20x64xbf16, #tpu.memory_space<vmem>>, vector<1x8x16x64xbf16>
    %24 = vector.shape_cast %23 : vector<1x8x16x64xbf16> to vector<8x16x64xbf16>
    %25 = vector.shape_cast %24 : vector<8x16x64xbf16> to vector<128x64xbf16>
    %c2_15 = arith.constant 2 : index
    %c0_16 = arith.constant 0 : index
    %c0_17 = arith.constant 0 : index
    %26 = vector.load %arg3[%c2_15, %c0_16, %c0_17] : memref<9x64x64xbf16, #tpu.memory_space<vmem>>, vector<1x64x64xbf16>
    %27 = vector.shape_cast %26 : vector<1x64x64xbf16> to vector<64x64xbf16>
    %cst_18 = arith.constant dense<0.000000e+00> : vector<128x64xf32>
    %28 = tpu.matmul %25, %27, %cst_18 {dimension_numbers = #tpu.dot_dimension_numbers<[1], [0], [0], [1], [0, 0, 1, 1], [], []>} : vector<128x64xbf16>, vector<64x64xbf16>, vector<128x64xf32> -> vector<128x64xf32>
    %29 = arith.addf %20, %28 : vector<128x64xf32>
    %c2_i32 = arith.constant 2 : i32
    %30 = arith.addi %1, %c2_i32 : i32
    %c0_19 = arith.constant 0 : index
    %31 = arith.index_cast %30 : i32 to index
    %c0_20 = arith.constant 0 : index
    %c0_21 = arith.constant 0 : index
    %32 = vector.load %arg2[%c0_19, %31, %c0_20, %c0_21] : memref<1x20x20x64xbf16, #tpu.memory_space<vmem>>, vector<1x8x16x64xbf16>
    %33 = vector.shape_cast %32 : vector<1x8x16x64xbf16> to vector<8x16x64xbf16>
    %34 = vector.shape_cast %33 : vector<8x16x64xbf16> to vector<128x64xbf16>
    %c3 = arith.constant 3 : index
    %c0_22 = arith.constant 0 : index
    %c0_23 = arith.constant 0 : index
    %35 = vector.load %arg3[%c3, %c0_22, %c0_23] : memref<9x64x64xbf16, #tpu.memory_space<vmem>>, vector<1x64x64xbf16>
    %36 = vector.shape_cast %35 : vector<1x64x64xbf16> to vector<64x64xbf16>
    %cst_24 = arith.constant dense<0.000000e+00> : vector<128x64xf32>
    %37 = tpu.matmul %34, %36, %cst_24 {dimension_numbers = #tpu.dot_dimension_numbers<[1], [0], [0], [1], [0, 0, 1, 1], [], []>} : vector<128x64xbf16>, vector<64x64xbf16>, vector<128x64xf32> -> vector<128x64xf32>
    %38 = arith.addf %29, %37 : vector<128x64xf32>
    %c2_i32_25 = arith.constant 2 : i32
    %39 = arith.addi %1, %c2_i32_25 : i32
    %c0_26 = arith.constant 0 : index
    %40 = arith.index_cast %39 : i32 to index
    %c2_27 = arith.constant 2 : index
    %c0_28 = arith.constant 0 : index
    %41 = vector.load %arg2[%c0_26, %40, %c2_27, %c0_28] : memref<1x20x20x64xbf16, #tpu.memory_space<vmem>>, vector<1x8x16x64xbf16>
    %42 = vector.shape_cast %41 : vector<1x8x16x64xbf16> to vector<8x16x64xbf16>
    %43 = vector.shape_cast %42 : vector<8x16x64xbf16> to vector<128x64xbf16>
    %c4_29 = arith.constant 4 : index
    %c0_30 = arith.constant 0 : index
    %c0_31 = arith.constant 0 : index
    %44 = vector.load %arg3[%c4_29, %c0_30, %c0_31] : memref<9x64x64xbf16, #tpu.memory_space<vmem>>, vector<1x64x64xbf16>
    %45 = vector.shape_cast %44 : vector<1x64x64xbf16> to vector<64x64xbf16>
    %cst_32 = arith.constant dense<0.000000e+00> : vector<128x64xf32>
    %46 = tpu.matmul %43, %45, %cst_32 {dimension_numbers = #tpu.dot_dimension_numbers<[1], [0], [0], [1], [0, 0, 1, 1], [], []>} : vector<128x64xbf16>, vector<64x64xbf16>, vector<128x64xf32> -> vector<128x64xf32>
    %47 = arith.addf %38, %46 : vector<128x64xf32>
    %c2_i32_33 = arith.constant 2 : i32
    %48 = arith.addi %1, %c2_i32_33 : i32
    %c0_34 = arith.constant 0 : index
    %49 = arith.index_cast %48 : i32 to index
    %c4_35 = arith.constant 4 : index
    %c0_36 = arith.constant 0 : index
    %50 = vector.load %arg2[%c0_34, %49, %c4_35, %c0_36] : memref<1x20x20x64xbf16, #tpu.memory_space<vmem>>, vector<1x8x16x64xbf16>
    %51 = vector.shape_cast %50 : vector<1x8x16x64xbf16> to vector<8x16x64xbf16>
    %52 = vector.shape_cast %51 : vector<8x16x64xbf16> to vector<128x64xbf16>
    %c5 = arith.constant 5 : index
    %c0_37 = arith.constant 0 : index
    %c0_38 = arith.constant 0 : index
    %53 = vector.load %arg3[%c5, %c0_37, %c0_38] : memref<9x64x64xbf16, #tpu.memory_space<vmem>>, vector<1x64x64xbf16>
    %54 = vector.shape_cast %53 : vector<1x64x64xbf16> to vector<64x64xbf16>
    %cst_39 = arith.constant dense<0.000000e+00> : vector<128x64xf32>
    %55 = tpu.matmul %52, %54, %cst_39 {dimension_numbers = #tpu.dot_dimension_numbers<[1], [0], [0], [1], [0, 0, 1, 1], [], []>} : vector<128x64xbf16>, vector<64x64xbf16>, vector<128x64xf32> -> vector<128x64xf32>
    %56 = arith.addf %47, %55 : vector<128x64xf32>
    %c4_i32 = arith.constant 4 : i32
    %57 = arith.addi %1, %c4_i32 : i32
    %c0_40 = arith.constant 0 : index
    %58 = arith.index_cast %57 : i32 to index
    %c0_41 = arith.constant 0 : index
    %c0_42 = arith.constant 0 : index
    %59 = vector.load %arg2[%c0_40, %58, %c0_41, %c0_42] : memref<1x20x20x64xbf16, #tpu.memory_space<vmem>>, vector<1x8x16x64xbf16>
    %60 = vector.shape_cast %59 : vector<1x8x16x64xbf16> to vector<8x16x64xbf16>
    %61 = vector.shape_cast %60 : vector<8x16x64xbf16> to vector<128x64xbf16>
    %c6 = arith.constant 6 : index
    %c0_43 = arith.constant 0 : index
    %c0_44 = arith.constant 0 : index
    %62 = vector.load %arg3[%c6, %c0_43, %c0_44] : memref<9x64x64xbf16, #tpu.memory_space<vmem>>, vector<1x64x64xbf16>
    %63 = vector.shape_cast %62 : vector<1x64x64xbf16> to vector<64x64xbf16>
    %cst_45 = arith.constant dense<0.000000e+00> : vector<128x64xf32>
    %64 = tpu.matmul %61, %63, %cst_45 {dimension_numbers = #tpu.dot_dimension_numbers<[1], [0], [0], [1], [0, 0, 1, 1], [], []>} : vector<128x64xbf16>, vector<64x64xbf16>, vector<128x64xf32> -> vector<128x64xf32>
    %65 = arith.addf %56, %64 : vector<128x64xf32>
    %c4_i32_46 = arith.constant 4 : i32
    %66 = arith.addi %1, %c4_i32_46 : i32
    %c0_47 = arith.constant 0 : index
    %67 = arith.index_cast %66 : i32 to index
    %c2_48 = arith.constant 2 : index
    %c0_49 = arith.constant 0 : index
    %68 = vector.load %arg2[%c0_47, %67, %c2_48, %c0_49] : memref<1x20x20x64xbf16, #tpu.memory_space<vmem>>, vector<1x8x16x64xbf16>
    %69 = vector.shape_cast %68 : vector<1x8x16x64xbf16> to vector<8x16x64xbf16>
    %70 = vector.shape_cast %69 : vector<8x16x64xbf16> to vector<128x64xbf16>
    %c7 = arith.constant 7 : index
    %c0_50 = arith.constant 0 : index
    %c0_51 = arith.constant 0 : index
    %71 = vector.load %arg3[%c7, %c0_50, %c0_51] : memref<9x64x64xbf16, #tpu.memory_space<vmem>>, vector<1x64x64xbf16>
    %72 = vector.shape_cast %71 : vector<1x64x64xbf16> to vector<64x64xbf16>
    %cst_52 = arith.constant dense<0.000000e+00> : vector<128x64xf32>
    %73 = tpu.matmul %70, %72, %cst_52 {dimension_numbers = #tpu.dot_dimension_numbers<[1], [0], [0], [1], [0, 0, 1, 1], [], []>} : vector<128x64xbf16>, vector<64x64xbf16>, vector<128x64xf32> -> vector<128x64xf32>
    %74 = arith.addf %65, %73 : vector<128x64xf32>
    %c4_i32_53 = arith.constant 4 : i32
    %75 = arith.addi %1, %c4_i32_53 : i32
    %c0_54 = arith.constant 0 : index
    %76 = arith.index_cast %75 : i32 to index
    %c4_55 = arith.constant 4 : index
    %c0_56 = arith.constant 0 : index
    %77 = vector.load %arg2[%c0_54, %76, %c4_55, %c0_56] : memref<1x20x20x64xbf16, #tpu.memory_space<vmem>>, vector<1x8x16x64xbf16>
    %78 = vector.shape_cast %77 : vector<1x8x16x64xbf16> to vector<8x16x64xbf16>
    %79 = vector.shape_cast %78 : vector<8x16x64xbf16> to vector<128x64xbf16>
    %c8 = arith.constant 8 : index
    %c0_57 = arith.constant 0 : index
    %c0_58 = arith.constant 0 : index
    %80 = vector.load %arg3[%c8, %c0_57, %c0_58] : memref<9x64x64xbf16, #tpu.memory_space<vmem>>, vector<1x64x64xbf16>
    %81 = vector.shape_cast %80 : vector<1x64x64xbf16> to vector<64x64xbf16>
    %cst_59 = arith.constant dense<0.000000e+00> : vector<128x64xf32>
    %82 = tpu.matmul %79, %81, %cst_59 {dimension_numbers = #tpu.dot_dimension_numbers<[1], [0], [0], [1], [0, 0, 1, 1], [], []>} : vector<128x64xbf16>, vector<64x64xbf16>, vector<128x64xf32> -> vector<128x64xf32>
    %83 = arith.addf %74, %82 : vector<128x64xf32>
    %cst_60 = arith.constant 1.000000e-01 : f32
    %84 = vector.broadcast %cst_60 : f32 to vector<128x64xf32>
    %85 = arith.mulf %84, %83 : vector<128x64xf32>
    %86 = arith.maximumf %83, %85 : vector<128x64xf32>
    %87 = arith.truncf %86 : vector<128x64xf32> to vector<128x64xbf16>
    %c0_61 = arith.constant 0 : index
    %c0_62 = arith.constant 0 : index
    %c0_63 = arith.constant 0 : index
    %88 = vector.load %arg4[%c0_61, %c0_62, %c0_63] : memref<1x128x64xbf16, #tpu.memory_space<vmem>>, vector<1x128x64xbf16>
    %89 = vector.shape_cast %88 : vector<1x128x64xbf16> to vector<128x64xbf16>
    %90 = vector.shape_cast %87 : vector<128x64xbf16> to vector<1x128x64xbf16>
    tpu.vector_store %arg4[%c0_61, %c0_62, %c0_63], %90 {strides = array<i32>} : memref<1x128x64xbf16, #tpu.memory_space<vmem>>, vector<1x128x64xbf16>,
    return
  }
  func.func @transform_0(%arg0: i32, %arg1: i32) -> (i32, i32, i32, i32) {
    %c0_i32 = arith.constant 0 : i32
    %c0_i32_0 = arith.constant 0 : i32
    %c0_i32_1 = arith.constant 0 : i32
    %c0_i32_2 = arith.constant 0 : i32
    return %arg0, %c0_i32, %c0_i32_0, %c0_i32_1 : i32, i32, i32, i32
  }
  func.func @transform_1(%arg0: i32, %arg1: i32) -> (i32, i32, i32) {
    %c0_i32 = arith.constant 0 : i32
    %c0_i32_0 = arith.constant 0 : i32
    %c0_i32_1 = arith.constant 0 : i32
    %c0_i32_2 = arith.constant 0 : i32
    return %c0_i32, %c0_i32_0, %c0_i32_1 : i32, i32, i32
  }
  func.func @transform_2(%arg0: i32, %arg1: i32) -> (i32, i32, i32) {
    %c0_i32 = arith.constant 0 : i32
    %c0_i32_0 = arith.constant 0 : i32
    return %arg0, %arg1, %c0_i32 : i32, i32, i32
  }
}

module attributes {stable_mosaic.version = 11 : i64} {
  func.func @_mm_chain_kernel(%arg0: i32, %arg1: memref<128x256xbf16, #tpu.memory_space<vmem>>, %arg2: memref<256x16xbf16, #tpu.memory_space<vmem>>, %arg3: memref<16x64xbf16, #tpu.memory_space<vmem>>, %arg4: memref<128x64xbf16, #tpu.memory_space<vmem>>) attributes {dimension_semantics = [#tpu.dimension_semantics<parallel>], iteration_bounds = array<i64: 1>, scalar_prefetch = 0 : i64, scratch_operands = 0 : i64, tpu.core_type = #tpu.core_type<tc>, window_params = [{transform_indices = @transform_0, window_bounds = array<i64: 128, 256>}, {pipeline_mode = #tpu.pipeline_mode<synchronous>, transform_indices = @transform_1, window_bounds = array<i64: 256, 16>}, {pipeline_mode = #tpu.pipeline_mode<synchronous>, transform_indices = @transform_2, window_bounds = array<i64: 16, 64>}, {transform_indices = @transform_3, window_bounds = array<i64: 128, 64>}]} {
    %c0 = arith.constant 0 : index
    %c0_0 = arith.constant 0 : index
    %0 = vector.load %arg1[%c0, %c0_0] : memref<128x256xbf16, #tpu.memory_space<vmem>>, vector<128x256xbf16>
    %c0_1 = arith.constant 0 : index
    %c0_2 = arith.constant 0 : index
    %1 = vector.load %arg2[%c0_1, %c0_2] : memref<256x16xbf16, #tpu.memory_space<vmem>>, vector<256x16xbf16>
    %cst = arith.constant dense<0.000000e+00> : vector<128x16xf32>
    %2 = tpu.matmul %0, %1, %cst {dimension_numbers = #tpu.dot_dimension_numbers<[1], [0], [0], [1], [0, 0, 1, 1], [], []>} : vector<128x256xbf16>, vector<256x16xbf16>, vector<128x16xf32> -> vector<128x16xf32>
    %cst_3 = arith.constant 1.000000e-01 : f32
    %3 = vector.broadcast %cst_3 : f32 to vector<128x16xf32>
    %4 = arith.mulf %3, %2 : vector<128x16xf32>
    %5 = arith.maximumf %2, %4 : vector<128x16xf32>
    %6 = arith.truncf %5 : vector<128x16xf32> to vector<128x16xbf16>
    %c0_4 = arith.constant 0 : index
    %c0_5 = arith.constant 0 : index
    %7 = vector.load %arg3[%c0_4, %c0_5] : memref<16x64xbf16, #tpu.memory_space<vmem>>, vector<16x64xbf16>
    %cst_6 = arith.constant dense<0.000000e+00> : vector<128x64xf32>
    %8 = tpu.matmul %6, %7, %cst_6 {dimension_numbers = #tpu.dot_dimension_numbers<[1], [0], [0], [1], [0, 0, 1, 1], [], []>} : vector<128x16xbf16>, vector<16x64xbf16>, vector<128x64xf32> -> vector<128x64xf32>
    %cst_7 = arith.constant 1.000000e-01 : f32
    %9 = vector.broadcast %cst_7 : f32 to vector<128x64xf32>
    %10 = arith.mulf %9, %8 : vector<128x64xf32>
    %11 = arith.maximumf %8, %10 : vector<128x64xf32>
    %12 = arith.truncf %11 : vector<128x64xf32> to vector<128x64xbf16>
    %c0_8 = arith.constant 0 : index
    %c0_9 = arith.constant 0 : index
    %13 = vector.load %arg4[%c0_8, %c0_9] : memref<128x64xbf16, #tpu.memory_space<vmem>>, vector<128x64xbf16>
    tpu.vector_store %arg4[%c0_8, %c0_9], %12 {strides = array<i32>} : memref<128x64xbf16, #tpu.memory_space<vmem>>, vector<128x64xbf16>,
    return
  }
  func.func @transform_0(%arg0: i32) -> (i32, i32) {
    %c0_i32 = arith.constant 0 : i32
    %c0_i32_0 = arith.constant 0 : i32
    return %arg0, %c0_i32 : i32, i32
  }
  func.func @transform_1(%arg0: i32) -> (i32, i32) {
    %c0_i32 = arith.constant 0 : i32
    %c0_i32_0 = arith.constant 0 : i32
    %c0_i32_1 = arith.constant 0 : i32
    return %c0_i32, %c0_i32_0 : i32, i32
  }
  func.func @transform_2(%arg0: i32) -> (i32, i32) {
    %c0_i32 = arith.constant 0 : i32
    %c0_i32_0 = arith.constant 0 : i32
    %c0_i32_1 = arith.constant 0 : i32
    return %c0_i32, %c0_i32_0 : i32, i32
  }
  func.func @transform_3(%arg0: i32) -> (i32, i32) {
    %c0_i32 = arith.constant 0 : i32
    %c0_i32_0 = arith.constant 0 : i32
    return %arg0, %c0_i32 : i32, i32
  }
}

module attributes {stable_mosaic.version = 11 : i64} {
  func.func @_mm_kernel(%arg0: i32, %arg1: memref<512x144xbf16, #tpu.memory_space<vmem>>, %arg2: memref<144x64xbf16, #tpu.memory_space<vmem>>, %arg3: memref<512x64xbf16, #tpu.memory_space<vmem>>) attributes {dimension_semantics = [#tpu.dimension_semantics<parallel>], iteration_bounds = array<i64: 1>, scalar_prefetch = 0 : i64, scratch_operands = 0 : i64, tpu.core_type = #tpu.core_type<tc>, window_params = [{transform_indices = @transform_0, window_bounds = array<i64: 512, 144>}, {pipeline_mode = #tpu.pipeline_mode<synchronous>, transform_indices = @transform_1, window_bounds = array<i64: 144, 64>}, {transform_indices = @transform_2, window_bounds = array<i64: 512, 64>}]} {
    %c0 = arith.constant 0 : index
    %c0_0 = arith.constant 0 : index
    %0 = vector.load %arg1[%c0, %c0_0] : memref<512x144xbf16, #tpu.memory_space<vmem>>, vector<512x144xbf16>
    %c0_1 = arith.constant 0 : index
    %c0_2 = arith.constant 0 : index
    %1 = vector.load %arg2[%c0_1, %c0_2] : memref<144x64xbf16, #tpu.memory_space<vmem>>, vector<144x64xbf16>
    %cst = arith.constant dense<0.000000e+00> : vector<512x64xf32>
    %2 = tpu.matmul %0, %1, %cst {dimension_numbers = #tpu.dot_dimension_numbers<[1], [0], [0], [1], [0, 0, 1, 1], [], []>} : vector<512x144xbf16>, vector<144x64xbf16>, vector<512x64xf32> -> vector<512x64xf32>
    %cst_3 = arith.constant 1.000000e-01 : f32
    %3 = vector.broadcast %cst_3 : f32 to vector<512x64xf32>
    %4 = arith.mulf %3, %2 : vector<512x64xf32>
    %5 = arith.maximumf %2, %4 : vector<512x64xf32>
    %6 = arith.truncf %5 : vector<512x64xf32> to vector<512x64xbf16>
    %c0_4 = arith.constant 0 : index
    %c0_5 = arith.constant 0 : index
    %7 = vector.load %arg3[%c0_4, %c0_5] : memref<512x64xbf16, #tpu.memory_space<vmem>>, vector<512x64xbf16>
    tpu.vector_store %arg3[%c0_4, %c0_5], %6 {strides = array<i32>} : memref<512x64xbf16, #tpu.memory_space<vmem>>, vector<512x64xbf16>,
    return
  }
  func.func @transform_0(%arg0: i32) -> (i32, i32) {
    %c0_i32 = arith.constant 0 : i32
    %c0_i32_0 = arith.constant 0 : i32
    return %arg0, %c0_i32 : i32, i32
  }
  func.func @transform_1(%arg0: i32) -> (i32, i32) {
    %c0_i32 = arith.constant 0 : i32
    %c0_i32_0 = arith.constant 0 : i32
    %c0_i32_1 = arith.constant 0 : i32
    return %c0_i32, %c0_i32_0 : i32, i32
  }
  func.func @transform_2(%arg0: i32) -> (i32, i32) {
    %c0_i32 = arith.constant 0 : i32
    %c0_i32_0 = arith.constant 0 : i32
    return %arg0, %c0_i32 : i32, i32
  }
}

module attributes {stable_mosaic.version = 11 : i64} {
  func.func @_dil_kernel(%arg0: i32, %arg1: i32, %arg2: memref<1x20x20x64xbf16, #tpu.memory_space<vmem>>, %arg3: memref<9x64x64xbf16, #tpu.memory_space<vmem>>, %arg4: memref<1x128x64xf32, #tpu.memory_space<vmem>>, %arg5: memref<1x128x64xf32, #tpu.memory_space<vmem>>) attributes {dimension_semantics = [#tpu.dimension_semantics<parallel>, #tpu.dimension_semantics<parallel>], iteration_bounds = array<i64: 2, 2>, scalar_prefetch = 0 : i64, scratch_operands = 0 : i64, tpu.core_type = #tpu.core_type<tc>, window_params = [{transform_indices = @transform_0, window_bounds = array<i64: 1, 20, 20, 64>}, {pipeline_mode = #tpu.pipeline_mode<synchronous>, transform_indices = @transform_1, window_bounds = array<i64: 9, 64, 64>}, {transform_indices = @transform_2, window_bounds = array<i64: 1, 128, 64>}, {transform_indices = @transform_3, window_bounds = array<i64: 1, 128, 64>}]} {
    %c8_i32 = arith.constant 8 : i32
    %0 = arith.muli %arg1, %c8_i32 : i32
    %1 = tpu.assume_multiple %0, 8 : i32
    %cst = arith.constant 0.000000e+00 : f32
    %2 = vector.broadcast %cst : f32 to vector<128x64xf32>
    %c0_i32 = arith.constant 0 : i32
    %3 = arith.addi %1, %c0_i32 : i32
    %c0 = arith.constant 0 : index
    %4 = arith.index_cast %3 : i32 to index
    %c0_0 = arith.constant 0 : index
    %c0_1 = arith.constant 0 : index
    %5 = vector.load %arg2[%c0, %4, %c0_0, %c0_1] : memref<1x20x20x64xbf16, #tpu.memory_space<vmem>>, vector<1x8x16x64xbf16>
    %6 = vector.shape_cast %5 : vector<1x8x16x64xbf16> to vector<8x16x64xbf16>
    %7 = vector.shape_cast %6 : vector<8x16x64xbf16> to vector<128x64xbf16>
    %c0_2 = arith.constant 0 : index
    %c0_3 = arith.constant 0 : index
    %c0_4 = arith.constant 0 : index
    %8 = vector.load %arg3[%c0_2, %c0_3, %c0_4] : memref<9x64x64xbf16, #tpu.memory_space<vmem>>, vector<1x64x64xbf16>
    %9 = vector.shape_cast %8 : vector<1x64x64xbf16> to vector<64x64xbf16>
    %cst_5 = arith.constant dense<0.000000e+00> : vector<128x64xf32>
    %10 = tpu.matmul %7, %9, %cst_5 {dimension_numbers = #tpu.dot_dimension_numbers<[1], [0], [0], [1], [0, 0, 1, 1], [], []>} : vector<128x64xbf16>, vector<64x64xbf16>, vector<128x64xf32> -> vector<128x64xf32>
    %11 = arith.addf %2, %10 : vector<128x64xf32>
    %c0_i32_6 = arith.constant 0 : i32
    %12 = arith.addi %1, %c0_i32_6 : i32
    %c0_7 = arith.constant 0 : index
    %13 = arith.index_cast %12 : i32 to index
    %c2 = arith.constant 2 : index
    %c0_8 = arith.constant 0 : index
    %14 = vector.load %arg2[%c0_7, %13, %c2, %c0_8] : memref<1x20x20x64xbf16, #tpu.memory_space<vmem>>, vector<1x8x16x64xbf16>
    %15 = vector.shape_cast %14 : vector<1x8x16x64xbf16> to vector<8x16x64xbf16>
    %16 = vector.shape_cast %15 : vector<8x16x64xbf16> to vector<128x64xbf16>
    %c1 = arith.constant 1 : index
    %c0_9 = arith.constant 0 : index
    %c0_10 = arith.constant 0 : index
    %17 = vector.load %arg3[%c1, %c0_9, %c0_10] : memref<9x64x64xbf16, #tpu.memory_space<vmem>>, vector<1x64x64xbf16>
    %18 = vector.shape_cast %17 : vector<1x64x64xbf16> to vector<64x64xbf16>
    %cst_11 = arith.constant dense<0.000000e+00> : vector<128x64xf32>
    %19 = tpu.matmul %16, %18, %cst_11 {dimension_numbers = #tpu.dot_dimension_numbers<[1], [0], [0], [1], [0, 0, 1, 1], [], []>} : vector<128x64xbf16>, vector<64x64xbf16>, vector<128x64xf32> -> vector<128x64xf32>
    %20 = arith.addf %11, %19 : vector<128x64xf32>
    %c0_i32_12 = arith.constant 0 : i32
    %21 = arith.addi %1, %c0_i32_12 : i32
    %c0_13 = arith.constant 0 : index
    %22 = arith.index_cast %21 : i32 to index
    %c4 = arith.constant 4 : index
    %c0_14 = arith.constant 0 : index
    %23 = vector.load %arg2[%c0_13, %22, %c4, %c0_14] : memref<1x20x20x64xbf16, #tpu.memory_space<vmem>>, vector<1x8x16x64xbf16>
    %24 = vector.shape_cast %23 : vector<1x8x16x64xbf16> to vector<8x16x64xbf16>
    %25 = vector.shape_cast %24 : vector<8x16x64xbf16> to vector<128x64xbf16>
    %c2_15 = arith.constant 2 : index
    %c0_16 = arith.constant 0 : index
    %c0_17 = arith.constant 0 : index
    %26 = vector.load %arg3[%c2_15, %c0_16, %c0_17] : memref<9x64x64xbf16, #tpu.memory_space<vmem>>, vector<1x64x64xbf16>
    %27 = vector.shape_cast %26 : vector<1x64x64xbf16> to vector<64x64xbf16>
    %cst_18 = arith.constant dense<0.000000e+00> : vector<128x64xf32>
    %28 = tpu.matmul %25, %27, %cst_18 {dimension_numbers = #tpu.dot_dimension_numbers<[1], [0], [0], [1], [0, 0, 1, 1], [], []>} : vector<128x64xbf16>, vector<64x64xbf16>, vector<128x64xf32> -> vector<128x64xf32>
    %29 = arith.addf %20, %28 : vector<128x64xf32>
    %c2_i32 = arith.constant 2 : i32
    %30 = arith.addi %1, %c2_i32 : i32
    %c0_19 = arith.constant 0 : index
    %31 = arith.index_cast %30 : i32 to index
    %c0_20 = arith.constant 0 : index
    %c0_21 = arith.constant 0 : index
    %32 = vector.load %arg2[%c0_19, %31, %c0_20, %c0_21] : memref<1x20x20x64xbf16, #tpu.memory_space<vmem>>, vector<1x8x16x64xbf16>
    %33 = vector.shape_cast %32 : vector<1x8x16x64xbf16> to vector<8x16x64xbf16>
    %34 = vector.shape_cast %33 : vector<8x16x64xbf16> to vector<128x64xbf16>
    %c3 = arith.constant 3 : index
    %c0_22 = arith.constant 0 : index
    %c0_23 = arith.constant 0 : index
    %35 = vector.load %arg3[%c3, %c0_22, %c0_23] : memref<9x64x64xbf16, #tpu.memory_space<vmem>>, vector<1x64x64xbf16>
    %36 = vector.shape_cast %35 : vector<1x64x64xbf16> to vector<64x64xbf16>
    %cst_24 = arith.constant dense<0.000000e+00> : vector<128x64xf32>
    %37 = tpu.matmul %34, %36, %cst_24 {dimension_numbers = #tpu.dot_dimension_numbers<[1], [0], [0], [1], [0, 0, 1, 1], [], []>} : vector<128x64xbf16>, vector<64x64xbf16>, vector<128x64xf32> -> vector<128x64xf32>
    %38 = arith.addf %29, %37 : vector<128x64xf32>
    %c2_i32_25 = arith.constant 2 : i32
    %39 = arith.addi %1, %c2_i32_25 : i32
    %c0_26 = arith.constant 0 : index
    %40 = arith.index_cast %39 : i32 to index
    %c2_27 = arith.constant 2 : index
    %c0_28 = arith.constant 0 : index
    %41 = vector.load %arg2[%c0_26, %40, %c2_27, %c0_28] : memref<1x20x20x64xbf16, #tpu.memory_space<vmem>>, vector<1x8x16x64xbf16>
    %42 = vector.shape_cast %41 : vector<1x8x16x64xbf16> to vector<8x16x64xbf16>
    %43 = vector.shape_cast %42 : vector<8x16x64xbf16> to vector<128x64xbf16>
    %c4_29 = arith.constant 4 : index
    %c0_30 = arith.constant 0 : index
    %c0_31 = arith.constant 0 : index
    %44 = vector.load %arg3[%c4_29, %c0_30, %c0_31] : memref<9x64x64xbf16, #tpu.memory_space<vmem>>, vector<1x64x64xbf16>
    %45 = vector.shape_cast %44 : vector<1x64x64xbf16> to vector<64x64xbf16>
    %cst_32 = arith.constant dense<0.000000e+00> : vector<128x64xf32>
    %46 = tpu.matmul %43, %45, %cst_32 {dimension_numbers = #tpu.dot_dimension_numbers<[1], [0], [0], [1], [0, 0, 1, 1], [], []>} : vector<128x64xbf16>, vector<64x64xbf16>, vector<128x64xf32> -> vector<128x64xf32>
    %47 = arith.addf %38, %46 : vector<128x64xf32>
    %c2_i32_33 = arith.constant 2 : i32
    %48 = arith.addi %1, %c2_i32_33 : i32
    %c0_34 = arith.constant 0 : index
    %49 = arith.index_cast %48 : i32 to index
    %c4_35 = arith.constant 4 : index
    %c0_36 = arith.constant 0 : index
    %50 = vector.load %arg2[%c0_34, %49, %c4_35, %c0_36] : memref<1x20x20x64xbf16, #tpu.memory_space<vmem>>, vector<1x8x16x64xbf16>
    %51 = vector.shape_cast %50 : vector<1x8x16x64xbf16> to vector<8x16x64xbf16>
    %52 = vector.shape_cast %51 : vector<8x16x64xbf16> to vector<128x64xbf16>
    %c5 = arith.constant 5 : index
    %c0_37 = arith.constant 0 : index
    %c0_38 = arith.constant 0 : index
    %53 = vector.load %arg3[%c5, %c0_37, %c0_38] : memref<9x64x64xbf16, #tpu.memory_space<vmem>>, vector<1x64x64xbf16>
    %54 = vector.shape_cast %53 : vector<1x64x64xbf16> to vector<64x64xbf16>
    %cst_39 = arith.constant dense<0.000000e+00> : vector<128x64xf32>
    %55 = tpu.matmul %52, %54, %cst_39 {dimension_numbers = #tpu.dot_dimension_numbers<[1], [0], [0], [1], [0, 0, 1, 1], [], []>} : vector<128x64xbf16>, vector<64x64xbf16>, vector<128x64xf32> -> vector<128x64xf32>
    %56 = arith.addf %47, %55 : vector<128x64xf32>
    %c4_i32 = arith.constant 4 : i32
    %57 = arith.addi %1, %c4_i32 : i32
    %c0_40 = arith.constant 0 : index
    %58 = arith.index_cast %57 : i32 to index
    %c0_41 = arith.constant 0 : index
    %c0_42 = arith.constant 0 : index
    %59 = vector.load %arg2[%c0_40, %58, %c0_41, %c0_42] : memref<1x20x20x64xbf16, #tpu.memory_space<vmem>>, vector<1x8x16x64xbf16>
    %60 = vector.shape_cast %59 : vector<1x8x16x64xbf16> to vector<8x16x64xbf16>
    %61 = vector.shape_cast %60 : vector<8x16x64xbf16> to vector<128x64xbf16>
    %c6 = arith.constant 6 : index
    %c0_43 = arith.constant 0 : index
    %c0_44 = arith.constant 0 : index
    %62 = vector.load %arg3[%c6, %c0_43, %c0_44] : memref<9x64x64xbf16, #tpu.memory_space<vmem>>, vector<1x64x64xbf16>
    %63 = vector.shape_cast %62 : vector<1x64x64xbf16> to vector<64x64xbf16>
    %cst_45 = arith.constant dense<0.000000e+00> : vector<128x64xf32>
    %64 = tpu.matmul %61, %63, %cst_45 {dimension_numbers = #tpu.dot_dimension_numbers<[1], [0], [0], [1], [0, 0, 1, 1], [], []>} : vector<128x64xbf16>, vector<64x64xbf16>, vector<128x64xf32> -> vector<128x64xf32>
    %65 = arith.addf %56, %64 : vector<128x64xf32>
    %c4_i32_46 = arith.constant 4 : i32
    %66 = arith.addi %1, %c4_i32_46 : i32
    %c0_47 = arith.constant 0 : index
    %67 = arith.index_cast %66 : i32 to index
    %c2_48 = arith.constant 2 : index
    %c0_49 = arith.constant 0 : index
    %68 = vector.load %arg2[%c0_47, %67, %c2_48, %c0_49] : memref<1x20x20x64xbf16, #tpu.memory_space<vmem>>, vector<1x8x16x64xbf16>
    %69 = vector.shape_cast %68 : vector<1x8x16x64xbf16> to vector<8x16x64xbf16>
    %70 = vector.shape_cast %69 : vector<8x16x64xbf16> to vector<128x64xbf16>
    %c7 = arith.constant 7 : index
    %c0_50 = arith.constant 0 : index
    %c0_51 = arith.constant 0 : index
    %71 = vector.load %arg3[%c7, %c0_50, %c0_51] : memref<9x64x64xbf16, #tpu.memory_space<vmem>>, vector<1x64x64xbf16>
    %72 = vector.shape_cast %71 : vector<1x64x64xbf16> to vector<64x64xbf16>
    %cst_52 = arith.constant dense<0.000000e+00> : vector<128x64xf32>
    %73 = tpu.matmul %70, %72, %cst_52 {dimension_numbers = #tpu.dot_dimension_numbers<[1], [0], [0], [1], [0, 0, 1, 1], [], []>} : vector<128x64xbf16>, vector<64x64xbf16>, vector<128x64xf32> -> vector<128x64xf32>
    %74 = arith.addf %65, %73 : vector<128x64xf32>
    %c4_i32_53 = arith.constant 4 : i32
    %75 = arith.addi %1, %c4_i32_53 : i32
    %c0_54 = arith.constant 0 : index
    %76 = arith.index_cast %75 : i32 to index
    %c4_55 = arith.constant 4 : index
    %c0_56 = arith.constant 0 : index
    %77 = vector.load %arg2[%c0_54, %76, %c4_55, %c0_56] : memref<1x20x20x64xbf16, #tpu.memory_space<vmem>>, vector<1x8x16x64xbf16>
    %78 = vector.shape_cast %77 : vector<1x8x16x64xbf16> to vector<8x16x64xbf16>
    %79 = vector.shape_cast %78 : vector<8x16x64xbf16> to vector<128x64xbf16>
    %c8 = arith.constant 8 : index
    %c0_57 = arith.constant 0 : index
    %c0_58 = arith.constant 0 : index
    %80 = vector.load %arg3[%c8, %c0_57, %c0_58] : memref<9x64x64xbf16, #tpu.memory_space<vmem>>, vector<1x64x64xbf16>
    %81 = vector.shape_cast %80 : vector<1x64x64xbf16> to vector<64x64xbf16>
    %cst_59 = arith.constant dense<0.000000e+00> : vector<128x64xf32>
    %82 = tpu.matmul %79, %81, %cst_59 {dimension_numbers = #tpu.dot_dimension_numbers<[1], [0], [0], [1], [0, 0, 1, 1], [], []>} : vector<128x64xbf16>, vector<64x64xbf16>, vector<128x64xf32> -> vector<128x64xf32>
    %83 = arith.addf %74, %82 : vector<128x64xf32>
    %c0_60 = arith.constant 0 : index
    %c0_61 = arith.constant 0 : index
    %c0_62 = arith.constant 0 : index
    %84 = vector.load %arg4[%c0_60, %c0_61, %c0_62] : memref<1x128x64xf32, #tpu.memory_space<vmem>>, vector<1x128x64xf32>
    %85 = vector.shape_cast %84 : vector<1x128x64xf32> to vector<128x64xf32>
    %86 = arith.addf %83, %85 : vector<128x64xf32>
    %c0_63 = arith.constant 0 : index
    %c0_64 = arith.constant 0 : index
    %c0_65 = arith.constant 0 : index
    %87 = vector.load %arg5[%c0_63, %c0_64, %c0_65] : memref<1x128x64xf32, #tpu.memory_space<vmem>>, vector<1x128x64xf32>
    %88 = vector.shape_cast %87 : vector<1x128x64xf32> to vector<128x64xf32>
    %89 = vector.shape_cast %86 : vector<128x64xf32> to vector<1x128x64xf32>
    tpu.vector_store %arg5[%c0_63, %c0_64, %c0_65], %89 {strides = array<i32>} : memref<1x128x64xf32, #tpu.memory_space<vmem>>, vector<1x128x64xf32>,
    return
  }
  func.func @transform_0(%arg0: i32, %arg1: i32) -> (i32, i32, i32, i32) {
    %c0_i32 = arith.constant 0 : i32
    %c0_i32_0 = arith.constant 0 : i32
    %c0_i32_1 = arith.constant 0 : i32
    %c0_i32_2 = arith.constant 0 : i32
    return %arg0, %c0_i32, %c0_i32_0, %c0_i32_1 : i32, i32, i32, i32
  }
  func.func @transform_1(%arg0: i32, %arg1: i32) -> (i32, i32, i32) {
    %c0_i32 = arith.constant 0 : i32
    %c0_i32_0 = arith.constant 0 : i32
    %c0_i32_1 = arith.constant 0 : i32
    %c0_i32_2 = arith.constant 0 : i32
    return %c0_i32, %c0_i32_0, %c0_i32_1 : i32, i32, i32
  }
  func.func @transform_2(%arg0: i32, %arg1: i32) -> (i32, i32, i32) {
    %c0_i32 = arith.constant 0 : i32
    %c0_i32_0 = arith.constant 0 : i32
    return %arg0, %arg1, %c0_i32 : i32, i32, i32
  }
  func.func @transform_3(%arg0: i32, %arg1: i32) -> (i32, i32, i32) {
    %c0_i32 = arith.constant 0 : i32
    %c0_i32_0 = arith.constant 0 : i32
    return %arg0, %arg1, %c0_i32 : i32, i32, i32
  }
}

module attributes {stable_mosaic.version = 11 : i64} {
  func.func @_mm_bias_kernel(%arg0: i32, %arg1: memref<512x64xbf16, #tpu.memory_space<vmem>>, %arg2: memref<64x4xbf16, #tpu.memory_space<vmem>>, %arg3: memref<1x4xf32, #tpu.memory_space<vmem>>, %arg4: memref<512x4xf32, #tpu.memory_space<vmem>>) attributes {dimension_semantics = [#tpu.dimension_semantics<parallel>], iteration_bounds = array<i64: 1>, scalar_prefetch = 0 : i64, scratch_operands = 0 : i64, tpu.core_type = #tpu.core_type<tc>, window_params = [{transform_indices = @transform_0, window_bounds = array<i64: 512, 64>}, {pipeline_mode = #tpu.pipeline_mode<synchronous>, transform_indices = @transform_1, window_bounds = array<i64: 64, 4>}, {pipeline_mode = #tpu.pipeline_mode<synchronous>, transform_indices = @transform_2, window_bounds = array<i64: 1, 4>}, {transform_indices = @transform_3, window_bounds = array<i64: 512, 4>}]} {
    %c0 = arith.constant 0 : index
    %c0_0 = arith.constant 0 : index
    %0 = vector.load %arg1[%c0, %c0_0] : memref<512x64xbf16, #tpu.memory_space<vmem>>, vector<512x64xbf16>
    %c0_1 = arith.constant 0 : index
    %c0_2 = arith.constant 0 : index
    %1 = vector.load %arg2[%c0_1, %c0_2] : memref<64x4xbf16, #tpu.memory_space<vmem>>, vector<64x4xbf16>
    %cst = arith.constant dense<0.000000e+00> : vector<512x4xf32>
    %2 = tpu.matmul %0, %1, %cst {dimension_numbers = #tpu.dot_dimension_numbers<[1], [0], [0], [1], [0, 0, 1, 1], [], []>} : vector<512x64xbf16>, vector<64x4xbf16>, vector<512x4xf32> -> vector<512x4xf32>
    %c0_3 = arith.constant 0 : index
    %c0_4 = arith.constant 0 : index
    %3 = vector.load %arg3[%c0_3, %c0_4] : memref<1x4xf32, #tpu.memory_space<vmem>>, vector<1x4xf32>
    %4 = vector.broadcast %3 : vector<1x4xf32> to vector<512x4xf32>
    %5 = arith.addf %2, %4 : vector<512x4xf32>
    %c0_5 = arith.constant 0 : index
    %c0_6 = arith.constant 0 : index
    %6 = vector.load %arg4[%c0_5, %c0_6] : memref<512x4xf32, #tpu.memory_space<vmem>>, vector<512x4xf32>
    tpu.vector_store %arg4[%c0_5, %c0_6], %5 {strides = array<i32>} : memref<512x4xf32, #tpu.memory_space<vmem>>, vector<512x4xf32>,
    return
  }
  func.func @transform_0(%arg0: i32) -> (i32, i32) {
    %c0_i32 = arith.constant 0 : i32
    %c0_i32_0 = arith.constant 0 : i32
    return %arg0, %c0_i32 : i32, i32
  }
  func.func @transform_1(%arg0: i32) -> (i32, i32) {
    %c0_i32 = arith.constant 0 : i32
    %c0_i32_0 = arith.constant 0 : i32
    %c0_i32_1 = arith.constant 0 : i32
    return %c0_i32, %c0_i32_0 : i32, i32
  }
  func.func @transform_2(%arg0: i32) -> (i32, i32) {
    %c0_i32 = arith.constant 0 : i32
    %c0_i32_0 = arith.constant 0 : i32
    %c0_i32_1 = arith.constant 0 : i32
    return %c0_i32, %c0_i32_0 : i32, i32
  }
  func.func @transform_3(%arg0: i32) -> (i32, i32) {
    %c0_i32 = arith.constant 0 : i32
    %c0_i32_0 = arith.constant 0 : i32
    return %arg0, %c0_i32 : i32, i32
  }
}

</mosaic_0001>

<bundles_post_ra>
// kernel: net_forward.123
= control target key start
LH: loop header
LB: loop body
LE: loop exit
PB: predicated region body
PF: predicated region fallthrough
CT: control target
= control target key end

     0   :  { %vm609_vm0 = vcmask 261120   ;;  %vm843_vm1 = vcmask 519168   ;;  %s1604_s1 = inlined_call_operand.vmem [shape: bf16[256,32], index: 1, kind: input, shape index: {}]   ;;  %s1605_s0 = inlined_call_operand.vmem [shape: bf16[256,256], index: 0, kind: input, shape index: {}]   ;;  %s1606_s2 = inlined_call_operand.vmem [shape: bf16[32,64], index: 2, kind: input, shape index: {}]   ;;  %s1607_s3 = inlined_call_operand.vmem [shape: bf16[256,64], index: 3, kind: output, shape index: {}]  }
   0x1   :  { %v1135_v0 = vld [vmem:[%s1604_s1 + $0x38] sm:$0xff]  ;;  %v1134_v2 = vld [vmem:[%s1604_s1 + $0x30] sm:$0xff]  ;;  %v1133_v4 = vld [vmem:[%s1604_s1 + $0x28] sm:$0xff] }
   0x2   :  { %v1143_v1 = vld [vmem:[%s1604_s1 + $0x78] sm:$0xff]  ;;  %335 = vmatpush.bf16.msra.mxu0 %v1135_v0  ;;  %v1142_v3 = vld [vmem:[%s1604_s1 + $0x70] sm:$0xff]  ;;  %1146 = vmatpush.bf16.msra.mxu3 %v1135_v0  ;;  %v1141_v5 = vld [vmem:[%s1604_s1 + $0x68] sm:$0xff] }
   0x3   :  { %424 = vmatpush.bf16.msra.mxu1 %v1143_v1  ;;  %v1132_v6 = vld [vmem:[%s1604_s1 + $0x20] sm:$0xff]  ;;  %v1131_v8 = vld [vmem:[%s1604_s1 + $0x18] sm:$0xff]  ;;  %v1130_v10 = vld [vmem:[%s1604_s1 + $0x10] sm:$0xff] }
   0x4   :  { %v1140_v7 = vld [vmem:[%s1604_s1 + $0x60] sm:$0xff]  ;;  %v1139_v9 = vld [vmem:[%s1604_s1 + $0x58] sm:$0xff]  ;;  %v1138_v11 = vld [vmem:[%s1604_s1 + $0x50] sm:$0xff] }
   0x5   :  { %v1129_v12 = vld [vmem:[%s1604_s1 + $0x8] sm:$0xff]  ;;  %v1128_v14 = vld [vmem:[%s1604_s1] sm:$0xff]  ;;  %v890_v25 = vld [vmem:[%s1605_s0 + $0x10] sm:$0xf] }
   0x6   :  { %336 = vmatpush.bf16.msra.mxu0 %v1134_v2  ;;  %1147 = vmatpush.bf16.msra.mxu3 %v1134_v2  ;;  %v1137_v13 = vld [vmem:[%s1604_s1 + $0x48] sm:$0xff]  ;;  %v1136_v15 = vld [vmem:[%s1604_s1 + $0x40] sm:$0xff]  ;;  %v1099_v26 = vld [vmem:[%s1605_s0 + $0x14] sm:$0xf0] }
   0x7   :  { %425 = vmatpush.bf16.msra.mxu1 %v1142_v3  ;;  %v882_v16 = vld [vmem:[%s1605_s0] sm:$0xf]  ;;  %v1097_v17 = vld [vmem:[%s1605_s0 + $0x4] sm:$0xf0]  ;;  %v1096_v18 = vld [vmem:[%s1605_s0 + $0x4] sm:$0xf]  ;;  %v891_v31 = vor.u32 %v1099_v26, %v890_v25 }
   0x8   :  { %v884_v19 = vld [vmem:[%s1605_s0 + $0x8] sm:$0xf0]  ;;  %v978_v20 = vld [vmem:[%s1605_s0 + $0xc0] sm:$0xf]  ;;  %v1121_v21 = vld [vmem:[%s1605_s0 + $0xc4] sm:$0xf0]  ;;  %v883_v22 = vor.u32 %v1097_v17, %v882_v16 }
   0x9   :  { %v887_v23 = vor.u32 %v1096_v18, %v884_v19  ;;  %v979_v24 = vor.u32 %v1121_v21, %v978_v20  ;;  %v1098_v27 = vld [vmem:[%s1605_s0 + $0x14] sm:$0xf]  ;;  %v892_v28 = vld [vmem:[%s1605_s0 + $0x18] sm:$0xf0]  ;;  %v986_v29 = vld [vmem:[%s1605_s0 + $0xd0] sm:$0xf] }
   0xa   :  { %337 = vmatpush.bf16.msra.mxu0 %v1133_v4  ;;  %1148 = vmatpush.bf16.msra.mxu3 %v1133_v4  ;;  %v1123_v30 = vld [vmem:[%s1605_s0 + $0xd4] sm:$0xf0]  ;;  %v895_v32 = vor.u32 %v1098_v27, %v892_v28  ;;  %v898_v34 = vld [vmem:[%s1605_s0 + $0x20] sm:$0xf]  ;;  %v1101_v35 = vld [vmem:[%s1605_s0 + $0x24] sm:$0xf0] }
   0xb   :  { %426 = vmatpush.bf16.msra.mxu1 %v1141_v5  ;;  %v987_v33 = vor.u32 %v1123_v30, %v986_v29  ;;  %v1100_v36 = vld [vmem:[%s1605_s0 + $0x24] sm:$0xf]  ;;  %v900_v37 = vld [vmem:[%s1605_s0 + $0x28] sm:$0xf0]  ;;  %v994_v38 = vld [vmem:[%s1605_s0 + $0xe0] sm:$0xf]  ;;  %v899_v40 = vor.u32 %v1101_v35, %v898_v34 }
   0xc   :  { %v1125_v39 = vld [vmem:[%s1605_s0 + $0xe4] sm:$0xf0]  ;;  %v903_v41 = vor.u32 %v1100_v36, %v900_v37  ;;  %v906_v43 = vld [vmem:[%s1605_s0 + $0x30] sm:$0xf]  ;;  %v1103_v44 = vld [vmem:[%s1605_s0 + $0x34] sm:$0xf0] }
   0xd   :  { %v995_v42 = vor.u32 %v1125_v39, %v994_v38  ;;  %v1102_v45 = vld [vmem:[%s1605_s0 + $0x34] sm:$0xf]  ;;  %v908_v46 = vld [vmem:[%s1605_s0 + $0x38] sm:$0xf0]  ;;  %v1002_v47 = vld [vmem:[%s1605_s0 + $0xf0] sm:$0xf]  ;;  %v907_v49 = vor.u32 %v1103_v44, %v906_v43 }
   0xe   :  { %338 = vmatpush.bf16.msra.mxu0 %v1132_v6  ;;  %1149 = vmatpush.bf16.msra.mxu3 %v1132_v6  ;;  %v1127_v48 = vld [vmem:[%s1605_s0 + $0xf4] sm:$0xf0]  ;;  %v911_v50 = vor.u32 %v1102_v45, %v908_v46  ;;  %v914_v52 = vld [vmem:[%s1605_s0 + $0x40] sm:$0xf]  ;;  %v1105_v53 = vld [vmem:[%s1605_s0 + $0x44] sm:$0xf0] }
   0xf   :  { %427 = vmatpush.bf16.msra.mxu1 %v1140_v7  ;;  %v1003_v51 = vor.u32 %v1127_v48, %v1002_v47  ;;  %v1104_v54 = vld [vmem:[%s1605_s0 + $0x44] sm:$0xf]  ;;  %v916_v55 = vld [vmem:[%s1605_s0 + $0x48] sm:$0xf0]  ;;  %v915_v58 = vor.u32 %v1105_v53, %v914_v52  ;;  %v922_v61 = vld [vmem:[%s1605_s0 + $0x50] sm:$0xf] }
  0x10   :  { %v1120_v56 = vld [vmem:[%s1605_s0 + $0xc4] sm:$0xf]  ;;  %v980_v57 = vld [vmem:[%s1605_s0 + $0xc8] sm:$0xf0]  ;;  %v919_v59 = vor.u32 %v1104_v54, %v916_v55  ;;  %v1107_v62 = vld [vmem:[%s1605_s0 + $0x54] sm:$0xf0] }
  0x11   :  { %v983_v60 = vor.u32 %v1120_v56, %v980_v57  ;;  %v1106_v63 = vld [vmem:[%s1605_s0 + $0x54] sm:$0xf]  ;;  %v924_v0 = vld [vmem:[%s1605_s0 + $0x58] sm:$0xf0]  ;;  %v930_v6 = vld [vmem:[%s1605_s0 + $0x60] sm:$0xf] }
  0x12   :  { %339 = vmatpush.bf16.msra.mxu0 %v1131_v8  ;;  %1150 = vmatpush.bf16.msra.mxu3 %v1131_v8  ;;  %v988_v2 = vld [vmem:[%s1605_s0 + $0xd8] sm:$0xf0]  ;;  %v927_v4 = vor.u32 %v1106_v63, %v924_v0  ;;  %v1108_v8 = vld [vmem:[%s1605_s0 + $0x64] sm:$0xf]  ;;  %v938_v16 = vld [vmem:[%s1605_s0 + $0x70] sm:$0xf] }
  0x13   :  { %428 = vmatpush.bf16.msra.mxu1 %v1139_v9  ;;  %v1111_v17 = vld [vmem:[%s1605_s0 + $0x74] sm:$0xf0]  ;;  %v1110_v18 = vld [vmem:[%s1605_s0 + $0x74] sm:$0xf]  ;;  %v940_v19 = vld [vmem:[%s1605_s0 + $0x78] sm:$0xf0] }
  0x14   :  { %v1144_v20 = vld [vmem:[%s1606_s2] sm:$0xff]  ;;  %v1126_v21 = vld [vmem:[%s1605_s0 + $0xf4] sm:$0xf]  ;;  %v1113_v27 = vld [vmem:[%s1605_s0 + $0x84] sm:$0xf0] }
  0x15   :  { %v946_v26 = vld [vmem:[%s1605_s0 + $0x80] sm:$0xf]  ;;  %v1112_v28 = vld [vmem:[%s1605_s0 + $0x84] sm:$0xf]  ;;  %v948_v29 = vld [vmem:[%s1605_s0 + $0x88] sm:$0xf0] }
  0x16   :  { %340 = vmatpush.bf16.msra.mxu0 %v1130_v10  ;;  %1151 = vmatpush.bf16.msra.mxu3 %v1130_v10  ;;  %v1124_v10 = vld [vmem:[%s1605_s0 + $0xe4] sm:$0xf]  ;;  %v947_v30 = vor.u32 %v1113_v27, %v946_v26  ;;  %v1114_v43 = vld [vmem:[%s1605_s0 + $0x94] sm:$0xf]  ;;  %v956_v44 = vld [vmem:[%s1605_s0 + $0x98] sm:$0xf0] }
  0x17   :  { %429 = vmatpush.bf16.msra.mxu1 %v1138_v11  ;;  %v964_v63 = vld [vmem:[%s1605_s0 + $0xa8] sm:$0xf0] }
  0x1a   :  { %341 = vmatpush.bf16.msra.mxu0 %v1129_v12  ;;  %1152 = vmatpush.bf16.msra.mxu3 %v1129_v12 }
  0x1b   :  { %430 = vmatpush.bf16.msra.mxu1 %v1137_v13 }
  0x1e   :  { %342 = vmatpush.bf16.msra.mxu0 %v1128_v14  ;;  %1153 = vmatpush.bf16.msra.mxu3 %v1128_v14 }
  0x1f   :  { %431 = vmatpush.bf16.msra.mxu1 %v1136_v15 }
  0x21   :  { %343 = vmatmul.bf16.vlgmr.msra.gmra.mxu0 %v883_v22  ;;  %403 = vmatmul.bf16.vlgmr.msra.gmra.mxu3 %v979_v24  ;;  %v1004_v22 = vld [vmem:[%s1605_s0 + $0xf8] sm:$0xf0]  ;;  %v943_v24 = vor.u32 %v1110_v18, %v940_v19 }
  0x22   :  { %1154 = vmatpush.bf16.msrb.mxu3 %v1143_v1  ;;  %432 = vmatmul.bf16.vlgmr.msra.gmra.mxu1 %v887_v23  ;;  %v1122_v1 = vld [vmem:[%s1605_s0 + $0xd4] sm:$0xf]  ;;  %v939_v23 = vor.u32 %v1111_v17, %v938_v16  ;;  %v1007_v25 = vor.u32 %v1126_v21, %v1004_v22  ;;  %v1119_v16 = vld [vmem:[%s1605_s0 + $0xb4] sm:$0xf0]  ;;  %v972_v18 = vld [vmem:[%s1605_s0 + $0xb8] sm:$0xf0] }
  0x23   :  { %v1118_v17 = vld [vmem:[%s1605_s0 + $0xb4] sm:$0xf] }
  0x26   :  { %1155 = vmatpush.bf16.msrb.mxu3 %v1142_v3  ;;  %v923_v3 = vor.u32 %v1107_v62, %v922_v61  ;;  %v1117_v61 = vld [vmem:[%s1605_s0 + $0xa4] sm:$0xf0]  ;;  %v1116_v62 = vld [vmem:[%s1605_s0 + $0xa4] sm:$0xf] }
  0x2a   :  { %1156 = vmatpush.bf16.msrb.mxu3 %v1141_v5  ;;  %v991_v5 = vor.u32 %v1122_v1, %v988_v2 }
  0x2e   :  { %1157 = vmatpush.bf16.msrb.mxu3 %v1140_v7  ;;  %v1109_v7 = vld [vmem:[%s1605_s0 + $0x64] sm:$0xf0] }
  0x2f   :  { %v931_v12 = vor.u32 %v1109_v7, %v930_v6 }
  0x31   :  { %348 = vmatmul.bf16.gmra.mxu0 %v891_v31  ;;  %408 = vmatmul.bf16.gmra.mxu3 %v987_v33  ;;  %v951_v31 = vor.u32 %v1112_v28, %v948_v29 }
  0x32   :  { %1158 = vmatpush.bf16.msrb.mxu3 %v1139_v9  ;;  %437 = vmatmul.bf16.gmra.mxu1 %v895_v32  ;;  %v932_v9 = vld [vmem:[%s1605_s0 + $0x68] sm:$0xf0] }
  0x36   :  { %1159 = vmatpush.bf16.msrb.mxu3 %v1138_v11  ;;  %v996_v11 = vld [vmem:[%s1605_s0 + $0xe8] sm:$0xf0] }
  0x37   :  { %v999_v14 = vor.u32 %v1124_v10, %v996_v11 }
  0x3a   :  { %1160 = vmatpush.bf16.msrb.mxu3 %v1137_v13  ;;  %v935_v13 = vor.u32 %v1108_v8, %v932_v9 }
  0x3e   :  { %1161 = vmatpush.bf16.msrb.mxu3 %v1136_v15  ;;  %v1145_v15 = vld [vmem:[%s1606_s2 + $0x8] sm:$0xff] }
  0x3f   :  { %664 = vmatpush.bf16.msra.mxu2 %v1145_v15 }
  0x41   :  { %353 = vmatmul.bf16.gmra.mxu0 %v899_v40  ;;  %413 = vmatmul.bf16.gmra.mxu3 %v995_v42  ;;  %v1115_v42 = vld [vmem:[%s1605_s0 + $0x94] sm:$0xf0] }
  0x42   :  { %442 = vmatmul.bf16.gmra.mxu1 %v903_v41  ;;  %1162 = vmatpush.bf16.msra.mxu3 %v1145_v15  ;;  %v954_v41 = vld [vmem:[%s1605_s0 + $0x90] sm:$0xf] }
  0x43   :  { %665 = vmatpush.bf16.msra.mxu2 %v1144_v20  ;;  %v955_v48 = vor.u32 %v1115_v42, %v954_v41  ;;  %v970_v15 = vld [vmem:[%s1605_s0 + $0xb0] sm:$0xf] }
  0x44   :  { %v971_v22 = vor.u32 %v1119_v16, %v970_v15 }
  0x46   :  { %1163 = vmatpush.bf16.msra.mxu3 %v1144_v20 }
  0x51   :  { %358 = vmatmul.bf16.gmra.mxu0 %v907_v49  ;;  %418 = vmatmul.bf16.gmra.mxu3 %v1003_v51  ;;  %v959_v49 = vor.u32 %v1114_v43, %v956_v44 }
  0x52   :  { %447 = vmatmul.bf16.gmra.mxu1 %v911_v50 }
  0x61   :  { %363 = vmatmul.bf16.gmra.mxu0 %v915_v58  ;;  %492 = vmatmul.bf16.vlgmr.msrb.gmra.mxu3 %v983_v60  ;;  %v962_v60 = vld [vmem:[%s1605_s0 + $0xa0] sm:$0xf] }
  0x62   :  { %452 = vmatmul.bf16.gmra.mxu1 %v919_v59 }
  0x71   :  { %368 = vmatmul.bf16.gmra.mxu0 %v923_v3  ;;  %497 = vmatmul.bf16.gmra.mxu3 %v991_v5  ;;  %v963_v3 = vor.u32 %v1117_v61, %v962_v60 }
  0x72   :  { %457 = vmatmul.bf16.gmra.mxu1 %v927_v4  ;;  %v967_v4 = vor.u32 %v1116_v62, %v964_v63 }
  0x81   :  { %373 = vmatmul.bf16.gmra.mxu0 %v931_v12  ;;  %502 = vmatmul.bf16.gmra.mxu3 %v999_v14 }
  0x82   :  { %462 = vmatmul.bf16.gmra.mxu1 %v935_v13 }
  0x91   :  { %378 = vmatmul.bf16.gmra.mxu0 %v939_v23  ;;  %507 = vmatmul.bf16.gmra.mxu3 %v1007_v25  ;;  %v975_v23 = vor.u32 %v1118_v17, %v972_v18 }
  0x92   :  { %467 = vmatmul.bf16.gmra.mxu1 %v943_v24 }
  0x9e   :  { %v344_v32 = vpop.f32.mrf.mxu0 }
  0x9f   :  { %v433_v33 = vpop.f32.mrf.mxu1 }
  0xa0   :  { %v434_v34 = vadd.f32 %v433_v33, %v344_v32 }
  0xa1   :  { %383 = vmatmul.bf16.gmra.mxu0 %v947_v30 }
  0xa2   :  { %472 = vmatmul.bf16.gmra.mxu1 %v951_v31  ;;  %v513_v38 = vmul.f32 0.1, %v434_v34 }
  0xa4   :  { %v1394_v35 = vpop.f32.mrf.mxu3  ;;  %v545_v45 = vmax.f32 %v434_v34, %v513_v38 }
  0xa6   :  { %v346_v36 = vpop.f32.mrf.mxu0 }
  0xa7   :  { %v435_v37 = vpop.f32.mrf.mxu1 }
  0xa8   :  { %v436_v39 = vadd.f32 %v435_v37, %v346_v36 }
  0xaa   :  { %v514_v40 = vmul.f32 0.1, %v436_v39 }
  0xac   :  { %v546_v46 = vmax.f32 %v436_v39, %v514_v40  ;;  %v1408_v50 = vpop.f32.mrf.mxu3 }
  0xae   :  { %v577_v47 = vpack.c.bf16 %v546_v46, %v545_v45  ;;  %v349_v51 = vpop.f32.mrf.mxu0 }
  0xaf   :  { %v438_v52 = vpop.f32.mrf.mxu1 }
  0xb0   :  { %1080 = vmatmul.msk.bf16.vlgmr.msra.gmra.mxu2 %vm609_vm0, %v577_v47  ;;  %v439_v53 = vadd.f32 %v438_v52, %v349_v51 }
  0xb1   :  { %388 = vmatmul.bf16.gmra.mxu0 %v955_v48 }
  0xb2   :  { %477 = vmatmul.bf16.gmra.mxu1 %v959_v49  ;;  %v515_v57 = vmul.f32 0.1, %v439_v53 }
  0xb4   :  { %v1411_v54 = vpop.f32.mrf.mxu3  ;;  %v547_v0 = vmax.f32 %v439_v53, %v515_v57 }
  0xb6   :  { %v351_v55 = vpop.f32.mrf.mxu0 }
  0xb7   :  { %v440_v56 = vpop.f32.mrf.mxu1 }
  0xb8   :  { %v441_v58 = vadd.f32 %v440_v56, %v351_v55 }
  0xba   :  { %v516_v59 = vmul.f32 0.1, %v441_v58 }
  0xbc   :  { %v548_v1 = vmax.f32 %v441_v58, %v516_v59  ;;  %v1425_v5 = vpop.f32.mrf.mxu3 }
  0xbe   :  { %v578_v2 = vpack.c.bf16 %v548_v1, %v547_v0  ;;  %v354_v6 = vpop.f32.mrf.mxu0 }
  0xbf   :  { %v443_v7 = vpop.f32.mrf.mxu1 }
  0xc0   :  { %1081 = vmatmul.msk.bf16.gmra.mxu2 %vm609_vm0, %v578_v2  ;;  %v444_v8 = vadd.f32 %v443_v7, %v354_v6 }
  0xc1   :  { %393 = vmatmul.bf16.gmra.mxu0 %v963_v3 }
  0xc2   :  { %482 = vmatmul.bf16.gmra.mxu1 %v967_v4  ;;  %v517_v12 = vmul.f32 0.1, %v444_v8 }
  0xc4   :  { %v1428_v9 = vpop.f32.mrf.mxu3  ;;  %v549_v19 = vmax.f32 %v444_v8, %v517_v12 }
  0xc6   :  { %v356_v10 = vpop.f32.mrf.mxu0 }
  0xc7   :  { %v445_v11 = vpop.f32.mrf.mxu1 }
  0xc8   :  { %v446_v13 = vadd.f32 %v445_v11, %v356_v10 }
  0xca   :  { %v518_v14 = vmul.f32 0.1, %v446_v13 }
  0xcc   :  { %v550_v20 = vmax.f32 %v446_v13, %v518_v14  ;;  %v1442_v24 = vpop.f32.mrf.mxu3 }
  0xce   :  { %v579_v21 = vpack.c.bf16 %v550_v20, %v549_v19  ;;  %v359_v25 = vpop.f32.mrf.mxu0 }
  0xcf   :  { %v448_v26 = vpop.f32.mrf.mxu1 }
  0xd0   :  { %1082 = vmatmul.msk.bf16.gmra.mxu2 %vm609_vm0, %v579_v21  ;;  %v449_v27 = vadd.f32 %v448_v26, %v359_v25 }
  0xd1   :  { %398 = vmatmul.bf16.gmra.mxu0 %v971_v22 }
  0xd2   :  { %487 = vmatmul.bf16.gmra.mxu1 %v975_v23  ;;  %v519_v31 = vmul.f32 0.1, %v449_v27 }
  0xd4   :  { %v1445_v28 = vpop.f32.mrf.mxu3  ;;  %v551_v34 = vmax.f32 %v449_v27, %v519_v31 }
  0xd6   :  { %v361_v29 = vpop.f32.mrf.mxu0 }
  0xd7   :  { %v450_v30 = vpop.f32.mrf.mxu1 }
  0xd8   :  { %v451_v32 = vadd.f32 %v450_v30, %v361_v29 }
  0xda   :  { %v520_v33 = vmul.f32 0.1, %v451_v32 }
  0xdc   :  { %v552_v36 = vmax.f32 %v451_v32, %v520_v33  ;;  %v1447_v38 = vpop.f32.mrf.mxu3 }
  0xde   :  { %v580_v37 = vpack.c.bf16 %v552_v36, %v551_v34  ;;  %v364_v39 = vpop.f32.mrf.mxu0 }
  0xdf   :  { %v453_v40 = vpop.f32.mrf.mxu1 }
  0xe0   :  { %1083 = vmatmul.msk.bf16.gmra.mxu2 %vm609_vm0, %v580_v37  ;;  %v454_v41 = vadd.f32 %v453_v40, %v364_v39 }
  0xe2   :  { %v521_v46 = vmul.f32 0.1, %v454_v41 }
  0xe4   :  { %v493_v42 = vpop.f32.mrf.mxu3  ;;  %v553_v49 = vmax.f32 %v454_v41, %v521_v46 }
  0xe5   :  { %v494_v45 = vadd.f32 %v493_v42, %v1394_v35 }
  0xe6   :  { %v366_v43 = vpop.f32.mrf.mxu0 }
  0xe7   :  { %v455_v44 = vpop.f32.mrf.mxu1  ;;  %v537_v52 = vmul.f32 0.1, %v494_v45 }
  0xe8   :  { %v456_v47 = vadd.f32 %v455_v44, %v366_v43 }
  0xe9   :  { %v569_v59 = vmax.f32 %v494_v45, %v537_v52 }
  0xea   :  { %v522_v48 = vmul.f32 0.1, %v456_v47 }
  0xec   :  { %v554_v51 = vmax.f32 %v456_v47, %v522_v48  ;;  %v495_v55 = vpop.f32.mrf.mxu3 }
  0xed   :  { %v496_v58 = vadd.f32 %v495_v55, %v1408_v50 }
  0xee   :  { %v581_v53 = vpack.c.bf16 %v554_v51, %v553_v49  ;;  %v369_v56 = vpop.f32.mrf.mxu0 }
  0xef   :  { %v458_v57 = vpop.f32.mrf.mxu1  ;;  %v538_v60 = vmul.f32 0.1, %v496_v58 }
  0xf0   :  { %1084 = vmatmul.msk.bf16.gmra.mxu2 %vm609_vm0, %v581_v53  ;;  %v459_v62 = vadd.f32 %v458_v57, %v369_v56 }
  0xf1   :  { %v570_v61 = vmax.f32 %v496_v58, %v538_v60 }
  0xf2   :  { %v523_v3 = vmul.f32 0.1, %v459_v62 }
  0xf3   :  { %v1453_v63 = vpack.c.bf16 %v570_v61, %v569_v59 }
  0xf4   :  { %v498_v35 = vpop.f32.mrf.mxu3  ;;  %v555_v7 = vmax.f32 %v459_v62, %v523_v3 }
  0xf5   :  { %v499_v2 = vadd.f32 %v498_v35, %v1411_v54 }
  0xf6   :  { %v371_v0 = vpop.f32.mrf.mxu0 }
  0xf7   :  { %v460_v1 = vpop.f32.mrf.mxu1  ;;  %v539_v10 = vmul.f32 0.1, %v499_v2 }
  0xf8   :  { %v461_v4 = vadd.f32 %v460_v1, %v371_v0 }
  0xf9   :  { %v571_v15 = vmax.f32 %v499_v2, %v539_v10 }
  0xfa   :  { %v524_v6 = vmul.f32 0.1, %v461_v4 }
  0xfc   :  { %v556_v8 = vmax.f32 %v461_v4, %v524_v6  ;;  %v500_v11 = vpop.f32.mrf.mxu3 }
  0xfd   :  { %v501_v14 = vadd.f32 %v500_v11, %v1425_v5 }
  0xfe   :  { %v582_v50 = vpack.c.bf16 %v556_v8, %v555_v7  ;;  %v374_v12 = vpop.f32.mrf.mxu0 }
  0xff   :  { %v463_v13 = vpop.f32.mrf.mxu1  ;;  %v540_v16 = vmul.f32 0.1, %v501_v14 }
 0x100   :  { %1085 = vmatmul.msk.bf16.gmra.mxu2 %vm609_vm0, %v582_v50  ;;  %v464_v18 = vadd.f32 %v463_v13, %v374_v12 }
 0x101   :  { %v572_v17 = vmax.f32 %v501_v14, %v540_v16 }
 0x102   :  { %v525_v22 = vmul.f32 0.1, %v464_v18 }
 0x103   :  { %v1458_v19 = vpack.c.bf16 %v572_v17, %v571_v15 }
 0x104   :  { %v503_v54 = vpop.f32.mrf.mxu3  ;;  %v557_v27 = vmax.f32 %v464_v18, %v525_v22 }
 0x105   :  { %v504_v25 = vadd.f32 %v503_v54, %v1428_v9 }
 0x106   :  { %v376_v20 = vpop.f32.mrf.mxu0 }
 0x107   :  { %v465_v21 = vpop.f32.mrf.mxu1  ;;  %v541_v30 = vmul.f32 0.1, %v504_v25 }
 0x108   :  { %v466_v23 = vadd.f32 %v465_v21, %v376_v20 }
 0x109   :  { %v573_v36 = vmax.f32 %v504_v25, %v541_v30 }
 0x10a   :  { %v526_v26 = vmul.f32 0.1, %v466_v23 }
 0x10c   :  { %v558_v29 = vmax.f32 %v466_v23, %v526_v26  ;;  %v505_v31 = vpop.f32.mrf.mxu3 }
 0x10d   :  { %v506_v34 = vadd.f32 %v505_v31, %v1442_v24 }
 0x10e   :  { %v583_v5 = vpack.c.bf16 %v558_v29, %v557_v27  ;;  %v379_v32 = vpop.f32.mrf.mxu0 }
 0x10f   :  { %v468_v33 = vpop.f32.mrf.mxu1  ;;  %v542_v37 = vmul.f32 0.1, %v506_v34 }
 0x110   :  { %1086 = vmatmul.msk.bf16.gmra.mxu2 %vm609_vm0, %v583_v5  ;;  %v469_v40 = vadd.f32 %v468_v33, %v379_v32 }
 0x111   :  { %v574_v39 = vmax.f32 %v506_v34, %v542_v37 }
 0x112   :  { %v527_v44 = vmul.f32 0.1, %v469_v40 }
 0x113   :  { %v591_v41 = vpack.c.bf16 %v574_v39, %v573_v36 }
 0x114   :  { %v508_v42 = vpop.f32.mrf.mxu3  ;;  %v559_v48 = vmax.f32 %v469_v40, %v527_v44 }
 0x115   :  { %1094 = vmatmul.msk.bf16.vlgmr.msra.gmra.mxu3 %vm609_vm0, %v591_v41  ;;  %v509_v46 = vadd.f32 %v508_v42, %v1445_v28 }
 0x116   :  { %v381_v43 = vpop.f32.mrf.mxu0 }
 0x117   :  { %v470_v9 = vpop.f32.mrf.mxu1  ;;  %v543_v24 = vmul.f32 0.1, %v509_v46 }
 0x118   :  { %v471_v45 = vadd.f32 %v470_v9, %v381_v43 }
 0x119   :  { %v575_v57 = vmax.f32 %v509_v46, %v543_v24 }
 0x11a   :  { %v528_v47 = vmul.f32 0.1, %v471_v45 }
 0x11c   :  { %v560_v49 = vmax.f32 %v471_v45, %v528_v47  ;;  %v510_v52 = vpop.f32.mrf.mxu3 }
 0x11d   :  { %v511_v56 = vadd.f32 %v510_v52, %v1447_v38 }
 0x11e   :  { %v584_v51 = vpack.c.bf16 %v560_v49, %v559_v48  ;;  %v384_v53 = vpop.f32.mrf.mxu0 }
 0x11f   :  { %v473_v55 = vpop.f32.mrf.mxu1  ;;  %v544_v58 = vmul.f32 0.1, %v511_v56 }
 0x120   :  { %1087 = vmatmul.msk.bf16.gmra.mxu2 %vm609_vm0, %v584_v51  ;;  %v474_v60 = vadd.f32 %v473_v55, %v384_v53 }
 0x121   :  { %v576_v59 = vmax.f32 %v511_v56, %v544_v58 }
 0x122   :  { %v529_v28 = vmul.f32 0.1, %v474_v60 }
 0x123   :  { %v592_v61 = vpack.c.bf16 %v576_v59, %v575_v57 }
 0x124   :  { %v561_v2 = vmax.f32 %v474_v60, %v529_v28 }
 0x125   :  { %1095 = vmatmul.msk.bf16.gmra.mxu3 %vm609_vm0, %v592_v61 }
 0x126   :  { %v386_v62 = vpop.f32.mrf.mxu0 }
 0x127   :  { %v475_v35 = vpop.f32.mrf.mxu1 }
 0x128   :  { %v476_v0 = vadd.f32 %v475_v35, %v386_v62 }
 0x12a   :  { %v530_v1 = vmul.f32 0.1, %v476_v0 }
 0x12c   :  { %v562_v3 = vmax.f32 %v476_v0, %v530_v1 }
 0x12e   :  { %v585_v4 = vpack.c.bf16 %v562_v3, %v561_v2  ;;  %v389_v6 = vpop.f32.mrf.mxu0 }
 0x12f   :  { %v478_v7 = vpop.f32.mrf.mxu1 }
 0x130   :  { %1088 = vmatmul.msk.bf16.gmra.mxu2 %vm609_vm0, %v585_v4  ;;  %v479_v8 = vadd.f32 %v478_v7, %v389_v6 }
 0x132   :  { %v531_v13 = vmul.f32 0.1, %v479_v8 }
 0x133   :  { %v667_v38 = vpop.f32.mrf.mxu2 }
 0x134   :  { %v747_v10 = vmul.f32 0.1, %v667_v38  ;;  %v563_v18 = vmax.f32 %v479_v8, %v531_v13 }
 0x136   :  { %v779_v50 = vmax.f32 %v667_v38, %v747_v10  ;;  %v391_v11 = vpop.f32.mrf.mxu0 }
 0x137   :  { %v480_v12 = vpop.f32.mrf.mxu1 }
 0x138   :  { %v811_v14 = vpack.c.bf16 %v779_v50, %v779_v50  ;;  %v481_v15 = vadd.f32 %v480_v12, %v391_v11 }
 0x13a   :  { %844 = vst.msk [vmem:[%s1607_s3] sm:$0xf] %vm843_vm1, %v811_v14  ;;  %v532_v16 = vmul.f32 0.1, %v481_v15 }
 0x13b   :  { %v669_v17 = vpop.f32.mrf.mxu2 }
 0x13c   :  { %v564_v54 = vmax.f32 %v481_v15, %v532_v16  ;;  %v748_v20 = vmul.f32 0.1, %v669_v17 }
 0x13e   :  { %v780_v21 = vmax.f32 %v669_v17, %v748_v20  ;;  %v586_v22 = vpack.c.bf16 %v564_v54, %v563_v18  ;;  %v394_v23 = vpop.f32.mrf.mxu0 }
 0x13f   :  { %v483_v25 = vpop.f32.mrf.mxu1 }
 0x140   :  { %v812_v26 = vpack.c.bf16 %v780_v21, %v780_v21  ;;  %1089 = vmatmul.msk.bf16.gmra.mxu2 %vm609_vm0, %v586_v22  ;;  %v484_v29 = vadd.f32 %v483_v25, %v394_v23 }
 0x142   :  { %845 = vst.msk [vmem:[%s1607_s3 + $0x4] sm:$0xf] %vm843_vm1, %v812_v26  ;;  %v533_v33 = vmul.f32 0.1, %v484_v29 }
 0x143   :  { %v672_v27 = vpop.f32.mrf.mxu2 }
 0x144   :  { %v749_v30 = vmul.f32 0.1, %v672_v27  ;;  %v565_v40 = vmax.f32 %v484_v29, %v533_v33 }
 0x146   :  { %v781_v5 = vmax.f32 %v672_v27, %v749_v30  ;;  %v396_v31 = vpop.f32.mrf.mxu0 }
 0x147   :  { %v485_v32 = vpop.f32.mrf.mxu1 }
 0x148   :  { %v813_v34 = vpack.c.bf16 %v781_v5, %v781_v5  ;;  %v486_v36 = vadd.f32 %v485_v32, %v396_v31 }
 0x14a   :  { %846 = vst.msk [vmem:[%s1607_s3 + $0x8] sm:$0xf] %vm843_vm1, %v813_v34  ;;  %v534_v37 = vmul.f32 0.1, %v486_v36 }
 0x14b   :  { %v674_v39 = vpop.f32.mrf.mxu2 }
 0x14c   :  { %v566_v41 = vmax.f32 %v486_v36, %v534_v37  ;;  %v750_v42 = vmul.f32 0.1, %v674_v39 }
 0x14e   :  { %v782_v43 = vmax.f32 %v674_v39, %v750_v42  ;;  %v587_v9 = vpack.c.bf16 %v566_v41, %v565_v40  ;;  %v399_v44 = vpop.f32.mrf.mxu0 }
 0x14f   :  { %v488_v45 = vpop.f32.mrf.mxu1 }
 0x150   :  { %v814_v46 = vpack.c.bf16 %v782_v43, %v782_v43  ;;  %1090 = vmatmul.msk.bf16.gmra.mxu2 %vm609_vm0, %v587_v9  ;;  %v489_v48 = vadd.f32 %v488_v45, %v399_v44 }
 0x152   :  { %847 = vst.msk [vmem:[%s1607_s3 + $0xc] sm:$0xf] %vm843_vm1, %v814_v46  ;;  %v535_v53 = vmul.f32 0.1, %v489_v48 }
 0x153   :  { %v677_v47 = vpop.f32.mrf.mxu2 }
 0x154   :  { %v751_v49 = vmul.f32 0.1, %v677_v47  ;;  %v567_v59 = vmax.f32 %v489_v48, %v535_v53 }
 0x156   :  { %v783_v24 = vmax.f32 %v677_v47, %v751_v49  ;;  %v401_v51 = vpop.f32.mrf.mxu0 }
 0x157   :  { %v490_v52 = vpop.f32.mrf.mxu1 }
 0x158   :  { %v815_v55 = vpack.c.bf16 %v783_v24, %v783_v24  ;;  %v491_v56 = vadd.f32 %v490_v52, %v401_v51 }
 0x15a   :  { %848 = vst.msk [vmem:[%s1607_s3 + $0x10] sm:$0xf] %vm843_vm1, %v815_v55  ;;  %v536_v57 = vmul.f32 0.1, %v491_v56 }
 0x15b   :  { %v679_v58 = vpop.f32.mrf.mxu2 }
 0x15c   :  { %v568_v60 = vmax.f32 %v491_v56, %v536_v57  ;;  %v752_v61 = vmul.f32 0.1, %v679_v58 }
 0x15e   :  { %v784_v62 = vmax.f32 %v679_v58, %v752_v61  ;;  %v588_v35 = vpack.c.bf16 %v568_v60, %v567_v59 }
 0x160   :  { %v816_v28 = vpack.c.bf16 %v784_v62, %v784_v62  ;;  %1091 = vmatmul.msk.bf16.gmra.mxu2 %vm609_vm0, %v588_v35 }
 0x162   :  { %849 = vst.msk [vmem:[%s1607_s3 + $0x14] sm:$0xf] %vm843_vm1, %v816_v28 }
 0x163   :  { %v682_v0 = vpop.f32.mrf.mxu2 }
 0x164   :  { %v753_v1 = vmul.f32 0.1, %v682_v0 }
 0x166   :  { %v785_v2 = vmax.f32 %v682_v0, %v753_v1 }
 0x168   :  { %v817_v3 = vpack.c.bf16 %v785_v2, %v785_v2 }
 0x16a   :  { %850 = vst.msk [vmem:[%s1607_s3 + $0x18] sm:$0xf] %vm843_vm1, %v817_v3 }
 0x16b   :  { %v684_v4 = vpop.f32.mrf.mxu2 }
 0x16c   :  { %v754_v6 = vmul.f32 0.1, %v684_v4 }
 0x16e   :  { %v786_v7 = vmax.f32 %v684_v4, %v754_v6 }
 0x170   :  { %v818_v38 = vpack.c.bf16 %v786_v7, %v786_v7  ;;  %1092 = vmatmul.msk.bf16.gmra.mxu2 %vm609_vm0, %v1453_v63 }
 0x172   :  { %851 = vst.msk [vmem:[%s1607_s3 + $0x1c] sm:$0xf] %vm843_vm1, %v818_v38 }
 0x173   :  { %v687_v8 = vpop.f32.mrf.mxu2 }
 0x174   :  { %v755_v10 = vmul.f32 0.1, %v687_v8 }
 0x176   :  { %v787_v50 = vmax.f32 %v687_v8, %v755_v10 }
 0x178   :  { %v819_v11 = vpack.c.bf16 %v787_v50, %v787_v50 }
 0x17a   :  { %852 = vst.msk [vmem:[%s1607_s3 + $0x20] sm:$0xf] %vm843_vm1, %v819_v11 }
 0x17b   :  { %v689_v12 = vpop.f32.mrf.mxu2 }
 0x17c   :  { %v756_v13 = vmul.f32 0.1, %v689_v12 }
 0x17e   :  { %v788_v14 = vmax.f32 %v689_v12, %v756_v13 }
 0x180   :  { %v820_v15 = vpack.c.bf16 %v788_v14, %v788_v14  ;;  %1093 = vmatmul.msk.bf16.gmra.mxu2 %vm609_vm0, %v1458_v19 }
 0x182   :  { %853 = vst.msk [vmem:[%s1607_s3 + $0x24] sm:$0xf] %vm843_vm1, %v820_v15 }
 0x183   :  { %v692_v63 = vpop.f32.mrf.mxu2 }
 0x184   :  { %v757_v16 = vmul.f32 0.1, %v692_v63 }
 0x186   :  { %v789_v17 = vmax.f32 %v692_v63, %v757_v16 }
 0x188   :  { %v821_v18 = vpack.c.bf16 %v789_v17, %v789_v17 }
 0x18a   :  { %854 = vst.msk [vmem:[%s1607_s3 + $0x28] sm:$0xf] %vm843_vm1, %v821_v18 }
 0x18b   :  { %v694_v54 = vpop.f32.mrf.mxu2 }
 0x18c   :  { %v758_v20 = vmul.f32 0.1, %v694_v54 }
 0x18e   :  { %v790_v21 = vmax.f32 %v694_v54, %v758_v20 }
 0x190   :  { %v822_v22 = vpack.c.bf16 %v790_v21, %v790_v21 }
 0x192   :  { %855 = vst.msk [vmem:[%s1607_s3 + $0x2c] sm:$0xf] %vm843_vm1, %v822_v22 }
 0x193   :  { %v697_v19 = vpop.f32.mrf.mxu2 }
 0x194   :  { %v759_v23 = vmul.f32 0.1, %v697_v19 }
 0x196   :  { %v791_v25 = vmax.f32 %v697_v19, %v759_v23 }
 0x198   :  { %v823_v26 = vpack.c.bf16 %v791_v25, %v791_v25  ;;  %v737_v27 = vpop.f32.mrf.mxu3 }
 0x199   :  { %v775_v30 = vmul.f32 0.1, %v737_v27 }
 0x19a   :  { %856 = vst.msk [vmem:[%s1607_s3 + $0x30] sm:$0xf] %vm843_vm1, %v823_v26 }
 0x19b   :  { %v699_v29 = vpop.f32.mrf.mxu2  ;;  %v807_v31 = vmax.f32 %v737_v27, %v775_v30 }
 0x19c   :  { %v760_v5 = vmul.f32 0.1, %v699_v29 }
 0x19d   :  { %v839_v33 = vpack.c.bf16 %v807_v31, %v807_v31 }
 0x19e   :  { %v792_v32 = vmax.f32 %v699_v29, %v760_v5 }
 0x19f   :  { %872 = vst.msk [vmem:[%s1607_s3 + $0x70] sm:$0xf] %vm843_vm1, %v839_v33 }
 0x1a0   :  { %v824_v34 = vpack.c.bf16 %v792_v32, %v792_v32  ;;  %v739_v36 = vpop.f32.mrf.mxu3 }
 0x1a1   :  { %v776_v39 = vmul.f32 0.1, %v739_v36 }
 0x1a2   :  { %857 = vst.msk [vmem:[%s1607_s3 + $0x34] sm:$0xf] %vm843_vm1, %v824_v34 }
 0x1a3   :  { %v702_v37 = vpop.f32.mrf.mxu2  ;;  %v808_v41 = vmax.f32 %v739_v36, %v776_v39 }
 0x1a4   :  { %v761_v40 = vmul.f32 0.1, %v702_v37 }
 0x1a5   :  { %v840_v43 = vpack.c.bf16 %v808_v41, %v808_v41 }
 0x1a6   :  { %v793_v42 = vmax.f32 %v702_v37, %v761_v40 }
 0x1a7   :  { %873 = vst.msk [vmem:[%s1607_s3 + $0x74] sm:$0xf] %vm843_vm1, %v840_v43 }
 0x1a8   :  { %v825_v9 = vpack.c.bf16 %v793_v42, %v793_v42  ;;  %v742_v44 = vpop.f32.mrf.mxu3 }
 0x1a9   :  { %v777_v46 = vmul.f32 0.1, %v742_v44 }
 0x1aa   :  { %858 = vst.msk [vmem:[%s1607_s3 + $0x38] sm:$0xf] %vm843_vm1, %v825_v9 }
 0x1ab   :  { %v704_v45 = vpop.f32.mrf.mxu2  ;;  %v809_v48 = vmax.f32 %v742_v44, %v777_v46 }
 0x1ac   :  { %v762_v47 = vmul.f32 0.1, %v704_v45 }
 0x1ad   :  { %v841_v24 = vpack.c.bf16 %v809_v48, %v809_v48 }
 0x1ae   :  { %v794_v49 = vmax.f32 %v704_v45, %v762_v47 }
 0x1af   :  { %874 = vst.msk [vmem:[%s1607_s3 + $0x78] sm:$0xf] %vm843_vm1, %v841_v24 }
 0x1b0   :  { %v826_v51 = vpack.c.bf16 %v794_v49, %v794_v49  ;;  %v744_v52 = vpop.f32.mrf.mxu3 }
 0x1b1   :  { %v778_v55 = vmul.f32 0.1, %v744_v52 }
 0x1b2   :  { %859 = vst.msk [vmem:[%s1607_s3 + $0x3c] sm:$0xf] %vm843_vm1, %v826_v51 }
 0x1b3   :  { %v707_v53 = vpop.f32.mrf.mxu2  ;;  %v810_v57 = vmax.f32 %v744_v52, %v778_v55 }
 0x1b4   :  { %v763_v56 = vmul.f32 0.1, %v707_v53 }
 0x1b5   :  { %v842_v59 = vpack.c.bf16 %v810_v57, %v810_v57 }
 0x1b6   :  { %v795_v58 = vmax.f32 %v707_v53, %v763_v56 }
 0x1b7   :  { %875 = vst.msk [vmem:[%s1607_s3 + $0x7c] sm:$0xf] %vm843_vm1, %v842_v59 }
 0x1b8   :  { %v827_v60 = vpack.c.bf16 %v795_v58, %v795_v58 }
 0x1ba   :  { %860 = vst.msk [vmem:[%s1607_s3 + $0x40] sm:$0xf] %vm843_vm1, %v827_v60 }
 0x1bb   :  { %v709_v61 = vpop.f32.mrf.mxu2 }
 0x1bc   :  { %v764_v62 = vmul.f32 0.1, %v709_v61 }
 0x1be   :  { %v796_v35 = vmax.f32 %v709_v61, %v764_v62 }
 0x1c0   :  { %v828_v28 = vpack.c.bf16 %v796_v35, %v796_v35 }
 0x1c2   :  { %861 = vst.msk [vmem:[%s1607_s3 + $0x44] sm:$0xf] %vm843_vm1, %v828_v28 }
 0x1c3   :  { %v712_v0 = vpop.f32.mrf.mxu2 }
 0x1c4   :  { %v765_v1 = vmul.f32 0.1, %v712_v0 }
 0x1c6   :  { %v797_v2 = vmax.f32 %v712_v0, %v765_v1 }
 0x1c8   :  { %v829_v3 = vpack.c.bf16 %v797_v2, %v797_v2 }
 0x1ca   :  { %862 = vst.msk [vmem:[%s1607_s3 + $0x48] sm:$0xf] %vm843_vm1, %v829_v3 }
 0x1cb   :  { %v714_v4 = vpop.f32.mrf.mxu2 }
 0x1cc   :  { %v766_v6 = vmul.f32 0.1, %v714_v4 }
 0x1ce   :  { %v798_v7 = vmax.f32 %v714_v4, %v766_v6 }
 0x1d0   :  { %v830_v38 = vpack.c.bf16 %v798_v7, %v798_v7 }
 0x1d2   :  { %863 = vst.msk [vmem:[%s1607_s3 + $0x4c] sm:$0xf] %vm843_vm1, %v830_v38 }
 0x1d3   :  { %v717_v8 = vpop.f32.mrf.mxu2 }
 0x1d4   :  { %v767_v10 = vmul.f32 0.1, %v717_v8 }
 0x1d6   :  { %v799_v50 = vmax.f32 %v717_v8, %v767_v10 }
 0x1d8   :  { %v831_v11 = vpack.c.bf16 %v799_v50, %v799_v50 }
 0x1da   :  { %864 = vst.msk [vmem:[%s1607_s3 + $0x50] sm:$0xf] %vm843_vm1, %v831_v11 }
 0x1db   :  { %v719_v12 = vpop.f32.mrf.mxu2 }
 0x1dc   :  { %v768_v13 = vmul.f32 0.1, %v719_v12 }
 0x1de   :  { %v800_v14 = vmax.f32 %v719_v12, %v768_v13 }
 0x1e0   :  { %v832_v15 = vpack.c.bf16 %v800_v14, %v800_v14 }
 0x1e2   :  { %865 = vst.msk [vmem:[%s1607_s3 + $0x54] sm:$0xf] %vm843_vm1, %v832_v15 }
 0x1e3   :  { %v722_v63 = vpop.f32.mrf.mxu2 }
 0x1e4   :  { %v769_v16 = vmul.f32 0.1, %v722_v63 }
 0x1e6   :  { %v801_v17 = vmax.f32 %v722_v63, %v769_v16 }
 0x1e8   :  { %v833_v18 = vpack.c.bf16 %v801_v17, %v801_v17 }
 0x1ea   :  { %866 = vst.msk [vmem:[%s1607_s3 + $0x58] sm:$0xf] %vm843_vm1, %v833_v18 }
 0x1eb   :  { %v724_v54 = vpop.f32.mrf.mxu2 }
 0x1ec   :  { %v770_v20 = vmul.f32 0.1, %v724_v54 }
 0x1ee   :  { %v802_v21 = vmax.f32 %v724_v54, %v770_v20 }
 0x1f0   :  { %v834_v22 = vpack.c.bf16 %v802_v21, %v802_v21 }
 0x1f2   :  { %867 = vst.msk [vmem:[%s1607_s3 + $0x5c] sm:$0xf] %vm843_vm1, %v834_v22 }
 0x1f3   :  { %v727_v19 = vpop.f32.mrf.mxu2 }
 0x1f4   :  { %v771_v23 = vmul.f32 0.1, %v727_v19 }
 0x1f6   :  { %v803_v25 = vmax.f32 %v727_v19, %v771_v23 }
 0x1f8   :  { %v835_v26 = vpack.c.bf16 %v803_v25, %v803_v25 }
 0x1fa   :  { %868 = vst.msk [vmem:[%s1607_s3 + $0x60] sm:$0xf] %vm843_vm1, %v835_v26 }
 0x1fb   :  { %v729_v27 = vpop.f32.mrf.mxu2 }
 0x1fc   :  { %v772_v29 = vmul.f32 0.1, %v729_v27 }
 0x1fe   :  { %v804_v30 = vmax.f32 %v729_v27, %v772_v29 }
 0x200   :  { %v836_v5 = vpack.c.bf16 %v804_v30, %v804_v30 }
 0x202   :  { %869 = vst.msk [vmem:[%s1607_s3 + $0x64] sm:$0xf] %vm843_vm1, %v836_v5 }
 0x203   :  { %v732_v31 = vpop.f32.mrf.mxu2 }
 0x204   :  { %v773_v32 = vmul.f32 0.1, %v732_v31 }
 0x206   :  { %v805_v33 = vmax.f32 %v732_v31, %v773_v32 }
 0x208   :  { %v837_v34 = vpack.c.bf16 %v805_v33, %v805_v33 }
 0x20a   :  { %870 = vst.msk [vmem:[%s1607_s3 + $0x68] sm:$0xf] %vm843_vm1, %v837_v34 }
 0x20b   :  { %v734_v36 = vpop.f32.mrf.mxu2 }
 0x20c   :  { %v774_v37 = vmul.f32 0.1, %v734_v36 }
 0x20e   :  { %v806_v39 = vmax.f32 %v734_v36, %v774_v37 }
 0x210   :  { %v838_v40 = vpack.c.bf16 %v806_v39, %v806_v39 }
 0x212   :  { %871 = vst.msk [vmem:[%s1607_s3 + $0x6c] sm:$0xf] %vm843_vm1, %v838_v40 }

// kernel: net_forward.119
= control target key start
LH: loop header
LB: loop body
LE: loop exit
PB: predicated region body
PF: predicated region fallthrough
CT: control target
= control target key end

     0   :  { %s2462_s9 = smov 0   ;;  %s2464_s10 = smov 0   ;;  %s3169_s0 = inlined_call_operand.vmem [shape: bf16[2,20,20,8], index: 0, kind: input, shape index: {}]   ;;  %s3170_s1 = inlined_call_operand.vmem [shape: bf16[9,8,64], index: 1, kind: input, shape index: {}]   ;;  %s3171_s2 = inlined_call_operand.vmem [shape: f32[2,256,64], index: 2, kind: output, shape index: {}]  }
   0x1   :  { %s2466_s11 = smov 0   ;;  %s2468_s12 = smov 0  }
   0x2   :  { %s2470_s13 = smov 0  }
   0x3 LB: > { %s21_s14 = sadd.s32 1, %s2437_s11  ;;  %s24_s15 = sadd.s32 1, %s2441_s12  ;;  %s2445_s13 = sphi %s2470_s13, %s12_s13   ;;  %s2441_s12 = sphi %s2468_s12, %s3179_s12   ;;  %s2437_s11 = sphi %s2466_s11, %s3178_s11   ;;  %s2433_s10 = sphi %s2464_s10, %s3177_s10   ;;  %s2429_s9 = sphi %s2462_s9, %s3176_s9  }
   0x4   : > { %p22_p0 = scmp.ge.s32.totalorder %s21_s14, 2  ;;  %p1988_p1 = scmp.ge.s32.totalorder %s2445_s13, 1 }
   0x5   : > { %p126_p2 = scmp.lt.s32.totalorder %s2445_s13, 5 }
   0x6   : > { %s3181_s14 = smov (%p22_p0, %s21_s14), 0  ;;  %s3183_s15 = smov (!%p22_p0, %s24_s15), %s2441_s12 }
   0x7   : > { %p127_p3 = pnand %p1988_p1, %p126_p2  ;;  %p26_p4 = scmp.ge.s32.totalorder %s3183_s15, 2 }
   0x8   : > { %p152_p5 = scmp.lt.s32.totalorder (!%p127_p3), %s2433_s10, 1  ;;  %s2338_s24 = smul.u32 (!%p127_p3), 96, %s2429_s9 }
   0x9   : > { %s3185_s15 = smov (%p26_p4, %s3183_s15), 0  ;;  %130 = sbr.rel (%p127_p3) target bundleno = 450 (0x1c2), region = 28 }
   0xa   : > { %s1990_s19 = sshll.u32 (!%p127_p3), %s2429_s9, 4 }
   0xb   : > { %p160_p6 = scmp.lt.s32.totalorder (!%p127_p3), %s1990_s19, 31 }
   0xe   : > { %v2004_v0 = vld [vmem:[%s3170_s1 + $0x4] sm:$0xf]  ;;  %vm339_vm0 = vcmask 1043456   ;;  %v2061_v2 = vld [vmem:[%s3170_s1 + $0x8] sm:$0xf]  ;;  %s3187_s10 = smov (!%p152_p5, %s2433_s10), 1 }
   0xf   : > { %v341_v1 = vsel %vm339_vm0, %v2004_v0, 0  ;;  %v642_v3 = vsel %vm339_vm0, %v2061_v2, 0  ;;  %v2088_v4 = vld [vmem:[%s3170_s1 + $0xc] sm:$0xf]  ;;  %v188_v5 = vld [vmem:[%s3170_s1] sm:$0xf] }
  0x10   : > { %2363 = vmatpush.bf16.msra.mxu1 %v341_v1  ;;  %2364 = vmatpush.bf16.msra.mxu2 %v341_v1  ;;  %v796_v6 = vsel %vm339_vm0, %v2088_v4, 0  ;;  %v449_v7 = vsel %vm339_vm0, %v188_v5, 0  ;;  %v2161_v8 = vld [vmem:[%s3170_s1 + $0x10] sm:$0xf]  ;;  %s2366_s27 = smul.u32 240, %s3187_s10  ;;  %vm229_vm1 = vcmask 1042432  }
  0x11   : > { %2365 = vmatpush.bf16.msra.mxu3 %v341_v1  ;;  %350 = vmatpush.bf16.msra.mxu0 %v341_v1  ;;  %vm230_vm2 = vcmask 1046532   ;;  %v1018_v9 = vsel %vm339_vm0, %v2161_v8, 0  ;;  %vm314_vm4 = vcmask 64512   ;;  %vm532_vm5 = vcmask 1041408   ;;  %s3189_s19 = smov (!%p160_p6, %s1990_s19), 31  ;;  %s1991_s20 = sshll.u32 %s3187_s10, 5 }
  0x12   : > { %s156_s30 = scalar_lea.vmem %s3169_s0, %s2366_s27  ;;  %vm2523_vm3 = vmor %vm229_vm1, %vm230_vm2  ;;  %vm533_vm6 = vcmask 1045508   ;;  %s163_s21 = sadd.s32 %s1991_s20, %s3189_s19  ;;  %vm1873_vm8 = vcmask 523264  }
  0x13   : > { %s2521_s3 = scalar_lea.vmem %s156_s30, %s2338_s24  ;;  %vm2636_vm7 = vmor %vm532_vm5, %vm533_vm6  ;;  %s1992_s9 = sshll.u32 %s163_s21, 3 }
  0x14   : > { %651 = vmatpush.bf16.msrb.mxu2 %v642_v3  ;;  %458 = vmatpush.bf16.msrb.mxu1 %v449_v7  ;;  %v2528_v11 = vld [vmem:[%s2521_s3 + $0x1c] sm:$0xf]  ;;  %v193_v12 = vld [vmem:[%s2521_s3 + $0x18] sm:$0xe]  ;;  %v194_v13 = vld [vmem:[%s2521_s3 + $0x20] sm:$0x1]  ;;  %s3105_s24 = scalar_lea.vmem %s3171_s2, %s1992_s9 }
  0x15   : > { %805 = vmatpush.bf16.msrb.mxu3 %v796_v6  ;;  %1027 = vmatpush.bf16.msrb.mxu0 %v1018_v9  ;;  %v1998_v14 = vrot.slane %v193_v12, 9  ;;  %v248_v15 = vrot.slane %v2528_v11, 5  ;;  %v251_v16 = vrot.slane %v194_v13, 5  ;;  %v2534_v17 = vld [vmem:[%s2521_s3 + $0x34] sm:$0xf] }
  0x16   : > { %v197_v18 = vld [vmem:[%s2521_s3 + $0x30] sm:$0xe]  ;;  %v198_v19 = vld [vmem:[%s2521_s3 + $0x38] sm:$0x1]  ;;  %v262_v20 = vrot.slane %v2534_v17, 5 }
  0x17   : > { %v249_v21 = vsel %vm2523_vm3, %v1998_v14, %v248_v15  ;;  %v250_v22 = vrot.slane %v248_v15, 4  ;;  %v2000_v23 = vrot.slane %v197_v18, 9  ;;  %v265_v24 = vrot.slane %v198_v19, 5  ;;  %v2542_v25 = vld [vmem:[%s2521_s3 + $0x4c] sm:$0xf] }
  0x18   : > { %v294_v26 = vunpack.c.l.b16 %v249_v21  ;;  %v264_v27 = vrot.slane %v262_v20, 4  ;;  %v201_v28 = vld [vmem:[%s2521_s3 + $0x48] sm:$0xe]  ;;  %v202_v29 = vld [vmem:[%s2521_s3 + $0x50] sm:$0x1]  ;;  %v276_v30 = vrot.slane %v2542_v25, 5 }
  0x19   : > { %v252_v31 = vsel %vm2523_vm3, %v250_v22, %v251_v16  ;;  %v263_v32 = vsel %vm2523_vm3, %v2000_v23, %v262_v20  ;;  %v2002_v33 = vrot.slane %v201_v28, 9  ;;  %v279_v34 = vrot.slane %v202_v29, 5  ;;  %v2552_v35 = vld [vmem:[%s2521_s3 + $0x4] sm:$0xf]  ;;  %v189_v36 = vld [vmem:[%s2521_s3] sm:$0xe] }
  0x1a   : > { %v295_v37 = vunpack.c.l.b16 %v252_v31  ;;  %v266_v38 = vsel %vm2523_vm3, %v264_v27, %v265_v24  ;;  %v298_v39 = vunpack.c.l.b16 %v263_v32  ;;  %v278_v40 = vrot.slane %v276_v30, 4  ;;  %v190_v41 = vld [vmem:[%s2521_s3 + $0x8] sm:$0x1]  ;;  %v195_v47 = vld [vmem:[%s2521_s3 + $0x24] sm:$0xe] }
  0x1b   : > { %v299_v42 = vunpack.c.l.b16 %v266_v38  ;;  %v277_v43 = vsel %vm2523_vm3, %v2002_v33, %v276_v30  ;;  %v1996_v44 = vrot.slane %v189_v36, 9  ;;  %v234_v45 = vrot.slane %v2552_v35, 5  ;;  %v2562_v46 = vld [vmem:[%s2521_s3 + $0x28] sm:$0xf]  ;;  %v196_v52 = vld [vmem:[%s2521_s3 + $0x2c] sm:$0x1] }
  0x1c   : > { %v308_v48 = vpack.c.b16 %v295_v37, %v294_v26  ;;  %v280_v49 = vsel %vm2523_vm3, %v278_v40, %v279_v34  ;;  %v302_v50 = vunpack.c.l.b16 %v277_v43  ;;  %v237_v51 = vrot.slane %v190_v41, 5  ;;  %v2569_v53 = vld [vmem:[%s2521_s3 + $0x40] sm:$0xf]  ;;  %v199_v58 = vld [vmem:[%s2521_s3 + $0x3c] sm:$0xe] }
  0x1d   : > { %v310_v54 = vpack.c.b16 %v299_v42, %v298_v39  ;;  %v303_v55 = vunpack.c.l.b16 %v280_v49  ;;  %v235_v56 = vsel %vm2523_vm3, %v1996_v44, %v234_v45  ;;  %v236_v57 = vrot.slane %v234_v45, 4  ;;  %v200_v59 = vld [vmem:[%s2521_s3 + $0x44] sm:$0x1]  ;;  %v2578_v62 = vld [vmem:[%s2521_s3 + $0x58] sm:$0xf] }
  0x1e   : > { %2007 = vmatmul.msk.bf16.vlgmr.msra.gmra.mxu1 %vm314_vm4, %v308_v48  ;;  %v290_v60 = vunpack.c.l.b16 %v235_v56  ;;  %v255_v61 = vrot.slane %v2562_v46, 5  ;;  %v203_v63 = vld [vmem:[%s2521_s3 + $0x54] sm:$0xe]  ;;  %v1999_v2 = vrot.slane %v195_v47, 9  ;;  %v258_v3 = vrot.slane %v196_v52, 5 }
  0x1f   : > { %2009 = vmatmul.msk.bf16.vlgmr.msra.gmra.mxu2 %vm314_vm4, %v310_v54  ;;  %v312_v0 = vpack.c.b16 %v303_v55, %v302_v50  ;;  %v238_v1 = vsel %vm2523_vm3, %v236_v57, %v237_v51  ;;  %v2001_v6 = vrot.slane %v199_v58, 9  ;;  %v269_v7 = vrot.slane %v2569_v53, 5  ;;  %v204_v8 = vld [vmem:[%s2521_s3 + $0x5c] sm:$0x1]  ;;  %v2589_v14 = vld [vmem:[%s2521_s3 + $0x10] sm:$0xf] }
  0x20   : > { %v291_v4 = vunpack.c.l.b16 %v238_v1  ;;  %v257_v5 = vrot.slane %v255_v61, 4  ;;  %v272_v9 = vrot.slane %v200_v59, 5  ;;  %v2003_v12 = vrot.slane %v203_v63, 9  ;;  %v191_v18 = vld [vmem:[%s2521_s3 + $0xc] sm:$0xe] }
  0x21   : > { %2011 = vmatmul.msk.bf16.vlgmr.msra.gmra.mxu3 %vm314_vm4, %v312_v0  ;;  %v283_v13 = vrot.slane %v2578_v62, 5  ;;  %v271_v16 = vrot.slane %v269_v7, 4  ;;  %v192_v19 = vld [vmem:[%s2521_s3 + $0x14] sm:$0x1]  ;;  %v256_v20 = vsel %vm2523_vm3, %v1999_v2, %v255_v61  ;;  %v270_v23 = vsel %vm2523_vm3, %v2001_v6, %v269_v7  ;;  %v2221_v34 = vld [vmem:[%s3170_s1 + $0x18] sm:$0xf] }
  0x22   : > { %v306_v15 = vpack.c.b16 %v291_v4, %v290_v60  ;;  %v259_v21 = vsel %vm2523_vm3, %v257_v5, %v258_v3  ;;  %v286_v26 = vrot.slane %v204_v8, 5  ;;  %v1997_v28 = vrot.slane %v191_v18, 9  ;;  %v2294_v40 = vld [vmem:[%s3170_s1 + $0x1c] sm:$0xf]  ;;  %v2194_v45 = vld [vmem:[%s3170_s1 + $0x14] sm:$0xf] }
  0x23   : > { %v285_v22 = vrot.slane %v283_v13, 4  ;;  %v273_v24 = vsel %vm2523_vm3, %v271_v16, %v272_v9  ;;  %v284_v27 = vsel %vm2523_vm3, %v2003_v12, %v283_v13  ;;  %v241_v29 = vrot.slane %v2589_v14, 5  ;;  %v2327_v48 = vld [vmem:[%s3170_s1 + $0x20] sm:$0xf]  ;;  %v501_v58 = vld [vmem:[%s2521_s3 + $0x8] sm:$0x3] }
  0x24   : > { %2005 = vmatmul.msk.bf16.vlgmr.msra.gmra.mxu0 %vm314_vm4, %v306_v15  ;;  %v244_v30 = vrot.slane %v192_v19, 5  ;;  %v296_v31 = vunpack.c.l.b16 %v256_v20  ;;  %v297_v32 = vunpack.c.l.b16 %v259_v21  ;;  %v300_v36 = vunpack.c.l.b16 %v270_v23  ;;  %v500_v57 = vld [vmem:[%s2521_s3] sm:$0xc]  ;;  %v2632_v60 = vld [vmem:[%s2521_s3 + $0x1c] sm:$0xf] }
  0x25   : > { %v287_v33 = vsel %vm2523_vm3, %v285_v22, %v286_v26  ;;  %v301_v37 = vunpack.c.l.b16 %v273_v24  ;;  %v243_v38 = vrot.slane %v241_v29, 4  ;;  %v304_v39 = vunpack.c.l.b16 %v284_v27  ;;  %v2129_v3 = vld [vmem:[%s2521_s3 + $0x18] sm:$0xe]  ;;  %v2131_v4 = vld [vmem:[%s2521_s3 + $0x20] sm:$0x1] }
  0x26   : > { %v305_v41 = vunpack.c.l.b16 %v287_v33  ;;  %v242_v42 = vsel %vm2523_vm3, %v1997_v28, %v241_v29  ;;  %v1378_v44 = vsel %vm339_vm0, %v2221_v34, 0  ;;  %v309_v47 = vpack.c.b16 %v297_v32, %v296_v31  ;;  %v2339_v18 = vld [vmem:[%s2521_s3] sm:$0xff]  ;;  %v2347_v23 = vld [vmem:[%s2521_s3 + $0x18] sm:$0xff]  ;;  %v502_v24 = vld [vmem:[%s2521_s3 + $0xc] sm:$0xc] }
  0x27   : > { %v245_v43 = vsel %vm2523_vm3, %v243_v38, %v244_v30  ;;  %1387 = vmatpush.bf16.msra.mxu2 %v1378_v44  ;;  %v311_v49 = vpack.c.b16 %v301_v37, %v300_v36  ;;  %v1600_v50 = vsel %vm339_vm0, %v2294_v40, 0  ;;  %v537_v51 = vrot.slane %v2552_v35, 6  ;;  %v503_v26 = vld [vmem:[%s2521_s3 + $0x14] sm:$0x3]  ;;  %v2659_v27 = vld [vmem:[%s2521_s3 + $0x28] sm:$0xf] }
  0x28   : > { %v292_v52 = vunpack.c.l.b16 %v242_v42  ;;  %v293_v54 = vunpack.c.l.b16 %v245_v43  ;;  %1609 = vmatpush.bf16.msra.mxu3 %v1600_v50  ;;  %v1224_v55 = vsel %vm339_vm0, %v2194_v45, 0  ;;  %v313_v56 = vpack.c.b16 %v305_v41, %v304_v39  ;;  %v2132_v33 = vld [vmem:[%s2521_s3 + $0x24] sm:$0xe]  ;;  %v2340_v44 = vld [vmem:[%s2521_s3 + $0xc] sm:$0xff] }
  0x29   : > { %1233 = vmatpush.bf16.msra.mxu1 %v1224_v55  ;;  %v1806_v59 = vsel %vm339_vm0, %v2327_v48, 0  ;;  %v2053_v61 = vrot.slane %v500_v57, 10  ;;  %v539_v63 = vrot.slane %v537_v51, 4  ;;  %v540_v0 = vrot.slane %v501_v58, 6  ;;  %v2348_v50 = vld [vmem:[%s2521_s3 + $0x24] sm:$0xff] }
  0x2a   : > { %1815 = vmatpush.bf16.msra.mxu0 %v1806_v59  ;;  %v307_v35 = vpack.c.b16 %v293_v54, %v292_v52  ;;  %v913_v2 = vrot.slane %v2632_v60, 5  ;;  %v2153_v7 = vrot.slane %v2129_v3, 9  ;;  %v916_v9 = vrot.slane %v2131_v4, 5  ;;  %v505_v52 = vld [vmem:[%s2521_s3 + $0x20] sm:$0x3] }
  0x2b   : > { %v538_v5 = vsel %vm2636_vm7, %v2053_v61, %v537_v51  ;;  %v541_v6 = vsel %vm2636_vm7, %v539_v63, %v540_v0  ;;  %v544_v22 = vrot.slane %v2589_v14, 6  ;;  %v2054_v29 = vrot.slane %v502_v24, 10  ;;  %v2134_v14 = vld [vmem:[%s2521_s3 + $0x2c] sm:$0x1]  ;;  %v504_v51 = vld [vmem:[%s2521_s3 + $0x18] sm:$0xc] }
  0x2c   : > { %v915_v8 = vrot.slane %v913_v2, 4  ;;  %v593_v12 = vunpack.c.l.b16 %v538_v5  ;;  %v594_v13 = vunpack.c.l.b16 %v541_v6  ;;  %v914_v15 = vsel %vm2523_vm3, %v2153_v7, %v913_v2  ;;  %v2682_v54 = vld [vmem:[%s2521_s3 + $0x34] sm:$0xf] }
  0x2d   : > { %v969_v20 = vunpack.c.l.b16 %v914_v15  ;;  %v546_v30 = vrot.slane %v544_v22, 4  ;;  %v547_v31 = vrot.slane %v503_v26, 6  ;;  %v920_v32 = vrot.slane %v2659_v27, 5 }
  0x2e   : > { %2008 = vmatmul.msk.bf16.gmra.mxu1 %vm314_vm4, %v309_v47  ;;  %v917_v16 = vsel %vm2523_vm3, %v915_v8, %v916_v9  ;;  %v609_v19 = vpack.c.b16 %v594_v13, %v593_v12  ;;  %v545_v34 = vsel %vm2636_vm7, %v2054_v29, %v544_v22  ;;  %v2154_v37 = vrot.slane %v2132_v33, 9  ;;  %v2341_v8 = vld [vmem:[%s2521_s3 + $0x18] sm:$0xff] }
  0x2f   : > { %2010 = vmatmul.msk.bf16.gmra.mxu2 %vm314_vm4, %v311_v49  ;;  %v970_v21 = vunpack.c.l.b16 %v917_v16  ;;  %v548_v36 = vsel %vm2636_vm7, %v546_v30, %v547_v31  ;;  %v922_v38 = vrot.slane %v920_v32, 4  ;;  %v923_v39 = vrot.slane %v2134_v14, 5  ;;  %v2349_v16 = vld [vmem:[%s2521_s3 + $0x30] sm:$0xff] }
  0x30   : > { %v595_v40 = vunpack.c.l.b16 %v545_v34  ;;  %v596_v41 = vunpack.c.l.b16 %v548_v36  ;;  %v921_v42 = vsel %vm2523_vm3, %v2154_v37, %v920_v32  ;;  %v551_v49 = vrot.slane %v2528_v11, 6  ;;  %v2137_v11 = vld [vmem:[%s2521_s3 + $0x38] sm:$0x1] }
  0x31   : > { %2012 = vmatmul.msk.bf16.gmra.mxu3 %vm314_vm4, %v313_v56  ;;  %v985_v28 = vpack.c.b16 %v970_v21, %v969_v20  ;;  %v924_v43 = vsel %vm2523_vm3, %v922_v38, %v923_v39  ;;  %v971_v47 = vunpack.c.l.b16 %v921_v42  ;;  %v2055_v56 = vrot.slane %v504_v51, 10  ;;  %v2705_v20 = vld [vmem:[%s2521_s3 + $0x40] sm:$0xf]  ;;  %v2342_v38 = vld [vmem:[%s2521_s3 + $0x24] sm:$0xff] }
  0x32   : > { %v610_v45 = vpack.c.b16 %v596_v41, %v595_v40  ;;  %v972_v48 = vunpack.c.l.b16 %v924_v43  ;;  %v553_v57 = vrot.slane %v551_v49, 4  ;;  %v554_v58 = vrot.slane %v505_v52, 6  ;;  %v2350_v43 = vld [vmem:[%s2521_s3 + $0x3c] sm:$0xff] }
  0x33   : > { %v927_v59 = vrot.slane %v2682_v54, 5  ;;  %v552_v61 = vsel %vm2636_vm7, %v2055_v56, %v551_v49  ;;  %v930_v3 = vrot.slane %v2137_v11, 5  ;;  %v558_v15 = vrot.slane %v2562_v46, 6  ;;  %v2140_v46 = vld [vmem:[%s2521_s3 + $0x44] sm:$0x1] }
  0x34   : > { %2006 = vmatmul.msk.bf16.gmra.mxu0 %vm314_vm4, %v307_v35  ;;  %v986_v55 = vpack.c.b16 %v972_v48, %v971_v47  ;;  %v2135_v35 = vld [vmem:[%s2521_s3 + $0x30] sm:$0xe]  ;;  %v555_v63 = vsel %vm2636_vm7, %v553_v57, %v554_v58  ;;  %v597_v4 = vunpack.c.l.b16 %v552_v61  ;;  %v934_v26 = vrot.slane %v2705_v20, 5  ;;  %v2728_v47 = vld [vmem:[%s2521_s3 + $0x4c] sm:$0xf] }
  0x35   : > { %v2155_v0 = vrot.slane %v2135_v35, 9  ;;  %v929_v2 = vrot.slane %v927_v59, 4  ;;  %v598_v5 = vunpack.c.l.b16 %v555_v63  ;;  %v937_v33 = vrot.slane %v2140_v46, 5 }
  0x36   : > { %v936_v32 = vrot.slane %v934_v26, 4  ;;  %v565_v42 = vrot.slane %v2534_v17, 6  ;;  %v941_v52 = vrot.slane %v2728_v47, 5  ;;  %v2143_v17 = vld [vmem:[%s2521_s3 + $0x50] sm:$0x1] }
  0x37   : > { %v928_v6 = vsel %vm2523_vm3, %v2155_v0, %v927_v59  ;;  %v931_v7 = vsel %vm2523_vm3, %v929_v2, %v930_v3  ;;  %v611_v9 = vpack.c.b16 %v598_v5, %v597_v4  ;;  %v944_v35 = vrot.slane %v2143_v17, 5  ;;  %v2343_v2 = vld [vmem:[%s2521_s3 + $0x30] sm:$0xff] }
  0x38   : > { %v973_v12 = vunpack.c.l.b16 %v928_v6  ;;  %v974_v13 = vunpack.c.l.b16 %v931_v7  ;;  %v938_v37 = vsel %vm2523_vm3, %v936_v32, %v937_v33  ;;  %v943_v59 = vrot.slane %v941_v52, 4  ;;  %v2351_v7 = vld [vmem:[%s2521_s3 + $0x48] sm:$0xff]  ;;  %v2344_v32 = vld [vmem:[%s2521_s3 + $0x3c] sm:$0xff] }
  0x39   : > { %v976_v41 = vunpack.c.l.b16 %v938_v37  ;;  %v572_v6 = vrot.slane %v2569_v53, 6  ;;  %v2146_v53 = vld [vmem:[%s2521_s3 + $0x5c] sm:$0x1]  ;;  %v2352_v37 = vld [vmem:[%s2521_s3 + $0x54] sm:$0xff] }
  0x3a   : > { %v987_v21 = vpack.c.b16 %v974_v13, %v973_v12  ;;  %v945_v0 = vsel %vm2523_vm3, %v943_v59, %v944_v35  ;;  %v2751_v12 = vld [vmem:[%s2521_s3 + $0x58] sm:$0xf]  ;;  %v2345_v59 = vld [vmem:[%s2521_s3 + $0x48] sm:$0xff] }
  0x3b   : > { %v978_v5 = vunpack.c.l.b16 %v945_v0  ;;  %v586_v0 = vrot.slane %v2578_v62, 6 }
  0x3e   : > { %2045 = vmatmul.msk.bf16.vlgmr.msrb.gmra.mxu1 %vm314_vm4, %v2339_v18  ;;  %v506_v18 = vld [vmem:[%s2521_s3 + $0x24] sm:$0xc] }
  0x3f   : > { %2062 = vmatmul.msk.bf16.vlgmr.msrb.gmra.mxu2 %vm314_vm4, %v609_v19  ;;  %v507_v19 = vld [vmem:[%s2521_s3 + $0x2c] sm:$0x3]  ;;  %v2056_v22 = vrot.slane %v506_v18, 10 }
  0x40   : > { %v561_v24 = vrot.slane %v507_v19, 6  ;;  %v948_v19 = vrot.slane %v2751_v12, 5 }
  0x41   : > { %2121 = vmatmul.msk.bf16.vlgmr.msrb.gmra.mxu3 %vm314_vm4, %v2347_v23  ;;  %v560_v23 = vrot.slane %v558_v15, 4  ;;  %v559_v29 = vsel %vm2636_vm7, %v2056_v22, %v558_v15 }
  0x42   : > { %v599_v14 = vunpack.c.l.b16 %v559_v29 }
  0x43   : > { %v562_v30 = vsel %vm2636_vm7, %v560_v23, %v561_v24 }
  0x44   : > { %2162 = vmatmul.msk.bf16.vlgmr.msrb.gmra.mxu0 %vm314_vm4, %v985_v28  ;;  %v2138_v28 = vld [vmem:[%s2521_s3 + $0x3c] sm:$0xe]  ;;  %v600_v34 = vunpack.c.l.b16 %v562_v30 }
  0x45   : > { %v2156_v31 = vrot.slane %v2138_v28, 9  ;;  %v951_v28 = vrot.slane %v2146_v53, 5 }
  0x46   : > { %v612_v39 = vpack.c.b16 %v600_v34, %v599_v14 }
  0x47   : > { %v935_v36 = vsel %vm2523_vm3, %v2156_v31, %v934_v26  ;;  %v950_v26 = vrot.slane %v948_v19, 4 }
  0x48   : > { %v975_v40 = vunpack.c.l.b16 %v935_v36  ;;  %v579_v36 = vrot.slane %v2542_v25, 6  ;;  %v2149_v25 = vld [vmem:[%s2521_s3 + $0x68] sm:$0x1] }
  0x49   : > { %v952_v31 = vsel %vm2523_vm3, %v950_v26, %v951_v28 }
  0x4a   : > { %v988_v48 = vpack.c.b16 %v976_v41, %v975_v40  ;;  %v980_v34 = vunpack.c.l.b16 %v952_v31  ;;  %v2774_v40 = vld [vmem:[%s2521_s3 + $0x64] sm:$0xf] }
  0x4e   : > { %2046 = vmatmul.msk.bf16.gmra.mxu1 %vm314_vm4, %v2340_v44  ;;  %v508_v44 = vld [vmem:[%s2521_s3 + $0x30] sm:$0xc] }
  0x4f   : > { %2063 = vmatmul.msk.bf16.gmra.mxu2 %vm314_vm4, %v610_v45  ;;  %v509_v45 = vld [vmem:[%s2521_s3 + $0x38] sm:$0x3]  ;;  %v2057_v49 = vrot.slane %v508_v44, 10 }
  0x50   : > { %v568_v51 = vrot.slane %v509_v45, 6  ;;  %v955_v45 = vrot.slane %v2774_v40, 5 }
  0x51   : > { %2122 = vmatmul.msk.bf16.gmra.mxu3 %vm314_vm4, %v2348_v50  ;;  %v567_v50 = vrot.slane %v565_v42, 4  ;;  %v566_v56 = vsel %vm2636_vm7, %v2057_v49, %v565_v42 }
  0x52   : > { %v601_v11 = vunpack.c.l.b16 %v566_v56 }
  0x53   : > { %v569_v57 = vsel %vm2636_vm7, %v567_v50, %v568_v51 }
  0x54   : > { %2163 = vmatmul.msk.bf16.gmra.mxu0 %vm314_vm4, %v986_v55  ;;  %v2141_v55 = vld [vmem:[%s2521_s3 + $0x48] sm:$0xe]  ;;  %v602_v61 = vunpack.c.l.b16 %v569_v57 }
  0x55   : > { %v2157_v58 = vrot.slane %v2141_v55, 9  ;;  %v958_v55 = vrot.slane %v2149_v25, 5 }
  0x56   : > { %v613_v3 = vpack.c.b16 %v602_v61, %v601_v11 }
  0x57   : > { %v942_v63 = vsel %vm2523_vm3, %v2157_v58, %v941_v52  ;;  %v957_v52 = vrot.slane %v955_v45, 4 }
  0x58   : > { %v977_v4 = vunpack.c.l.b16 %v942_v63 }
  0x59   : > { %v959_v58 = vsel %vm2523_vm3, %v957_v52, %v958_v55 }
  0x5a   : > { %v989_v13 = vpack.c.b16 %v978_v5, %v977_v4  ;;  %v982_v63 = vunpack.c.l.b16 %v959_v58  ;;  %v515_v4 = vld [vmem:[%s2521_s3 + $0x5c] sm:$0x3]  ;;  %v2799_v5 = vld [vmem:[%s2521_s3 + $0x70] sm:$0xf] }
  0x5b   : > { %v962_v62 = vrot.slane %v2799_v5, 5 }
  0x5e   : > { %2047 = vmatmul.msk.bf16.gmra.mxu1 %vm314_vm4, %v2341_v8  ;;  %v510_v8 = vld [vmem:[%s2521_s3 + $0x3c] sm:$0xc] }
  0x5f   : > { %2064 = vmatmul.msk.bf16.gmra.mxu2 %vm314_vm4, %v611_v9  ;;  %v511_v9 = vld [vmem:[%s2521_s3 + $0x44] sm:$0x3]  ;;  %v2058_v15 = vrot.slane %v510_v8, 10  ;;  %v588_v8 = vrot.slane %v586_v0, 4 }
  0x60   : > { %v575_v18 = vrot.slane %v511_v9, 6  ;;  %v589_v9 = vrot.slane %v515_v4, 6 }
  0x61   : > { %2123 = vmatmul.msk.bf16.gmra.mxu3 %vm314_vm4, %v2349_v16  ;;  %v574_v16 = vrot.slane %v572_v6, 4  ;;  %v573_v22 = vsel %vm2636_vm7, %v2058_v15, %v572_v6 }
  0x62   : > { %v603_v46 = vunpack.c.l.b16 %v573_v22  ;;  %v590_v22 = vsel %vm2636_vm7, %v588_v8, %v589_v9 }
  0x63   : > { %v576_v23 = vsel %vm2636_vm7, %v574_v16, %v575_v18  ;;  %v2150_v16 = vld [vmem:[%s2521_s3 + $0x6c] sm:$0xe]  ;;  %v2152_v18 = vld [vmem:[%s2521_s3 + $0x74] sm:$0x1] }
  0x64   : > { %2164 = vmatmul.msk.bf16.gmra.mxu0 %vm314_vm4, %v987_v21  ;;  %v2144_v21 = vld [vmem:[%s2521_s3 + $0x54] sm:$0xe]  ;;  %v604_v29 = vunpack.c.l.b16 %v576_v23  ;;  %v2160_v23 = vrot.slane %v2150_v16, 9  ;;  %v965_v26 = vrot.slane %v2152_v18, 5 }
  0x65   : > { %v2158_v24 = vrot.slane %v2144_v21, 9 }
  0x66   : > { %v614_v33 = vpack.c.b16 %v604_v29, %v603_v46  ;;  %v608_v46 = vunpack.c.l.b16 %v590_v22 }
  0x67   : > { %v949_v30 = vsel %vm2523_vm3, %v2158_v24, %v948_v19  ;;  %v964_v24 = vrot.slane %v962_v62, 4 }
  0x68   : > { %v979_v14 = vunpack.c.l.b16 %v949_v30  ;;  %v963_v30 = vsel %vm2523_vm3, %v2160_v23, %v962_v62 }
  0x69   : > { %v966_v31 = vsel %vm2523_vm3, %v964_v24, %v965_v26 }
  0x6a   : > { %v990_v41 = vpack.c.b16 %v980_v34, %v979_v14  ;;  %v1119_v14 = vrot.slane %v2632_v60, 6 }
  0x6c   : > { %v1121_v25 = vrot.slane %v1119_v14, 4 }
  0x6e   : > { %2048 = vmatmul.msk.bf16.gmra.mxu1 %vm314_vm4, %v2342_v38  ;;  %v512_v38 = vld [vmem:[%s2521_s3 + $0x48] sm:$0xc] }
  0x6f   : > { %2065 = vmatmul.msk.bf16.gmra.mxu2 %vm314_vm4, %v612_v39  ;;  %v513_v39 = vld [vmem:[%s2521_s3 + $0x50] sm:$0x3]  ;;  %v2059_v42 = vrot.slane %v512_v38, 10 }
  0x70   : > { %v582_v44 = vrot.slane %v513_v39, 6  ;;  %v983_v39 = vunpack.c.l.b16 %v963_v30  ;;  %v1126_v30 = vrot.slane %v2659_v27, 6 }
  0x71   : > { %2124 = vmatmul.msk.bf16.gmra.mxu3 %vm314_vm4, %v2350_v43  ;;  %v581_v43 = vrot.slane %v579_v36, 4  ;;  %v580_v49 = vsel %vm2636_vm7, %v2059_v42, %v579_v36  ;;  %v2170_v42 = vld [vmem:[%s2521_s3 + $0x18] sm:$0xc] }
  0x72   : > { %v605_v17 = vunpack.c.l.b16 %v580_v49  ;;  %v2186_v60 = vrot.slane %v2170_v42, 10 }
  0x73   : > { %v583_v50 = vsel %vm2636_vm7, %v581_v43, %v582_v44  ;;  %v2171_v43 = vld [vmem:[%s2521_s3 + $0x20] sm:$0x3]  ;;  %v2354_v44 = vld [vmem:[%s2521_s3 + $0x6c] sm:$0xff] }
  0x74   : > { %2165 = vmatmul.msk.bf16.gmra.mxu0 %vm314_vm4, %v988_v48  ;;  %v2147_v48 = vld [vmem:[%s2521_s3 + $0x60] sm:$0xe]  ;;  %v606_v56 = vunpack.c.l.b16 %v583_v50  ;;  %v1122_v49 = vrot.slane %v2171_v43, 6  ;;  %v2264_v50 = vld [vmem:[%s2521_s3 + $0x38] sm:$0x1] }
  0x75   : > { %v2159_v51 = vrot.slane %v2147_v48, 9  ;;  %v1498_v58 = vrot.slane %v2264_v50, 5  ;;  %v2265_v43 = vld [vmem:[%s2521_s3 + $0x3c] sm:$0xe] }
  0x76   : > { %v615_v11 = vpack.c.b16 %v606_v56, %v605_v17 }
  0x77   : > { %v956_v57 = vsel %vm2523_vm3, %v2159_v51, %v955_v45  ;;  %v2262_v45 = vld [vmem:[%s2521_s3 + $0x30] sm:$0xe] }
  0x78   : > { %v981_v61 = vunpack.c.l.b16 %v956_v57  ;;  %v2286_v55 = vrot.slane %v2262_v45, 9  ;;  %v1128_v45 = vrot.slane %v1126_v30, 4 }
  0x7a   : > { %v991_v6 = vpack.c.b16 %v982_v63, %v981_v61  ;;  %v1120_v63 = vsel %vm2636_vm7, %v2186_v60, %v1119_v14 }
  0x7e   : > { %2049 = vmatmul.msk.bf16.gmra.mxu1 %vm314_vm4, %v2343_v2  ;;  %v2353_v2 = vld [vmem:[%s2521_s3 + $0x60] sm:$0xff] }
  0x7f   : > { %2066 = vmatmul.msk.bf16.gmra.mxu2 %vm314_vm4, %v613_v3  ;;  %v514_v3 = vld [vmem:[%s2521_s3 + $0x54] sm:$0xc] }
  0x81   : > { %2125 = vmatmul.msk.bf16.gmra.mxu3 %vm314_vm4, %v2351_v7  ;;  %v2060_v7 = vrot.slane %v514_v3, 10 }
  0x83   : > { %v587_v53 = vsel %vm2636_vm7, %v2060_v7, %v586_v0  ;;  %v1123_v0 = vsel %vm2636_vm7, %v1121_v25, %v1122_v49  ;;  %v1175_v7 = vunpack.c.l.b16 %v1120_v63  ;;  %v2267_v25 = vld [vmem:[%s2521_s3 + $0x44] sm:$0x1] }
  0x84   : > { %2166 = vmatmul.msk.bf16.gmra.mxu0 %vm314_vm4, %v989_v13  ;;  %v607_v28 = vunpack.c.l.b16 %v587_v53  ;;  %v1176_v8 = vunpack.c.l.b16 %v1123_v0 }
  0x86   : > { %v616_v36 = vpack.c.b16 %v608_v46, %v607_v28  ;;  %v1191_v26 = vpack.c.b16 %v1176_v8, %v1175_v7  ;;  %v2355_v46 = vld [vmem:[%s2521_s3 + $0x30] sm:$0xff] }
  0x8e   : > { %2050 = vmatmul.msk.bf16.gmra.mxu1 %vm314_vm4, %v2344_v32 }
  0x8f   : > { %2067 = vmatmul.msk.bf16.gmra.mxu2 %vm314_vm4, %v614_v33  ;;  %v2346_v33 = vld [vmem:[%s2521_s3 + $0x54] sm:$0xff] }
  0x91   : > { %2126 = vmatmul.msk.bf16.gmra.mxu3 %vm314_vm4, %v2352_v37  ;;  %v2263_v37 = vld [vmem:[%s2521_s3 + $0x34] sm:$0xf] }
  0x92   : > { %v1495_v48 = vrot.slane %v2263_v37, 5  ;;  %v1701_v17 = vrot.slane %v2263_v37, 6 }
  0x94   : > { %2167 = vmatmul.msk.bf16.gmra.mxu0 %vm314_vm4, %v990_v41  ;;  %v984_v41 = vunpack.c.l.b16 %v966_v31  ;;  %v1497_v57 = vrot.slane %v1495_v48, 4  ;;  %v1703_v4 = vrot.slane %v1701_v17, 4  ;;  %v1496_v9 = vsel %vm2523_vm3, %v2286_v55, %v1495_v48  ;;  %v2266_v31 = vld [vmem:[%s2521_s3 + $0x40] sm:$0xf] }
  0x95   : > { %v1551_v18 = vunpack.c.l.b16 %v1496_v9  ;;  %v1708_v50 = vrot.slane %v2266_v31, 6 }
  0x96   : > { %v992_v51 = vpack.c.b16 %v984_v41, %v983_v39  ;;  %v1499_v62 = vsel %vm2523_vm3, %v1497_v57, %v1498_v58  ;;  %v2172_v39 = vld [vmem:[%s2521_s3 + $0x24] sm:$0xc]  ;;  %v2173_v41 = vld [vmem:[%s2521_s3 + $0x2c] sm:$0x3]  ;;  %v2305_v57 = vld [vmem:[%s2521_s3 + $0x3c] sm:$0xc] }
  0x97   : > { %v1552_v53 = vunpack.c.l.b16 %v1499_v62  ;;  %v2187_v27 = vrot.slane %v2172_v39, 10  ;;  %v1129_v48 = vrot.slane %v2173_v41, 6  ;;  %v2306_v58 = vld [vmem:[%s2521_s3 + $0x44] sm:$0x3]  ;;  %v2320_v7 = vrot.slane %v2305_v57, 10  ;;  %v2356_v41 = vld [vmem:[%s2521_s3 + $0x3c] sm:$0xff] }
  0x98   : > { %v1710_v8 = vrot.slane %v1708_v50, 4  ;;  %v1711_v9 = vrot.slane %v2306_v58, 6 }
  0x99   : > { %v1567_v42 = vpack.c.b16 %v1552_v53, %v1551_v18  ;;  %v1127_v63 = vsel %vm2636_vm7, %v2187_v27, %v1126_v30  ;;  %v1130_v0 = vsel %vm2636_vm7, %v1128_v45, %v1129_v48  ;;  %v2174_v48 = vld [vmem:[%s2521_s3 + $0x30] sm:$0xc] }
  0x9a   : > { %v1177_v62 = vunpack.c.l.b16 %v1127_v63  ;;  %v1178_v18 = vunpack.c.l.b16 %v1130_v0  ;;  %v1712_v30 = vsel %vm2636_vm7, %v1710_v8, %v1711_v9 }
  0x9b   : > { %v2791_v35 = vpop.f32.mrf.mxu1  ;;  %v1760_v45 = vunpack.c.l.b16 %v1712_v30 }
  0x9e   : > { %2051 = vmatmul.msk.bf16.gmra.mxu1 %vm314_vm4, %v2345_v59  ;;  %v2303_v59 = vld [vmem:[%s2521_s3 + $0x30] sm:$0xc] }
  0x9f   : > { %2068 = vmatmul.msk.bf16.gmra.mxu2 %vm314_vm4, %v615_v11  ;;  %v2304_v11 = vld [vmem:[%s2521_s3 + $0x38] sm:$0x3]  ;;  %v2319_v3 = vrot.slane %v2303_v59, 10 }
  0xa1   : > { %v2802_v13 = vpop.f32.mrf.mxu0  ;;  %2127 = vmatmul.msk.bf16.gmra.mxu3 %vm314_vm4, %v2353_v2  ;;  %v1702_v22 = vsel %vm2636_vm7, %v2319_v3, %v1701_v17  ;;  %v1505_v17 = vrot.slane %v2267_v25, 5  ;;  %v2175_v25 = vld [vmem:[%s2521_s3 + $0x38] sm:$0x3] }
  0xa2   : > { %v2806_v15 = vpop.f32.mrf.mxu2 }
  0xa3   : > { %v2810_v19 = vpop.f32.mrf.mxu1 }
  0xa4   : > { %2168 = vmatmul.msk.bf16.gmra.mxu0 %vm314_vm4, %v991_v6  ;;  %v2813_v21 = vpop.f32.mrf.mxu3  ;;  %v1704_v6 = vrot.slane %v2304_v11, 6 }
  0xa6   : > { %v1705_v23 = vsel %vm2636_vm7, %v1703_v4, %v1704_v6 }
  0xa7   : > { %v1758_v37 = vunpack.c.l.b16 %v1705_v23 }
  0xa9   : > { %v2819_v29 = vpop.f32.mrf.mxu0 }
  0xaa   : > { %v2825_v32 = vpop.f32.mrf.mxu2 }
  0xab   : > { %v2829_v34 = vpop.f32.mrf.mxu1 }
  0xac   : > { %v2832_v38 = vpop.f32.mrf.mxu3 }
  0xae   : > { %2052 = vmatmul.msk.bf16.gmra.mxu1 %vm314_vm4, %v2346_v33 }
  0xaf   : > { %2069 = vmatmul.msk.bf16.gmra.mxu2 %vm314_vm4, %v616_v36  ;;  %v1757_v36 = vunpack.c.l.b16 %v1702_v22 }
  0xb1   : > { %v2841_v52 = vpop.f32.mrf.mxu0  ;;  %2128 = vmatmul.msk.bf16.gmra.mxu3 %vm314_vm4, %v2354_v44  ;;  %v1502_v44 = vrot.slane %v2266_v31, 5  ;;  %v1773_v60 = vpack.c.b16 %v1758_v37, %v1757_v36  ;;  %v1133_v36 = vrot.slane %v2682_v54, 6  ;;  %v2188_v54 = vrot.slane %v2174_v48, 10 }
  0xb2   : > { %v2844_v56 = vpop.f32.mrf.mxu2 }
  0xb3   : > { %v2848_v61 = vpop.f32.mrf.mxu1  ;;  %v1504_v55 = vrot.slane %v1502_v44, 4  ;;  %v1134_v9 = vsel %vm2636_vm7, %v2188_v54, %v1133_v36 }
  0xb4   : > { %2169 = vmatmul.msk.bf16.gmra.mxu0 %vm314_vm4, %v992_v51  ;;  %v2855_v2 = vpop.f32.mrf.mxu3 }
  0xb5   : > { %v1506_v22 = vsel %vm2523_vm3, %v1504_v55, %v1505_v17  ;;  %v1136_v55 = vrot.slane %v2175_v25, 6  ;;  %v2270_v17 = vld [vmem:[%s2521_s3 + $0x50] sm:$0x1]  ;;  %v2357_v25 = vld [vmem:[%s2521_s3 + $0x48] sm:$0xff] }
  0xb9   : > { %v2861_v16 = vpop.f32.mrf.mxu0 }
  0xba   : > { %v2867_v24 = vpop.f32.mrf.mxu2 }
  0xbb   : > { %v460_v28 = vpop.f32.mrf.mxu1 }
  0xbc   : > { %v2872_v33 = vpop.f32.mrf.mxu3  ;;  %v461_v14 = vadd.f32 %v460_v28, %v2802_v13  ;;  %v2287_v13 = vrot.slane %v2265_v43, 9 }
  0xbe   : > { %2195 = vmatmul.msk.bf16.vlgmr.msra.gmra.mxu1 %vm314_vm4, %v1191_v26  ;;  %v1503_v53 = vsel %vm2523_vm3, %v2287_v13, %v1502_v44  ;;  %v2268_v13 = vld [vmem:[%s2521_s3 + $0x48] sm:$0xe] }
  0xbf   : > { %2254 = vmatmul.msk.bf16.vlgmr.msra.gmra.mxu2 %vm314_vm4, %v2355_v46  ;;  %v1553_v28 = vunpack.c.l.b16 %v1503_v53  ;;  %v1709_v46 = vsel %vm2636_vm7, %v2320_v7, %v1708_v50 }
  0xc0   : > { %v1759_v27 = vunpack.c.l.b16 %v1709_v46  ;;  %v1179_v46 = vunpack.c.l.b16 %v1134_v9 }
  0xc1   : > { %v1029_v49 = vpop.f32.mrf.mxu0  ;;  %2295 = vmatmul.msk.bf16.vlgmr.msra.gmra.mxu3 %vm314_vm4, %v1567_v42  ;;  %v2269_v42 = vld [vmem:[%s2521_s3 + $0x4c] sm:$0xf] }
  0xc2   : > { %v653_v51 = vpop.f32.mrf.mxu2  ;;  %v1509_v50 = vrot.slane %v2269_v42, 5  ;;  %v1774_v57 = vpack.c.b16 %v1760_v45, %v1759_v27  ;;  %v1140_v27 = vrot.slane %v2705_v20, 6 }
  0xc3   : > { %v693_v59 = vadd.f32 %v653_v51, %v461_v14  ;;  %v462_v11 = vpop.f32.mrf.mxu1  ;;  %v1192_v14 = vpack.c.b16 %v1178_v18, %v1177_v62  ;;  %v1135_v51 = vrot.slane %v1133_v36, 4 }
  0xc4   : > { %2328 = vmatmul.msk.bf16.vlgmr.msra.gmra.mxu0 %vm314_vm4, %v1773_v60  ;;  %v807_v3 = vpop.f32.mrf.mxu3  ;;  %v463_v4 = vadd.f32 %v462_v11, %v2819_v29  ;;  %v1554_v29 = vunpack.c.l.b16 %v1506_v22  ;;  %v1715_v11 = vrot.slane %v2269_v42, 6  ;;  %v1511_v0 = vrot.slane %v1509_v50, 4 }
  0xc5   : > { %v847_v6 = vadd.f32 %v807_v3, %v693_v59  ;;  %v2288_v59 = vrot.slane %v2268_v13, 9  ;;  %v1512_v3 = vrot.slane %v2270_v17, 5  ;;  %v1137_v62 = vsel %vm2636_vm7, %v1135_v51, %v1136_v55  ;;  %v2176_v51 = vld [vmem:[%s2521_s3 + $0x3c] sm:$0xc]  ;;  %v2177_v55 = vld [vmem:[%s2521_s3 + $0x44] sm:$0x3] }
  0xc6   : > { %v1180_v30 = vunpack.c.l.b16 %v1137_v62  ;;  %v2189_v20 = vrot.slane %v2176_v51, 10  ;;  %v2358_v51 = vld [vmem:[%s2521_s3 + $0x54] sm:$0xff] }
  0xc7   : > { %v2894_v23 = vadd.f32 %v1029_v49, %v847_v6  ;;  %v1568_v49 = vpack.c.b16 %v1554_v29, %v1553_v28  ;;  %v2308_v6 = vld [vmem:[%s2521_s3 + $0x50] sm:$0x3]  ;;  %v1717_v28 = vrot.slane %v1715_v11, 4 }
  0xc8   : > { %v1718_v29 = vrot.slane %v2308_v6, 6 }
  0xc9   : > { %v1031_v26 = vpop.f32.mrf.mxu0 }
  0xca   : > { %v655_v31 = vpop.f32.mrf.mxu2  ;;  %v1719_v42 = vsel %vm2636_vm7, %v1717_v28, %v1718_v29  ;;  %v1141_v28 = vsel %vm2636_vm7, %v2189_v20, %v1140_v27  ;;  %v2178_v20 = vld [vmem:[%s2521_s3 + $0x48] sm:$0xc] }
  0xcb   : > { %v694_v37 = vadd.f32 %v655_v31, %v463_v4  ;;  %v465_v39 = vpop.f32.mrf.mxu1  ;;  %v2307_v4 = vld [vmem:[%s2521_s3 + $0x48] sm:$0xc]  ;;  %v1510_v31 = vsel %vm2523_vm3, %v2288_v59, %v1509_v50  ;;  %v1762_v54 = vunpack.c.l.b16 %v1719_v42 }
  0xcc   : > { %v809_v43 = vpop.f32.mrf.mxu3  ;;  %v466_v44 = vadd.f32 %v465_v39, %v2841_v52  ;;  %v1555_v39 = vunpack.c.l.b16 %v1510_v31 }
  0xcd   : > { %v848_v60 = vadd.f32 %v809_v43, %v694_v37 }
  0xce   : > { %2196 = vmatmul.msk.bf16.gmra.mxu1 %vm314_vm4, %v1192_v14  ;;  %v1513_v14 = vsel %vm2523_vm3, %v1511_v0, %v1512_v3  ;;  %v2273_v0 = vld [vmem:[%s2521_s3 + $0x5c] sm:$0x1] }
  0xcf   : > { %2255 = vmatmul.msk.bf16.gmra.mxu2 %vm314_vm4, %v2356_v41  ;;  %v2910_v52 = vadd.f32 %v1031_v26, %v848_v60  ;;  %v2321_v26 = vrot.slane %v2307_v4, 10  ;;  %v2272_v60 = vld [vmem:[%s2521_s3 + $0x58] sm:$0xf]  ;;  %v1519_v62 = vrot.slane %v2273_v0, 5 }
  0xd0   : > { %v1516_v59 = vrot.slane %v2272_v60, 5 }
  0xd1   : > { %v1034_v58 = vpop.f32.mrf.mxu0  ;;  %2296 = vmatmul.msk.bf16.gmra.mxu3 %vm314_vm4, %v1568_v49  ;;  %v1716_v41 = vsel %vm2636_vm7, %v2321_v26, %v1715_v11  ;;  %v1142_v11 = vrot.slane %v1140_v27, 4 }
  0xd2   : > { %v658_v63 = vpop.f32.mrf.mxu2  ;;  %v1761_v50 = vunpack.c.l.b16 %v1716_v41  ;;  %v1518_v9 = vrot.slane %v1516_v59, 4 }
  0xd3   : > { %v695_v7 = vadd.f32 %v658_v63, %v466_v44  ;;  %v467_v8 = vpop.f32.mrf.mxu1  ;;  %v1193_v44 = vpack.c.b16 %v1180_v30, %v1179_v46  ;;  %v1143_v63 = vrot.slane %v2177_v55, 6  ;;  %v2275_v55 = vld [vmem:[%s2521_s3 + $0x64] sm:$0xf] }
  0xd4   : > { %2329 = vmatmul.msk.bf16.gmra.mxu0 %vm314_vm4, %v1774_v57  ;;  %v812_v18 = vpop.f32.mrf.mxu3  ;;  %v468_v53 = vadd.f32 %v467_v8, %v2861_v16  ;;  %v1556_v16 = vunpack.c.l.b16 %v1513_v14  ;;  %v1775_v3 = vpack.c.b16 %v1762_v54, %v1761_v50 }
  0xd5   : > { %v849_v22 = vadd.f32 %v812_v18, %v695_v7  ;;  %v1722_v7 = vrot.slane %v2272_v60, 6  ;;  %v2309_v18 = vld [vmem:[%s2521_s3 + $0x54] sm:$0xc]  ;;  %v1144_v29 = vsel %vm2636_vm7, %v1142_v11, %v1143_v63  ;;  %v2179_v11 = vld [vmem:[%s2521_s3 + $0x50] sm:$0x3] }
  0xd6   : > { %v1569_v57 = vpack.c.b16 %v1556_v16, %v1555_v39  ;;  %v2322_v14 = vrot.slane %v2309_v18, 10  ;;  %v1181_v16 = vunpack.c.l.b16 %v1141_v28  ;;  %v1182_v41 = vunpack.c.l.b16 %v1144_v29  ;;  %v2311_v29 = vld [vmem:[%s2521_s3 + $0x60] sm:$0xc] }
  0xd7   : > { %v2925_v36 = vadd.f32 %v1034_v58, %v849_v22  ;;  %v2271_v58 = vld [vmem:[%s2521_s3 + $0x54] sm:$0xe] }
  0xd8   : > { %v2289_v6 = vrot.slane %v2271_v58, 9 }
  0xd9   : > { %v1036_v37 = vpop.f32.mrf.mxu0 }
  0xda   : > { %v660_v43 = vpop.f32.mrf.mxu2  ;;  %v1517_v42 = vsel %vm2523_vm3, %v2289_v6, %v1516_v59 }
  0xdb   : > { %v696_v45 = vadd.f32 %v660_v43, %v468_v53  ;;  %v470_v48 = vpop.f32.mrf.mxu1  ;;  %v2310_v53 = vld [vmem:[%s2521_s3 + $0x5c] sm:$0x3]  ;;  %v1520_v43 = vsel %vm2523_vm3, %v1518_v9, %v1519_v62 }
  0xdc   : > { %v814_v49 = vpop.f32.mrf.mxu3  ;;  %v471_v13 = vadd.f32 %v470_v48, %v2791_v35  ;;  %v1725_v39 = vrot.slane %v2310_v53, 6  ;;  %v1723_v48 = vsel %vm2636_vm7, %v2322_v14, %v1722_v7  ;;  %v1729_v53 = vrot.slane %v2275_v55, 6 }
  0xdd   : > { %v850_v17 = vadd.f32 %v814_v49, %v696_v45  ;;  %v1557_v45 = vunpack.c.l.b16 %v1517_v42  ;;  %v1194_v49 = vpack.c.b16 %v1182_v41, %v1181_v16  ;;  %v1763_v58 = vunpack.c.l.b16 %v1723_v48 }
  0xde   : > { %2197 = vmatmul.msk.bf16.gmra.mxu1 %vm314_vm4, %v1193_v44  ;;  %v2323_v42 = vrot.slane %v2311_v29, 10 }
  0xdf   : > { %2256 = vmatmul.msk.bf16.gmra.mxu2 %vm314_vm4, %v2357_v25  ;;  %v2941_v35 = vadd.f32 %v1036_v37, %v850_v17  ;;  %v1724_v37 = vrot.slane %v1722_v7, 4  ;;  %v1150_v7 = vrot.slane %v2179_v11, 6 }
  0xe1   : > { %v1039_v4 = vpop.f32.mrf.mxu0  ;;  %2297 = vmatmul.msk.bf16.gmra.mxu3 %vm314_vm4, %v1569_v57  ;;  %v1726_v25 = vsel %vm2636_vm7, %v1724_v37, %v1725_v39 }
  0xe2   : > { %v663_v8 = vpop.f32.mrf.mxu2  ;;  %v1764_v59 = vunpack.c.l.b16 %v1726_v25 }
  0xe3   : > { %v697_v22 = vadd.f32 %v663_v8, %v471_v13  ;;  %v472_v26 = vpop.f32.mrf.mxu1  ;;  %v1147_v13 = vrot.slane %v2728_v47, 6  ;;  %v2190_v47 = vrot.slane %v2178_v20, 10  ;;  %v2276_v8 = vld [vmem:[%s2521_s3 + $0x68] sm:$0x1]  ;;  %v2278_v20 = vld [vmem:[%s2521_s3 + $0x70] sm:$0xf] }
  0xe4   : > { %2330 = vmatmul.msk.bf16.gmra.mxu0 %vm314_vm4, %v1775_v3  ;;  %v817_v46 = vpop.f32.mrf.mxu3  ;;  %v473_v30 = vadd.f32 %v472_v26, %v2810_v19  ;;  %v1558_v19 = vunpack.c.l.b16 %v1520_v43  ;;  %v2274_v3 = vld [vmem:[%s2521_s3 + $0x60] sm:$0xe]  ;;  %v1776_v9 = vpack.c.b16 %v1764_v59, %v1763_v58  ;;  %v1526_v28 = vrot.slane %v2276_v8, 5 }
  0xe5   : > { %v851_v31 = vadd.f32 %v817_v46, %v697_v22  ;;  %v1149_v6 = vrot.slane %v1147_v13, 4  ;;  %v2290_v18 = vrot.slane %v2274_v3, 9  ;;  %v2312_v46 = vld [vmem:[%s2521_s3 + $0x68] sm:$0x3]  ;;  %v1148_v14 = vsel %vm2636_vm7, %v2190_v47, %v1147_v13  ;;  %v2359_v59 = vld [vmem:[%s2521_s3 + $0x60] sm:$0xff] }
  0xe6   : > { %v1570_v0 = vpack.c.b16 %v1558_v19, %v1557_v45  ;;  %v1731_v43 = vrot.slane %v1729_v53, 4  ;;  %v1183_v45 = vunpack.c.l.b16 %v1148_v14  ;;  %v2180_v3 = vld [vmem:[%s2521_s3 + $0x54] sm:$0xc]  ;;  %v1530_v8 = vrot.slane %v2278_v20, 5 }
  0xe7   : > { %v2956_v44 = vadd.f32 %v1039_v4, %v851_v31  ;;  %v1523_v4 = vrot.slane %v2275_v55, 5  ;;  %v1151_v37 = vsel %vm2636_vm7, %v1149_v6, %v1150_v7  ;;  %v2277_v7 = vld [vmem:[%s2521_s3 + $0x6c] sm:$0xe] }
  0xe8   : > { %v1184_v19 = vunpack.c.l.b16 %v1151_v37  ;;  %v2291_v29 = vrot.slane %v2277_v7, 9  ;;  %v1532_v14 = vrot.slane %v1530_v8, 4  ;;  %v2182_v7 = vld [vmem:[%s2521_s3 + $0x60] sm:$0xc] }
  0xe9   : > { %v1041_v27 = vpop.f32.mrf.mxu0  ;;  %v1525_v26 = vrot.slane %v1523_v4, 4  ;;  %v1524_v48 = vsel %vm2523_vm3, %v2290_v18, %v1523_v4  ;;  %v2181_v4 = vld [vmem:[%s2521_s3 + $0x5c] sm:$0x3]  ;;  %v2279_v18 = vld [vmem:[%s2521_s3 + $0x74] sm:$0x1] }
  0xea   : > { %v665_v60 = vpop.f32.mrf.mxu2  ;;  %v1195_v55 = vpack.c.b16 %v1184_v19, %v1183_v45  ;;  %v1533_v37 = vrot.slane %v2279_v18, 5  ;;  %v1531_v19 = vsel %vm2523_vm3, %v2291_v29, %v1530_v8  ;;  %v2183_v8 = vld [vmem:[%s2521_s3 + $0x68] sm:$0x3] }
  0xeb   : > { %v698_v50 = vadd.f32 %v665_v60, %v473_v30  ;;  %v475_v54 = vpop.f32.mrf.mxu1  ;;  %v1527_v25 = vsel %vm2523_vm3, %v1525_v26, %v1526_v28 }
  0xec   : > { %v819_v17 = vpop.f32.mrf.mxu3  ;;  %v476_v57 = vadd.f32 %v475_v54, %v2829_v34  ;;  %v1560_v13 = vunpack.c.l.b16 %v1527_v25 }
  0xed   : > { %v852_v63 = vadd.f32 %v819_v17, %v698_v50  ;;  %v1730_v50 = vsel %vm2636_vm7, %v2323_v42, %v1729_v53  ;;  %v1154_v17 = vrot.slane %v2751_v12, 6  ;;  %v2191_v12 = vrot.slane %v2180_v3, 10  ;;  %v2360_v3 = vld [vmem:[%s2521_s3 + $0x6c] sm:$0xff] }
  0xee   : > { %2198 = vmatmul.msk.bf16.gmra.mxu1 %vm314_vm4, %v1194_v49 }
  0xef   : > { %2257 = vmatmul.msk.bf16.gmra.mxu2 %vm314_vm4, %v2358_v51  ;;  %v2972_v34 = vadd.f32 %v1041_v27, %v852_v63  ;;  %v1732_v27 = vrot.slane %v2312_v46, 6  ;;  %v1765_v63 = vunpack.c.l.b16 %v1730_v50  ;;  %v2313_v46 = vld [vmem:[%s2521_s3 + $0x6c] sm:$0xc]  ;;  %v1155_v42 = vsel %vm2636_vm7, %v2191_v12, %v1154_v17 }
  0xf1   : > { %v1044_v62 = vpop.f32.mrf.mxu0  ;;  %2298 = vmatmul.msk.bf16.gmra.mxu3 %vm314_vm4, %v1570_v0  ;;  %v1733_v54 = vsel %vm2636_vm7, %v1731_v43, %v1732_v27  ;;  %v2324_v27 = vrot.slane %v2313_v46, 10 }
  0xf2   : > { %v668_v22 = vpop.f32.mrf.mxu2  ;;  %v1766_v0 = vunpack.c.l.b16 %v1733_v54  ;;  %v1561_v54 = vunpack.c.l.b16 %v1531_v19 }
  0xf3   : > { %v699_v30 = vadd.f32 %v668_v22, %v476_v57  ;;  %v477_v31 = vpop.f32.mrf.mxu1 }
  0xf4   : > { %2331 = vmatmul.msk.bf16.gmra.mxu0 %vm314_vm4, %v1776_v9  ;;  %v822_v39 = vpop.f32.mrf.mxu3  ;;  %v478_v16 = vadd.f32 %v477_v31, %v2848_v61  ;;  %v1559_v61 = vunpack.c.l.b16 %v1524_v48  ;;  %v1156_v9 = vrot.slane %v1154_v17, 4  ;;  %v1777_v53 = vpack.c.b16 %v1766_v0, %v1765_v63 }
  0xf5   : > { %v853_v41 = vadd.f32 %v822_v39, %v699_v30  ;;  %v1736_v30 = vrot.slane %v2278_v20, 6  ;;  %v2314_v39 = vld [vmem:[%s2521_s3 + $0x74] sm:$0x3] }
  0xf6   : > { %v1571_v6 = vpack.c.b16 %v1560_v13, %v1559_v61  ;;  %v1739_v25 = vrot.slane %v2314_v39, 6  ;;  %v1534_v13 = vsel %vm2523_vm3, %v1532_v14, %v1533_v37  ;;  %v2315_v37 = vld [vmem:[%s2521_s3 + $0x78] sm:$0xc] }
  0xf7   : > { %v2987_v60 = vadd.f32 %v1044_v62, %v853_v41  ;;  %v1157_v62 = vrot.slane %v2181_v4, 6  ;;  %v1738_v48 = vrot.slane %v1736_v30, 4  ;;  %v1562_v17 = vunpack.c.l.b16 %v1534_v13  ;;  %v2281_v4 = vld [vmem:[%s2521_s3 + $0x7c] sm:$0xf] }
  0xf8   : > { %v1537_v18 = vrot.slane %v2281_v4, 5  ;;  %v1743_v39 = vrot.slane %v2281_v4, 6  ;;  %v1168_v4 = vrot.slane %v2799_v5, 6 }
  0xf9   : > { %v1046_v49 = vpop.f32.mrf.mxu0  ;;  %v1158_v43 = vsel %vm2636_vm7, %v1156_v9, %v1157_v62  ;;  %v1572_v9 = vpack.c.b16 %v1562_v17, %v1561_v54  ;;  %v2280_v62 = vld [vmem:[%s2521_s3 + $0x78] sm:$0xe] }
  0xfa   : > { %v670_v51 = vpop.f32.mrf.mxu2  ;;  %v1186_v61 = vunpack.c.l.b16 %v1158_v43  ;;  %v2292_v14 = vrot.slane %v2280_v62, 9  ;;  %v2316_v43 = vld [vmem:[%s2521_s3 + $0x80] sm:$0x3]  ;;  %v2185_v62 = vld [vmem:[%s2521_s3 + $0x74] sm:$0x3] }
  0xfb   : > { %v700_v57 = vadd.f32 %v670_v51, %v478_v16  ;;  %v480_v58 = vpop.f32.mrf.mxu1  ;;  %v1746_v13 = vrot.slane %v2316_v43, 6 }
  0xfc   : > { %v824_v11 = vpop.f32.mrf.mxu3  ;;  %v481_v26 = vadd.f32 %v480_v58, %v2806_v15  ;;  %v1740_v58 = vsel %vm2636_vm7, %v1738_v48, %v1739_v25  ;;  %v2325_v48 = vrot.slane %v2315_v37, 10 }
  0xfd   : > { %v854_v47 = vadd.f32 %v824_v11, %v700_v57  ;;  %v1737_v57 = vsel %vm2636_vm7, %v2324_v27, %v1736_v30  ;;  %v1161_v11 = vrot.slane %v2774_v40, 6  ;;  %v2192_v40 = vrot.slane %v2182_v7, 10  ;;  %v2284_v7 = vld [vmem:[%s2521_s3 + $0x88] sm:$0xf] }
  0xfe   : > { %2199 = vmatmul.msk.bf16.gmra.mxu1 %vm314_vm4, %v1195_v55 }
  0xff   : > { %2258 = vmatmul.msk.bf16.gmra.mxu2 %vm314_vm4, %v2359_v59  ;;  %v3002_v22 = vadd.f32 %v1046_v49, %v854_v47  ;;  %v1185_v49 = vunpack.c.l.b16 %v1155_v42  ;;  %v1767_v47 = vunpack.c.l.b16 %v1737_v57 }
 0x101   : > { %v1049_v28 = vpop.f32.mrf.mxu0  ;;  %2299 = vmatmul.msk.bf16.gmra.mxu3 %vm314_vm4, %v1571_v6  ;;  %v1196_v20 = vpack.c.b16 %v1186_v61, %v1185_v49  ;;  %v1768_v6 = vunpack.c.l.b16 %v1740_v58  ;;  %v1538_v49 = vsel %vm2523_vm3, %v2292_v14, %v1537_v18  ;;  %v1745_v61 = vrot.slane %v1743_v39, 4 }
 0x102   : > { %v673_v31 = vpop.f32.mrf.mxu2  ;;  %v1563_v57 = vunpack.c.l.b16 %v1538_v49 }
 0x103   : > { %v701_v16 = vadd.f32 %v673_v31, %v481_v26  ;;  %v482_v41 = vpop.f32.mrf.mxu1  ;;  %v1164_v26 = vrot.slane %v2183_v8, 6  ;;  %v1778_v29 = vpack.c.b16 %v1768_v6, %v1767_v47  ;;  %v2361_v6 = vld [vmem:[%s2521_s3 + $0x78] sm:$0xff] }
 0x104   : > { %2332 = vmatmul.msk.bf16.gmra.mxu0 %vm314_vm4, %v1777_v53  ;;  %v827_v15 = vpop.f32.mrf.mxu3  ;;  %v483_v51 = vadd.f32 %v482_v41, %v2825_v32  ;;  %v1163_v53 = vrot.slane %v1161_v11, 4  ;;  %v1539_v41 = vrot.slane %v1537_v18, 4 }
 0x105   : > { %v855_v45 = vadd.f32 %v827_v15, %v701_v16 }
 0x106   : > { %v1165_v19 = vsel %vm2636_vm7, %v1163_v53, %v1164_v26  ;;  %v2283_v53 = vld [vmem:[%s2521_s3 + $0x84] sm:$0xe]  ;;  %v1544_v26 = vrot.slane %v2284_v7, 5 }
 0x107   : > { %v3017_v50 = vadd.f32 %v1049_v28, %v855_v45  ;;  %v2282_v28 = vld [vmem:[%s2521_s3 + $0x80] sm:$0x1]  ;;  %v1162_v45 = vsel %vm2636_vm7, %v2192_v40, %v1161_v11  ;;  %v1744_v11 = vsel %vm2636_vm7, %v2325_v48, %v1743_v39 }
 0x108   : > { %v1540_v42 = vrot.slane %v2282_v28, 5  ;;  %v1187_v54 = vunpack.c.l.b16 %v1162_v45  ;;  %v1769_v8 = vunpack.c.l.b16 %v1744_v11  ;;  %v1170_v28 = vrot.slane %v1168_v4, 4  ;;  %v2318_v45 = vld [vmem:[%s2521_s3 + $0x8c] sm:$0x3] }
 0x109   : > { %v1051_v55 = vpop.f32.mrf.mxu0 }
 0x10a   : > { %v675_v59 = vpop.f32.mrf.mxu2 }
 0x10b   : > { %v702_v63 = vadd.f32 %v675_v59, %v483_v51  ;;  %v485_v0 = vpop.f32.mrf.mxu1  ;;  %v1188_v51 = vunpack.c.l.b16 %v1165_v19 }
 0x10c   : > { %v829_v32 = vpop.f32.mrf.mxu3  ;;  %v486_v30 = vadd.f32 %v485_v0, %v2844_v56 }
 0x10d   : > { %v856_v12 = vadd.f32 %v829_v32, %v702_v63  ;;  %v1747_v63 = vsel %vm2636_vm7, %v1745_v61, %v1746_v13 }
 0x10e   : > { %2200 = vmatmul.msk.bf16.gmra.mxu1 %vm314_vm4, %v1196_v20 }
 0x10f   : > { %2259 = vmatmul.msk.bf16.gmra.mxu2 %vm314_vm4, %v2360_v3  ;;  %v3033_v46 = vadd.f32 %v1051_v55, %v856_v12  ;;  %v1541_v55 = vsel %vm2523_vm3, %v1539_v41, %v1540_v42  ;;  %v1197_v3 = vpack.c.b16 %v1188_v51, %v1187_v54  ;;  %v1770_v12 = vunpack.c.l.b16 %v1747_v63  ;;  %v2317_v41 = vld [vmem:[%s2521_s3 + $0x84] sm:$0xc] }
 0x110   : > { %v1564_v20 = vunpack.c.l.b16 %v1541_v55  ;;  %v1750_v42 = vrot.slane %v2284_v7, 6  ;;  %v2326_v49 = vrot.slane %v2317_v41, 10  ;;  %v1753_v51 = vrot.slane %v2318_v45, 6 }
 0x111   : > { %v1054_v31 = vpop.f32.mrf.mxu0  ;;  %2300 = vmatmul.msk.bf16.gmra.mxu3 %vm314_vm4, %v1572_v9  ;;  %v2184_v9 = vld [vmem:[%s2521_s3 + $0x6c] sm:$0xc]  ;;  %v1779_v14 = vpack.c.b16 %v1770_v12, %v1769_v8 }
 0x112   : > { %v678_v16 = vpop.f32.mrf.mxu2  ;;  %v1573_v40 = vpack.c.b16 %v1564_v20, %v1563_v57  ;;  %v2193_v5 = vrot.slane %v2184_v9, 10  ;;  %v1752_v54 = vrot.slane %v1750_v42, 4 }
 0x113   : > { %v703_v15 = vadd.f32 %v678_v16, %v486_v30  ;;  %v487_v27 = vpop.f32.mrf.mxu1  ;;  %v2285_v30 = vld [vmem:[%s2521_s3 + $0x8c] sm:$0x1]  ;;  %v2293_v16 = vrot.slane %v2283_v53, 9 }
 0x114   : > { %2333 = vmatmul.msk.bf16.gmra.mxu0 %vm314_vm4, %v1778_v29  ;;  %v832_v56 = vpop.f32.mrf.mxu3  ;;  %v488_v58 = vadd.f32 %v487_v27, %v2867_v24  ;;  %v1171_v29 = vrot.slane %v2185_v62, 6  ;;  %v1547_v27 = vrot.slane %v2285_v30, 5  ;;  %v1169_v48 = vsel %vm2636_vm7, %v2193_v5, %v1168_v4 }
 0x115   : > { %v857_v25 = vadd.f32 %v832_v56, %v703_v15  ;;  %v1546_v15 = vrot.slane %v1544_v26, 4  ;;  %v1545_v13 = vsel %vm2523_vm3, %v2293_v16, %v1544_v26  ;;  %v1189_v55 = vunpack.c.l.b16 %v1169_v48 }
 0x116   : > { %v1565_v20 = vunpack.c.l.b16 %v1545_v13  ;;  %v1754_v4 = vsel %vm2636_vm7, %v1752_v54, %v1753_v51 }
 0x117   : > { %v3048_v17 = vadd.f32 %v1054_v31, %v857_v25  ;;  %v1172_v25 = vsel %vm2636_vm7, %v1170_v28, %v1171_v29  ;;  %v1772_v12 = vunpack.c.l.b16 %v1754_v4 }
 0x118   : > { %v1190_v57 = vunpack.c.l.b16 %v1172_v25 }
 0x119   : > { %v1056_v59 = vpop.f32.mrf.mxu0 }
 0x11a   : > { %v680_v0 = vpop.f32.mrf.mxu2 }
 0x11b   : > { %v704_v32 = vadd.f32 %v680_v0, %v488_v58  ;;  %v490_v47 = vpop.f32.mrf.mxu1  ;;  %v1548_v58 = vsel %vm2523_vm3, %v1546_v15, %v1547_v27 }
 0x11c   : > { %v834_v24 = vpop.f32.mrf.mxu3  ;;  %v491_v37 = vadd.f32 %v490_v47, %v2813_v21  ;;  %v1566_v0 = vunpack.c.l.b16 %v1548_v58  ;;  %v1198_v47 = vpack.c.b16 %v1190_v57, %v1189_v55 }
 0x11d   : > { %v858_v18 = vadd.f32 %v834_v24, %v704_v32  ;;  %v2362_v24 = vld [vmem:[%s2521_s3 + $0x84] sm:$0xff] }
 0x11e   : > { %2201 = vmatmul.msk.bf16.gmra.mxu1 %vm314_vm4, %v1197_v3  ;;  %v1751_v3 = vsel %vm2636_vm7, %v2326_v49, %v1750_v42  ;;  %v1574_v62 = vpack.c.b16 %v1566_v0, %v1565_v20 }
 0x11f   : > { %2260 = vmatmul.msk.bf16.gmra.mxu2 %vm314_vm4, %v2361_v6  ;;  %v3064_v31 = vadd.f32 %v1056_v59, %v858_v18  ;;  %v1771_v8 = vunpack.c.l.b16 %v1751_v3 }
 0x121   : > { %v1059_v39 = vpop.f32.mrf.mxu0  ;;  %2301 = vmatmul.msk.bf16.gmra.mxu3 %vm314_vm4, %v1573_v40  ;;  %v1780_v18 = vpack.c.b16 %v1772_v12, %v1771_v8 }
 0x122   : > { %v683_v43 = vpop.f32.mrf.mxu2 }
 0x123   : > { %v705_v19 = vadd.f32 %v683_v43, %v491_v37  ;;  %v492_v56 = vpop.f32.mrf.mxu1 }
 0x124   : > { %2334 = vmatmul.msk.bf16.gmra.mxu0 %vm314_vm4, %v1779_v14  ;;  %v837_v21 = vpop.f32.mrf.mxu3  ;;  %v493_v11 = vadd.f32 %v492_v56, %v2832_v38 }
 0x125   : > { %v859_v61 = vadd.f32 %v837_v21, %v705_v19 }
 0x127   : > { %v3079_v59 = vadd.f32 %v1059_v39, %v859_v61 }
 0x129   : > { %v1061_v63 = vpop.f32.mrf.mxu0 }
 0x12a   : > { %v685_v32 = vpop.f32.mrf.mxu2 }
 0x12b   : > { %v706_v6 = vadd.f32 %v685_v32, %v493_v11  ;;  %v495_v7 = vpop.f32.mrf.mxu1 }
 0x12c   : > { %v839_v10 = vpop.f32.mrf.mxu3  ;;  %v496_v1 = vadd.f32 %v495_v7, %v2855_v2 }
 0x12d   : > { %v860_v9 = vadd.f32 %v839_v10, %v706_v6 }
 0x12e   : > { %2202 = vmatmul.msk.bf16.gmra.mxu1 %vm314_vm4, %v1198_v47 }
 0x12f   : > { %2261 = vmatmul.msk.bf16.gmra.mxu2 %vm314_vm4, %v2362_v24  ;;  %v3089_v38 = vadd.f32 %v1061_v63, %v860_v9 }
 0x131   : > { %v1064_v40 = vpop.f32.mrf.mxu0  ;;  %2302 = vmatmul.msk.bf16.gmra.mxu3 %vm314_vm4, %v1574_v62 }
 0x132   : > { %v688_v53 = vpop.f32.mrf.mxu2 }
 0x133   : > { %v707_v26 = vadd.f32 %v688_v53, %v496_v1  ;;  %v497_v5 = vpop.f32.mrf.mxu1 }
 0x134   : > { %2335 = vmatmul.msk.bf16.gmra.mxu0 %vm314_vm4, %v1780_v18  ;;  %v842_v28 = vpop.f32.mrf.mxu3  ;;  %v498_v14 = vadd.f32 %v497_v5, %v2872_v33 }
 0x135   : > { %v861_v29 = vadd.f32 %v842_v28, %v707_v26 }
 0x137   : > { %v3095_v30 = vadd.f32 %v1064_v40, %v861_v29 }
 0x139   : > { %v1066_v37 = vpop.f32.mrf.mxu0 }
 0x13a   : > { %v690_v39 = vpop.f32.mrf.mxu2 }
 0x13b   : > { %v708_v2 = vadd.f32 %v690_v39, %v498_v14  ;;  %v1235_v16 = vpop.f32.mrf.mxu1 }
 0x13c   : > { %v844_v41 = vpop.f32.mrf.mxu3  ;;  %v1275_v15 = vadd.f32 %v1235_v16, %v2894_v23 }
 0x13d   : > { %v862_v42 = vadd.f32 %v844_v41, %v708_v2 }
 0x13f   : > { %v3099_v43 = vadd.f32 %v1066_v37, %v862_v42 }
 0x141   : > { %v1817_v27 = vpop.f32.mrf.mxu0 }
 0x142   : > { %v1389_v45 = vpop.f32.mrf.mxu2 }
 0x143   : > { %v1429_v19 = vadd.f32 %v1389_v45, %v1275_v15  ;;  %v1237_v56 = vpop.f32.mrf.mxu1 }
 0x144   : > { %v1611_v48 = vpop.f32.mrf.mxu3  ;;  %v1276_v23 = vadd.f32 %v1237_v56, %v2910_v52 }
 0x145   : > { %v1651_v33 = vadd.f32 %v1611_v48, %v1429_v19 }
 0x147   : > { %v1857_v25 = vadd.f32 %v1817_v27, %v1651_v33 }
 0x149   : > { %1874 = vst.msk [vmem:[%s3105_s24] sm:$0xff] %vm1873_vm8, %v1857_v25  ;;  %v1819_v21 = vpop.f32.mrf.mxu0 }
 0x14a   : > { %v1391_v49 = vpop.f32.mrf.mxu2 }
 0x14b   : > { %v1430_v61 = vadd.f32 %v1391_v49, %v1276_v23  ;;  %v1240_v13 = vpop.f32.mrf.mxu1 }
 0x14c   : > { %v1613_v54 = vpop.f32.mrf.mxu3  ;;  %v1277_v57 = vadd.f32 %v1240_v13, %v2925_v36 }
 0x14d   : > { %v1652_v51 = vadd.f32 %v1613_v54, %v1430_v61 }
 0x14f   : > { %v1858_v55 = vadd.f32 %v1819_v21, %v1652_v51 }
 0x151   : > { %1875 = vst.msk [vmem:[%s3105_s24 + $0x8] sm:$0xff] %vm1873_vm8, %v1858_v55  ;;  %v1822_v58 = vpop.f32.mrf.mxu0 }
 0x152   : > { %v1394_v20 = vpop.f32.mrf.mxu2 }
 0x153   : > { %v1431_v11 = vadd.f32 %v1394_v20, %v1277_v57  ;;  %v1242_v63 = vpop.f32.mrf.mxu1 }
 0x154   : > { %v1616_v0 = vpop.f32.mrf.mxu3  ;;  %v1278_v4 = vadd.f32 %v1242_v63, %v2941_v35 }
 0x155   : > { %v1653_v3 = vadd.f32 %v1616_v0, %v1431_v11 }
 0x157   : > { %v1859_v52 = vadd.f32 %v1822_v58, %v1653_v3 }
 0x159   : > { %1876 = vst.msk [vmem:[%s3105_s24 + $0x10] sm:$0xff] %vm1873_vm8, %v1859_v52  ;;  %v1824_v32 = vpop.f32.mrf.mxu0 }
 0x15a   : > { %v1396_v47 = vpop.f32.mrf.mxu2 }
 0x15b   : > { %v1432_v6 = vadd.f32 %v1396_v47, %v1278_v4  ;;  %v1245_v7 = vpop.f32.mrf.mxu1 }
 0x15c   : > { %v1618_v24 = vpop.f32.mrf.mxu3  ;;  %v1279_v8 = vadd.f32 %v1245_v7, %v2956_v44 }
 0x15d   : > { %v1654_v10 = vadd.f32 %v1618_v24, %v1432_v6 }
 0x15f   : > { %v1860_v36 = vadd.f32 %v1824_v32, %v1654_v10 }
 0x161   : > { %1877 = vst.msk [vmem:[%s3105_s24 + $0x18] sm:$0xff] %vm1873_vm8, %v1860_v36  ;;  %v1827_v12 = vpop.f32.mrf.mxu0 }
 0x162   : > { %v1399_v9 = vpop.f32.mrf.mxu2 }
 0x163   : > { %v1433_v62 = vadd.f32 %v1399_v9, %v1279_v8  ;;  %v1247_v18 = vpop.f32.mrf.mxu1 }
 0x164   : > { %v1621_v1 = vpop.f32.mrf.mxu3  ;;  %v1280_v53 = vadd.f32 %v1247_v18, %v2972_v34 }
 0x165   : > { %v1655_v40 = vadd.f32 %v1621_v1, %v1433_v62 }
 0x167   : > { %v1861_v35 = vadd.f32 %v1827_v12, %v1655_v40 }
 0x169   : > { %1878 = vst.msk [vmem:[%s3105_s24 + $0x20] sm:$0xff] %vm1873_vm8, %v1861_v35  ;;  %v1829_v26 = vpop.f32.mrf.mxu0 }
 0x16a   : > { %v1401_v5 = vpop.f32.mrf.mxu2 }
 0x16b   : > { %v1434_v28 = vadd.f32 %v1401_v5, %v1280_v53  ;;  %v1250_v29 = vpop.f32.mrf.mxu1 }
 0x16c   : > { %v1623_v14 = vpop.f32.mrf.mxu3  ;;  %v1281_v39 = vadd.f32 %v1250_v29, %v2987_v60 }
 0x16d   : > { %v1656_v37 = vadd.f32 %v1623_v14, %v1434_v28 }
 0x16f   : > { %v1862_v44 = vadd.f32 %v1829_v26, %v1656_v37 }
 0x171   : > { %1879 = vst.msk [vmem:[%s3105_s24 + $0x28] sm:$0xff] %vm1873_vm8, %v1862_v44  ;;  %v1832_v2 = vpop.f32.mrf.mxu0 }
 0x172   : > { %v1404_v16 = vpop.f32.mrf.mxu2 }
 0x173   : > { %v1435_v41 = vadd.f32 %v1404_v16, %v1281_v39  ;;  %v1252_v42 = vpop.f32.mrf.mxu1 }
 0x174   : > { %v1626_v15 = vpop.f32.mrf.mxu3  ;;  %v1282_v45 = vadd.f32 %v1252_v42, %v3002_v22 }
 0x175   : > { %v1657_v27 = vadd.f32 %v1626_v15, %v1435_v41 }
 0x177   : > { %v1863_v34 = vadd.f32 %v1832_v2, %v1657_v27 }
 0x179   : > { %1880 = vst.msk [vmem:[%s3105_s24 + $0x30] sm:$0xff] %vm1873_vm8, %v1863_v34  ;;  %v1834_v19 = vpop.f32.mrf.mxu0 }
 0x17a   : > { %v1406_v56 = vpop.f32.mrf.mxu2 }
 0x17b   : > { %v1436_v48 = vadd.f32 %v1406_v56, %v1282_v45  ;;  %v1255_v33 = vpop.f32.mrf.mxu1 }
 0x17c   : > { %v1628_v25 = vpop.f32.mrf.mxu3  ;;  %v1283_v21 = vadd.f32 %v1255_v33, %v3017_v50 }
 0x17d   : > { %v1658_v23 = vadd.f32 %v1628_v25, %v1436_v48 }
 0x17f   : > { %v1864_v60 = vadd.f32 %v1834_v19, %v1658_v23 }
 0x181   : > { %1881 = vst.msk [vmem:[%s3105_s24 + $0x38] sm:$0xff] %vm1873_vm8, %v1864_v60  ;;  %v1837_v49 = vpop.f32.mrf.mxu0 }
 0x182   : > { %v1409_v61 = vpop.f32.mrf.mxu2 }
 0x183   : > { %v1437_v13 = vadd.f32 %v1409_v61, %v1283_v21  ;;  %v1257_v54 = vpop.f32.mrf.mxu1 }
 0x184   : > { %v1631_v51 = vpop.f32.mrf.mxu3  ;;  %v1284_v57 = vadd.f32 %v1257_v54, %v3033_v46 }
 0x185   : > { %v1659_v55 = vadd.f32 %v1631_v51, %v1437_v13 }
 0x187   : > { %v1865_v22 = vadd.f32 %v1837_v49, %v1659_v55 }
 0x189   : > { %1882 = vst.msk [vmem:[%s3105_s24 + $0x40] sm:$0xff] %vm1873_vm8, %v1865_v22  ;;  %v1839_v58 = vpop.f32.mrf.mxu0 }
 0x18a   : > { %v1411_v20 = vpop.f32.mrf.mxu2 }
 0x18b   : > { %v1438_v11 = vadd.f32 %v1411_v20, %v1284_v57  ;;  %v1260_v63 = vpop.f32.mrf.mxu1 }
 0x18c   : > { %v1633_v0 = vpop.f32.mrf.mxu3  ;;  %v1285_v52 = vadd.f32 %v1260_v63, %v3048_v17 }
 0x18d   : > { %v1660_v3 = vadd.f32 %v1633_v0, %v1438_v11 }
 0x18f   : > { %v1866_v50 = vadd.f32 %v1839_v58, %v1660_v3 }
 0x191   : > { %1883 = vst.msk [vmem:[%s3105_s24 + $0x48] sm:$0xff] %vm1873_vm8, %v1866_v50  ;;  %v1842_v4 = vpop.f32.mrf.mxu0 }
 0x192   : > { %v1414_v32 = vpop.f32.mrf.mxu2 }
 0x193   : > { %v1439_v47 = vadd.f32 %v1414_v32, %v1285_v52  ;;  %v1262_v6 = vpop.f32.mrf.mxu1 }
 0x194   : > { %v1636_v7 = vpop.f32.mrf.mxu3  ;;  %v1286_v10 = vadd.f32 %v1262_v6, %v3064_v31 }
 0x195   : > { %v1661_v24 = vadd.f32 %v1636_v7, %v1439_v47 }
 0x197   : > { %v1867_v46 = vadd.f32 %v1842_v4, %v1661_v24 }
 0x199   : > { %1884 = vst.msk [vmem:[%s3105_s24 + $0x50] sm:$0xff] %vm1873_vm8, %v1867_v46  ;;  %v1844_v36 = vpop.f32.mrf.mxu0 }
 0x19a   : > { %v1416_v8 = vpop.f32.mrf.mxu2 }
 0x19b   : > { %v1440_v12 = vadd.f32 %v1416_v8, %v1286_v10  ;;  %v1265_v9 = vpop.f32.mrf.mxu1 }
 0x19c   : > { %v1638_v62 = vpop.f32.mrf.mxu3  ;;  %v1287_v1 = vadd.f32 %v1265_v9, %v3079_v59 }
 0x19d   : > { %v1662_v18 = vadd.f32 %v1638_v62, %v1440_v12 }
 0x19f   : > { %v1868_v17 = vadd.f32 %v1844_v36, %v1662_v18 }
 0x1a1   : > { %1885 = vst.msk [vmem:[%s3105_s24 + $0x58] sm:$0xff] %vm1873_vm8, %v1868_v17  ;;  %v1847_v40 = vpop.f32.mrf.mxu0 }
 0x1a2   : > { %v1419_v35 = vpop.f32.mrf.mxu2 }
 0x1a3   : > { %v1441_v53 = vadd.f32 %v1419_v35, %v1287_v1  ;;  %v1267_v26 = vpop.f32.mrf.mxu1 }
 0x1a4   : > { %v1641_v5 = vpop.f32.mrf.mxu3  ;;  %v1288_v29 = vadd.f32 %v1267_v26, %v3089_v38 }
 0x1a5   : > { %v1663_v28 = vadd.f32 %v1641_v5, %v1441_v53 }
 0x1a7   : > { %v1869_v31 = vadd.f32 %v1847_v40, %v1663_v28 }
 0x1a9   : > { %1886 = vst.msk [vmem:[%s3105_s24 + $0x60] sm:$0xff] %vm1873_vm8, %v1869_v31  ;;  %v1849_v14 = vpop.f32.mrf.mxu0 }
 0x1aa   : > { %v1421_v37 = vpop.f32.mrf.mxu2 }
 0x1ab   : > { %v1442_v44 = vadd.f32 %v1421_v37, %v1288_v29  ;;  %v1270_v2 = vpop.f32.mrf.mxu1 }
 0x1ac   : > { %v1643_v39 = vpop.f32.mrf.mxu3  ;;  %v1289_v41 = vadd.f32 %v1270_v2, %v3095_v30 }
 0x1ad   : > { %v1664_v16 = vadd.f32 %v1643_v39, %v1442_v44 }
 0x1af   : > { %v1870_v59 = vadd.f32 %v1849_v14, %v1664_v16 }
 0x1b1   : > { %1887 = vst.msk [vmem:[%s3105_s24 + $0x68] sm:$0xff] %vm1873_vm8, %v1870_v59  ;;  %v1852_v27 = vpop.f32.mrf.mxu0 }
 0x1b2   : > { %v1424_v42 = vpop.f32.mrf.mxu2 }
 0x1b3   : > { %v1443_v15 = vadd.f32 %v1424_v42, %v1289_v41  ;;  %v1272_v19 = vpop.f32.mrf.mxu1 }
 0x1b4   : > { %v1646_v34 = vpop.f32.mrf.mxu3  ;;  %v1290_v56 = vadd.f32 %v1272_v19, %v3099_v43 }
 0x1b5   : > { %v1665_v45 = vadd.f32 %v1646_v34, %v1443_v15 }
 0x1b7   : > { %v1871_v38 = vadd.f32 %v1852_v27, %v1665_v45 }
 0x1b9   : > { %1888 = vst.msk [vmem:[%s3105_s24 + $0x70] sm:$0xff] %vm1873_vm8, %v1871_v38  ;;  %v1854_v60 = vpop.f32.mrf.mxu0 }
 0x1ba   : > { %v1426_v48 = vpop.f32.mrf.mxu2 }
 0x1bb   : > { %v1444_v33 = vadd.f32 %v1426_v48, %v1290_v56 }
 0x1bc   : > { %v1648_v25 = vpop.f32.mrf.mxu3 }
 0x1bd   : > { %v1666_v23 = vadd.f32 %v1648_v25, %v1444_v33 }
 0x1bf   : > { %v1872_v21 = vadd.f32 %v1854_v60, %v1666_v23 }
 0x1c1   : > { %1889 = vst.msk [vmem:[%s3105_s24 + $0x78] sm:$0xff] %vm1873_vm8, %v1872_v21 }
 0x1c2 PF: > { %s12_s13 = sadd.s32 1, %s2445_s13   ;;  %s3176_s9 = smov %s2437_s11 }
 0x1c3   : > { %p9_p7 = scmp.ge.s32.totalorder %s12_s13, 6   ;;  %s3177_s10 = smov %s2441_s12 }
 0x1c4   : > { %s3178_s11 = smov %s3181_s14  ;;  %s3179_s12 = smov %s3185_s15 }
 0x1c5   :  { %11 = sbr.rel (!%p9_p7) target bundleno = 3 (0x3), region = 69 }

// kernel: net_forward.122
= control target key start
LH: loop header
LB: loop body
LE: loop exit
PB: predicated region body
PF: predicated region fallthrough
CT: control target
= control target key end

     0   :  { %vm385_vm0 = vcmask 130048   ;;  %vm507_vm1 = vcmask 519168   ;;  %s956_s1 = inlined_call_operand.vmem [shape: bf16[256,16], index: 1, kind: input, shape index: {}]   ;;  %s957_s0 = inlined_call_operand.vmem [shape: bf16[128,256], index: 0, kind: input, shape index: {}]   ;;  %s958_s2 = inlined_call_operand.vmem [shape: bf16[16,64], index: 2, kind: input, shape index: {}]   ;;  %s959_s3 = inlined_call_operand.vmem [shape: bf16[128,64], index: 3, kind: output, shape index: {}]  }
   0x1   :  { %v691_v0 = vld [vmem:[%s956_s1 + $0x38] sm:$0xff]  ;;  %v690_v2 = vld [vmem:[%s956_s1 + $0x30] sm:$0xff]  ;;  %v689_v4 = vld [vmem:[%s956_s1 + $0x28] sm:$0xff] }
   0x2   :  { %v699_v1 = vld [vmem:[%s956_s1 + $0x78] sm:$0xff]  ;;  %239 = vmatpush.bf16.msra.mxu0 %v691_v0  ;;  %v698_v3 = vld [vmem:[%s956_s1 + $0x70] sm:$0xff]  ;;  %701 = vmatpush.bf16.msra.mxu3 %v691_v0  ;;  %v697_v5 = vld [vmem:[%s956_s1 + $0x68] sm:$0xff] }
   0x3   :  { %288 = vmatpush.bf16.msra.mxu1 %v699_v1  ;;  %v688_v6 = vld [vmem:[%s956_s1 + $0x20] sm:$0xff]  ;;  %v687_v8 = vld [vmem:[%s956_s1 + $0x18] sm:$0xff]  ;;  %v686_v10 = vld [vmem:[%s956_s1 + $0x10] sm:$0xff] }
   0x4   :  { %v696_v7 = vld [vmem:[%s956_s1 + $0x60] sm:$0xff]  ;;  %v695_v9 = vld [vmem:[%s956_s1 + $0x58] sm:$0xff]  ;;  %v694_v11 = vld [vmem:[%s956_s1 + $0x50] sm:$0xff] }
   0x5   :  { %v685_v12 = vld [vmem:[%s956_s1 + $0x8] sm:$0xff]  ;;  %v684_v14 = vld [vmem:[%s956_s1] sm:$0xff]  ;;  %v538_v25 = vld [vmem:[%s957_s0 + $0x10] sm:$0xf] }
   0x6   :  { %240 = vmatpush.bf16.msra.mxu0 %v690_v2  ;;  %702 = vmatpush.bf16.msra.mxu3 %v690_v2  ;;  %v693_v13 = vld [vmem:[%s956_s1 + $0x48] sm:$0xff]  ;;  %v692_v15 = vld [vmem:[%s956_s1 + $0x40] sm:$0xff]  ;;  %v671_v26 = vld [vmem:[%s957_s0 + $0x14] sm:$0xf0] }
   0x7   :  { %289 = vmatpush.bf16.msra.mxu1 %v698_v3  ;;  %v530_v16 = vld [vmem:[%s957_s0] sm:$0xf]  ;;  %v669_v17 = vld [vmem:[%s957_s0 + $0x4] sm:$0xf0]  ;;  %v668_v18 = vld [vmem:[%s957_s0 + $0x4] sm:$0xf]  ;;  %v539_v31 = vor.u32 %v671_v26, %v538_v25 }
   0x8   :  { %v532_v19 = vld [vmem:[%s957_s0 + $0x8] sm:$0xf0]  ;;  %v578_v20 = vld [vmem:[%s957_s0 + $0x60] sm:$0xf]  ;;  %v681_v21 = vld [vmem:[%s957_s0 + $0x64] sm:$0xf0]  ;;  %v531_v22 = vor.u32 %v669_v17, %v530_v16 }
   0x9   :  { %v535_v23 = vor.u32 %v668_v18, %v532_v19  ;;  %v579_v24 = vor.u32 %v681_v21, %v578_v20  ;;  %v670_v27 = vld [vmem:[%s957_s0 + $0x14] sm:$0xf]  ;;  %v540_v28 = vld [vmem:[%s957_s0 + $0x18] sm:$0xf0]  ;;  %v586_v29 = vld [vmem:[%s957_s0 + $0x70] sm:$0xf] }
   0xa   :  { %241 = vmatpush.bf16.msra.mxu0 %v689_v4  ;;  %703 = vmatpush.bf16.msra.mxu3 %v689_v4  ;;  %v683_v30 = vld [vmem:[%s957_s0 + $0x74] sm:$0xf0]  ;;  %v543_v32 = vor.u32 %v670_v27, %v540_v28  ;;  %v546_v34 = vld [vmem:[%s957_s0 + $0x20] sm:$0xf]  ;;  %v673_v35 = vld [vmem:[%s957_s0 + $0x24] sm:$0xf0] }
   0xb   :  { %290 = vmatpush.bf16.msra.mxu1 %v697_v5  ;;  %v587_v33 = vor.u32 %v683_v30, %v586_v29  ;;  %v672_v36 = vld [vmem:[%s957_s0 + $0x24] sm:$0xf]  ;;  %v548_v37 = vld [vmem:[%s957_s0 + $0x28] sm:$0xf0]  ;;  %v547_v40 = vor.u32 %v673_v35, %v546_v34  ;;  %v554_v43 = vld [vmem:[%s957_s0 + $0x30] sm:$0xf] }
   0xc   :  { %v680_v38 = vld [vmem:[%s957_s0 + $0x64] sm:$0xf]  ;;  %v580_v39 = vld [vmem:[%s957_s0 + $0x68] sm:$0xf0]  ;;  %v551_v41 = vor.u32 %v672_v36, %v548_v37  ;;  %v675_v44 = vld [vmem:[%s957_s0 + $0x34] sm:$0xf0] }
   0xd   :  { %v583_v42 = vor.u32 %v680_v38, %v580_v39  ;;  %v674_v45 = vld [vmem:[%s957_s0 + $0x34] sm:$0xf]  ;;  %v556_v46 = vld [vmem:[%s957_s0 + $0x38] sm:$0xf0]  ;;  %v555_v49 = vor.u32 %v675_v44, %v554_v43  ;;  %v562_v52 = vld [vmem:[%s957_s0 + $0x40] sm:$0xf] }
   0xe   :  { %242 = vmatpush.bf16.msra.mxu0 %v688_v6  ;;  %704 = vmatpush.bf16.msra.mxu3 %v688_v6  ;;  %v682_v47 = vld [vmem:[%s957_s0 + $0x74] sm:$0xf]  ;;  %v588_v48 = vld [vmem:[%s957_s0 + $0x78] sm:$0xf0]  ;;  %v559_v50 = vor.u32 %v674_v45, %v556_v46  ;;  %v677_v53 = vld [vmem:[%s957_s0 + $0x44] sm:$0xf0] }
   0xf   :  { %291 = vmatpush.bf16.msra.mxu1 %v696_v7  ;;  %v591_v51 = vor.u32 %v682_v47, %v588_v48  ;;  %v676_v54 = vld [vmem:[%s957_s0 + $0x44] sm:$0xf]  ;;  %v564_v55 = vld [vmem:[%s957_s0 + $0x48] sm:$0xf0]  ;;  %v563_v56 = vor.u32 %v677_v53, %v562_v52  ;;  %v570_v58 = vld [vmem:[%s957_s0 + $0x50] sm:$0xf] }
  0x10   :  { %v567_v57 = vor.u32 %v676_v54, %v564_v55  ;;  %v679_v59 = vld [vmem:[%s957_s0 + $0x54] sm:$0xf0]  ;;  %v678_v60 = vld [vmem:[%s957_s0 + $0x54] sm:$0xf]  ;;  %v572_v61 = vld [vmem:[%s957_s0 + $0x58] sm:$0xf0] }
  0x11   :  { %v571_v62 = vor.u32 %v679_v59, %v570_v58  ;;  %v575_v63 = vor.u32 %v678_v60, %v572_v61  ;;  %v700_v0 = vld [vmem:[%s958_s2] sm:$0xff] }
  0x12   :  { %243 = vmatpush.bf16.msra.mxu0 %v687_v8  ;;  %705 = vmatpush.bf16.msra.mxu3 %v687_v8 }
  0x13   :  { %292 = vmatpush.bf16.msra.mxu1 %v695_v9  ;;  %417 = vmatpush.bf16.msra.mxu2 %v700_v0 }
  0x16   :  { %244 = vmatpush.bf16.msra.mxu0 %v686_v10  ;;  %706 = vmatpush.bf16.msra.mxu3 %v686_v10 }
  0x17   :  { %293 = vmatpush.bf16.msra.mxu1 %v694_v11 }
  0x1a   :  { %245 = vmatpush.bf16.msra.mxu0 %v685_v12  ;;  %707 = vmatpush.bf16.msra.mxu3 %v685_v12 }
  0x1b   :  { %294 = vmatpush.bf16.msra.mxu1 %v693_v13 }
  0x1e   :  { %246 = vmatpush.bf16.msra.mxu0 %v684_v14  ;;  %708 = vmatpush.bf16.msra.mxu3 %v684_v14 }
  0x1f   :  { %295 = vmatpush.bf16.msra.mxu1 %v692_v15 }
  0x21   :  { %247 = vmatmul.bf16.vlgmr.msra.gmra.mxu0 %v531_v22  ;;  %277 = vmatmul.bf16.vlgmr.msra.gmra.mxu3 %v579_v24 }
  0x22   :  { %709 = vmatpush.bf16.msrb.mxu3 %v699_v1  ;;  %296 = vmatmul.bf16.vlgmr.msra.gmra.mxu1 %v535_v23 }
  0x26   :  { %710 = vmatpush.bf16.msrb.mxu3 %v698_v3 }
  0x2a   :  { %711 = vmatpush.bf16.msrb.mxu3 %v697_v5 }
  0x2e   :  { %712 = vmatpush.bf16.msrb.mxu3 %v696_v7 }
  0x31   :  { %252 = vmatmul.bf16.gmra.mxu0 %v539_v31  ;;  %282 = vmatmul.bf16.gmra.mxu3 %v587_v33 }
  0x32   :  { %713 = vmatpush.bf16.msrb.mxu3 %v695_v9  ;;  %301 = vmatmul.bf16.gmra.mxu1 %v543_v32 }
  0x36   :  { %714 = vmatpush.bf16.msrb.mxu3 %v694_v11 }
  0x3a   :  { %715 = vmatpush.bf16.msrb.mxu3 %v693_v13 }
  0x3e   :  { %716 = vmatpush.bf16.msrb.mxu3 %v692_v15 }
  0x41   :  { %257 = vmatmul.bf16.gmra.mxu0 %v547_v40  ;;  %326 = vmatmul.bf16.vlgmr.msrb.gmra.mxu3 %v583_v42 }
  0x42   :  { %306 = vmatmul.bf16.gmra.mxu1 %v551_v41 }
  0x51   :  { %262 = vmatmul.bf16.gmra.mxu0 %v555_v49  ;;  %331 = vmatmul.bf16.gmra.mxu3 %v591_v51 }
  0x52   :  { %311 = vmatmul.bf16.gmra.mxu1 %v559_v50 }
  0x61   :  { %267 = vmatmul.bf16.gmra.mxu0 %v563_v56 }
  0x62   :  { %316 = vmatmul.bf16.gmra.mxu1 %v567_v57 }
  0x71   :  { %272 = vmatmul.bf16.gmra.mxu0 %v571_v62 }
  0x72   :  { %321 = vmatmul.bf16.gmra.mxu1 %v575_v63 }
  0x9e   :  { %v248_v1 = vpop.f32.mrf.mxu0 }
  0x9f   :  { %v297_v2 = vpop.f32.mrf.mxu1 }
  0xa0   :  { %v298_v3 = vadd.f32 %v297_v2, %v248_v1 }
  0xa2   :  { %v337_v6 = vmul.f32 0.1, %v298_v3 }
  0xa4   :  { %v353_v9 = vmax.f32 %v298_v3, %v337_v6  ;;  %v278_v28 = vpop.f32.mrf.mxu3 }
  0xa6   :  { %v250_v4 = vpop.f32.mrf.mxu0 }
  0xa7   :  { %v299_v5 = vpop.f32.mrf.mxu1 }
  0xa8   :  { %v300_v7 = vadd.f32 %v299_v5, %v250_v4 }
  0xaa   :  { %v338_v8 = vmul.f32 0.1, %v300_v7 }
  0xac   :  { %v354_v10 = vmax.f32 %v300_v7, %v338_v8  ;;  %v280_v37 = vpop.f32.mrf.mxu3 }
  0xae   :  { %v369_v11 = vpack.c.bf16 %v354_v10, %v353_v9  ;;  %v253_v12 = vpop.f32.mrf.mxu0 }
  0xaf   :  { %v302_v13 = vpop.f32.mrf.mxu1 }
  0xb0   :  { %660 = vmatmul.msk.bf16.vlgmr.msra.gmra.mxu2 %vm385_vm0, %v369_v11  ;;  %v303_v14 = vadd.f32 %v302_v13, %v253_v12 }
  0xb2   :  { %v339_v17 = vmul.f32 0.1, %v303_v14 }
  0xb4   :  { %v355_v20 = vmax.f32 %v303_v14, %v339_v17  ;;  %v283_v44 = vpop.f32.mrf.mxu3 }
  0xb6   :  { %v255_v15 = vpop.f32.mrf.mxu0 }
  0xb7   :  { %v304_v16 = vpop.f32.mrf.mxu1 }
  0xb8   :  { %v305_v18 = vadd.f32 %v304_v16, %v255_v15 }
  0xba   :  { %v340_v19 = vmul.f32 0.1, %v305_v18 }
  0xbc   :  { %v356_v21 = vmax.f32 %v305_v18, %v340_v19  ;;  %v285_v51 = vpop.f32.mrf.mxu3 }
  0xbe   :  { %v370_v22 = vpack.c.bf16 %v356_v21, %v355_v20  ;;  %v258_v23 = vpop.f32.mrf.mxu0 }
  0xbf   :  { %v307_v24 = vpop.f32.mrf.mxu1 }
  0xc0   :  { %661 = vmatmul.msk.bf16.gmra.mxu2 %vm385_vm0, %v370_v22  ;;  %v308_v25 = vadd.f32 %v307_v24, %v258_v23 }
  0xc2   :  { %v341_v29 = vmul.f32 0.1, %v308_v25 }
  0xc4   :  { %v357_v32 = vmax.f32 %v308_v25, %v341_v29  ;;  %v327_v62 = vpop.f32.mrf.mxu3 }
  0xc5   :  { %v328_v9 = vadd.f32 %v327_v62, %v278_v28 }
  0xc6   :  { %v260_v26 = vpop.f32.mrf.mxu0 }
  0xc7   :  { %v309_v27 = vpop.f32.mrf.mxu1  ;;  %v349_v12 = vmul.f32 0.1, %v328_v9 }
  0xc8   :  { %v310_v30 = vadd.f32 %v309_v27, %v260_v26 }
  0xc9   :  { %v365_v14 = vmax.f32 %v328_v9, %v349_v12 }
  0xca   :  { %v342_v31 = vmul.f32 0.1, %v310_v30 }
  0xcc   :  { %v358_v33 = vmax.f32 %v310_v30, %v342_v31  ;;  %v329_v5 = vpop.f32.mrf.mxu3 }
  0xcd   :  { %v330_v10 = vadd.f32 %v329_v5, %v280_v37 }
  0xce   :  { %v371_v34 = vpack.c.bf16 %v358_v33, %v357_v32  ;;  %v263_v35 = vpop.f32.mrf.mxu0 }
  0xcf   :  { %v312_v36 = vpop.f32.mrf.mxu1  ;;  %v350_v13 = vmul.f32 0.1, %v330_v10 }
  0xd0   :  { %662 = vmatmul.msk.bf16.gmra.mxu2 %vm385_vm0, %v371_v34  ;;  %v313_v38 = vadd.f32 %v312_v36, %v263_v35 }
  0xd1   :  { %v366_v15 = vmax.f32 %v330_v10, %v350_v13 }
  0xd2   :  { %v343_v41 = vmul.f32 0.1, %v313_v38 }
  0xd3   :  { %v375_v16 = vpack.c.bf16 %v366_v15, %v365_v14 }
  0xd4   :  { %v359_v45 = vmax.f32 %v313_v38, %v343_v41  ;;  %v332_v11 = vpop.f32.mrf.mxu3 }
  0xd5   :  { %v333_v18 = vadd.f32 %v332_v11, %v283_v44 }
  0xd6   :  { %v265_v39 = vpop.f32.mrf.mxu0 }
  0xd7   :  { %v314_v40 = vpop.f32.mrf.mxu1  ;;  %v351_v20 = vmul.f32 0.1, %v333_v18 }
  0xd8   :  { %v315_v42 = vadd.f32 %v314_v40, %v265_v39 }
  0xd9   :  { %v367_v22 = vmax.f32 %v333_v18, %v351_v20 }
  0xda   :  { %v344_v43 = vmul.f32 0.1, %v315_v42 }
  0xdc   :  { %v360_v46 = vmax.f32 %v315_v42, %v344_v43  ;;  %v334_v17 = vpop.f32.mrf.mxu3 }
  0xdd   :  { %v335_v19 = vadd.f32 %v334_v17, %v285_v51 }
  0xde   :  { %v372_v47 = vpack.c.bf16 %v360_v46, %v359_v45  ;;  %v268_v48 = vpop.f32.mrf.mxu0 }
  0xdf   :  { %v317_v49 = vpop.f32.mrf.mxu1  ;;  %v352_v21 = vmul.f32 0.1, %v335_v19 }
  0xe0   :  { %663 = vmatmul.msk.bf16.gmra.mxu2 %vm385_vm0, %v372_v47  ;;  %v318_v50 = vadd.f32 %v317_v49, %v268_v48 }
  0xe1   :  { %v368_v23 = vmax.f32 %v335_v19, %v352_v21 }
  0xe2   :  { %v345_v54 = vmul.f32 0.1, %v318_v50 }
  0xe3   :  { %v376_v24 = vpack.c.bf16 %v368_v23, %v367_v22 }
  0xe4   :  { %v361_v57 = vmax.f32 %v318_v50, %v345_v54 }
  0xe6   :  { %v270_v52 = vpop.f32.mrf.mxu0 }
  0xe7   :  { %v319_v53 = vpop.f32.mrf.mxu1 }
  0xe8   :  { %v320_v55 = vadd.f32 %v319_v53, %v270_v52 }
  0xea   :  { %v346_v56 = vmul.f32 0.1, %v320_v55 }
  0xec   :  { %v362_v58 = vmax.f32 %v320_v55, %v346_v56 }
  0xee   :  { %v373_v59 = vpack.c.bf16 %v362_v58, %v361_v57  ;;  %v273_v60 = vpop.f32.mrf.mxu0 }
  0xef   :  { %v322_v61 = vpop.f32.mrf.mxu1 }
  0xf0   :  { %664 = vmatmul.msk.bf16.gmra.mxu2 %vm385_vm0, %v373_v59  ;;  %v323_v63 = vadd.f32 %v322_v61, %v273_v60 }
  0xf2   :  { %v347_v2 = vmul.f32 0.1, %v323_v63 }
  0xf4   :  { %v363_v6 = vmax.f32 %v323_v63, %v347_v2 }
  0xf6   :  { %v275_v0 = vpop.f32.mrf.mxu0 }
  0xf7   :  { %v324_v1 = vpop.f32.mrf.mxu1 }
  0xf8   :  { %v325_v3 = vadd.f32 %v324_v1, %v275_v0 }
  0xfa   :  { %v348_v4 = vmul.f32 0.1, %v325_v3 }
  0xfc   :  { %v364_v7 = vmax.f32 %v325_v3, %v348_v4 }
  0xfe   :  { %v374_v8 = vpack.c.bf16 %v364_v7, %v363_v6 }
 0x100   :  { %665 = vmatmul.msk.bf16.gmra.mxu2 %vm385_vm0, %v374_v8 }
 0x110   :  { %666 = vmatmul.msk.bf16.gmra.mxu2 %vm385_vm0, %v375_v16 }
 0x120   :  { %667 = vmatmul.msk.bf16.gmra.mxu2 %vm385_vm0, %v376_v24 }
 0x133   :  { %v419_v25 = vpop.f32.mrf.mxu2 }
 0x134   :  { %v459_v26 = vmul.f32 0.1, %v419_v25 }
 0x136   :  { %v475_v27 = vmax.f32 %v419_v25, %v459_v26 }
 0x138   :  { %v491_v28 = vpack.c.bf16 %v475_v27, %v475_v27 }
 0x13a   :  { %508 = vst.msk [vmem:[%s959_s3] sm:$0xf] %vm507_vm1, %v491_v28 }
 0x13b   :  { %v421_v29 = vpop.f32.mrf.mxu2 }
 0x13c   :  { %v460_v30 = vmul.f32 0.1, %v421_v29 }
 0x13e   :  { %v476_v31 = vmax.f32 %v421_v29, %v460_v30 }
 0x140   :  { %v492_v32 = vpack.c.bf16 %v476_v31, %v476_v31 }
 0x142   :  { %509 = vst.msk [vmem:[%s959_s3 + $0x4] sm:$0xf] %vm507_vm1, %v492_v32 }
 0x143   :  { %v424_v33 = vpop.f32.mrf.mxu2 }
 0x144   :  { %v461_v34 = vmul.f32 0.1, %v424_v33 }
 0x146   :  { %v477_v35 = vmax.f32 %v424_v33, %v461_v34 }
 0x148   :  { %v493_v36 = vpack.c.bf16 %v477_v35, %v477_v35 }
 0x14a   :  { %510 = vst.msk [vmem:[%s959_s3 + $0x8] sm:$0xf] %vm507_vm1, %v493_v36 }
 0x14b   :  { %v426_v37 = vpop.f32.mrf.mxu2 }
 0x14c   :  { %v462_v38 = vmul.f32 0.1, %v426_v37 }
 0x14e   :  { %v478_v39 = vmax.f32 %v426_v37, %v462_v38 }
 0x150   :  { %v494_v40 = vpack.c.bf16 %v478_v39, %v478_v39 }
 0x152   :  { %511 = vst.msk [vmem:[%s959_s3 + $0xc] sm:$0xf] %vm507_vm1, %v494_v40 }
 0x153   :  { %v429_v41 = vpop.f32.mrf.mxu2 }
 0x154   :  { %v463_v42 = vmul.f32 0.1, %v429_v41 }
 0x156   :  { %v479_v43 = vmax.f32 %v429_v41, %v463_v42 }
 0x158   :  { %v495_v44 = vpack.c.bf16 %v479_v43, %v479_v43 }
 0x15a   :  { %512 = vst.msk [vmem:[%s959_s3 + $0x10] sm:$0xf] %vm507_vm1, %v495_v44 }
 0x15b   :  { %v431_v45 = vpop.f32.mrf.mxu2 }
 0x15c   :  { %v464_v46 = vmul.f32 0.1, %v431_v45 }
 0x15e   :  { %v480_v47 = vmax.f32 %v431_v45, %v464_v46 }
 0x160   :  { %v496_v48 = vpack.c.bf16 %v480_v47, %v480_v47 }
 0x162   :  { %513 = vst.msk [vmem:[%s959_s3 + $0x14] sm:$0xf] %vm507_vm1, %v496_v48 }
 0x163   :  { %v434_v49 = vpop.f32.mrf.mxu2 }
 0x164   :  { %v465_v50 = vmul.f32 0.1, %v434_v49 }
 0x166   :  { %v481_v51 = vmax.f32 %v434_v49, %v465_v50 }
 0x168   :  { %v497_v52 = vpack.c.bf16 %v481_v51, %v481_v51 }
 0x16a   :  { %514 = vst.msk [vmem:[%s959_s3 + $0x18] sm:$0xf] %vm507_vm1, %v497_v52 }
 0x16b   :  { %v436_v53 = vpop.f32.mrf.mxu2 }
 0x16c   :  { %v466_v54 = vmul.f32 0.1, %v436_v53 }
 0x16e   :  { %v482_v55 = vmax.f32 %v436_v53, %v466_v54 }
 0x170   :  { %v498_v56 = vpack.c.bf16 %v482_v55, %v482_v55 }
 0x172   :  { %515 = vst.msk [vmem:[%s959_s3 + $0x1c] sm:$0xf] %vm507_vm1, %v498_v56 }
 0x173   :  { %v439_v57 = vpop.f32.mrf.mxu2 }
 0x174   :  { %v467_v58 = vmul.f32 0.1, %v439_v57 }
 0x176   :  { %v483_v59 = vmax.f32 %v439_v57, %v467_v58 }
 0x178   :  { %v499_v60 = vpack.c.bf16 %v483_v59, %v483_v59 }
 0x17a   :  { %516 = vst.msk [vmem:[%s959_s3 + $0x20] sm:$0xf] %vm507_vm1, %v499_v60 }
 0x17b   :  { %v441_v61 = vpop.f32.mrf.mxu2 }
 0x17c   :  { %v468_v62 = vmul.f32 0.1, %v441_v61 }
 0x17e   :  { %v484_v63 = vmax.f32 %v441_v61, %v468_v62 }
 0x180   :  { %v500_v0 = vpack.c.bf16 %v484_v63, %v484_v63 }
 0x182   :  { %517 = vst.msk [vmem:[%s959_s3 + $0x24] sm:$0xf] %vm507_vm1, %v500_v0 }
 0x183   :  { %v444_v1 = vpop.f32.mrf.mxu2 }
 0x184   :  { %v469_v2 = vmul.f32 0.1, %v444_v1 }
 0x186   :  { %v485_v3 = vmax.f32 %v444_v1, %v469_v2 }
 0x188   :  { %v501_v4 = vpack.c.bf16 %v485_v3, %v485_v3 }
 0x18a   :  { %518 = vst.msk [vmem:[%s959_s3 + $0x28] sm:$0xf] %vm507_vm1, %v501_v4 }
 0x18b   :  { %v446_v5 = vpop.f32.mrf.mxu2 }
 0x18c   :  { %v470_v6 = vmul.f32 0.1, %v446_v5 }
 0x18e   :  { %v486_v7 = vmax.f32 %v446_v5, %v470_v6 }
 0x190   :  { %v502_v8 = vpack.c.bf16 %v486_v7, %v486_v7 }
 0x192   :  { %519 = vst.msk [vmem:[%s959_s3 + $0x2c] sm:$0xf] %vm507_vm1, %v502_v8 }
 0x193   :  { %v449_v9 = vpop.f32.mrf.mxu2 }
 0x194   :  { %v471_v10 = vmul.f32 0.1, %v449_v9 }
 0x196   :  { %v487_v11 = vmax.f32 %v449_v9, %v471_v10 }
 0x198   :  { %v503_v12 = vpack.c.bf16 %v487_v11, %v487_v11 }
 0x19a   :  { %520 = vst.msk [vmem:[%s959_s3 + $0x30] sm:$0xf] %vm507_vm1, %v503_v12 }
 0x19b   :  { %v451_v13 = vpop.f32.mrf.mxu2 }
 0x19c   :  { %v472_v14 = vmul.f32 0.1, %v451_v13 }
 0x19e   :  { %v488_v15 = vmax.f32 %v451_v13, %v472_v14 }
 0x1a0   :  { %v504_v16 = vpack.c.bf16 %v488_v15, %v488_v15 }
 0x1a2   :  { %521 = vst.msk [vmem:[%s959_s3 + $0x34] sm:$0xf] %vm507_vm1, %v504_v16 }
 0x1a3   :  { %v454_v17 = vpop.f32.mrf.mxu2 }
 0x1a4   :  { %v473_v18 = vmul.f32 0.1, %v454_v17 }
 0x1a6   :  { %v489_v19 = vmax.f32 %v454_v17, %v473_v18 }
 0x1a8   :  { %v505_v20 = vpack.c.bf16 %v489_v19, %v489_v19 }
 0x1aa   :  { %522 = vst.msk [vmem:[%s959_s3 + $0x38] sm:$0xf] %vm507_vm1, %v505_v20 }
 0x1ab   :  { %v456_v21 = vpop.f32.mrf.mxu2 }
 0x1ac   :  { %v474_v22 = vmul.f32 0.1, %v456_v21 }
 0x1ae   :  { %v490_v23 = vmax.f32 %v456_v21, %v474_v22 }
 0x1b0   :  { %v506_v24 = vpack.c.bf16 %v490_v23, %v490_v23 }
 0x1b2   :  { %523 = vst.msk [vmem:[%s959_s3 + $0x3c] sm:$0xf] %vm507_vm1, %v506_v24 }

// kernel: net_forward.120
= control target key start
LH: loop header
LB: loop body
LE: loop exit
PB: predicated region body
PF: predicated region fallthrough
CT: control target
= control target key end

     0   :  { %s3006_s9 = smov 0   ;;  %s3008_s10 = smov 0   ;;  %s3785_s0 = inlined_call_operand.vmem [shape: bf16[2,20,20,64], index: 0, kind: input, shape index: {}]   ;;  %s3786_s1 = inlined_call_operand.vmem [shape: bf16[9,64,64], index: 1, kind: input, shape index: {}]   ;;  %s3787_s2 = inlined_call_operand.vmem [shape: bf16[2,256,64], index: 2, kind: output, shape index: {}]  }
   0x1   :  { %s3010_s11 = smov 0   ;;  %s3012_s12 = smov 0  }
   0x2   :  { %s3014_s13 = smov 0  }
   0x3 LB: > { %s21_s14 = sadd.s32 1, %s2981_s11  ;;  %s24_s15 = sadd.s32 1, %s2985_s12  ;;  %s2989_s13 = sphi %s3014_s13, %s12_s13   ;;  %s2985_s12 = sphi %s3012_s12, %s3795_s12   ;;  %s2981_s11 = sphi %s3010_s11, %s3794_s11   ;;  %s2977_s10 = sphi %s3008_s10, %s3793_s10   ;;  %s2973_s9 = sphi %s3006_s9, %s3792_s9  }
   0x4   : > { %p22_p0 = scmp.ge.s32.totalorder %s21_s14, 2  ;;  %p2287_p1 = scmp.ge.s32.totalorder %s2989_s13, 1 }
   0x5   : > { %p126_p2 = scmp.lt.s32.totalorder %s2989_s13, 5 }
   0x6   : > { %s3797_s14 = smov (%p22_p0, %s21_s14), 0  ;;  %s3799_s15 = smov (!%p22_p0, %s24_s15), %s2985_s12 }
   0x7   : > { %p127_p3 = pnand %p2287_p1, %p126_p2  ;;  %p26_p4 = scmp.ge.s32.totalorder %s3799_s15, 2 }
   0x8   : > { %p152_p5 = scmp.lt.s32.totalorder (!%p127_p3), %s2977_s10, 1  ;;  %s2837_s20 = smul.u32 (!%p127_p3), 96, %s2973_s9 }
   0x9   : > { %s3801_s15 = smov (%p26_p4, %s3799_s15), 0  ;;  %130 = sbr.rel (%p127_p3) target bundleno = 456 (0x1c8), region = 28 }
   0xe   : > { %v2853_v0 = vld [vmem:[%s3786_s1 + $0x38] sm:$0xff]  ;;  %v2852_v1 = vld [vmem:[%s3786_s1 + $0x30] sm:$0xff]  ;;  %s3803_s10 = smov (!%p152_p5, %s2977_s10), 1  ;;  %vm236_vm0 = vcmask 1042432   ;;  %vm237_vm1 = vcmask 1046532   ;;  %v2851_v2 = vld [vmem:[%s3786_s1 + $0x28] sm:$0xff] }
   0xf   : > { %2898 = vmatpush.bf16.msra.mxu1 %v2853_v0  ;;  %2899 = vmatpush.bf16.msra.mxu2 %v2853_v0  ;;  %s2910_s21 = smul.u32 240, %s3803_s10  ;;  %vm3056_vm2 = vmor %vm236_vm0, %vm237_vm1  ;;  %v2850_v4 = vld [vmem:[%s3786_s1 + $0x20] sm:$0xff]  ;;  %vm352_vm3 = vcmask 523264   ;;  %v2857_v15 = vld [vmem:[%s3786_s1 + $0x58] sm:$0xff]  ;;  %vm587_vm4 = vcmask 1041408   ;;  %vm588_vm5 = vcmask 1045508  }
  0x10   : > { %2900 = vmatpush.bf16.msra.mxu3 %v2853_v0  ;;  %381 = vmatpush.bf16.msra.mxu0 %v2853_v0  ;;  %v2869_v16 = vld [vmem:[%s3786_s1 + $0x78] sm:$0xff]  ;;  %v2856_v44 = vld [vmem:[%s3786_s1 + $0x50] sm:$0xff]  ;;  %vm3216_vm6 = vmor %vm587_vm4, %vm588_vm5  ;;  %s2290_s6 = sshll.u32 %s3803_s10, 5  ;;  %vm2172_vm7 = vcmask 519168  }
  0x11   : > { %s156_s26 = scalar_lea.vmem %s3785_s0, %s2910_s21  ;;  %v2849_v22 = vld [vmem:[%s3786_s1 + $0x18] sm:$0xff]  ;;  %v2868_v50 = vld [vmem:[%s3786_s1 + $0x70] sm:$0xff] }
  0x12   : > { %s3054_s27 = scalar_lea.vmem %s156_s26, %s2837_s20  ;;  %v2873_v23 = vld [vmem:[%s3786_s1 + $0x98] sm:$0xff]  ;;  %v2848_v57 = vld [vmem:[%s3786_s1 + $0x10] sm:$0xff] }
  0x13   : > { %2901 = vmatpush.bf16.msra.mxu1 %v2852_v1  ;;  %2902 = vmatpush.bf16.msra.mxu2 %v2852_v1  ;;  %v3064_v5 = vld [vmem:[%s3054_s27 + $0x1c] sm:$0xf]  ;;  %v200_v6 = vld [vmem:[%s3054_s27 + $0x18] sm:$0xe]  ;;  %v201_v7 = vld [vmem:[%s3054_s27 + $0x20] sm:$0x1] }
  0x14   : > { %2903 = vmatpush.bf16.msra.mxu3 %v2852_v1  ;;  %382 = vmatpush.bf16.msra.mxu0 %v2852_v1  ;;  %v2297_v8 = vrot.slane %v200_v6, 9  ;;  %v255_v9 = vrot.slane %v3064_v5, 5  ;;  %v258_v10 = vrot.slane %v201_v7, 5  ;;  %v3070_v11 = vld [vmem:[%s3054_s27 + $0x34] sm:$0xf] }
  0x15   : > { %v204_v12 = vld [vmem:[%s3054_s27 + $0x30] sm:$0xe]  ;;  %v205_v13 = vld [vmem:[%s3054_s27 + $0x38] sm:$0x1]  ;;  %v269_v14 = vrot.slane %v3070_v11, 5 }
  0x16   : > { %v256_v17 = vsel %vm3056_vm2, %v2297_v8, %v255_v9  ;;  %v257_v18 = vrot.slane %v255_v9, 4  ;;  %v2299_v19 = vrot.slane %v204_v12, 9  ;;  %v272_v20 = vrot.slane %v205_v13, 5  ;;  %v3084_v21 = vld [vmem:[%s3054_s27 + $0x4c] sm:$0xf]  ;;  %v2872_v0 = vld [vmem:[%s3786_s1 + $0x90] sm:$0xff] }
  0x17   : > { %2904 = vmatpush.bf16.msra.mxu1 %v2851_v2  ;;  %2905 = vmatpush.bf16.msra.mxu2 %v2851_v2  ;;  %v308_v24 = vunpack.c.l.b16 %v256_v17  ;;  %v271_v25 = vrot.slane %v269_v14, 4  ;;  %v208_v26 = vld [vmem:[%s3054_s27 + $0x48] sm:$0xe]  ;;  %v209_v27 = vld [vmem:[%s3054_s27 + $0x50] sm:$0x1]  ;;  %v283_v28 = vrot.slane %v3084_v21, 5 }
  0x18   : > { %2906 = vmatpush.bf16.msra.mxu3 %v2851_v2  ;;  %383 = vmatpush.bf16.msra.mxu0 %v2851_v2  ;;  %v259_v29 = vsel %vm3056_vm2, %v257_v18, %v258_v10  ;;  %v270_v30 = vsel %vm3056_vm2, %v2299_v19, %v269_v14  ;;  %v2301_v31 = vrot.slane %v208_v26, 9  ;;  %v286_v32 = vrot.slane %v209_v27, 5  ;;  %v3100_v33 = vld [vmem:[%s3054_s27 + $0x4] sm:$0xf]  ;;  %v196_v34 = vld [vmem:[%s3054_s27] sm:$0xe] }
  0x19   : > { %v309_v35 = vunpack.c.l.b16 %v259_v29  ;;  %v273_v36 = vsel %vm3056_vm2, %v271_v25, %v272_v20  ;;  %v312_v37 = vunpack.c.l.b16 %v270_v30  ;;  %v285_v38 = vrot.slane %v283_v28, 4  ;;  %v197_v39 = vld [vmem:[%s3054_s27 + $0x8] sm:$0x1]  ;;  %v202_v51 = vld [vmem:[%s3054_s27 + $0x24] sm:$0xe] }
  0x1a   : > { %v313_v40 = vunpack.c.l.b16 %v273_v36  ;;  %v284_v41 = vsel %vm3056_vm2, %v2301_v31, %v283_v28  ;;  %v2295_v42 = vrot.slane %v196_v34, 9  ;;  %v241_v43 = vrot.slane %v3100_v33, 5  ;;  %v3113_v45 = vld [vmem:[%s3054_s27 + $0x28] sm:$0xf]  ;;  %v203_v52 = vld [vmem:[%s3054_s27 + $0x2c] sm:$0x1] }
  0x1b   : > { %2907 = vmatpush.bf16.msra.mxu1 %v2850_v4  ;;  %2908 = vmatpush.bf16.msra.mxu2 %v2850_v4  ;;  %v322_v46 = vpack.c.b16 %v309_v35, %v308_v24  ;;  %v287_v47 = vsel %vm3056_vm2, %v285_v38, %v286_v32  ;;  %v316_v48 = vunpack.c.l.b16 %v284_v41  ;;  %v244_v49 = vrot.slane %v197_v39, 5  ;;  %v3128_v58 = vld [vmem:[%s3054_s27 + $0x40] sm:$0xf]  ;;  %v206_v59 = vld [vmem:[%s3054_s27 + $0x3c] sm:$0xe]  ;;  %v2855_v8 = vld [vmem:[%s3786_s1 + $0x48] sm:$0xff] }
  0x1c   : > { %2909 = vmatpush.bf16.msra.mxu3 %v2850_v4  ;;  %384 = vmatpush.bf16.msra.mxu0 %v2850_v4  ;;  %v324_v53 = vpack.c.b16 %v313_v40, %v312_v37  ;;  %v317_v54 = vunpack.c.l.b16 %v287_v47  ;;  %v242_v55 = vsel %vm3056_vm2, %v2295_v42, %v241_v43  ;;  %v243_v56 = vrot.slane %v241_v43, 4  ;;  %v207_v62 = vld [vmem:[%s3054_s27 + $0x44] sm:$0x1]  ;;  %v3135_v63 = vld [vmem:[%s3054_s27 + $0x58] sm:$0xf]  ;;  %v2867_v14 = vld [vmem:[%s3786_s1 + $0x68] sm:$0xff] }
  0x1d   : > { %v304_v60 = vunpack.c.l.b16 %v242_v55  ;;  %v262_v61 = vrot.slane %v3113_v45, 5  ;;  %v2298_v4 = vrot.slane %v202_v51, 9  ;;  %v265_v6 = vrot.slane %v203_v52, 5  ;;  %v210_v7 = vld [vmem:[%s3054_s27 + $0x54] sm:$0xe]  ;;  %v2854_v34 = vld [vmem:[%s3786_s1 + $0x40] sm:$0xff] }
  0x1e   : > { %2329 = vmatmul.msk.bf16.vlgmr.msra.gmra.mxu1 %vm352_vm3, %v322_v46  ;;  %2331 = vmatmul.msk.bf16.vlgmr.msra.gmra.mxu2 %vm352_vm3, %v324_v53  ;;  %v326_v1 = vpack.c.b16 %v317_v54, %v316_v48  ;;  %v245_v2 = vsel %vm3056_vm2, %v243_v56, %v244_v49  ;;  %v2300_v12 = vrot.slane %v206_v59, 9  ;;  %v276_v13 = vrot.slane %v3128_v58, 5  ;;  %v211_v18 = vld [vmem:[%s3054_s27 + $0x5c] sm:$0x1]  ;;  %v3161_v20 = vld [vmem:[%s3054_s27 + $0x10] sm:$0xf] }
  0x1f   : > { %731 = vmatpush.bf16.msrb.mxu2 %v2857_v15  ;;  %510 = vmatpush.bf16.msrb.mxu1 %v2849_v22  ;;  %v305_v9 = vunpack.c.l.b16 %v245_v2  ;;  %v264_v10 = vrot.slane %v262_v61, 4  ;;  %v2847_v15 = vld [vmem:[%s3786_s1 + $0x8] sm:$0xff]  ;;  %v279_v17 = vrot.slane %v207_v62, 5  ;;  %v290_v19 = vrot.slane %v3135_v63, 5  ;;  %v199_v26 = vld [vmem:[%s3054_s27 + $0x14] sm:$0x1] }
  0x20   : > { %913 = vmatpush.bf16.msrb.mxu3 %v2869_v16  ;;  %1163 = vmatpush.bf16.msrb.mxu0 %v2873_v23  ;;  %v2871_v16 = vld [vmem:[%s3786_s1 + $0x88] sm:$0xff]  ;;  %v278_v23 = vrot.slane %v276_v13, 4  ;;  %v2302_v24 = vrot.slane %v210_v7, 9  ;;  %v263_v27 = vsel %vm3056_vm2, %v2298_v4, %v262_v61  ;;  %v277_v30 = vsel %vm3056_vm2, %v2300_v12, %v276_v13  ;;  %v2866_v38 = vld [vmem:[%s3786_s1 + $0x60] sm:$0xff]  ;;  %v2889_v46 = vld [vmem:[%s3786_s1 + $0xd8] sm:$0xff] }
  0x21   : > { %2333 = vmatmul.msk.bf16.vlgmr.msra.gmra.mxu3 %vm352_vm3, %v326_v1  ;;  %v320_v22 = vpack.c.b16 %v305_v9, %v304_v60  ;;  %v198_v25 = vld [vmem:[%s3054_s27 + $0xc] sm:$0xe]  ;;  %v266_v28 = vsel %vm3056_vm2, %v264_v10, %v265_v6  ;;  %v292_v29 = vrot.slane %v290_v19, 4  ;;  %v293_v32 = vrot.slane %v211_v18, 5  ;;  %v2846_v39 = vld [vmem:[%s3786_s1] sm:$0xff]  ;;  %v2877_v51 = vld [vmem:[%s3786_s1 + $0xb8] sm:$0xff] }
  0x22   : > { %v280_v31 = vsel %vm3056_vm2, %v278_v23, %v279_v17  ;;  %v2296_v35 = vrot.slane %v198_v25, 9  ;;  %v248_v36 = vrot.slane %v3161_v20, 5  ;;  %v251_v37 = vrot.slane %v199_v26, 5  ;;  %v2897_v52 = vld [vmem:[%s3786_s1 + $0x118] sm:$0xff]  ;;  %v555_v1 = vld [vmem:[%s3054_s27] sm:$0xc] }
  0x23   : > { %732 = vmatpush.bf16.msrb.mxu2 %v2856_v44  ;;  %511 = vmatpush.bf16.msrb.mxu1 %v2848_v57  ;;  %v310_v40 = vunpack.c.l.b16 %v263_v27  ;;  %v311_v41 = vunpack.c.l.b16 %v266_v28  ;;  %v291_v42 = vsel %vm3056_vm2, %v2302_v24, %v290_v19  ;;  %v294_v43 = vsel %vm3056_vm2, %v292_v29, %v293_v32  ;;  %v2870_v44 = vld [vmem:[%s3786_s1 + $0x80] sm:$0xff]  ;;  %v556_v2 = vld [vmem:[%s3054_s27 + $0x8] sm:$0x3]  ;;  %v3212_v4 = vld [vmem:[%s3054_s27 + $0x1c] sm:$0xf] }
  0x24   : > { %914 = vmatpush.bf16.msrb.mxu3 %v2868_v50  ;;  %1164 = vmatpush.bf16.msrb.mxu0 %v2872_v0  ;;  %v314_v47 = vunpack.c.l.b16 %v277_v30  ;;  %v315_v48 = vunpack.c.l.b16 %v280_v31  ;;  %v250_v49 = vrot.slane %v248_v36, 4  ;;  %v2893_v50 = vld [vmem:[%s3786_s1 + $0xf8] sm:$0xff]  ;;  %v318_v53 = vunpack.c.l.b16 %v291_v42  ;;  %v2515_v13 = vld [vmem:[%s3054_s27 + $0x20] sm:$0x1]  ;;  %v557_v31 = vld [vmem:[%s3054_s27 + $0xc] sm:$0xc] }
  0x25   : > { %2327 = vmatmul.msk.bf16.vlgmr.msra.gmra.mxu0 %vm352_vm3, %v320_v22  ;;  %v319_v54 = vunpack.c.l.b16 %v294_v43  ;;  %v249_v55 = vsel %vm3056_vm2, %v2296_v35, %v248_v36  ;;  %v323_v57 = vpack.c.b16 %v311_v41, %v310_v40  ;;  %v592_v60 = vrot.slane %v3100_v33, 6  ;;  %v2513_v12 = vld [vmem:[%s3054_s27 + $0x18] sm:$0xe]  ;;  %v2838_v25 = vld [vmem:[%s3054_s27] sm:$0xff]  ;;  %v558_v32 = vld [vmem:[%s3054_s27 + $0x14] sm:$0x3] }
  0x26   : > { %v252_v56 = vsel %vm3056_vm2, %v250_v49, %v251_v37  ;;  %v325_v59 = vpack.c.b16 %v315_v48, %v314_v47  ;;  %v306_v61 = vunpack.c.l.b16 %v249_v55  ;;  %v2391_v7 = vrot.slane %v555_v1, 10  ;;  %v2858_v30 = vld [vmem:[%s3054_s27 + $0x18] sm:$0xff]  ;;  %v2516_v40 = vld [vmem:[%s3054_s27 + $0x24] sm:$0xe]  ;;  %v2518_v41 = vld [vmem:[%s3054_s27 + $0x2c] sm:$0x1] }
  0x27   : > { %733 = vmatpush.bf16.msrb.mxu2 %v2855_v8  ;;  %512 = vmatpush.bf16.msrb.mxu1 %v2847_v15  ;;  %v307_v62 = vunpack.c.l.b16 %v252_v56  ;;  %v327_v0 = vpack.c.b16 %v319_v54, %v318_v53  ;;  %v594_v8 = vrot.slane %v592_v60, 4  ;;  %v595_v33 = vrot.slane %v556_v2, 6  ;;  %v2896_v47 = vld [vmem:[%s3786_s1 + $0x110] sm:$0xff] }
  0x28   : > { %915 = vmatpush.bf16.msrb.mxu3 %v2867_v14  ;;  %1165 = vmatpush.bf16.msrb.mxu0 %v2871_v16  ;;  %v1024_v10 = vrot.slane %v3212_v4, 5  ;;  %v593_v14 = vsel %vm3216_vm6, %v2391_v7, %v592_v60  ;;  %v2537_v16 = vrot.slane %v2513_v12, 9  ;;  %v1027_v18 = vrot.slane %v2515_v13, 5  ;;  %v2839_v55 = vld [vmem:[%s3054_s27 + $0xc] sm:$0xff]  ;;  %v3274_v1 = vld [vmem:[%s3054_s27 + $0x34] sm:$0xf] }
  0x29   : > { %v321_v6 = vpack.c.b16 %v307_v62, %v306_v61  ;;  %v596_v15 = vsel %vm3216_vm6, %v594_v8, %v595_v33  ;;  %v655_v19 = vunpack.c.l.b16 %v593_v14  ;;  %v599_v29 = vrot.slane %v3161_v20, 6  ;;  %v2888_v20 = vld [vmem:[%s3786_s1 + $0xd0] sm:$0xff]  ;;  %v2859_v61 = vld [vmem:[%s3054_s27 + $0x24] sm:$0xff]  ;;  %v559_v62 = vld [vmem:[%s3054_s27 + $0x18] sm:$0xc] }
  0x2a   : > { %v1026_v17 = vrot.slane %v1024_v10, 4  ;;  %v656_v22 = vunpack.c.l.b16 %v596_v15  ;;  %v1025_v23 = vsel %vm3056_vm2, %v2537_v16, %v1024_v10  ;;  %v2392_v36 = vrot.slane %v557_v31, 10  ;;  %v2519_v10 = vld [vmem:[%s3054_s27 + $0x30] sm:$0xe]  ;;  %v3297_v31 = vld [vmem:[%s3054_s27 + $0x40] sm:$0xf] }
  0x2b   : > { %734 = vmatpush.bf16.msrb.mxu2 %v2854_v34  ;;  %513 = vmatpush.bf16.msrb.mxu1 %v2846_v39  ;;  %v1087_v27 = vunpack.c.l.b16 %v1025_v23  ;;  %v3239_v34 = vld [vmem:[%s3054_s27 + $0x28] sm:$0xf]  ;;  %v601_v37 = vrot.slane %v599_v29, 4  ;;  %v2538_v48 = vrot.slane %v2516_v40, 9  ;;  %v606_v60 = vrot.slane %v3064_v5, 6  ;;  %v2840_v23 = vld [vmem:[%s3054_s27 + $0x18] sm:$0xff] }
  0x2c   : > { %916 = vmatpush.bf16.msrb.mxu3 %v2866_v38  ;;  %1166 = vmatpush.bf16.msrb.mxu0 %v2870_v44  ;;  %v1028_v24 = vsel %vm3056_vm2, %v1026_v17, %v1027_v18  ;;  %v671_v26 = vpack.c.b16 %v656_v22, %v655_v19  ;;  %v602_v38 = vrot.slane %v558_v32, 6  ;;  %v1031_v39 = vrot.slane %v3239_v34, 5  ;;  %v2892_v44 = vld [vmem:[%s3786_s1 + $0xf0] sm:$0xff]  ;;  %v2521_v5 = vld [vmem:[%s3054_s27 + $0x38] sm:$0x1] }
  0x2d   : > { %v1088_v28 = vunpack.c.l.b16 %v1028_v24  ;;  %v600_v42 = vsel %vm3216_vm6, %v2392_v36, %v599_v29  ;;  %v608_v7 = vrot.slane %v606_v60, 4  ;;  %v1038_v33 = vrot.slane %v3274_v1, 5  ;;  %v561_v29 = vld [vmem:[%s3054_s27 + $0x24] sm:$0xc] }
  0x2e   : > { %2330 = vmatmul.msk.bf16.gmra.mxu1 %vm352_vm3, %v323_v57  ;;  %2332 = vmatmul.msk.bf16.gmra.mxu2 %vm352_vm3, %v325_v59  ;;  %v603_v43 = vsel %vm3216_vm6, %v601_v37, %v602_v38  ;;  %v1033_v49 = vrot.slane %v1031_v39, 4  ;;  %v1032_v53 = vsel %vm3056_vm2, %v2538_v48, %v1031_v39  ;;  %v2539_v14 = vrot.slane %v2519_v10, 9  ;;  %v2522_v39 = vld [vmem:[%s3054_s27 + $0x3c] sm:$0xe] }
  0x2f   : > { %1579 = vmatpush.bf16.msra.mxu2 %v2889_v46  ;;  %1397 = vmatpush.bf16.msra.mxu1 %v2877_v51  ;;  %v1103_v35 = vpack.c.b16 %v1088_v28, %v1087_v27  ;;  %v2876_v46 = vld [vmem:[%s3786_s1 + $0xb0] sm:$0xff]  ;;  %v657_v51 = vunpack.c.l.b16 %v600_v42  ;;  %v1089_v57 = vunpack.c.l.b16 %v1032_v53  ;;  %v1040_v15 = vrot.slane %v1038_v33, 4  ;;  %v2891_v42 = vld [vmem:[%s3786_s1 + $0xe8] sm:$0xff] }
  0x30   : > { %1829 = vmatpush.bf16.msra.mxu3 %v2893_v50  ;;  %2063 = vmatpush.bf16.msra.mxu0 %v2897_v52  ;;  %v1034_v50 = vrot.slane %v2518_v41, 5  ;;  %v658_v52 = vunpack.c.l.b16 %v603_v43  ;;  %v1041_v16 = vrot.slane %v2521_v5, 5  ;;  %v1039_v19 = vsel %vm3056_vm2, %v2539_v14, %v1038_v33  ;;  %v2860_v28 = vld [vmem:[%s3054_s27 + $0x30] sm:$0xff]  ;;  %v2875_v43 = vld [vmem:[%s3786_s1 + $0xa8] sm:$0xff] }
  0x31   : > { %2334 = vmatmul.msk.bf16.gmra.mxu3 %vm352_vm3, %v327_v0  ;;  %v560_v0 = vld [vmem:[%s3054_s27 + $0x20] sm:$0x3]  ;;  %v613_v27 = vrot.slane %v3113_v45, 6  ;;  %v1045_v38 = vrot.slane %v3297_v31, 5  ;;  %v2887_v45 = vld [vmem:[%s3786_s1 + $0xc8] sm:$0xff] }
  0x32   : > { %v1035_v54 = vsel %vm3056_vm2, %v1033_v49, %v1034_v50  ;;  %v672_v56 = vpack.c.b16 %v658_v52, %v657_v51  ;;  %v609_v8 = vrot.slane %v560_v0, 6  ;;  %v1042_v22 = vsel %vm3056_vm2, %v1040_v15, %v1041_v16  ;;  %v2841_v53 = vld [vmem:[%s3054_s27 + $0x24] sm:$0xff] }
  0x33   : > { %1580 = vmatpush.bf16.msra.mxu2 %v2888_v20  ;;  %1398 = vmatpush.bf16.msra.mxu1 %v2876_v46  ;;  %v1090_v59 = vunpack.c.l.b16 %v1035_v54  ;;  %v615_v36 = vrot.slane %v613_v27, 4  ;;  %v2524_v20 = vld [vmem:[%s3054_s27 + $0x44] sm:$0x1]  ;;  %v2540_v46 = vrot.slane %v2522_v39, 9  ;;  %v2525_v33 = vld [vmem:[%s3054_s27 + $0x48] sm:$0xe] }
  0x34   : > { %1830 = vmatpush.bf16.msra.mxu3 %v2892_v44  ;;  %2064 = vmatpush.bf16.msra.mxu0 %v2896_v47  ;;  %v610_v13 = vsel %vm3216_vm6, %v608_v7, %v609_v8  ;;  %v2895_v44 = vld [vmem:[%s3786_s1 + $0x108] sm:$0xff]  ;;  %v1047_v47 = vrot.slane %v1045_v38, 4  ;;  %v1048_v48 = vrot.slane %v2524_v20, 5 }
  0x35   : > { %2328 = vmatmul.msk.bf16.gmra.mxu0 %vm352_vm3, %v321_v6  ;;  %v1104_v2 = vpack.c.b16 %v1090_v59, %v1089_v57  ;;  %v2393_v6 = vrot.slane %v559_v62, 10  ;;  %v660_v18 = vunpack.c.l.b16 %v610_v13  ;;  %v1046_v51 = vsel %vm3056_vm2, %v2540_v46, %v1045_v38  ;;  %v2861_v59 = vld [vmem:[%s3054_s27 + $0x3c] sm:$0xff]  ;;  %v3332_v62 = vld [vmem:[%s3054_s27 + $0x4c] sm:$0xf]  ;;  %v2528_v38 = vld [vmem:[%s3054_s27 + $0x54] sm:$0xe] }
  0x36   : > { %v1049_v52 = vsel %vm3056_vm2, %v1047_v47, %v1048_v48  ;;  %v620_v57 = vrot.slane %v3070_v11, 6  ;;  %v1052_v8 = vrot.slane %v3332_v62, 5  ;;  %v2527_v11 = vld [vmem:[%s3054_s27 + $0x50] sm:$0x1] }
  0x37   : > { %v607_v12 = vsel %vm3216_vm6, %v2393_v6, %v606_v60  ;;  %1581 = vmatpush.bf16.msra.mxu2 %v2887_v45  ;;  %1399 = vmatpush.bf16.msra.mxu1 %v2875_v43  ;;  %v563_v60 = vld [vmem:[%s3054_s27 + $0x30] sm:$0xc]  ;;  %v1055_v14 = vrot.slane %v2527_v11, 5  ;;  %v2530_v45 = vld [vmem:[%s3054_s27 + $0x5c] sm:$0x1] }
  0x38   : > { %v659_v17 = vunpack.c.l.b16 %v607_v12  ;;  %1831 = vmatpush.bf16.msra.mxu3 %v2891_v42  ;;  %2065 = vmatpush.bf16.msra.mxu0 %v2895_v44  ;;  %v622_v6 = vrot.slane %v620_v57, 4  ;;  %v2541_v12 = vrot.slane %v2525_v33, 9  ;;  %v1054_v13 = vrot.slane %v1052_v8, 4 }
  0x39   : > { %v2542_v42 = vrot.slane %v2528_v38, 9  ;;  %v1062_v44 = vrot.slane %v2530_v45, 5  ;;  %v2534_v38 = vld [vmem:[%s3054_s27 + $0x6c] sm:$0xe]  ;;  %v2536_v45 = vld [vmem:[%s3054_s27 + $0x74] sm:$0x1] }
  0x3a   : > { %v673_v24 = vpack.c.b16 %v660_v18, %v659_v17  ;;  %v1053_v17 = vsel %vm3056_vm2, %v2541_v12, %v1052_v8  ;;  %v1056_v18 = vsel %vm3056_vm2, %v1054_v13, %v1055_v14  ;;  %v2531_v8 = vld [vmem:[%s3054_s27 + $0x60] sm:$0xe] }
  0x3e   : > { %2383 = vmatmul.msk.bf16.vlgmr.msrb.gmra.mxu1 %vm352_vm3, %v2838_v25  ;;  %2423 = vmatmul.msk.bf16.vlgmr.msrb.gmra.mxu2 %vm352_vm3, %v671_v26  ;;  %v1091_v25 = vunpack.c.l.b16 %v1039_v19  ;;  %v1092_v26 = vunpack.c.l.b16 %v1042_v22  ;;  %v2842_v19 = vld [vmem:[%s3054_s27 + $0x30] sm:$0xff] }
  0x40   : > { %v1105_v32 = vpack.c.b16 %v1092_v26, %v1091_v25  ;;  %v627_v25 = vrot.slane %v3128_v58, 6  ;;  %v2862_v26 = vld [vmem:[%s3054_s27 + $0x48] sm:$0xff]  ;;  %v2886_v58 = vld [vmem:[%s3786_s1 + $0xc0] sm:$0xff] }
  0x41   : > { %2505 = vmatmul.msk.bf16.vlgmr.msrb.gmra.mxu3 %vm352_vm3, %v2858_v30  ;;  %v562_v30 = vld [vmem:[%s3054_s27 + $0x2c] sm:$0x3]  ;;  %1582 = vmatpush.bf16.msra.mxu2 %v2886_v58 }
  0x42   : > { %v616_v37 = vrot.slane %v562_v30, 6 }
  0x44   : > { %v617_v41 = vsel %vm3216_vm6, %v615_v36, %v616_v37 }
  0x45   : > { %2569 = vmatmul.msk.bf16.vlgmr.msrb.gmra.mxu0 %vm352_vm3, %v1103_v35  ;;  %v2394_v35 = vrot.slane %v561_v29, 10  ;;  %v662_v50 = vunpack.c.l.b16 %v617_v41  ;;  %v3355_v29 = vld [vmem:[%s3054_s27 + $0x58] sm:$0xf]  ;;  %v2874_v41 = vld [vmem:[%s3786_s1 + $0xa0] sm:$0xff] }
  0x46   : > { %v1059_v37 = vrot.slane %v3355_v29, 5  ;;  %1400 = vmatpush.bf16.msra.mxu1 %v2874_v41 }
  0x47   : > { %v614_v40 = vsel %vm3216_vm6, %v2394_v35, %v613_v27  ;;  %v565_v27 = vld [vmem:[%s3054_s27 + $0x3c] sm:$0xc]  ;;  %v629_v35 = vrot.slane %v627_v25, 4 }
  0x48   : > { %v661_v49 = vunpack.c.l.b16 %v614_v40  ;;  %v2890_v40 = vld [vmem:[%s3786_s1 + $0xe0] sm:$0xff]  ;;  %v1061_v43 = vrot.slane %v1059_v37, 4  ;;  %v1060_v48 = vsel %vm3056_vm2, %v2542_v42, %v1059_v37  ;;  %v2544_v42 = vrot.slane %v2534_v38, 9 }
  0x49   : > { %1832 = vmatpush.bf16.msra.mxu3 %v2890_v40 }
  0x4a   : > { %v674_v54 = vpack.c.b16 %v662_v50, %v661_v49  ;;  %v1063_v49 = vsel %vm3056_vm2, %v1061_v43, %v1062_v44  ;;  %v2894_v50 = vld [vmem:[%s3786_s1 + $0x100] sm:$0xff]  ;;  %v1076_v44 = vrot.slane %v2536_v45, 5 }
  0x4b   : > { %2066 = vmatpush.bf16.msra.mxu0 %v2894_v50 }
  0x4e   : > { %2384 = vmatmul.msk.bf16.gmra.mxu1 %vm352_vm3, %v2839_v55  ;;  %2424 = vmatmul.msk.bf16.gmra.mxu2 %vm352_vm3, %v672_v56  ;;  %v1093_v55 = vunpack.c.l.b16 %v1046_v51  ;;  %v1094_v56 = vunpack.c.l.b16 %v1049_v52  ;;  %v2843_v51 = vld [vmem:[%s3054_s27 + $0x3c] sm:$0xff] }
  0x50   : > { %v1106_v0 = vpack.c.b16 %v1094_v56, %v1093_v55  ;;  %v634_v55 = vrot.slane %v3084_v21, 6  ;;  %v2863_v56 = vld [vmem:[%s3054_s27 + $0x54] sm:$0xff]  ;;  %v2533_v21 = vld [vmem:[%s3054_s27 + $0x68] sm:$0x1] }
  0x51   : > { %2506 = vmatmul.msk.bf16.gmra.mxu3 %vm352_vm3, %v2859_v61  ;;  %v564_v61 = vld [vmem:[%s3054_s27 + $0x38] sm:$0x3]  ;;  %v1069_v12 = vrot.slane %v2533_v21, 5 }
  0x52   : > { %v623_v7 = vrot.slane %v564_v61, 6 }
  0x54   : > { %v624_v5 = vsel %vm3216_vm6, %v622_v6, %v623_v7 }
  0x55   : > { %2570 = vmatmul.msk.bf16.gmra.mxu0 %vm352_vm3, %v1104_v2  ;;  %v2395_v2 = vrot.slane %v563_v60, 10  ;;  %v664_v16 = vunpack.c.l.b16 %v624_v5  ;;  %v3390_v60 = vld [vmem:[%s3054_s27 + $0x64] sm:$0xf] }
  0x56   : > { %v1066_v7 = vrot.slane %v3390_v60, 5 }
  0x57   : > { %v621_v10 = vsel %vm3216_vm6, %v2395_v2, %v620_v57  ;;  %v567_v57 = vld [vmem:[%s3054_s27 + $0x48] sm:$0xc]  ;;  %v636_v2 = vrot.slane %v634_v55, 4 }
  0x58   : > { %v663_v15 = vunpack.c.l.b16 %v621_v10  ;;  %v2543_v10 = vrot.slane %v2531_v8, 9  ;;  %v1068_v5 = vrot.slane %v1066_v7, 4 }
  0x5a   : > { %v675_v22 = vpack.c.b16 %v664_v16, %v663_v15  ;;  %v1067_v15 = vsel %vm3056_vm2, %v2543_v10, %v1066_v7  ;;  %v1070_v16 = vsel %vm3056_vm2, %v1068_v5, %v1069_v12  ;;  %v2715_v7 = vld [vmem:[%s3054_s27 + $0x30] sm:$0xe] }
  0x5b   : > { %v2739_v12 = vrot.slane %v2715_v7, 9 }
  0x5e   : > { %2385 = vmatmul.msk.bf16.gmra.mxu1 %vm352_vm3, %v2840_v23  ;;  %2425 = vmatmul.msk.bf16.gmra.mxu2 %vm352_vm3, %v673_v24  ;;  %v1095_v23 = vunpack.c.l.b16 %v1053_v17  ;;  %v1096_v24 = vunpack.c.l.b16 %v1056_v18  ;;  %v2844_v17 = vld [vmem:[%s3054_s27 + $0x48] sm:$0xff] }
  0x60   : > { %v1107_v30 = vpack.c.b16 %v1096_v24, %v1095_v23  ;;  %v1100_v23 = vunpack.c.l.b16 %v1070_v16  ;;  %v641_v24 = vrot.slane %v3135_v63, 6 }
  0x61   : > { %2507 = vmatmul.msk.bf16.gmra.mxu3 %vm352_vm3, %v2860_v28  ;;  %v566_v28 = vld [vmem:[%s3054_s27 + $0x44] sm:$0x3] }
  0x62   : > { %v630_v36 = vrot.slane %v566_v28, 6  ;;  %v3415_v28 = vld [vmem:[%s3054_s27 + $0x70] sm:$0xf] }
  0x63   : > { %v1073_v63 = vrot.slane %v3415_v28, 5 }
  0x64   : > { %v631_v20 = vsel %vm3216_vm6, %v629_v35, %v630_v36  ;;  %v643_v35 = vrot.slane %v641_v24, 4 }
  0x65   : > { %2571 = vmatmul.msk.bf16.gmra.mxu0 %vm352_vm3, %v1105_v32  ;;  %v2396_v32 = vrot.slane %v565_v27, 10  ;;  %v666_v47 = vunpack.c.l.b16 %v631_v20  ;;  %v570_v27 = vld [vmem:[%s3054_s27 + $0x5c] sm:$0x3]  ;;  %v1075_v43 = vrot.slane %v1073_v63, 4 }
  0x66   : > { %v644_v36 = vrot.slane %v570_v27, 6 }
  0x67   : > { %v628_v39 = vsel %vm3216_vm6, %v2396_v32, %v627_v25  ;;  %v2864_v25 = vld [vmem:[%s3054_s27 + $0x60] sm:$0xff]  ;;  %v1077_v50 = vsel %vm3056_vm2, %v1075_v43, %v1076_v44 }
  0x68   : > { %v665_v46 = vunpack.c.l.b16 %v628_v39  ;;  %v645_v41 = vsel %vm3216_vm6, %v643_v35, %v644_v36 }
  0x6a   : > { %v676_v52 = vpack.c.b16 %v666_v47, %v665_v46  ;;  %v670_v47 = vunpack.c.l.b16 %v645_v41 }
  0x6e   : > { %2386 = vmatmul.msk.bf16.gmra.mxu1 %vm352_vm3, %v2841_v53  ;;  %2426 = vmatmul.msk.bf16.gmra.mxu2 %vm352_vm3, %v674_v54  ;;  %v1097_v53 = vunpack.c.l.b16 %v1060_v48  ;;  %v1098_v54 = vunpack.c.l.b16 %v1063_v49  ;;  %v1074_v49 = vsel %vm3056_vm2, %v2544_v42, %v1073_v63 }
  0x70   : > { %v1108_v61 = vpack.c.b16 %v1098_v54, %v1097_v53  ;;  %v1258_v53 = vrot.slane %v3212_v4, 6 }
  0x71   : > { %2508 = vmatmul.msk.bf16.gmra.mxu3 %vm352_vm3, %v2861_v59  ;;  %v568_v59 = vld [vmem:[%s3054_s27 + $0x50] sm:$0x3] }
  0x72   : > { %v637_v6 = vrot.slane %v568_v59, 6  ;;  %v1101_v59 = vunpack.c.l.b16 %v1074_v49  ;;  %v1260_v21 = vrot.slane %v1258_v53, 4  ;;  %v1265_v49 = vrot.slane %v3239_v34, 6 }
  0x74   : > { %v638_v11 = vsel %vm3216_vm6, %v636_v2, %v637_v6  ;;  %v2578_v2 = vld [vmem:[%s3054_s27 + $0x20] sm:$0x3]  ;;  %v2865_v6 = vld [vmem:[%s3054_s27 + $0x6c] sm:$0xff]  ;;  %v1267_v7 = vrot.slane %v1265_v49, 4 }
  0x75   : > { %2572 = vmatmul.msk.bf16.gmra.mxu0 %vm352_vm3, %v1106_v0  ;;  %v2397_v0 = vrot.slane %v567_v57, 10  ;;  %v668_v14 = vunpack.c.l.b16 %v638_v11  ;;  %v2717_v11 = vld [vmem:[%s3054_s27 + $0x38] sm:$0x1] }
  0x76   : > { %v1693_v16 = vrot.slane %v2717_v11, 5 }
  0x77   : > { %v635_v33 = vsel %vm3216_vm6, %v2397_v0, %v634_v55  ;;  %v2577_v0 = vld [vmem:[%s3054_s27 + $0x18] sm:$0xc] }
  0x78   : > { %v667_v13 = vunpack.c.l.b16 %v635_v33  ;;  %v2593_v4 = vrot.slane %v2577_v0, 10  ;;  %v1261_v33 = vrot.slane %v2578_v2, 6  ;;  %v2718_v2 = vld [vmem:[%s3054_s27 + $0x3c] sm:$0xe] }
  0x7e   : > { %2387 = vmatmul.msk.bf16.gmra.mxu1 %vm352_vm3, %v2842_v19  ;;  %2427 = vmatmul.msk.bf16.gmra.mxu2 %vm352_vm3, %v675_v22  ;;  %v677_v19 = vpack.c.b16 %v668_v14, %v667_v13  ;;  %v1099_v22 = vunpack.c.l.b16 %v1067_v15 }
  0x81   : > { %2509 = vmatmul.msk.bf16.gmra.mxu3 %vm352_vm3, %v2862_v26  ;;  %v569_v26 = vld [vmem:[%s3054_s27 + $0x54] sm:$0xc] }
  0x82   : > { %v2398_v32 = vrot.slane %v569_v26, 10 }
  0x84   : > { %v642_v40 = vsel %vm3216_vm6, %v2398_v32, %v641_v24  ;;  %v1262_v24 = vsel %vm3216_vm6, %v1260_v21, %v1261_v33  ;;  %v2720_v21 = vld [vmem:[%s3054_s27 + $0x44] sm:$0x1] }
  0x85   : > { %2573 = vmatmul.msk.bf16.gmra.mxu0 %vm352_vm3, %v1107_v30  ;;  %v1109_v30 = vpack.c.b16 %v1100_v23, %v1099_v22  ;;  %v669_v46 = vunpack.c.l.b16 %v642_v40  ;;  %v1259_v23 = vsel %vm3216_vm6, %v2593_v4, %v1258_v53  ;;  %v1322_v35 = vunpack.c.l.b16 %v1262_v24 }
  0x86   : > { %v1321_v32 = vunpack.c.l.b16 %v1259_v23 }
  0x87   : > { %v678_v55 = vpack.c.b16 %v670_v47, %v669_v46  ;;  %v2878_v47 = vld [vmem:[%s3054_s27 + $0x30] sm:$0xff] }
  0x88   : > { %v1337_v44 = vpack.c.b16 %v1322_v35, %v1321_v32 }
  0x8e   : > { %2388 = vmatmul.msk.bf16.gmra.mxu1 %vm352_vm3, %v2843_v51  ;;  %2428 = vmatmul.msk.bf16.gmra.mxu2 %vm352_vm3, %v676_v52  ;;  %v2845_v52 = vld [vmem:[%s3054_s27 + $0x54] sm:$0xff] }
  0x91   : > { %2510 = vmatmul.msk.bf16.gmra.mxu3 %vm352_vm3, %v2863_v56  ;;  %v2716_v56 = vld [vmem:[%s3054_s27 + $0x34] sm:$0xf] }
  0x92   : > { %v1690_v8 = vrot.slane %v2716_v56, 5  ;;  %v1924_v13 = vrot.slane %v2716_v56, 6 }
  0x94   : > { %v1692_v15 = vrot.slane %v1690_v8, 4  ;;  %v1926_v27 = vrot.slane %v1924_v13, 4  ;;  %v1691_v36 = vsel %vm3056_vm2, %v2739_v12, %v1690_v8 }
  0x95   : > { %2574 = vmatmul.msk.bf16.gmra.mxu0 %vm352_vm3, %v1108_v61  ;;  %v1102_v61 = vunpack.c.l.b16 %v1077_v50  ;;  %v1753_v45 = vunpack.c.l.b16 %v1691_v36  ;;  %v2719_v50 = vld [vmem:[%s3054_s27 + $0x40] sm:$0xf] }
  0x96   : > { %v1694_v63 = vsel %vm3056_vm2, %v1692_v15, %v1693_v16  ;;  %v1931_v11 = vrot.slane %v2719_v50, 6  ;;  %v2781_v15 = vld [vmem:[%s3054_s27 + $0x3c] sm:$0xc]  ;;  %v2782_v16 = vld [vmem:[%s3054_s27 + $0x44] sm:$0x3] }
  0x97   : > { %v1110_v10 = vpack.c.b16 %v1102_v61, %v1101_v59  ;;  %v1754_v40 = vunpack.c.l.b16 %v1694_v63  ;;  %v2579_v59 = vld [vmem:[%s3054_s27 + $0x24] sm:$0xc]  ;;  %v2580_v61 = vld [vmem:[%s3054_s27 + $0x2c] sm:$0x3]  ;;  %v2796_v32 = vrot.slane %v2781_v15, 10  ;;  %v1934_v36 = vrot.slane %v2782_v16, 6 }
  0x98   : > { %v2594_v34 = vrot.slane %v2579_v59, 10  ;;  %v1268_v8 = vrot.slane %v2580_v61, 6  ;;  %v1933_v35 = vrot.slane %v1931_v11, 4  ;;  %v2879_v61 = vld [vmem:[%s3054_s27 + $0x3c] sm:$0xff] }
  0x99   : > { %v1769_v0 = vpack.c.b16 %v1754_v40, %v1753_v45 }
  0x9a   : > { %v1266_v23 = vsel %vm3216_vm6, %v2594_v34, %v1265_v49  ;;  %v1269_v24 = vsel %vm3216_vm6, %v1267_v7, %v1268_v8  ;;  %v1935_v49 = vsel %vm3216_vm6, %v1933_v35, %v1934_v36  ;;  %v2581_v8 = vld [vmem:[%s3054_s27 + $0x30] sm:$0xc] }
  0x9b   : > { %v3407_v18 = vpop.f32.mrf.mxu1  ;;  %v1323_v63 = vunpack.c.l.b16 %v1266_v23  ;;  %v1324_v45 = vunpack.c.l.b16 %v1269_v24  ;;  %v1990_v7 = vunpack.c.l.b16 %v1935_v49 }
  0x9e   : > { %2389 = vmatmul.msk.bf16.gmra.mxu1 %vm352_vm3, %v2844_v17  ;;  %2429 = vmatmul.msk.bf16.gmra.mxu2 %vm352_vm3, %v677_v19  ;;  %v2779_v17 = vld [vmem:[%s3054_s27 + $0x30] sm:$0xc]  ;;  %v2780_v19 = vld [vmem:[%s3054_s27 + $0x38] sm:$0x3] }
  0x9f   : > { %v2795_v26 = vrot.slane %v2779_v17, 10 }
  0xa1   : > { %2511 = vmatmul.msk.bf16.gmra.mxu3 %vm352_vm3, %v2864_v25  ;;  %v3422_v58 = vpop.f32.mrf.mxu2  ;;  %v1925_v41 = vsel %vm3216_vm6, %v2795_v26, %v1924_v13  ;;  %v1700_v13 = vrot.slane %v2720_v21, 5  ;;  %v2582_v21 = vld [vmem:[%s3054_s27 + $0x38] sm:$0x3] }
  0xa2   : > { %v3418_v37 = vpop.f32.mrf.mxu0 }
  0xa3   : > { %v3426_v39 = vpop.f32.mrf.mxu1 }
  0xa4   : > { %v3429_v20 = vpop.f32.mrf.mxu3 }
  0xa5   : > { %2575 = vmatmul.msk.bf16.gmra.mxu0 %vm352_vm3, %v1109_v30  ;;  %v1927_v30 = vrot.slane %v2780_v19, 6 }
  0xa7   : > { %v1928_v42 = vsel %vm3216_vm6, %v1926_v27, %v1927_v30 }
  0xa8   : > { %v1988_v56 = vunpack.c.l.b16 %v1928_v42 }
  0xa9   : > { %v3441_v51 = vpop.f32.mrf.mxu2 }
  0xaa   : > { %v3435_v48 = vpop.f32.mrf.mxu0 }
  0xab   : > { %v3445_v54 = vpop.f32.mrf.mxu1 }
  0xac   : > { %v3448_v57 = vpop.f32.mrf.mxu3 }
  0xae   : > { %2390 = vmatmul.msk.bf16.gmra.mxu1 %vm352_vm3, %v2845_v52  ;;  %2430 = vmatmul.msk.bf16.gmra.mxu2 %vm352_vm3, %v678_v55  ;;  %v1987_v55 = vunpack.c.l.b16 %v1925_v41 }
  0xb0   : > { %v2003_v4 = vpack.c.b16 %v1988_v56, %v1987_v55  ;;  %v1272_v55 = vrot.slane %v3274_v1, 6  ;;  %v2595_v1 = vrot.slane %v2581_v8, 10 }
  0xb1   : > { %2512 = vmatmul.msk.bf16.gmra.mxu3 %vm352_vm3, %v2865_v6  ;;  %v3460_v14 = vpop.f32.mrf.mxu2  ;;  %v1697_v6 = vrot.slane %v2719_v50, 5 }
  0xb2   : > { %v3457_v5 = vpop.f32.mrf.mxu0  ;;  %v1273_v36 = vsel %vm3216_vm6, %v2595_v1, %v1272_v55 }
  0xb3   : > { %v3464_v22 = vpop.f32.mrf.mxu1  ;;  %v1699_v12 = vrot.slane %v1697_v6, 4 }
  0xb4   : > { %v3471_v25 = vpop.f32.mrf.mxu3 }
  0xb5   : > { %2576 = vmatmul.msk.bf16.gmra.mxu0 %vm352_vm3, %v1110_v10  ;;  %v1701_v41 = vsel %vm3056_vm2, %v1699_v12, %v1700_v13  ;;  %v1275_v12 = vrot.slane %v2582_v21, 6  ;;  %v2723_v13 = vld [vmem:[%s3054_s27 + $0x50] sm:$0x1]  ;;  %v2880_v21 = vld [vmem:[%s3054_s27 + $0x48] sm:$0xff] }
  0xb9   : > { %v3483_v43 = vpop.f32.mrf.mxu2 }
  0xba   : > { %v3477_v38 = vpop.f32.mrf.mxu0 }
  0xbb   : > { %v515_v46 = vpop.f32.mrf.mxu1 }
  0xbc   : > { %v3488_v52 = vpop.f32.mrf.mxu3  ;;  %v516_v53 = vadd.f32 %v515_v46, %v3418_v37  ;;  %v2740_v37 = vrot.slane %v2718_v2, 9 }
  0xbe   : > { %2625 = vmatmul.msk.bf16.vlgmr.msra.gmra.mxu1 %vm352_vm3, %v1337_v44  ;;  %2707 = vmatmul.msk.bf16.vlgmr.msra.gmra.mxu2 %vm352_vm3, %v2878_v47  ;;  %v1698_v40 = vsel %vm3056_vm2, %v2740_v37, %v1697_v6  ;;  %v1932_v47 = vsel %vm3216_vm6, %v2796_v32, %v1931_v11  ;;  %v2721_v37 = vld [vmem:[%s3054_s27 + $0x48] sm:$0xe] }
  0xbf   : > { %v1755_v46 = vunpack.c.l.b16 %v1698_v40  ;;  %v1989_v34 = vunpack.c.l.b16 %v1932_v47  ;;  %v1325_v47 = vunpack.c.l.b16 %v1273_v36 }
  0xc1   : > { %2771 = vmatmul.msk.bf16.vlgmr.msra.gmra.mxu3 %vm352_vm3, %v1769_v0  ;;  %v736_v10 = vpop.f32.mrf.mxu2  ;;  %v2722_v0 = vld [vmem:[%s3054_s27 + $0x4c] sm:$0xf]  ;;  %v2004_v15 = vpack.c.b16 %v1990_v7, %v1989_v34  ;;  %v1279_v34 = vrot.slane %v3297_v31, 6 }
  0xc2   : > { %v1168_v33 = vpop.f32.mrf.mxu0  ;;  %v776_v17 = vadd.f32 %v736_v10, %v516_v53  ;;  %v1338_v53 = vpack.c.b16 %v1324_v45, %v1323_v63  ;;  %v1704_v11 = vrot.slane %v2722_v0, 5  ;;  %v1274_v10 = vrot.slane %v1272_v55, 4 }
  0xc3   : > { %v517_v19 = vpop.f32.mrf.mxu1 }
  0xc4   : > { %v918_v26 = vpop.f32.mrf.mxu3  ;;  %v518_v27 = vadd.f32 %v517_v19, %v3435_v48  ;;  %v1756_v48 = vunpack.c.l.b16 %v1701_v41  ;;  %v1938_v19 = vrot.slane %v2722_v0, 6  ;;  %v1706_v24 = vrot.slane %v1704_v11, 4 }
  0xc5   : > { %2827 = vmatmul.msk.bf16.vlgmr.msra.gmra.mxu0 %vm352_vm3, %v2003_v4  ;;  %v958_v30 = vadd.f32 %v918_v26, %v776_v17  ;;  %v2741_v17 = vrot.slane %v2721_v37, 9  ;;  %v1707_v26 = vrot.slane %v2723_v13, 5  ;;  %v1276_v63 = vsel %vm3216_vm6, %v1274_v10, %v1275_v12  ;;  %v2583_v10 = vld [vmem:[%s3054_s27 + $0x3c] sm:$0xc]  ;;  %v2584_v12 = vld [vmem:[%s3054_s27 + $0x44] sm:$0x3] }
  0xc6   : > { %v1326_v49 = vunpack.c.l.b16 %v1276_v63  ;;  %v2596_v31 = vrot.slane %v2583_v10, 10  ;;  %v2881_v10 = vld [vmem:[%s3054_s27 + $0x54] sm:$0xff] }
  0xc7   : > { %v3510_v42 = vadd.f32 %v1168_v33, %v958_v30  ;;  %v1770_v33 = vpack.c.b16 %v1756_v48, %v1755_v46  ;;  %v2784_v30 = vld [vmem:[%s3054_s27 + $0x50] sm:$0x3]  ;;  %v1940_v46 = vrot.slane %v1938_v19, 4 }
  0xc8   : > { %v1941_v48 = vrot.slane %v2784_v30, 6 }
  0xc9   : > { %v738_v50 = vpop.f32.mrf.mxu2 }
  0xca   : > { %v1170_v44 = vpop.f32.mrf.mxu0  ;;  %v777_v56 = vadd.f32 %v738_v50, %v518_v27  ;;  %v2783_v27 = vld [vmem:[%s3054_s27 + $0x48] sm:$0xc]  ;;  %v1705_v50 = vsel %vm3056_vm2, %v2741_v17, %v1704_v11  ;;  %v1942_v0 = vsel %vm3216_vm6, %v1940_v46, %v1941_v48  ;;  %v1280_v46 = vsel %vm3216_vm6, %v2596_v31, %v1279_v34 }
  0xcb   : > { %v520_v59 = vpop.f32.mrf.mxu1  ;;  %v1992_v1 = vunpack.c.l.b16 %v1942_v0  ;;  %v2585_v31 = vld [vmem:[%s3054_s27 + $0x48] sm:$0xc] }
  0xcc   : > { %v920_v2 = vpop.f32.mrf.mxu3  ;;  %v521_v6 = vadd.f32 %v520_v59, %v3457_v5  ;;  %v1757_v59 = vunpack.c.l.b16 %v1705_v50 }
  0xcd   : > { %v959_v4 = vadd.f32 %v920_v2, %v777_v56 }
  0xce   : > { %2626 = vmatmul.msk.bf16.gmra.mxu1 %vm352_vm3, %v1338_v53  ;;  %2708 = vmatmul.msk.bf16.gmra.mxu2 %vm352_vm3, %v2879_v61  ;;  %v1708_v53 = vsel %vm3056_vm2, %v1706_v24, %v1707_v26  ;;  %v2726_v24 = vld [vmem:[%s3054_s27 + $0x5c] sm:$0x1] }
  0xcf   : > { %v3526_v5 = vadd.f32 %v1170_v44, %v959_v4  ;;  %v2797_v44 = vrot.slane %v2783_v27, 10  ;;  %v2725_v4 = vld [vmem:[%s3054_s27 + $0x58] sm:$0xf]  ;;  %v1714_v63 = vrot.slane %v2726_v24, 5 }
  0xd0   : > { %v1711_v17 = vrot.slane %v2725_v4, 5 }
  0xd1   : > { %2772 = vmatmul.msk.bf16.gmra.mxu3 %vm352_vm3, %v1770_v33  ;;  %v741_v23 = vpop.f32.mrf.mxu2  ;;  %v1939_v61 = vsel %vm3216_vm6, %v2797_v44, %v1938_v19  ;;  %v1281_v19 = vrot.slane %v1279_v34, 4 }
  0xd2   : > { %v1173_v16 = vpop.f32.mrf.mxu0  ;;  %v778_v32 = vadd.f32 %v741_v23, %v521_v6  ;;  %v1339_v6 = vpack.c.b16 %v1326_v49, %v1325_v47  ;;  %v1991_v11 = vunpack.c.l.b16 %v1939_v61  ;;  %v1282_v23 = vrot.slane %v2584_v12, 6  ;;  %v2728_v12 = vld [vmem:[%s3054_s27 + $0x64] sm:$0xf] }
  0xd3   : > { %v522_v35 = vpop.f32.mrf.mxu1  ;;  %v1713_v36 = vrot.slane %v1711_v17, 4 }
  0xd4   : > { %v923_v45 = vpop.f32.mrf.mxu3  ;;  %v523_v40 = vadd.f32 %v522_v35, %v3477_v38  ;;  %v1758_v38 = vunpack.c.l.b16 %v1708_v53  ;;  %v2005_v26 = vpack.c.b16 %v1992_v1, %v1991_v11  ;;  %v1283_v48 = vsel %vm3216_vm6, %v1281_v19, %v1282_v23  ;;  %v2586_v19 = vld [vmem:[%s3054_s27 + $0x50] sm:$0x3] }
  0xd5   : > { %2828 = vmatmul.msk.bf16.gmra.mxu0 %vm352_vm3, %v2004_v15  ;;  %v960_v41 = vadd.f32 %v923_v45, %v778_v32  ;;  %v1945_v32 = vrot.slane %v2725_v4, 6  ;;  %v2785_v45 = vld [vmem:[%s3054_s27 + $0x54] sm:$0xc]  ;;  %v1328_v61 = vunpack.c.l.b16 %v1283_v48  ;;  %v2787_v48 = vld [vmem:[%s3054_s27 + $0x60] sm:$0xc] }
  0xd6   : > { %v1771_v15 = vpack.c.b16 %v1758_v38, %v1757_v59  ;;  %v2798_v53 = vrot.slane %v2785_v45, 10  ;;  %v1327_v38 = vunpack.c.l.b16 %v1280_v46 }
  0xd7   : > { %v3541_v55 = vadd.f32 %v1173_v16, %v960_v41  ;;  %v2724_v16 = vld [vmem:[%s3054_s27 + $0x54] sm:$0xe] }
  0xd8   : > { %v2742_v30 = vrot.slane %v2724_v16, 9 }
  0xd9   : > { %v743_v2 = vpop.f32.mrf.mxu2 }
  0xda   : > { %v1175_v56 = vpop.f32.mrf.mxu0  ;;  %v779_v7 = vadd.f32 %v743_v2, %v523_v40  ;;  %v2786_v40 = vld [vmem:[%s3054_s27 + $0x5c] sm:$0x3]  ;;  %v1712_v0 = vsel %vm3056_vm2, %v2742_v30, %v1711_v17  ;;  %v1715_v2 = vsel %vm3056_vm2, %v1713_v36, %v1714_v63 }
  0xdb   : > { %v525_v8 = vpop.f32.mrf.mxu1  ;;  %v1948_v59 = vrot.slane %v2786_v40, 6  ;;  %v1952_v40 = vrot.slane %v2728_v12, 6 }
  0xdc   : > { %v925_v33 = vpop.f32.mrf.mxu3  ;;  %v526_v37 = vadd.f32 %v525_v8, %v3407_v18  ;;  %v1946_v8 = vsel %vm3216_vm6, %v2798_v53, %v1945_v32 }
  0xdd   : > { %v961_v13 = vadd.f32 %v925_v33, %v779_v7  ;;  %v1759_v7 = vunpack.c.l.b16 %v1712_v0  ;;  %v1340_v33 = vpack.c.b16 %v1328_v61, %v1327_v38  ;;  %v1993_v16 = vunpack.c.l.b16 %v1946_v8 }
  0xde   : > { %2627 = vmatmul.msk.bf16.gmra.mxu1 %vm352_vm3, %v1339_v6  ;;  %2709 = vmatmul.msk.bf16.gmra.mxu2 %vm352_vm3, %v2880_v21  ;;  %v2799_v0 = vrot.slane %v2787_v48, 10 }
  0xdf   : > { %v3557_v18 = vadd.f32 %v1175_v56, %v961_v13  ;;  %v1947_v56 = vrot.slane %v1945_v32, 4  ;;  %v1289_v32 = vrot.slane %v2586_v19, 6 }
  0xe1   : > { %2773 = vmatmul.msk.bf16.gmra.mxu3 %vm352_vm3, %v1771_v15  ;;  %v746_v35 = vpop.f32.mrf.mxu2  ;;  %v1949_v21 = vsel %vm3216_vm6, %v1947_v56, %v1948_v59 }
  0xe2   : > { %v1178_v27 = vpop.f32.mrf.mxu0  ;;  %v780_v41 = vadd.f32 %v746_v35, %v526_v37  ;;  %v1286_v37 = vrot.slane %v3332_v62, 6  ;;  %v1994_v17 = vunpack.c.l.b16 %v1949_v21  ;;  %v2597_v62 = vrot.slane %v2585_v31, 10  ;;  %v2729_v35 = vld [vmem:[%s3054_s27 + $0x68] sm:$0x1]  ;;  %v2731_v31 = vld [vmem:[%s3054_s27 + $0x70] sm:$0xf] }
  0xe3   : > { %v527_v44 = vpop.f32.mrf.mxu1  ;;  %v1721_v46 = vrot.slane %v2729_v35, 5  ;;  %v1725_v35 = vrot.slane %v2731_v31, 5 }
  0xe4   : > { %v928_v47 = vpop.f32.mrf.mxu3  ;;  %v528_v49 = vadd.f32 %v527_v44, %v3426_v39  ;;  %v1760_v39 = vunpack.c.l.b16 %v1715_v2  ;;  %v1288_v30 = vrot.slane %v1286_v37, 4  ;;  %v2006_v36 = vpack.c.b16 %v1994_v17, %v1993_v16  ;;  %v2882_v17 = vld [vmem:[%s3054_s27 + $0x60] sm:$0xff] }
  0xe5   : > { %2829 = vmatmul.msk.bf16.gmra.mxu0 %vm352_vm3, %v2005_v26  ;;  %v962_v50 = vadd.f32 %v928_v47, %v780_v41  ;;  %v2727_v26 = vld [vmem:[%s3054_s27 + $0x60] sm:$0xe]  ;;  %v2788_v47 = vld [vmem:[%s3054_s27 + $0x68] sm:$0x3]  ;;  %v1287_v53 = vsel %vm3216_vm6, %v2597_v62, %v1286_v37  ;;  %v1954_v2 = vrot.slane %v1952_v40, 4 }
  0xe6   : > { %v1772_v24 = vpack.c.b16 %v1760_v39, %v1759_v7  ;;  %v2743_v45 = vrot.slane %v2727_v26, 9  ;;  %v1290_v56 = vsel %vm3216_vm6, %v1288_v30, %v1289_v32  ;;  %v1329_v7 = vunpack.c.l.b16 %v1287_v53  ;;  %v2587_v26 = vld [vmem:[%s3054_s27 + $0x54] sm:$0xc]  ;;  %v2730_v32 = vld [vmem:[%s3054_s27 + $0x6c] sm:$0xe] }
  0xe7   : > { %v3572_v6 = vadd.f32 %v1178_v27, %v962_v50  ;;  %v1718_v27 = vrot.slane %v2728_v12, 5  ;;  %v1330_v39 = vunpack.c.l.b16 %v1290_v56  ;;  %v2744_v48 = vrot.slane %v2730_v32, 9  ;;  %v2589_v32 = vld [vmem:[%s3054_s27 + $0x60] sm:$0xc] }
  0xe8   : > { %v1727_v53 = vrot.slane %v1725_v35, 4 }
  0xe9   : > { %v748_v4 = vpop.f32.mrf.mxu2  ;;  %v1720_v44 = vrot.slane %v1718_v27, 4  ;;  %v1719_v8 = vsel %vm3056_vm2, %v2743_v45, %v1718_v27  ;;  %v1341_v12 = vpack.c.b16 %v1330_v39, %v1329_v7  ;;  %v2588_v27 = vld [vmem:[%s3054_s27 + $0x5c] sm:$0x3]  ;;  %v2732_v45 = vld [vmem:[%s3054_s27 + $0x74] sm:$0x1]  ;;  %v1726_v39 = vsel %vm3056_vm2, %v2744_v48, %v1725_v35 }
  0xea   : > { %v1180_v34 = vpop.f32.mrf.mxu0  ;;  %v781_v11 = vadd.f32 %v748_v4, %v528_v49  ;;  %v1728_v56 = vrot.slane %v2732_v45, 5  ;;  %v2590_v35 = vld [vmem:[%s3054_s27 + $0x68] sm:$0x3] }
  0xeb   : > { %v530_v1 = vpop.f32.mrf.mxu1  ;;  %v1722_v21 = vsel %vm3056_vm2, %v1720_v44, %v1721_v46 }
  0xec   : > { %v930_v13 = vpop.f32.mrf.mxu3  ;;  %v531_v15 = vadd.f32 %v530_v1, %v3445_v54  ;;  %v1762_v37 = vunpack.c.l.b16 %v1722_v21 }
  0xed   : > { %v963_v23 = vadd.f32 %v930_v13, %v781_v11  ;;  %v1953_v11 = vsel %vm3216_vm6, %v2799_v0, %v1952_v40  ;;  %v1293_v13 = vrot.slane %v3355_v29, 6  ;;  %v2598_v29 = vrot.slane %v2587_v26, 10  ;;  %v2883_v26 = vld [vmem:[%s3054_s27 + $0x6c] sm:$0xff] }
  0xee   : > { %2628 = vmatmul.msk.bf16.gmra.mxu1 %vm352_vm3, %v1340_v33  ;;  %2710 = vmatmul.msk.bf16.gmra.mxu2 %vm352_vm3, %v2881_v10 }
  0xef   : > { %v3588_v54 = vadd.f32 %v1180_v34, %v963_v23  ;;  %v1955_v34 = vrot.slane %v2788_v47, 6  ;;  %v1995_v23 = vunpack.c.l.b16 %v1953_v11  ;;  %v2789_v47 = vld [vmem:[%s3054_s27 + $0x6c] sm:$0xc]  ;;  %v1294_v0 = vsel %vm3216_vm6, %v2598_v29, %v1293_v13 }
  0xf1   : > { %2774 = vmatmul.msk.bf16.gmra.mxu3 %vm352_vm3, %v1772_v24  ;;  %v751_v41 = vpop.f32.mrf.mxu2  ;;  %v1956_v1 = vsel %vm3216_vm6, %v1954_v2, %v1955_v34  ;;  %v2800_v34 = vrot.slane %v2789_v47, 10 }
  0xf2   : > { %v1183_v63 = vpop.f32.mrf.mxu0  ;;  %v782_v49 = vadd.f32 %v751_v41, %v531_v15  ;;  %v1996_v24 = vunpack.c.l.b16 %v1956_v1  ;;  %v1763_v1 = vunpack.c.l.b16 %v1726_v39 }
  0xf3   : > { %v532_v50 = vpop.f32.mrf.mxu1 }
  0xf4   : > { %v933_v59 = vpop.f32.mrf.mxu3  ;;  %v533_v38 = vadd.f32 %v532_v50, %v3464_v22  ;;  %v1761_v22 = vunpack.c.l.b16 %v1719_v8  ;;  %v2007_v40 = vpack.c.b16 %v1996_v24, %v1995_v23 }
  0xf5   : > { %2830 = vmatmul.msk.bf16.gmra.mxu0 %vm352_vm3, %v2006_v36  ;;  %v964_v61 = vadd.f32 %v933_v59, %v782_v49  ;;  %v1295_v36 = vrot.slane %v1293_v13, 4  ;;  %v1959_v49 = vrot.slane %v2731_v31, 6  ;;  %v2790_v59 = vld [vmem:[%s3054_s27 + $0x74] sm:$0x3] }
  0xf6   : > { %v1773_v30 = vpack.c.b16 %v1762_v37, %v1761_v22  ;;  %v1962_v21 = vrot.slane %v2790_v59, 6  ;;  %v1729_v37 = vsel %vm3056_vm2, %v1727_v53, %v1728_v56  ;;  %v2791_v56 = vld [vmem:[%s3054_s27 + $0x78] sm:$0xc] }
  0xf7   : > { %v3603_v4 = vadd.f32 %v1183_v63, %v964_v61  ;;  %v1296_v63 = vrot.slane %v2588_v27, 6  ;;  %v1961_v8 = vrot.slane %v1959_v49, 4  ;;  %v1764_v13 = vunpack.c.l.b16 %v1729_v37  ;;  %v2734_v27 = vld [vmem:[%s3054_s27 + $0x7c] sm:$0xf] }
  0xf8   : > { %v1732_v45 = vrot.slane %v2734_v27, 5  ;;  %v1966_v59 = vrot.slane %v2734_v27, 6  ;;  %v1307_v27 = vrot.slane %v3415_v28, 6 }
  0xf9   : > { %v753_v10 = vpop.f32.mrf.mxu2  ;;  %v1297_v2 = vsel %vm3216_vm6, %v1295_v36, %v1296_v63  ;;  %v1774_v36 = vpack.c.b16 %v1764_v13, %v1763_v1  ;;  %v2733_v63 = vld [vmem:[%s3054_s27 + $0x78] sm:$0xe] }
  0xfa   : > { %v1185_v33 = vpop.f32.mrf.mxu0  ;;  %v783_v15 = vadd.f32 %v753_v10, %v533_v38  ;;  %v1332_v22 = vunpack.c.l.b16 %v1297_v2  ;;  %v2745_v53 = vrot.slane %v2733_v63, 9  ;;  %v2792_v2 = vld [vmem:[%s3054_s27 + $0x80] sm:$0x3]  ;;  %v2592_v63 = vld [vmem:[%s3054_s27 + $0x74] sm:$0x3] }
  0xfb   : > { %v535_v16 = vpop.f32.mrf.mxu1  ;;  %v1969_v37 = vrot.slane %v2792_v2, 6 }
  0xfc   : > { %v935_v19 = vpop.f32.mrf.mxu3  ;;  %v536_v44 = vadd.f32 %v535_v16, %v3422_v58  ;;  %v1963_v16 = vsel %vm3216_vm6, %v1961_v8, %v1962_v21  ;;  %v2801_v8 = vrot.slane %v2791_v56, 10 }
  0xfd   : > { %v965_v62 = vadd.f32 %v935_v19, %v783_v15  ;;  %v1960_v15 = vsel %vm3216_vm6, %v2800_v34, %v1959_v49  ;;  %v1300_v19 = vrot.slane %v3390_v60, 6  ;;  %v2599_v60 = vrot.slane %v2589_v32, 10  ;;  %v2737_v32 = vld [vmem:[%s3054_s27 + $0x88] sm:$0xf] }
  0xfe   : > { %2629 = vmatmul.msk.bf16.gmra.mxu1 %vm352_vm3, %v1341_v12  ;;  %2711 = vmatmul.msk.bf16.gmra.mxu2 %vm352_vm3, %v2882_v17 }
  0xff   : > { %v3618_v41 = vadd.f32 %v1185_v33, %v965_v62  ;;  %v1331_v33 = vunpack.c.l.b16 %v1294_v0  ;;  %v1997_v62 = vunpack.c.l.b16 %v1960_v15 }
 0x101   : > { %2775 = vmatmul.msk.bf16.gmra.mxu3 %vm352_vm3, %v1773_v30  ;;  %v756_v50 = vpop.f32.mrf.mxu2  ;;  %v1342_v31 = vpack.c.b16 %v1332_v22, %v1331_v33  ;;  %v1998_v30 = vunpack.c.l.b16 %v1963_v16  ;;  %v1733_v33 = vsel %vm3056_vm2, %v2745_v53, %v1732_v45  ;;  %v1968_v22 = vrot.slane %v1966_v59, 4 }
 0x102   : > { %v1188_v46 = vpop.f32.mrf.mxu0  ;;  %v784_v38 = vadd.f32 %v756_v50, %v536_v44  ;;  %v1303_v44 = vrot.slane %v2590_v35, 6  ;;  %v1765_v15 = vunpack.c.l.b16 %v1733_v33 }
 0x103   : > { %v537_v61 = vpop.f32.mrf.mxu1  ;;  %v2008_v48 = vpack.c.b16 %v1998_v30, %v1997_v62  ;;  %v2884_v30 = vld [vmem:[%s3054_s27 + $0x78] sm:$0xff] }
 0x104   : > { %v938_v58 = vpop.f32.mrf.mxu3  ;;  %v538_v10 = vadd.f32 %v537_v61, %v3441_v51  ;;  %v1734_v61 = vrot.slane %v1732_v45, 4 }
 0x105   : > { %2831 = vmatmul.msk.bf16.gmra.mxu0 %vm352_vm3, %v2007_v40  ;;  %v966_v7 = vadd.f32 %v938_v58, %v784_v38  ;;  %v1302_v40 = vrot.slane %v1300_v19, 4 }
 0x107   : > { %v3633_v11 = vadd.f32 %v1188_v46, %v966_v7  ;;  %v2735_v46 = vld [vmem:[%s3054_s27 + $0x80] sm:$0x1]  ;;  %v1301_v7 = vsel %vm3216_vm6, %v2599_v60, %v1300_v19  ;;  %v1304_v39 = vsel %vm3216_vm6, %v1302_v40, %v1303_v44  ;;  %v1967_v19 = vsel %vm3216_vm6, %v2801_v8, %v1966_v59  ;;  %v2736_v40 = vld [vmem:[%s3054_s27 + $0x84] sm:$0xe] }
 0x108   : > { %v1735_v0 = vrot.slane %v2735_v46, 5  ;;  %v1333_v1 = vunpack.c.l.b16 %v1301_v7  ;;  %v1999_v35 = vunpack.c.l.b16 %v1967_v19  ;;  %v1739_v44 = vrot.slane %v2737_v32, 5  ;;  %v2794_v7 = vld [vmem:[%s3054_s27 + $0x8c] sm:$0x3] }
 0x109   : > { %v758_v17 = vpop.f32.mrf.mxu2  ;;  %v1309_v46 = vrot.slane %v1307_v27, 4 }
 0x10a   : > { %v1190_v12 = vpop.f32.mrf.mxu0  ;;  %v785_v23 = vadd.f32 %v758_v17, %v538_v10  ;;  %v1334_v10 = vunpack.c.l.b16 %v1304_v39 }
 0x10b   : > { %v540_v24 = vpop.f32.mrf.mxu1 }
 0x10c   : > { %v940_v51 = vpop.f32.mrf.mxu3  ;;  %v541_v49 = vadd.f32 %v540_v24, %v3460_v14 }
 0x10d   : > { %v967_v29 = vadd.f32 %v940_v51, %v785_v23  ;;  %v1970_v23 = vsel %vm3216_vm6, %v1968_v22, %v1969_v37 }
 0x10e   : > { %2630 = vmatmul.msk.bf16.gmra.mxu1 %vm352_vm3, %v1342_v31  ;;  %2712 = vmatmul.msk.bf16.gmra.mxu2 %vm352_vm3, %v2883_v26  ;;  %v1343_v26 = vpack.c.b16 %v1334_v10, %v1333_v1  ;;  %v1976_v10 = vrot.slane %v2794_v7, 6 }
 0x10f   : > { %v3649_v47 = vadd.f32 %v1190_v12, %v967_v29  ;;  %v1736_v12 = vsel %vm3056_vm2, %v1734_v61, %v1735_v0  ;;  %v2000_v29 = vunpack.c.l.b16 %v1970_v23  ;;  %v2793_v61 = vld [vmem:[%s3054_s27 + $0x84] sm:$0xc]  ;;  %v1973_v0 = vrot.slane %v2737_v32, 6 }
 0x110   : > { %v1766_v31 = vunpack.c.l.b16 %v1736_v12  ;;  %v2802_v33 = vrot.slane %v2793_v61, 10 }
 0x111   : > { %2776 = vmatmul.msk.bf16.gmra.mxu3 %vm352_vm3, %v1774_v36  ;;  %v761_v38 = vpop.f32.mrf.mxu2  ;;  %v2591_v36 = vld [vmem:[%s3054_s27 + $0x6c] sm:$0xc]  ;;  %v2009_v53 = vpack.c.b16 %v2000_v29, %v1999_v35  ;;  %v1975_v1 = vrot.slane %v1973_v0, 4 }
 0x112   : > { %v1193_v50 = vpop.f32.mrf.mxu0  ;;  %v786_v58 = vadd.f32 %v761_v38, %v541_v49  ;;  %v1775_v60 = vpack.c.b16 %v1766_v31, %v1765_v15  ;;  %v2600_v28 = vrot.slane %v2591_v36, 10  ;;  %v2738_v49 = vld [vmem:[%s3054_s27 + $0x8c] sm:$0x1]  ;;  %v2746_v38 = vrot.slane %v2736_v40, 9 }
 0x113   : > { %v542_v34 = vpop.f32.mrf.mxu1 }
 0x114   : > { %v943_v14 = vpop.f32.mrf.mxu3  ;;  %v543_v16 = vadd.f32 %v542_v34, %v3483_v43  ;;  %v1742_v34 = vrot.slane %v2738_v49, 5  ;;  %v1308_v8 = vsel %vm3216_vm6, %v2600_v28, %v1307_v27  ;;  %v1740_v37 = vsel %vm3056_vm2, %v2746_v38, %v1739_v44 }
 0x115   : > { %2832 = vmatmul.msk.bf16.gmra.mxu0 %vm352_vm3, %v2008_v48  ;;  %v968_v21 = vadd.f32 %v943_v14, %v786_v58  ;;  %v1310_v48 = vrot.slane %v2592_v63, 6  ;;  %v1741_v58 = vrot.slane %v1739_v44, 4  ;;  %v1335_v12 = vunpack.c.l.b16 %v1308_v8 }
 0x116   : > { %v1767_v31 = vunpack.c.l.b16 %v1740_v37  ;;  %v1977_v27 = vsel %vm3216_vm6, %v1975_v1, %v1976_v10 }
 0x117   : > { %v3664_v13 = vadd.f32 %v1193_v50, %v968_v21  ;;  %v1311_v21 = vsel %vm3216_vm6, %v1309_v46, %v1310_v48  ;;  %v2002_v29 = vunpack.c.l.b16 %v1977_v27 }
 0x118   : > { %v1336_v15 = vunpack.c.l.b16 %v1311_v21 }
 0x119   : > { %v763_v24 = vpop.f32.mrf.mxu2 }
 0x11a   : > { %v1195_v17 = vpop.f32.mrf.mxu0  ;;  %v787_v51 = vadd.f32 %v763_v24, %v543_v16  ;;  %v1743_v16 = vsel %vm3056_vm2, %v1741_v58, %v1742_v34 }
 0x11b   : > { %v545_v62 = vpop.f32.mrf.mxu1  ;;  %v1768_v24 = vunpack.c.l.b16 %v1743_v16 }
 0x11c   : > { %v945_v43 = vpop.f32.mrf.mxu3  ;;  %v546_v56 = vadd.f32 %v545_v62, %v3429_v20  ;;  %v1344_v62 = vpack.c.b16 %v1336_v15, %v1335_v12 }
 0x11d   : > { %v969_v45 = vadd.f32 %v945_v43, %v787_v51  ;;  %v2885_v43 = vld [vmem:[%s3054_s27 + $0x84] sm:$0xff]  ;;  %v1776_v63 = vpack.c.b16 %v1768_v24, %v1767_v31  ;;  %s2289_s27 = sshll.u32 %s2973_s9, 4 }
 0x11e   : > { %2631 = vmatmul.msk.bf16.gmra.mxu1 %vm352_vm3, %v1343_v26  ;;  %2713 = vmatmul.msk.bf16.gmra.mxu2 %vm352_vm3, %v2884_v30  ;;  %v1974_v26 = vsel %vm3216_vm6, %v2802_v33, %v1973_v0  ;;  %p160_p6 = scmp.lt.s32.totalorder %s2289_s27, 31 }
 0x11f   : > { %v3680_v50 = vadd.f32 %v1195_v17, %v969_v45  ;;  %v2001_v35 = vunpack.c.l.b16 %v1974_v26 }
 0x120   : > { %s3805_s27 = smov (!%p160_p6, %s2289_s27), 31 }
 0x121   : > { %2777 = vmatmul.msk.bf16.gmra.mxu3 %vm352_vm3, %v1775_v60  ;;  %v766_v2 = vpop.f32.mrf.mxu2  ;;  %v2010_v45 = vpack.c.b16 %v2002_v29, %v2001_v35  ;;  %s163_s7 = sadd.s32 %s2290_s6, %s3805_s27 }
 0x122   : > { %v1198_v59 = vpop.f32.mrf.mxu0  ;;  %v788_v39 = vadd.f32 %v766_v2, %v546_v56  ;;  %s2291_s8 = sshll.u32 %s163_s7, 2 }
 0x123   : > { %v547_v14 = vpop.f32.mrf.mxu1  ;;  %s3722_s17 = scalar_lea.vmem %s3787_s2, %s2291_s8 }
 0x124   : > { %v948_v20 = vpop.f32.mrf.mxu3  ;;  %v548_v19 = vadd.f32 %v547_v14, %v3448_v57 }
 0x125   : > { %2833 = vmatmul.msk.bf16.gmra.mxu0 %vm352_vm3, %v2009_v53  ;;  %v970_v22 = vadd.f32 %v948_v20, %v788_v39 }
 0x127   : > { %v3695_v17 = vadd.f32 %v1198_v59, %v970_v22 }
 0x129   : > { %v768_v51 = vpop.f32.mrf.mxu2 }
 0x12a   : > { %v1200_v23 = vpop.f32.mrf.mxu0  ;;  %v789_v30 = vadd.f32 %v768_v51, %v548_v19 }
 0x12b   : > { %v550_v32 = vpop.f32.mrf.mxu1 }
 0x12c   : > { %v950_v3 = vpop.f32.mrf.mxu3  ;;  %v551_v9 = vadd.f32 %v550_v32, %v3471_v25 }
 0x12d   : > { %v971_v36 = vadd.f32 %v950_v3, %v789_v30 }
 0x12e   : > { %2632 = vmatmul.msk.bf16.gmra.mxu1 %vm352_vm3, %v1344_v62  ;;  %2714 = vmatmul.msk.bf16.gmra.mxu2 %vm352_vm3, %v2885_v43 }
 0x12f   : > { %v3705_v57 = vadd.f32 %v1200_v23, %v971_v36 }
 0x131   : > { %2778 = vmatmul.msk.bf16.gmra.mxu3 %vm352_vm3, %v1776_v63  ;;  %v771_v40 = vpop.f32.mrf.mxu2 }
 0x132   : > { %v1203_v60 = vpop.f32.mrf.mxu0  ;;  %v790_v44 = vadd.f32 %v771_v40, %v551_v9 }
 0x133   : > { %v552_v28 = vpop.f32.mrf.mxu1 }
 0x134   : > { %v953_v46 = vpop.f32.mrf.mxu3  ;;  %v553_v53 = vadd.f32 %v552_v28, %v3488_v52 }
 0x135   : > { %2834 = vmatmul.msk.bf16.gmra.mxu0 %vm352_vm3, %v2010_v45  ;;  %v972_v48 = vadd.f32 %v953_v46, %v790_v44 }
 0x137   : > { %v3710_v49 = vadd.f32 %v1203_v60, %v972_v48 }
 0x139   : > { %v773_v59 = vpop.f32.mrf.mxu2 }
 0x13a   : > { %v1205_v56 = vpop.f32.mrf.mxu0  ;;  %v791_v38 = vadd.f32 %v773_v59, %v553_v53 }
 0x13b   : > { %v1402_v61 = vpop.f32.mrf.mxu1 }
 0x13c   : > { %v955_v25 = vpop.f32.mrf.mxu3  ;;  %v1442_v58 = vadd.f32 %v1402_v61, %v3510_v42 }
 0x13d   : > { %v973_v0 = vadd.f32 %v955_v25, %v791_v38 }
 0x13f   : > { %v3714_v2 = vadd.f32 %v1205_v56, %v973_v0 }
 0x141   : > { %v1584_v7 = vpop.f32.mrf.mxu2 }
 0x142   : > { %v2068_v34 = vpop.f32.mrf.mxu0  ;;  %v1624_v39 = vadd.f32 %v1584_v7, %v1442_v58 }
 0x143   : > { %v1404_v14 = vpop.f32.mrf.mxu1 }
 0x144   : > { %v1834_v8 = vpop.f32.mrf.mxu3  ;;  %v1443_v33 = vadd.f32 %v1404_v14, %v3526_v5 }
 0x145   : > { %v1874_v52 = vadd.f32 %v1834_v8, %v1624_v39 }
 0x147   : > { %v2108_v21 = vadd.f32 %v2068_v34, %v1874_v52 }
 0x149   : > { %v2124_v20 = vmul.f32 0.1, %v2108_v21  ;;  %v1586_v37 = vpop.f32.mrf.mxu2 }
 0x14a   : > { %v2070_v22 = vpop.f32.mrf.mxu0  ;;  %v1625_v10 = vadd.f32 %v1586_v37, %v1443_v33 }
 0x14b   : > { %v2140_v1 = vmax.f32 %v2108_v21, %v2124_v20  ;;  %v1407_v12 = vpop.f32.mrf.mxu1 }
 0x14c   : > { %v1836_v42 = vpop.f32.mrf.mxu3  ;;  %v1444_v19 = vadd.f32 %v1407_v12, %v3541_v55 }
 0x14d   : > { %v2156_v15 = vpack.c.bf16 %v2140_v1, %v2140_v1  ;;  %v1875_v16 = vadd.f32 %v1836_v42, %v1625_v10 }
 0x14f   : > { %2173 = vst.msk [vmem:[%s3722_s17] sm:$0xf] %vm2172_vm7, %v2156_v15  ;;  %v2109_v31 = vadd.f32 %v2070_v22, %v1875_v16 }
 0x151   : > { %v2125_v5 = vmul.f32 0.1, %v2109_v31  ;;  %v1589_v24 = vpop.f32.mrf.mxu2 }
 0x152   : > { %v2073_v23 = vpop.f32.mrf.mxu0  ;;  %v1626_v27 = vadd.f32 %v1589_v24, %v1444_v19 }
 0x153   : > { %v2141_v26 = vmax.f32 %v2109_v31, %v2125_v5  ;;  %v1409_v51 = vpop.f32.mrf.mxu1 }
 0x154   : > { %v1839_v62 = vpop.f32.mrf.mxu3  ;;  %v1445_v35 = vadd.f32 %v1409_v51, %v3557_v18 }
 0x155   : > { %v2157_v30 = vpack.c.bf16 %v2141_v26, %v2141_v26  ;;  %v1876_v32 = vadd.f32 %v1839_v62, %v1626_v27 }
 0x157   : > { %2174 = vst.msk [vmem:[%s3722_s17 + $0x4] sm:$0xf] %vm2172_vm7, %v2157_v30  ;;  %v2110_v43 = vadd.f32 %v2073_v23, %v1876_v32 }
 0x159   : > { %v2126_v3 = vmul.f32 0.1, %v2110_v43  ;;  %v1591_v36 = vpop.f32.mrf.mxu2 }
 0x15a   : > { %v2075_v29 = vpop.f32.mrf.mxu0  ;;  %v1627_v45 = vadd.f32 %v1591_v36, %v1445_v35 }
 0x15b   : > { %v2142_v63 = vmax.f32 %v2110_v43, %v2126_v3  ;;  %v1412_v55 = vpop.f32.mrf.mxu1 }
 0x15c   : > { %v1841_v9 = vpop.f32.mrf.mxu3  ;;  %v1446_v46 = vadd.f32 %v1412_v55, %v3572_v6 }
 0x15d   : > { %v2158_v60 = vpack.c.bf16 %v2142_v63, %v2142_v63  ;;  %v1877_v40 = vadd.f32 %v1841_v9, %v1627_v45 }
 0x15f   : > { %2175 = vst.msk [vmem:[%s3722_s17 + $0x8] sm:$0xf] %vm2172_vm7, %v2158_v60  ;;  %v2111_v44 = vadd.f32 %v2075_v29, %v1877_v40 }
 0x161   : > { %v2127_v28 = vmul.f32 0.1, %v2111_v44  ;;  %v1594_v53 = vpop.f32.mrf.mxu2 }
 0x162   : > { %v2078_v48 = vpop.f32.mrf.mxu0  ;;  %v1628_v59 = vadd.f32 %v1594_v53, %v1446_v46 }
 0x163   : > { %v2143_v56 = vmax.f32 %v2111_v44, %v2127_v28  ;;  %v1414_v18 = vpop.f32.mrf.mxu1 }
 0x164   : > { %v1844_v38 = vpop.f32.mrf.mxu3  ;;  %v1447_v34 = vadd.f32 %v1414_v18, %v3588_v54 }
 0x165   : > { %v2159_v61 = vpack.c.bf16 %v2143_v56, %v2143_v56  ;;  %v1878_v25 = vadd.f32 %v1844_v38, %v1628_v59 }
 0x167   : > { %2176 = vst.msk [vmem:[%s3722_s17 + $0xc] sm:$0xf] %vm2172_vm7, %v2159_v61  ;;  %v2112_v0 = vadd.f32 %v2078_v48, %v1878_v25 }
 0x169   : > { %v2128_v58 = vmul.f32 0.1, %v2112_v0  ;;  %v1596_v39 = vpop.f32.mrf.mxu2 }
 0x16a   : > { %v2080_v7 = vpop.f32.mrf.mxu0  ;;  %v1629_v8 = vadd.f32 %v1596_v39, %v1447_v34 }
 0x16b   : > { %v2144_v14 = vmax.f32 %v2112_v0, %v2128_v58  ;;  %v1417_v6 = vpop.f32.mrf.mxu1 }
 0x16c   : > { %v1846_v52 = vpop.f32.mrf.mxu3  ;;  %v1448_v37 = vadd.f32 %v1417_v6, %v3603_v4 }
 0x16d   : > { %v2160_v21 = vpack.c.bf16 %v2144_v14, %v2144_v14  ;;  %v1879_v20 = vadd.f32 %v1846_v52, %v1629_v8 }
 0x16f   : > { %2177 = vst.msk [vmem:[%s3722_s17 + $0x10] sm:$0xf] %vm2172_vm7, %v2160_v21  ;;  %v2113_v33 = vadd.f32 %v2080_v7, %v1879_v20 }
 0x171   : > { %v2129_v22 = vmul.f32 0.1, %v2113_v33  ;;  %v1599_v10 = vpop.f32.mrf.mxu2 }
 0x172   : > { %v2083_v1 = vpop.f32.mrf.mxu0  ;;  %v1630_v42 = vadd.f32 %v1599_v10, %v1448_v37 }
 0x173   : > { %v2145_v12 = vmax.f32 %v2113_v33, %v2129_v22  ;;  %v1419_v54 = vpop.f32.mrf.mxu1 }
 0x174   : > { %v1849_v15 = vpop.f32.mrf.mxu3  ;;  %v1449_v23 = vadd.f32 %v1419_v54, %v3618_v41 }
 0x175   : > { %v2161_v16 = vpack.c.bf16 %v2145_v12, %v2145_v12  ;;  %v1880_v31 = vadd.f32 %v1849_v15, %v1630_v42 }
 0x177   : > { %2178 = vst.msk [vmem:[%s3722_s17 + $0x14] sm:$0xf] %vm2172_vm7, %v2161_v16  ;;  %v2114_v5 = vadd.f32 %v2083_v1, %v1880_v31 }
 0x179   : > { %v2130_v19 = vmul.f32 0.1, %v2114_v5  ;;  %v1601_v26 = vpop.f32.mrf.mxu2 }
 0x17a   : > { %v2085_v24 = vpop.f32.mrf.mxu0  ;;  %v1631_v51 = vadd.f32 %v1601_v26, %v1449_v23 }
 0x17b   : > { %v2146_v27 = vmax.f32 %v2114_v5, %v2130_v19  ;;  %v1422_v4 = vpop.f32.mrf.mxu1 }
 0x17c   : > { %v1851_v62 = vpop.f32.mrf.mxu3  ;;  %v1450_v35 = vadd.f32 %v1422_v4, %v3633_v11 }
 0x17d   : > { %v2162_v30 = vpack.c.bf16 %v2146_v27, %v2146_v27  ;;  %v1881_v32 = vadd.f32 %v1851_v62, %v1631_v51 }
 0x17f   : > { %2179 = vst.msk [vmem:[%s3722_s17 + $0x18] sm:$0xf] %vm2172_vm7, %v2162_v30  ;;  %v2115_v43 = vadd.f32 %v2085_v24, %v1881_v32 }
 0x181   : > { %v2131_v3 = vmul.f32 0.1, %v2115_v43  ;;  %v1604_v36 = vpop.f32.mrf.mxu2 }
 0x182   : > { %v2088_v29 = vpop.f32.mrf.mxu0  ;;  %v1632_v45 = vadd.f32 %v1604_v36, %v1450_v35 }
 0x183   : > { %v2147_v63 = vmax.f32 %v2115_v43, %v2131_v3  ;;  %v1424_v41 = vpop.f32.mrf.mxu1 }
 0x184   : > { %v1854_v55 = vpop.f32.mrf.mxu3  ;;  %v1451_v28 = vadd.f32 %v1424_v41, %v3649_v47 }
 0x185   : > { %v2163_v9 = vpack.c.bf16 %v2147_v63, %v2147_v63  ;;  %v1882_v60 = vadd.f32 %v1854_v55, %v1632_v45 }
 0x187   : > { %2180 = vst.msk [vmem:[%s3722_s17 + $0x1c] sm:$0xf] %vm2172_vm7, %v2163_v9  ;;  %v2116_v40 = vadd.f32 %v2088_v29, %v1882_v60 }
 0x189   : > { %v2132_v44 = vmul.f32 0.1, %v2116_v40  ;;  %v1606_v48 = vpop.f32.mrf.mxu2 }
 0x18a   : > { %v2090_v46 = vpop.f32.mrf.mxu0  ;;  %v1633_v56 = vadd.f32 %v1606_v48, %v1451_v28 }
 0x18b   : > { %v2148_v53 = vmax.f32 %v2116_v40, %v2132_v44  ;;  %v1427_v11 = vpop.f32.mrf.mxu1 }
 0x18c   : > { %v1856_v59 = vpop.f32.mrf.mxu3  ;;  %v1452_v0 = vadd.f32 %v1427_v11, %v3664_v13 }
 0x18d   : > { %v2164_v18 = vpack.c.bf16 %v2148_v53, %v2148_v53  ;;  %v1883_v38 = vadd.f32 %v1856_v59, %v1633_v56 }
 0x18f   : > { %2181 = vst.msk [vmem:[%s3722_s17 + $0x20] sm:$0xf] %vm2172_vm7, %v2164_v18  ;;  %v2117_v61 = vadd.f32 %v2090_v46, %v1883_v38 }
 0x191   : > { %v2133_v25 = vmul.f32 0.1, %v2117_v61  ;;  %v1609_v34 = vpop.f32.mrf.mxu2 }
 0x192   : > { %v2093_v58 = vpop.f32.mrf.mxu0  ;;  %v1634_v39 = vadd.f32 %v1609_v34, %v1452_v0 }
 0x193   : > { %v2149_v7 = vmax.f32 %v2117_v61, %v2133_v25  ;;  %v1429_v47 = vpop.f32.mrf.mxu1 }
 0x194   : > { %v1859_v14 = vpop.f32.mrf.mxu3  ;;  %v1453_v20 = vadd.f32 %v1429_v47, %v3680_v50 }
 0x195   : > { %v2165_v8 = vpack.c.bf16 %v2149_v7, %v2149_v7  ;;  %v1884_v6 = vadd.f32 %v1859_v14, %v1634_v39 }
 0x197   : > { %2182 = vst.msk [vmem:[%s3722_s17 + $0x24] sm:$0xf] %vm2172_vm7, %v2165_v8  ;;  %v2118_v52 = vadd.f32 %v2093_v58, %v1884_v6 }
 0x199   : > { %v2134_v21 = vmul.f32 0.1, %v2118_v52  ;;  %v1611_v22 = vpop.f32.mrf.mxu2 }
 0x19a   : > { %v2095_v33 = vpop.f32.mrf.mxu0  ;;  %v1635_v1 = vadd.f32 %v1611_v22, %v1453_v20 }
 0x19b   : > { %v2150_v37 = vmax.f32 %v2118_v52, %v2134_v21  ;;  %v1432_v13 = vpop.f32.mrf.mxu1 }
 0x19c   : > { %v1861_v10 = vpop.f32.mrf.mxu3  ;;  %v1454_v16 = vadd.f32 %v1432_v13, %v3695_v17 }
 0x19d   : > { %v2166_v12 = vpack.c.bf16 %v2150_v37, %v2150_v37  ;;  %v1885_v42 = vadd.f32 %v1861_v10, %v1635_v1 }
 0x19f   : > { %2183 = vst.msk [vmem:[%s3722_s17 + $0x28] sm:$0xf] %vm2172_vm7, %v2166_v12  ;;  %v2119_v54 = vadd.f32 %v2095_v33, %v1885_v42 }
 0x1a1   : > { %v2135_v15 = vmul.f32 0.1, %v2119_v54  ;;  %v1614_v5 = vpop.f32.mrf.mxu2 }
 0x1a2   : > { %v2098_v31 = vpop.f32.mrf.mxu0  ;;  %v1636_v23 = vadd.f32 %v1614_v5, %v1454_v16 }
 0x1a3   : > { %v2151_v19 = vmax.f32 %v2119_v54, %v2135_v15  ;;  %v1434_v50 = vpop.f32.mrf.mxu1 }
 0x1a4   : > { %v1864_v24 = vpop.f32.mrf.mxu3  ;;  %v1455_v62 = vadd.f32 %v1434_v50, %v3705_v57 }
 0x1a5   : > { %v2167_v26 = vpack.c.bf16 %v2151_v19, %v2151_v19  ;;  %v1886_v27 = vadd.f32 %v1864_v24, %v1636_v23 }
 0x1a7   : > { %2184 = vst.msk [vmem:[%s3722_s17 + $0x2c] sm:$0xf] %vm2172_vm7, %v2167_v26  ;;  %v2120_v51 = vadd.f32 %v2098_v31, %v1886_v27 }
 0x1a9   : > { %v2136_v4 = vmul.f32 0.1, %v2120_v51  ;;  %v1616_v32 = vpop.f32.mrf.mxu2 }
 0x1aa   : > { %v2100_v30 = vpop.f32.mrf.mxu0  ;;  %v1637_v3 = vadd.f32 %v1616_v32, %v1455_v62 }
 0x1ab   : > { %v2152_v43 = vmax.f32 %v2120_v51, %v2136_v4  ;;  %v1437_v35 = vpop.f32.mrf.mxu1 }
 0x1ac   : > { %v1866_v17 = vpop.f32.mrf.mxu3  ;;  %v1456_v41 = vadd.f32 %v1437_v35, %v3710_v49 }
 0x1ad   : > { %v2168_v29 = vpack.c.bf16 %v2152_v43, %v2152_v43  ;;  %v1887_v36 = vadd.f32 %v1866_v17, %v1637_v3 }
 0x1af   : > { %2185 = vst.msk [vmem:[%s3722_s17 + $0x30] sm:$0xf] %vm2172_vm7, %v2168_v29  ;;  %v2121_v63 = vadd.f32 %v2100_v30, %v1887_v36 }
 0x1b1   : > { %v2137_v45 = vmul.f32 0.1, %v2121_v63  ;;  %v1619_v55 = vpop.f32.mrf.mxu2 }
 0x1b2   : > { %v1638_v60 = vadd.f32 %v1619_v55, %v1456_v41  ;;  %v2103_v40 = vpop.f32.mrf.mxu0 }
 0x1b3   : > { %v2153_v9 = vmax.f32 %v2121_v63, %v2137_v45  ;;  %v1439_v46 = vpop.f32.mrf.mxu1 }
 0x1b4   : > { %v1869_v57 = vpop.f32.mrf.mxu3  ;;  %v1457_v56 = vadd.f32 %v1439_v46, %v3714_v2 }
 0x1b5   : > { %v2169_v44 = vpack.c.bf16 %v2153_v9, %v2153_v9  ;;  %v1888_v28 = vadd.f32 %v1869_v57, %v1638_v60 }
 0x1b7   : > { %2186 = vst.msk [vmem:[%s3722_s17 + $0x34] sm:$0xf] %vm2172_vm7, %v2169_v44  ;;  %v2122_v48 = vadd.f32 %v2103_v40, %v1888_v28 }
 0x1b9   : > { %v2138_v53 = vmul.f32 0.1, %v2122_v48  ;;  %v1621_v11 = vpop.f32.mrf.mxu2 }
 0x1ba   : > { %v1639_v18 = vadd.f32 %v1621_v11, %v1457_v56  ;;  %v2105_v25 = vpop.f32.mrf.mxu0 }
 0x1bb   : > { %v2154_v59 = vmax.f32 %v2122_v48, %v2138_v53 }
 0x1bc   : > { %v1871_v49 = vpop.f32.mrf.mxu3 }
 0x1bd   : > { %v2170_v38 = vpack.c.bf16 %v2154_v59, %v2154_v59  ;;  %v1889_v61 = vadd.f32 %v1871_v49, %v1639_v18 }
 0x1bf   : > { %2187 = vst.msk [vmem:[%s3722_s17 + $0x38] sm:$0xf] %vm2172_vm7, %v2170_v38  ;;  %v2123_v0 = vadd.f32 %v2105_v25, %v1889_v61 }
 0x1c1   : > { %v2139_v58 = vmul.f32 0.1, %v2123_v0 }
 0x1c3   : > { %v2155_v34 = vmax.f32 %v2123_v0, %v2139_v58 }
 0x1c5   : > { %v2171_v7 = vpack.c.bf16 %v2155_v34, %v2155_v34 }
 0x1c7   : > { %2188 = vst.msk [vmem:[%s3722_s17 + $0x3c] sm:$0xf] %vm2172_vm7, %v2171_v7 }
 0x1c8 PF: > { %s12_s13 = sadd.s32 1, %s2989_s13   ;;  %s3792_s9 = smov %s2981_s11 }
 0x1c9   : > { %p9_p7 = scmp.ge.s32.totalorder %s12_s13, 6   ;;  %s3793_s10 = smov %s2985_s12 }
 0x1ca   : > { %s3794_s11 = smov %s3797_s14  ;;  %s3795_s12 = smov %s3801_s15 }
 0x1cb   :  { %11 = sbr.rel (!%p9_p7) target bundleno = 3 (0x3), region = 69 }

// kernel: net_forward.125
= control target key start
LH: loop header
LB: loop body
LE: loop exit
PB: predicated region body
PF: predicated region fallthrough
CT: control target
= control target key end

     0   :  { %vm436_vm0 = vcmask 130048   ;;  %vm1063_vm1 = vcmask 519168   ;;  %s2336_s1 = inlined_call_operand.vmem [shape: bf16[144,64], index: 1, kind: input, shape index: {}]   ;;  %s2337_s0 = inlined_call_operand.vmem [shape: bf16[512,144], index: 0, kind: input, shape index: {}]   ;;  %s2338_s2 = inlined_call_operand.vmem [shape: bf16[512,64], index: 2, kind: output, shape index: {}]  }
   0x1   :  { %v1527_v0 = vld [vmem:[%s2336_s1 + $0x38] sm:$0xff]  ;;  %v1528_v1 = vld [vmem:[%s2336_s1 + $0x40] sm:$0xff]  ;;  %v1136_v3 = vld [vmem:[%s2337_s0 + $0x8] sm:$0xf0] }
   0x2   :  { %v1456_v2 = vld [vmem:[%s2337_s0 + $0x4] sm:$0xf]  ;;  %533 = vmatpush.bf16.msra.mxu0 %v1527_v0  ;;  %1529 = vmatpush.bf16.msra.mxu2 %v1527_v0  ;;  %v1526_v5 = vld [vmem:[%s2336_s1 + $0x30] sm:$0xff]  ;;  %v1525_v6 = vld [vmem:[%s2336_s1 + $0x28] sm:$0xff] }
   0x3   :  { %v1139_v4 = vor.u32 %v1456_v2, %v1136_v3  ;;  %709 = vmatpush.bf16.msra.mxu1 %v1528_v1  ;;  %1537 = vmatpush.bf16.msra.mxu3 %v1528_v1  ;;  %v1490_v7 = vld [vmem:[%s2337_s0 + $0x114] sm:$0xf]  ;;  %v1272_v8 = vld [vmem:[%s2337_s0 + $0x118] sm:$0xf0]  ;;  %v1524_v10 = vld [vmem:[%s2336_s1 + $0x20] sm:$0xff] }
   0x4   :  { %v1275_v9 = vor.u32 %v1490_v7, %v1272_v8  ;;  %v1523_v11 = vld [vmem:[%s2336_s1 + $0x18] sm:$0xff]  ;;  %v1458_v12 = vld [vmem:[%s2337_s0 + $0x14] sm:$0xf]  ;;  %v1521_v16 = vld [vmem:[%s2336_s1 + $0x8] sm:$0xff] }
   0x5   :  { %v1144_v13 = vld [vmem:[%s2337_s0 + $0x18] sm:$0xf0]  ;;  %v1522_v15 = vld [vmem:[%s2336_s1 + $0x10] sm:$0xff]  ;;  %v1492_v17 = vld [vmem:[%s2337_s0 + $0x124] sm:$0xf] }
   0x6   :  { %1424 = vmatmul.msk.bf16.vlgmr.msra.gmra.mxu1 %vm436_vm0, %v1139_v4  ;;  %534 = vmatpush.bf16.msra.mxu0 %v1526_v5  ;;  %v1147_v14 = vor.u32 %v1458_v12, %v1144_v13  ;;  %v1280_v18 = vld [vmem:[%s2337_s0 + $0x128] sm:$0xf0]  ;;  %v1520_v20 = vld [vmem:[%s2336_s1] sm:$0xff]  ;;  %v1457_v22 = vld [vmem:[%s2337_s0 + $0x4] sm:$0xf0] }
   0x7   :  { %1530 = vmatpush.bf16.msra.mxu2 %v1526_v5  ;;  %1441 = vmatmul.msk.bf16.vlgmr.msra.gmra.mxu3 %vm436_vm0, %v1275_v9  ;;  %v1283_v19 = vor.u32 %v1492_v17, %v1280_v18  ;;  %v1134_v21 = vld [vmem:[%s2337_s0] sm:$0xf]  ;;  %v1489_v24 = vld [vmem:[%s2337_s0 + $0x104] sm:$0xf0]  ;;  %v1460_v27 = vld [vmem:[%s2337_s0 + $0x24] sm:$0xf] }
   0x8   :  { %v1262_v23 = vld [vmem:[%s2337_s0 + $0x100] sm:$0xf]  ;;  %v1135_v25 = vor.u32 %v1457_v22, %v1134_v21  ;;  %v1152_v28 = vld [vmem:[%s2337_s0 + $0x28] sm:$0xf0]  ;;  %v1494_v30 = vld [vmem:[%s2337_s0 + $0x134] sm:$0xf] }
   0x9   :  { %v1263_v26 = vor.u32 %v1489_v24, %v1262_v23  ;;  %v1155_v29 = vor.u32 %v1460_v27, %v1152_v28  ;;  %v1288_v31 = vld [vmem:[%s2337_s0 + $0x138] sm:$0xf0]  ;;  %v1142_v33 = vld [vmem:[%s2337_s0 + $0x10] sm:$0xf]  ;;  %v1459_v34 = vld [vmem:[%s2337_s0 + $0x14] sm:$0xf0] }
   0xa   :  { %535 = vmatpush.bf16.msra.mxu0 %v1525_v6  ;;  %v1291_v32 = vor.u32 %v1494_v30, %v1288_v31  ;;  %v1270_v35 = vld [vmem:[%s2337_s0 + $0x110] sm:$0xf]  ;;  %v1491_v36 = vld [vmem:[%s2337_s0 + $0x114] sm:$0xf0]  ;;  %v1143_v37 = vor.u32 %v1459_v34, %v1142_v33  ;;  %v1462_v39 = vld [vmem:[%s2337_s0 + $0x34] sm:$0xf] }
   0xb   :  { %1531 = vmatpush.bf16.msra.mxu2 %v1525_v6  ;;  %v1271_v38 = vor.u32 %v1491_v36, %v1270_v35  ;;  %v1160_v40 = vld [vmem:[%s2337_s0 + $0x38] sm:$0xf0]  ;;  %v1496_v42 = vld [vmem:[%s2337_s0 + $0x144] sm:$0xf]  ;;  %v1296_v43 = vld [vmem:[%s2337_s0 + $0x148] sm:$0xf0] }
   0xc   :  { %v1163_v41 = vor.u32 %v1462_v39, %v1160_v40  ;;  %v1299_v44 = vor.u32 %v1496_v42, %v1296_v43  ;;  %v1150_v45 = vld [vmem:[%s2337_s0 + $0x20] sm:$0xf]  ;;  %v1461_v46 = vld [vmem:[%s2337_s0 + $0x24] sm:$0xf0]  ;;  %v1464_v51 = vld [vmem:[%s2337_s0 + $0x44] sm:$0xf] }
   0xd   :  { %v1278_v47 = vld [vmem:[%s2337_s0 + $0x120] sm:$0xf]  ;;  %v1493_v48 = vld [vmem:[%s2337_s0 + $0x124] sm:$0xf0]  ;;  %v1151_v49 = vor.u32 %v1461_v46, %v1150_v45  ;;  %v1168_v52 = vld [vmem:[%s2337_s0 + $0x48] sm:$0xf0] }
   0xe   :  { %536 = vmatpush.bf16.msra.mxu0 %v1524_v10  ;;  %v1279_v50 = vor.u32 %v1493_v48, %v1278_v47  ;;  %v1171_v53 = vor.u32 %v1464_v51, %v1168_v52  ;;  %v1498_v54 = vld [vmem:[%s2337_s0 + $0x154] sm:$0xf]  ;;  %v1304_v55 = vld [vmem:[%s2337_s0 + $0x158] sm:$0xf0]  ;;  %v1158_v57 = vld [vmem:[%s2337_s0 + $0x30] sm:$0xf] }
   0xf   :  { %1532 = vmatpush.bf16.msra.mxu2 %v1524_v10  ;;  %v1307_v56 = vor.u32 %v1498_v54, %v1304_v55  ;;  %v1463_v58 = vld [vmem:[%s2337_s0 + $0x34] sm:$0xf0]  ;;  %v1286_v59 = vld [vmem:[%s2337_s0 + $0x130] sm:$0xf]  ;;  %v1466_v63 = vld [vmem:[%s2337_s0 + $0x54] sm:$0xf] }
  0x10   :  { %v1495_v60 = vld [vmem:[%s2337_s0 + $0x134] sm:$0xf0]  ;;  %v1159_v61 = vor.u32 %v1463_v58, %v1158_v57  ;;  %v1176_v0 = vld [vmem:[%s2337_s0 + $0x58] sm:$0xf0]  ;;  %v1500_v2 = vld [vmem:[%s2337_s0 + $0x164] sm:$0xf] }
  0x11   :  { %v1287_v62 = vor.u32 %v1495_v60, %v1286_v59  ;;  %v1179_v1 = vor.u32 %v1466_v63, %v1176_v0  ;;  %v1312_v3 = vld [vmem:[%s2337_s0 + $0x168] sm:$0xf0]  ;;  %v1166_v5 = vld [vmem:[%s2337_s0 + $0x40] sm:$0xf]  ;;  %v1465_v6 = vld [vmem:[%s2337_s0 + $0x44] sm:$0xf0] }
  0x12   :  { %537 = vmatpush.bf16.msra.mxu0 %v1523_v11  ;;  %v1315_v4 = vor.u32 %v1500_v2, %v1312_v3  ;;  %v1294_v7 = vld [vmem:[%s2337_s0 + $0x140] sm:$0xf]  ;;  %v1497_v8 = vld [vmem:[%s2337_s0 + $0x144] sm:$0xf0]  ;;  %v1167_v9 = vor.u32 %v1465_v6, %v1166_v5  ;;  %v1184_v12 = vld [vmem:[%s2337_s0 + $0x68] sm:$0xf0] }
  0x13   :  { %1533 = vmatpush.bf16.msra.mxu2 %v1523_v11  ;;  %v1295_v10 = vor.u32 %v1497_v8, %v1294_v7  ;;  %v1468_v11 = vld [vmem:[%s2337_s0 + $0x64] sm:$0xf]  ;;  %v1174_v17 = vld [vmem:[%s2337_s0 + $0x50] sm:$0xf]  ;;  %v1467_v18 = vld [vmem:[%s2337_s0 + $0x54] sm:$0xf0] }
  0x14   :  { %v1187_v13 = vor.u32 %v1468_v11, %v1184_v12  ;;  %v1175_v21 = vor.u32 %v1467_v18, %v1174_v17  ;;  %v1470_v23 = vld [vmem:[%s2337_s0 + $0x74] sm:$0xf]  ;;  %v1192_v24 = vld [vmem:[%s2337_s0 + $0x78] sm:$0xf0]  ;;  %v1328_v27 = vld [vmem:[%s2337_s0 + $0x188] sm:$0xf0] }
  0x15   :  { %v1469_v30 = vld [vmem:[%s2337_s0 + $0x64] sm:$0xf0]  ;;  %v1310_v31 = vld [vmem:[%s2337_s0 + $0x160] sm:$0xf]  ;;  %v1472_v35 = vld [vmem:[%s2337_s0 + $0x84] sm:$0xf] }
  0x16   :  { %1425 = vmatmul.msk.bf16.gmra.mxu1 %vm436_vm0, %v1147_v14  ;;  %538 = vmatpush.bf16.msra.mxu0 %v1522_v15  ;;  %v1502_v14 = vld [vmem:[%s2337_s0 + $0x174] sm:$0xf]  ;;  %v1200_v36 = vld [vmem:[%s2337_s0 + $0x88] sm:$0xf0]  ;;  %v1336_v40 = vld [vmem:[%s2337_s0 + $0x198] sm:$0xf0] }
  0x17   :  { %1534 = vmatpush.bf16.msra.mxu2 %v1522_v15  ;;  %1442 = vmatmul.msk.bf16.gmra.mxu3 %vm436_vm0, %v1283_v19  ;;  %v1320_v15 = vld [vmem:[%s2337_s0 + $0x178] sm:$0xf0]  ;;  %v1302_v19 = vld [vmem:[%s2337_s0 + $0x150] sm:$0xf]  ;;  %v1506_v39 = vld [vmem:[%s2337_s0 + $0x194] sm:$0xf] }
  0x18   :  { %v1190_v42 = vld [vmem:[%s2337_s0 + $0x70] sm:$0xf]  ;;  %v1471_v43 = vld [vmem:[%s2337_s0 + $0x74] sm:$0xf0]  ;;  %v1208_v51 = vld [vmem:[%s2337_s0 + $0x98] sm:$0xf0] }
  0x19   :  { %v1318_v45 = vld [vmem:[%s2337_s0 + $0x170] sm:$0xf]  ;;  %v1503_v46 = vld [vmem:[%s2337_s0 + $0x174] sm:$0xf0]  ;;  %v1191_v47 = vor.u32 %v1471_v43, %v1190_v42  ;;  %v1508_v55 = vld [vmem:[%s2337_s0 + $0x1a4] sm:$0xf] }
  0x1a   :  { %539 = vmatpush.bf16.msra.mxu0 %v1521_v16  ;;  %v1198_v58 = vld [vmem:[%s2337_s0 + $0x80] sm:$0xf]  ;;  %v1473_v59 = vld [vmem:[%s2337_s0 + $0x84] sm:$0xf0]  ;;  %v1216_v5 = vld [vmem:[%s2337_s0 + $0xa8] sm:$0xf0] }
  0x1b   :  { %1535 = vmatpush.bf16.msra.mxu2 %v1521_v16  ;;  %v1323_v16 = vor.u32 %v1502_v14, %v1320_v15  ;;  %v1199_v63 = vor.u32 %v1473_v59, %v1198_v58  ;;  %v1510_v15 = vld [vmem:[%s2337_s0 + $0x1b4] sm:$0xf] }
  0x1e   :  { %540 = vmatpush.bf16.msra.mxu0 %v1520_v20 }
  0x1f   :  { %1536 = vmatpush.bf16.msra.mxu2 %v1520_v20  ;;  %v1499_v20 = vld [vmem:[%s2337_s0 + $0x154] sm:$0xf0] }
  0x20   :  { %v1303_v22 = vor.u32 %v1499_v20, %v1302_v19  ;;  %v1206_v19 = vld [vmem:[%s2337_s0 + $0x90] sm:$0xf]  ;;  %v1475_v20 = vld [vmem:[%s2337_s0 + $0x94] sm:$0xf0] }
  0x21   :  { %541 = vmatmul.bf16.vlgmr.msra.gmra.mxu0 %v1135_v25  ;;  %v1195_v25 = vor.u32 %v1470_v23, %v1192_v24  ;;  %v1334_v23 = vld [vmem:[%s2337_s0 + $0x190] sm:$0xf]  ;;  %v1507_v24 = vld [vmem:[%s2337_s0 + $0x194] sm:$0xf0] }
  0x22   :  { %621 = vmatmul.bf16.vlgmr.msra.gmra.mxu2 %v1263_v26  ;;  %v1504_v26 = vld [vmem:[%s2337_s0 + $0x184] sm:$0xf] }
  0x23   :  { %v1331_v28 = vor.u32 %v1504_v26, %v1328_v27  ;;  %v1207_v27 = vor.u32 %v1475_v20, %v1206_v19  ;;  %v1514_v19 = vld [vmem:[%s2337_s0 + $0x1d4] sm:$0xf]  ;;  %v1368_v20 = vld [vmem:[%s2337_s0 + $0x1d8] sm:$0xf0] }
  0x26   :  { %1426 = vmatmul.msk.bf16.gmra.mxu1 %vm436_vm0, %v1155_v29  ;;  %v1182_v29 = vld [vmem:[%s2337_s0 + $0x60] sm:$0xf] }
  0x27   :  { %1443 = vmatmul.msk.bf16.gmra.mxu3 %vm436_vm0, %v1291_v32  ;;  %v1501_v32 = vld [vmem:[%s2337_s0 + $0x164] sm:$0xf0]  ;;  %v1183_v33 = vor.u32 %v1469_v30, %v1182_v29  ;;  %v1335_v30 = vor.u32 %v1507_v24, %v1334_v23 }
  0x28   :  { %v1311_v34 = vor.u32 %v1501_v32, %v1310_v31  ;;  %v1478_v32 = vld [vmem:[%s2337_s0 + $0xb4] sm:$0xf] }
  0x31   :  { %546 = vmatmul.bf16.gmra.mxu0 %v1143_v37  ;;  %v1203_v37 = vor.u32 %v1472_v35, %v1200_v36 }
  0x32   :  { %626 = vmatmul.bf16.gmra.mxu2 %v1271_v38 }
  0x36   :  { %1427 = vmatmul.msk.bf16.gmra.mxu1 %vm436_vm0, %v1163_v41  ;;  %v1339_v41 = vor.u32 %v1506_v39, %v1336_v40 }
  0x37   :  { %1444 = vmatmul.msk.bf16.gmra.mxu3 %vm436_vm0, %v1299_v44 }
  0x41   :  { %551 = vmatmul.bf16.gmra.mxu0 %v1151_v49  ;;  %v1319_v49 = vor.u32 %v1503_v46, %v1318_v45  ;;  %v1360_v45 = vld [vmem:[%s2337_s0 + $0x1c8] sm:$0xf0] }
  0x42   :  { %631 = vmatmul.bf16.gmra.mxu2 %v1279_v50  ;;  %v1474_v50 = vld [vmem:[%s2337_s0 + $0x94] sm:$0xf] }
  0x43   :  { %v1211_v52 = vor.u32 %v1474_v50, %v1208_v51  ;;  %v1214_v50 = vld [vmem:[%s2337_s0 + $0xa0] sm:$0xf]  ;;  %v1477_v51 = vld [vmem:[%s2337_s0 + $0xa4] sm:$0xf0] }
  0x46   :  { %1428 = vmatmul.msk.bf16.gmra.mxu1 %vm436_vm0, %v1171_v53 }
  0x47   :  { %1445 = vmatmul.msk.bf16.gmra.mxu3 %vm436_vm0, %v1307_v56  ;;  %v1344_v56 = vld [vmem:[%s2337_s0 + $0x1a8] sm:$0xf0] }
  0x48   :  { %v1347_v57 = vor.u32 %v1508_v55, %v1344_v56  ;;  %v1342_v55 = vld [vmem:[%s2337_s0 + $0x1a0] sm:$0xf]  ;;  %v1509_v56 = vld [vmem:[%s2337_s0 + $0x1a4] sm:$0xf0] }
  0x51   :  { %556 = vmatmul.bf16.gmra.mxu0 %v1159_v61  ;;  %v1326_v61 = vld [vmem:[%s2337_s0 + $0x180] sm:$0xf] }
  0x52   :  { %636 = vmatmul.bf16.gmra.mxu2 %v1287_v62  ;;  %v1505_v62 = vld [vmem:[%s2337_s0 + $0x184] sm:$0xf0] }
  0x53   :  { %v1327_v2 = vor.u32 %v1505_v62, %v1326_v61 }
  0x56   :  { %1429 = vmatmul.msk.bf16.gmra.mxu1 %vm436_vm0, %v1179_v1 }
  0x57   :  { %1446 = vmatmul.msk.bf16.gmra.mxu3 %vm436_vm0, %v1315_v4  ;;  %v1476_v4 = vld [vmem:[%s2337_s0 + $0xa4] sm:$0xf] }
  0x58   :  { %v1219_v7 = vor.u32 %v1476_v4, %v1216_v5  ;;  %v1232_v4 = vld [vmem:[%s2337_s0 + $0xc8] sm:$0xf0] }
  0x61   :  { %561 = vmatmul.bf16.gmra.mxu0 %v1167_v9 }
  0x62   :  { %641 = vmatmul.bf16.gmra.mxu2 %v1295_v10 }
  0x66   :  { %1430 = vmatmul.msk.bf16.gmra.mxu1 %vm436_vm0, %v1187_v13 }
  0x67   :  { %1447 = vmatmul.msk.bf16.gmra.mxu3 %vm436_vm0, %v1323_v16  ;;  %v1352_v16 = vld [vmem:[%s2337_s0 + $0x1b8] sm:$0xf0] }
  0x68   :  { %v1355_v17 = vor.u32 %v1510_v15, %v1352_v16 }
  0x71   :  { %566 = vmatmul.bf16.gmra.mxu0 %v1175_v21 }
  0x72   :  { %646 = vmatmul.bf16.gmra.mxu2 %v1303_v22 }
  0x76   :  { %1431 = vmatmul.msk.bf16.gmra.mxu1 %vm436_vm0, %v1195_v25 }
  0x77   :  { %1448 = vmatmul.msk.bf16.gmra.mxu3 %vm436_vm0, %v1331_v28 }
  0x81   :  { %571 = vmatmul.bf16.gmra.mxu0 %v1183_v33  ;;  %v1224_v33 = vld [vmem:[%s2337_s0 + $0xb8] sm:$0xf0] }
  0x82   :  { %651 = vmatmul.bf16.gmra.mxu2 %v1311_v34  ;;  %v1227_v35 = vor.u32 %v1478_v32, %v1224_v33 }
  0x83   :  { %v711_v38 = vpop.f32.mrf.mxu1 }
  0x86   :  { %1432 = vmatmul.msk.bf16.gmra.mxu1 %vm436_vm0, %v1203_v37 }
  0x87   :  { %1449 = vmatmul.msk.bf16.gmra.mxu3 %vm436_vm0, %v1339_v41 }
  0x8a   :  { %v1802_v48 = vpop.f32.mrf.mxu3 }
  0x8b   :  { %v713_v44 = vpop.f32.mrf.mxu1 }
  0x91   :  { %576 = vmatmul.bf16.gmra.mxu0 %v1191_v47 }
  0x92   :  { %656 = vmatmul.bf16.gmra.mxu2 %v1319_v49  ;;  %v1810_v54 = vpop.f32.mrf.mxu3 }
  0x93   :  { %v716_v53 = vpop.f32.mrf.mxu1 }
  0x96   :  { %1433 = vmatmul.msk.bf16.gmra.mxu1 %vm436_vm0, %v1211_v52 }
  0x97   :  { %1450 = vmatmul.msk.bf16.gmra.mxu3 %vm436_vm0, %v1347_v57 }
  0x9a   :  { %v1832_v0 = vpop.f32.mrf.mxu3 }
  0x9b   :  { %v718_v60 = vpop.f32.mrf.mxu1 }
  0x9e   :  { %v542_v1 = vpop.f32.mrf.mxu0 }
  0x9f   :  { %v712_v3 = vadd.f32 %v711_v38, %v542_v1  ;;  %v1343_v1 = vor.u32 %v1509_v56, %v1342_v55 }
  0xa1   :  { %v871_v6 = vmul.f32 0.1, %v712_v3  ;;  %581 = vmatmul.bf16.gmra.mxu0 %v1199_v63 }
  0xa2   :  { %661 = vmatmul.bf16.gmra.mxu2 %v1327_v2  ;;  %v1844_v12 = vpop.f32.mrf.mxu3 }
  0xa3   :  { %v935_v8 = vmax.f32 %v712_v3, %v871_v6  ;;  %v1840_v9 = vpop.f32.mrf.mxu1  ;;  %v1480_v3 = vld [vmem:[%s2337_s0 + $0xc4] sm:$0xf] }
  0xa5   :  { %v999_v10 = vpack.c.bf16 %v935_v8, %v935_v8  ;;  %v1842_v11 = vpop.f32.mrf.mxu2 }
  0xa6   :  { %1434 = vmatmul.msk.bf16.gmra.mxu1 %vm436_vm0, %v1219_v7  ;;  %v544_v13 = vpop.f32.mrf.mxu0  ;;  %v1235_v7 = vor.u32 %v1480_v3, %v1232_v4  ;;  %v1358_v4 = vld [vmem:[%s2337_s0 + $0x1c0] sm:$0xf] }
  0xa7   :  { %1064 = vst.msk [vmem:[%s2338_s2] sm:$0xf] %vm1063_vm1, %v999_v10  ;;  %v714_v14 = vadd.f32 %v713_v44, %v544_v13  ;;  %1451 = vmatmul.msk.bf16.gmra.mxu3 %vm436_vm0, %v1355_v17  ;;  %v1512_v44 = vld [vmem:[%s2337_s0 + $0x1c4] sm:$0xf] }
  0xa8   :  { %v1363_v47 = vor.u32 %v1512_v44, %v1360_v45  ;;  %v1240_v44 = vld [vmem:[%s2337_s0 + $0xd8] sm:$0xf0] }
  0xa9   :  { %v872_v18 = vmul.f32 0.1, %v714_v14 }
  0xaa   :  { %v1874_v28 = vpop.f32.mrf.mxu3 }
  0xab   :  { %v936_v21 = vmax.f32 %v714_v14, %v872_v18  ;;  %v1864_v22 = vpop.f32.mrf.mxu1 }
  0xad   :  { %v1000_v25 = vpack.c.bf16 %v936_v21, %v936_v21  ;;  %v1872_v26 = vpop.f32.mrf.mxu2 }
  0xae   :  { %v547_v29 = vpop.f32.mrf.mxu0 }
  0xaf   :  { %1065 = vst.msk [vmem:[%s2338_s2 + $0x4] sm:$0xf] %vm1063_vm1, %v1000_v25  ;;  %v717_v31 = vadd.f32 %v716_v53, %v547_v29  ;;  %v1222_v25 = vld [vmem:[%s2337_s0 + $0xb0] sm:$0xf] }
  0xb1   :  { %v873_v34 = vmul.f32 0.1, %v717_v31  ;;  %586 = vmatmul.bf16.gmra.mxu0 %v1207_v27 }
  0xb2   :  { %666 = vmatmul.bf16.gmra.mxu2 %v1335_v30  ;;  %v1888_v40 = vpop.f32.mrf.mxu3  ;;  %v1350_v30 = vld [vmem:[%s2337_s0 + $0x1b0] sm:$0xf] }
  0xb3   :  { %v937_v36 = vmax.f32 %v717_v31, %v873_v34  ;;  %v1886_v37 = vpop.f32.mrf.mxu1  ;;  %v1511_v31 = vld [vmem:[%s2337_s0 + $0x1b4] sm:$0xf0] }
  0xb5   :  { %v1001_v38 = vpack.c.bf16 %v937_v36, %v937_v36  ;;  %v627_v39 = vpop.f32.mrf.mxu2 }
  0xb6   :  { %v797_v41 = vadd.f32 %v1802_v48, %v627_v39  ;;  %1435 = vmatmul.msk.bf16.gmra.mxu1 %vm436_vm0, %v1227_v35  ;;  %v549_v42 = vpop.f32.mrf.mxu0 }
  0xb7   :  { %1066 = vst.msk [vmem:[%s2338_s2 + $0x8] sm:$0xf] %vm1063_vm1, %v1001_v38  ;;  %v719_v43 = vadd.f32 %v718_v60, %v549_v42  ;;  %1452 = vmatmul.msk.bf16.gmra.mxu3 %vm436_vm0, %v1363_v47  ;;  %v1215_v60 = vor.u32 %v1477_v51, %v1214_v50 }
  0xb8   :  { %v905_v46 = vmul.f32 0.1, %v797_v41 }
  0xb9   :  { %v874_v48 = vmul.f32 0.1, %v719_v43 }
  0xba   :  { %v969_v49 = vmax.f32 %v797_v41, %v905_v46  ;;  %v1917_v61 = vpop.f32.mrf.mxu3  ;;  %v1351_v41 = vor.u32 %v1511_v31, %v1350_v30 }
  0xbb   :  { %v938_v52 = vmax.f32 %v719_v43, %v874_v48  ;;  %v1909_v53 = vpop.f32.mrf.mxu1  ;;  %v1482_v43 = vld [vmem:[%s2337_s0 + $0xd4] sm:$0xf] }
  0xbc   :  { %v1033_v57 = vpack.c.bf16 %v969_v49, %v969_v49  ;;  %v1243_v47 = vor.u32 %v1482_v43, %v1240_v44  ;;  %v1366_v44 = vld [vmem:[%s2337_s0 + $0x1d0] sm:$0xf] }
  0xbd   :  { %v1002_v58 = vpack.c.bf16 %v938_v52, %v938_v52  ;;  %v629_v59 = vpop.f32.mrf.mxu2 }
  0xbe   :  { %1098 = vst.msk [vmem:[%s2338_s2 + $0x88] sm:$0xf] %vm1063_vm1, %v1033_v57  ;;  %v799_v62 = vadd.f32 %v1810_v54, %v629_v59  ;;  %v552_v63 = vpop.f32.mrf.mxu0  ;;  %v1376_v59 = vld [vmem:[%s2337_s0 + $0x1e8] sm:$0xf0] }
  0xbf   :  { %1067 = vst.msk [vmem:[%s2338_s2 + $0xc] sm:$0xf] %vm1063_vm1, %v1002_v58  ;;  %v722_v2 = vadd.f32 %v1840_v9, %v552_v63  ;;  %v1516_v58 = vld [vmem:[%s2337_s0 + $0x1e4] sm:$0xf] }
  0xc0   :  { %v906_v5 = vmul.f32 0.1, %v799_v62 }
  0xc1   :  { %v875_v6 = vmul.f32 0.1, %v722_v2  ;;  %591 = vmatmul.bf16.gmra.mxu0 %v1215_v60 }
  0xc2   :  { %v970_v54 = vmax.f32 %v799_v62, %v906_v5  ;;  %671 = vmatmul.bf16.gmra.mxu2 %v1343_v1  ;;  %v1937_v15 = vpop.f32.mrf.mxu3  ;;  %v1230_v1 = vld [vmem:[%s2337_s0 + $0xc0] sm:$0xf]  ;;  %v1513_v5 = vld [vmem:[%s2337_s0 + $0x1c4] sm:$0xf0] }
  0xc3   :  { %v939_v8 = vmax.f32 %v722_v2, %v875_v6  ;;  %v1935_v10 = vpop.f32.mrf.mxu1 }
  0xc4   :  { %v1034_v13 = vpack.c.bf16 %v970_v54, %v970_v54 }
  0xc5   :  { %v1003_v14 = vpack.c.bf16 %v939_v8, %v939_v8  ;;  %v632_v9 = vpop.f32.mrf.mxu2 }
  0xc6   :  { %1099 = vst.msk [vmem:[%s2338_s2 + $0x8c] sm:$0xf] %vm1063_vm1, %v1034_v13  ;;  %v802_v16 = vadd.f32 %v1832_v0, %v632_v9  ;;  %1436 = vmatmul.msk.bf16.gmra.mxu1 %vm436_vm0, %v1235_v7  ;;  %v554_v17 = vpop.f32.mrf.mxu0  ;;  %v1371_v0 = vor.u32 %v1514_v19, %v1368_v20  ;;  %v1359_v9 = vor.u32 %v1513_v5, %v1358_v4 }
  0xc7   :  { %1068 = vst.msk [vmem:[%s2338_s2 + $0x10] sm:$0xf] %vm1063_vm1, %v1003_v14  ;;  %v724_v18 = vadd.f32 %v1864_v22, %v554_v17  ;;  %v1479_v22 = vld [vmem:[%s2337_s0 + $0xb4] sm:$0xf0]  ;;  %v1484_v17 = vld [vmem:[%s2337_s0 + $0xe4] sm:$0xf] }
  0xc8   :  { %v907_v21 = vmul.f32 0.1, %v802_v16  ;;  %1453 = vmatmul.msk.bf16.gmra.mxu3 %vm436_vm0, %v1371_v0  ;;  %v1223_v35 = vor.u32 %v1479_v22, %v1222_v25 }
  0xc9   :  { %v876_v23 = vmul.f32 0.1, %v724_v18 }
  0xca   :  { %v971_v24 = vmax.f32 %v802_v16, %v907_v21  ;;  %v1971_v36 = vpop.f32.mrf.mxu3 }
  0xcb   :  { %v940_v27 = vmax.f32 %v724_v18, %v876_v23  ;;  %v1963_v29 = vpop.f32.mrf.mxu1  ;;  %v1248_v18 = vld [vmem:[%s2337_s0 + $0xe8] sm:$0xf0] }
  0xcc   :  { %v1035_v32 = vpack.c.bf16 %v971_v24, %v971_v24  ;;  %v1251_v0 = vor.u32 %v1484_v17, %v1248_v18 }
  0xcd   :  { %v1004_v33 = vpack.c.bf16 %v940_v27, %v940_v27  ;;  %v634_v34 = vpop.f32.mrf.mxu2 }
  0xce   :  { %1100 = vst.msk [vmem:[%s2338_s2 + $0x90] sm:$0xf] %vm1063_vm1, %v1035_v32  ;;  %v804_v38 = vadd.f32 %v1844_v12, %v634_v34  ;;  %v557_v39 = vpop.f32.mrf.mxu0  ;;  %v1518_v32 = vld [vmem:[%s2337_s0 + $0x1f4] sm:$0xf] }
  0xcf   :  { %1069 = vst.msk [vmem:[%s2338_s2 + $0x14] sm:$0xf] %vm1063_vm1, %v1004_v33  ;;  %v727_v42 = vadd.f32 %v1886_v37, %v557_v39  ;;  %v1384_v33 = vld [vmem:[%s2337_s0 + $0x1f8] sm:$0xf0] }
  0xd0   :  { %v908_v45 = vmul.f32 0.1, %v804_v38 }
  0xd1   :  { %v877_v46 = vmul.f32 0.1, %v727_v42  ;;  %596 = vmatmul.bf16.gmra.mxu0 %v1223_v35 }
  0xd2   :  { %v972_v12 = vmax.f32 %v804_v38, %v908_v45  ;;  %676 = vmatmul.bf16.gmra.mxu2 %v1351_v41  ;;  %v1991_v52 = vpop.f32.mrf.mxu3  ;;  %v1238_v41 = vld [vmem:[%s2337_s0 + $0xd0] sm:$0xf]  ;;  %v1515_v45 = vld [vmem:[%s2337_s0 + $0x1d4] sm:$0xf0] }
  0xd3   :  { %v941_v48 = vmax.f32 %v727_v42, %v877_v46  ;;  %v1989_v49 = vpop.f32.mrf.mxu1 }
  0xd4   :  { %v1036_v50 = vpack.c.bf16 %v972_v12, %v972_v12 }
  0xd5   :  { %v1005_v51 = vpack.c.bf16 %v941_v48, %v941_v48  ;;  %v637_v37 = vpop.f32.mrf.mxu2 }
  0xd6   :  { %1101 = vst.msk [vmem:[%s2338_s2 + $0x94] sm:$0xf] %vm1063_vm1, %v1036_v50  ;;  %v807_v55 = vadd.f32 %v1874_v28, %v637_v37  ;;  %1437 = vmatmul.msk.bf16.gmra.mxu1 %vm436_vm0, %v1243_v47  ;;  %v559_v56 = vpop.f32.mrf.mxu0  ;;  %v1379_v28 = vor.u32 %v1516_v58, %v1376_v59  ;;  %v1367_v37 = vor.u32 %v1515_v45, %v1366_v44 }
  0xd7   :  { %1070 = vst.msk [vmem:[%s2338_s2 + $0x18] sm:$0xf] %vm1063_vm1, %v1005_v51  ;;  %v729_v57 = vadd.f32 %v1909_v53, %v559_v56  ;;  %v1481_v53 = vld [vmem:[%s2337_s0 + $0xc4] sm:$0xf0]  ;;  %v1486_v56 = vld [vmem:[%s2337_s0 + $0xf4] sm:$0xf] }
  0xd8   :  { %v909_v60 = vmul.f32 0.1, %v807_v55  ;;  %1454 = vmatmul.msk.bf16.gmra.mxu3 %vm436_vm0, %v1379_v28  ;;  %v1231_v8 = vor.u32 %v1481_v53, %v1230_v1 }
  0xd9   :  { %v878_v62 = vmul.f32 0.1, %v729_v57 }
  0xda   :  { %v973_v63 = vmax.f32 %v807_v55, %v909_v60  ;;  %v2041_v19 = vpop.f32.mrf.mxu3 }
  0xdb   :  { %v942_v2 = vmax.f32 %v729_v57, %v878_v62  ;;  %v2017_v3 = vpop.f32.mrf.mxu1  ;;  %v1256_v57 = vld [vmem:[%s2337_s0 + $0xf8] sm:$0xf0] }
  0xdc   :  { %v1037_v6 = vpack.c.bf16 %v973_v63, %v973_v63  ;;  %v1259_v60 = vor.u32 %v1486_v56, %v1256_v57 }
  0xdd   :  { %v1006_v54 = vpack.c.bf16 %v942_v2, %v942_v2  ;;  %v639_v7 = vpop.f32.mrf.mxu2 }
  0xde   :  { %1102 = vst.msk [vmem:[%s2338_s2 + $0x98] sm:$0xf] %vm1063_vm1, %v1037_v6  ;;  %v809_v13 = vadd.f32 %v1888_v40, %v639_v7  ;;  %v562_v14 = vpop.f32.mrf.mxu0 }
  0xdf   :  { %1071 = vst.msk [vmem:[%s2338_s2 + $0x1c] sm:$0xf] %vm1063_vm1, %v1006_v54  ;;  %v732_v16 = vadd.f32 %v1935_v10, %v562_v14 }
  0xe0   :  { %v910_v40 = vmul.f32 0.1, %v809_v13 }
  0xe1   :  { %v879_v20 = vmul.f32 0.1, %v732_v16  ;;  %601 = vmatmul.bf16.gmra.mxu0 %v1231_v8  ;;  %v1246_v8 = vld [vmem:[%s2337_s0 + $0xe0] sm:$0xf] }
  0xe2   :  { %v974_v21 = vmax.f32 %v809_v13, %v910_v40  ;;  %681 = vmatmul.bf16.gmra.mxu2 %v1359_v9  ;;  %v2062_v38 = vpop.f32.mrf.mxu3  ;;  %v1374_v9 = vld [vmem:[%s2337_s0 + $0x1e0] sm:$0xf] }
  0xe3   :  { %v943_v23 = vmax.f32 %v732_v16, %v879_v20  ;;  %v2043_v24 = vpop.f32.mrf.mxu1 }
  0xe4   :  { %v1038_v10 = vpack.c.bf16 %v974_v21, %v974_v21 }
  0xe5   :  { %v1007_v25 = vpack.c.bf16 %v943_v23, %v943_v23  ;;  %v642_v22 = vpop.f32.mrf.mxu2 }
  0xe6   :  { %1103 = vst.msk [vmem:[%s2338_s2 + $0x9c] sm:$0xf] %vm1063_vm1, %v1038_v10  ;;  %v812_v27 = vadd.f32 %v1917_v61, %v642_v22  ;;  %1438 = vmatmul.msk.bf16.gmra.mxu1 %vm436_vm0, %v1251_v0  ;;  %v564_v30 = vpop.f32.mrf.mxu0  ;;  %v1387_v61 = vor.u32 %v1518_v32, %v1384_v33  ;;  %v1264_v22 = vld [vmem:[%s2337_s0 + $0x108] sm:$0xf0] }
  0xe7   :  { %1072 = vst.msk [vmem:[%s2338_s2 + $0x20] sm:$0xf] %vm1063_vm1, %v1007_v25  ;;  %v734_v31 = vadd.f32 %v1963_v29, %v564_v30  ;;  %v1483_v29 = vld [vmem:[%s2337_s0 + $0xd4] sm:$0xf0]  ;;  %v1488_v25 = vld [vmem:[%s2337_s0 + $0x104] sm:$0xf] }
  0xe8   :  { %v911_v34 = vmul.f32 0.1, %v812_v27  ;;  %1455 = vmatmul.msk.bf16.gmra.mxu3 %vm436_vm0, %v1387_v61  ;;  %v1239_v48 = vor.u32 %v1483_v29, %v1238_v41 }
  0xe9   :  { %v880_v35 = vmul.f32 0.1, %v734_v31 }
  0xea   :  { %v975_v39 = vmax.f32 %v812_v27, %v911_v34  ;;  %v2097_v63 = vpop.f32.mrf.mxu3 }
  0xeb   :  { %v944_v42 = vmax.f32 %v734_v31, %v880_v35  ;;  %v2071_v43 = vpop.f32.mrf.mxu1  ;;  %v1267_v31 = vor.u32 %v1488_v25, %v1264_v22 }
  0xec   :  { %v1039_v46 = vpack.c.bf16 %v975_v39, %v975_v39 }
  0xed   :  { %v1008_v12 = vpack.c.bf16 %v944_v42, %v944_v42  ;;  %v644_v47 = vpop.f32.mrf.mxu2 }
  0xee   :  { %1104 = vst.msk [vmem:[%s2338_s2 + $0xa0] sm:$0xf] %vm1063_vm1, %v1039_v46  ;;  %v814_v50 = vadd.f32 %v1937_v15, %v644_v47  ;;  %v567_v51 = vpop.f32.mrf.mxu0  ;;  %v1254_v46 = vld [vmem:[%s2337_s0 + $0xf0] sm:$0xf] }
  0xef   :  { %1073 = vst.msk [vmem:[%s2338_s2 + $0x24] sm:$0xf] %vm1063_vm1, %v1008_v12  ;;  %v737_v55 = vadd.f32 %v1989_v49, %v567_v51 }
  0xf0   :  { %v912_v58 = vmul.f32 0.1, %v814_v50 }
  0xf1   :  { %v881_v59 = vmul.f32 0.1, %v737_v55  ;;  %606 = vmatmul.bf16.gmra.mxu0 %v1239_v48  ;;  %v1382_v48 = vld [vmem:[%s2337_s0 + $0x1f0] sm:$0xf] }
  0xf2   :  { %v976_v15 = vmax.f32 %v814_v50, %v912_v58  ;;  %686 = vmatmul.bf16.gmra.mxu2 %v1367_v37  ;;  %v2124_v20 = vpop.f32.mrf.mxu3 }
  0xf3   :  { %v945_v28 = vmax.f32 %v737_v55, %v881_v59  ;;  %v2095_v62 = vpop.f32.mrf.mxu1 }
  0xf4   :  { %v1040_v49 = vpack.c.bf16 %v976_v15, %v976_v15 }
  0xf5   :  { %v1009_v1 = vpack.c.bf16 %v945_v28, %v945_v28  ;;  %v647_v53 = vpop.f32.mrf.mxu2 }
  0xf6   :  { %1105 = vst.msk [vmem:[%s2338_s2 + $0xa4] sm:$0xf] %vm1063_vm1, %v1040_v49  ;;  %v817_v2 = vadd.f32 %v1971_v36, %v647_v53  ;;  %1439 = vmatmul.msk.bf16.gmra.mxu1 %vm436_vm0, %v1259_v60  ;;  %v569_v4 = vpop.f32.mrf.mxu0  ;;  %v1485_v36 = vld [vmem:[%s2337_s0 + $0xe4] sm:$0xf0] }
  0xf7   :  { %1074 = vst.msk [vmem:[%s2338_s2 + $0x28] sm:$0xf] %vm1063_vm1, %v1009_v1  ;;  %v739_v5 = vadd.f32 %v2017_v3, %v569_v4  ;;  %v1517_v3 = vld [vmem:[%s2337_s0 + $0x1e4] sm:$0xf0]  ;;  %v1247_v40 = vor.u32 %v1485_v36, %v1246_v8 }
  0xf8   :  { %v913_v6 = vmul.f32 0.1, %v817_v2  ;;  %v1375_v23 = vor.u32 %v1517_v3, %v1374_v9 }
  0xf9   :  { %v882_v54 = vmul.f32 0.1, %v739_v5 }
  0xfa   :  { %v977_v7 = vmax.f32 %v817_v2, %v913_v6  ;;  %v831_v29 = vpop.f32.mrf.mxu3 }
  0xfb   :  { %v946_v13 = vmax.f32 %v739_v5, %v882_v54  ;;  %v2116_v14 = vpop.f32.mrf.mxu1 }
  0xfc   :  { %v1041_v16 = vpack.c.bf16 %v977_v7, %v977_v7 }
  0xfd   :  { %v1010_v17 = vpack.c.bf16 %v946_v13, %v946_v13  ;;  %v649_v18 = vpop.f32.mrf.mxu2 }
  0xfe   :  { %1106 = vst.msk [vmem:[%s2338_s2 + $0xa8] sm:$0xf] %vm1063_vm1, %v1041_v16  ;;  %v819_v21 = vadd.f32 %v1991_v52, %v649_v18  ;;  %v572_v0 = vpop.f32.mrf.mxu0 }
  0xff   :  { %1075 = vst.msk [vmem:[%s2338_s2 + $0x2c] sm:$0xf] %vm1063_vm1, %v1010_v17  ;;  %v742_v10 = vadd.f32 %v2043_v24, %v572_v0 }
 0x100   :  { %v914_v27 = vmul.f32 0.1, %v819_v21 }
 0x101   :  { %v883_v30 = vmul.f32 0.1, %v742_v10  ;;  %611 = vmatmul.bf16.gmra.mxu0 %v1247_v40 }
 0x102   :  { %v978_v52 = vmax.f32 %v819_v21, %v914_v27  ;;  %691 = vmatmul.bf16.gmra.mxu2 %v1375_v23  ;;  %v833_v28 = vpop.f32.mrf.mxu3 }
 0x103   :  { %v947_v32 = vmax.f32 %v742_v10, %v883_v30  ;;  %v751_v33 = vpop.f32.mrf.mxu1 }
 0x104   :  { %v1042_v34 = vpack.c.bf16 %v978_v52, %v978_v52 }
 0x105   :  { %v1011_v61 = vpack.c.bf16 %v947_v32, %v947_v32  ;;  %v652_v35 = vpop.f32.mrf.mxu2 }
 0x106   :  { %1107 = vst.msk [vmem:[%s2338_s2 + $0xac] sm:$0xf] %vm1063_vm1, %v1042_v34  ;;  %v822_v24 = vadd.f32 %v2041_v19, %v652_v35  ;;  %1440 = vmatmul.msk.bf16.gmra.mxu1 %vm436_vm0, %v1267_v31  ;;  %v574_v39 = vpop.f32.mrf.mxu0  ;;  %v1487_v19 = vld [vmem:[%s2337_s0 + $0xf4] sm:$0xf0] }
 0x107   :  { %1076 = vst.msk [vmem:[%s2338_s2 + $0x30] sm:$0xf] %vm1063_vm1, %v1011_v61  ;;  %v744_v41 = vadd.f32 %v2071_v43, %v574_v39  ;;  %v1519_v43 = vld [vmem:[%s2337_s0 + $0x1f4] sm:$0xf0]  ;;  %v1255_v55 = vor.u32 %v1487_v19, %v1254_v46 }
 0x108   :  { %v915_v42 = vmul.f32 0.1, %v822_v24  ;;  %v1383_v58 = vor.u32 %v1519_v43, %v1382_v48 }
 0x109   :  { %v884_v44 = vmul.f32 0.1, %v744_v41 }
 0x10a   :  { %v979_v45 = vmax.f32 %v822_v24, %v915_v42  ;;  %v836_v9 = vpop.f32.mrf.mxu3 }
 0x10b   :  { %v948_v12 = vmax.f32 %v744_v41, %v884_v44  ;;  %v753_v47 = vpop.f32.mrf.mxu1 }
 0x10c   :  { %v1043_v50 = vpack.c.bf16 %v979_v45, %v979_v45 }
 0x10d   :  { %v1012_v51 = vpack.c.bf16 %v948_v12, %v948_v12  ;;  %v654_v37 = vpop.f32.mrf.mxu2 }
 0x10e   :  { %1108 = vst.msk [vmem:[%s2338_s2 + $0xb0] sm:$0xf] %vm1063_vm1, %v1043_v50  ;;  %v824_v56 = vadd.f32 %v2062_v38, %v654_v37  ;;  %v577_v57 = vpop.f32.mrf.mxu0 }
 0x10f   :  { %1077 = vst.msk [vmem:[%s2338_s2 + $0x34] sm:$0xf] %vm1063_vm1, %v1012_v51  ;;  %v747_v59 = vadd.f32 %v2095_v62, %v577_v57 }
 0x110   :  { %v916_v15 = vmul.f32 0.1, %v824_v56 }
 0x111   :  { %v885_v60 = vmul.f32 0.1, %v747_v59  ;;  %616 = vmatmul.bf16.gmra.mxu0 %v1255_v55 }
 0x112   :  { %v980_v49 = vmax.f32 %v824_v56, %v916_v15  ;;  %696 = vmatmul.bf16.gmra.mxu2 %v1383_v58  ;;  %v838_v30 = vpop.f32.mrf.mxu3 }
 0x113   :  { %v949_v1 = vmax.f32 %v747_v59, %v885_v60  ;;  %v756_v53 = vpop.f32.mrf.mxu1 }
 0x114   :  { %v1044_v2 = vpack.c.bf16 %v980_v49, %v980_v49 }
 0x115   :  { %v1013_v4 = vpack.c.bf16 %v949_v1, %v949_v1  ;;  %v657_v38 = vpop.f32.mrf.mxu2 }
 0x116   :  { %1109 = vst.msk [vmem:[%s2338_s2 + $0xb4] sm:$0xf] %vm1063_vm1, %v1044_v2  ;;  %v827_v5 = vadd.f32 %v2097_v63, %v657_v38  ;;  %v579_v6 = vpop.f32.mrf.mxu0 }
 0x117   :  { %1078 = vst.msk [vmem:[%s2338_s2 + $0x38] sm:$0xf] %vm1063_vm1, %v1013_v4  ;;  %v749_v62 = vadd.f32 %v2116_v14, %v579_v6 }
 0x118   :  { %v917_v54 = vmul.f32 0.1, %v827_v5 }
 0x119   :  { %v886_v7 = vmul.f32 0.1, %v749_v62 }
 0x11a   :  { %v981_v8 = vmax.f32 %v827_v5, %v917_v54  ;;  %v841_v45 = vpop.f32.mrf.mxu3 }
 0x11b   :  { %v950_v36 = vmax.f32 %v749_v62, %v886_v7  ;;  %v758_v13 = vpop.f32.mrf.mxu1 }
 0x11c   :  { %v1045_v3 = vpack.c.bf16 %v981_v8, %v981_v8 }
 0x11d   :  { %v1014_v16 = vpack.c.bf16 %v950_v36, %v950_v36  ;;  %v659_v17 = vpop.f32.mrf.mxu2 }
 0x11e   :  { %1110 = vst.msk [vmem:[%s2338_s2 + $0xb8] sm:$0xf] %vm1063_vm1, %v1045_v3  ;;  %v829_v63 = vadd.f32 %v2124_v20, %v659_v17  ;;  %v582_v18 = vpop.f32.mrf.mxu0 }
 0x11f   :  { %1079 = vst.msk [vmem:[%s2338_s2 + $0x3c] sm:$0xf] %vm1063_vm1, %v1014_v16  ;;  %v752_v14 = vadd.f32 %v751_v33, %v582_v18 }
 0x120   :  { %v918_v40 = vmul.f32 0.1, %v829_v63 }
 0x121   :  { %v887_v21 = vmul.f32 0.1, %v752_v14 }
 0x122   :  { %v982_v0 = vmax.f32 %v829_v63, %v918_v40  ;;  %v843_v59 = vpop.f32.mrf.mxu3 }
 0x123   :  { %v951_v23 = vmax.f32 %v752_v14, %v887_v21  ;;  %v761_v10 = vpop.f32.mrf.mxu1 }
 0x124   :  { %v1046_v25 = vpack.c.bf16 %v982_v0, %v982_v0 }
 0x125   :  { %v1015_v22 = vpack.c.bf16 %v951_v23, %v951_v23  ;;  %v662_v27 = vpop.f32.mrf.mxu2 }
 0x126   :  { %1111 = vst.msk [vmem:[%s2338_s2 + $0xbc] sm:$0xf] %vm1063_vm1, %v1046_v25  ;;  %v832_v20 = vadd.f32 %v831_v29, %v662_v27  ;;  %v584_v52 = vpop.f32.mrf.mxu0 }
 0x127   :  { %1080 = vst.msk [vmem:[%s2338_s2 + $0x40] sm:$0xf] %vm1063_vm1, %v1015_v22  ;;  %v754_v31 = vadd.f32 %v753_v47, %v584_v52 }
 0x128   :  { %v919_v32 = vmul.f32 0.1, %v832_v20 }
 0x129   :  { %v888_v33 = vmul.f32 0.1, %v754_v31 }
 0x12a   :  { %v983_v34 = vmax.f32 %v832_v20, %v919_v32  ;;  %v846_v8 = vpop.f32.mrf.mxu3 }
 0x12b   :  { %v952_v61 = vmax.f32 %v754_v31, %v888_v33  ;;  %v763_v35 = vpop.f32.mrf.mxu1 }
 0x12c   :  { %v1047_v24 = vpack.c.bf16 %v983_v34, %v983_v34 }
 0x12d   :  { %v1016_v39 = vpack.c.bf16 %v952_v61, %v952_v61  ;;  %v664_v41 = vpop.f32.mrf.mxu2 }
 0x12e   :  { %1112 = vst.msk [vmem:[%s2338_s2 + $0xc0] sm:$0xf] %vm1063_vm1, %v1047_v24  ;;  %v834_v29 = vadd.f32 %v833_v28, %v664_v41  ;;  %v587_v42 = vpop.f32.mrf.mxu0 }
 0x12f   :  { %1081 = vst.msk [vmem:[%s2338_s2 + $0x44] sm:$0xf] %vm1063_vm1, %v1016_v39  ;;  %v757_v44 = vadd.f32 %v756_v53, %v587_v42 }
 0x130   :  { %v920_v46 = vmul.f32 0.1, %v834_v29 }
 0x131   :  { %v889_v19 = vmul.f32 0.1, %v757_v44 }
 0x132   :  { %v984_v12 = vmax.f32 %v834_v29, %v920_v46  ;;  %v848_v25 = vpop.f32.mrf.mxu3 }
 0x133   :  { %v953_v47 = vmax.f32 %v757_v44, %v889_v19  ;;  %v766_v48 = vpop.f32.mrf.mxu1 }
 0x134   :  { %v1048_v43 = vpack.c.bf16 %v984_v12, %v984_v12 }
 0x135   :  { %v1017_v50 = vpack.c.bf16 %v953_v47, %v953_v47  ;;  %v667_v51 = vpop.f32.mrf.mxu2 }
 0x136   :  { %1113 = vst.msk [vmem:[%s2338_s2 + $0xc4] sm:$0xf] %vm1063_vm1, %v1048_v43  ;;  %v837_v37 = vadd.f32 %v836_v9, %v667_v51  ;;  %v589_v55 = vpop.f32.mrf.mxu0 }
 0x137   :  { %1082 = vst.msk [vmem:[%s2338_s2 + $0x48] sm:$0xf] %vm1063_vm1, %v1017_v50  ;;  %v759_v56 = vadd.f32 %v758_v13, %v589_v55 }
 0x138   :  { %v921_v57 = vmul.f32 0.1, %v837_v37 }
 0x139   :  { %v890_v58 = vmul.f32 0.1, %v759_v56 }
 0x13a   :  { %v985_v15 = vmax.f32 %v837_v37, %v921_v57  ;;  %v851_v29 = vpop.f32.mrf.mxu3 }
 0x13b   :  { %v954_v60 = vmax.f32 %v759_v56, %v890_v58  ;;  %v768_v28 = vpop.f32.mrf.mxu1 }
 0x13c   :  { %v1049_v49 = vpack.c.bf16 %v985_v15, %v985_v15 }
 0x13d   :  { %v1018_v1 = vpack.c.bf16 %v954_v60, %v954_v60  ;;  %v669_v53 = vpop.f32.mrf.mxu2 }
 0x13e   :  { %1114 = vst.msk [vmem:[%s2338_s2 + $0xc8] sm:$0xf] %vm1063_vm1, %v1049_v49  ;;  %v839_v2 = vadd.f32 %v838_v30, %v669_v53  ;;  %v592_v4 = vpop.f32.mrf.mxu0 }
 0x13f   :  { %1083 = vst.msk [vmem:[%s2338_s2 + $0x4c] sm:$0xf] %vm1063_vm1, %v1018_v1  ;;  %v762_v38 = vadd.f32 %v761_v10, %v592_v4 }
 0x140   :  { %v922_v5 = vmul.f32 0.1, %v839_v2 }
 0x141   :  { %v891_v6 = vmul.f32 0.1, %v762_v38 }
 0x142   :  { %v986_v62 = vmax.f32 %v839_v2, %v922_v5  ;;  %v853_v56 = vpop.f32.mrf.mxu3 }
 0x143   :  { %v955_v54 = vmax.f32 %v762_v38, %v891_v6  ;;  %v771_v7 = vpop.f32.mrf.mxu1 }
 0x144   :  { %v1050_v36 = vpack.c.bf16 %v986_v62, %v986_v62 }
 0x145   :  { %v1019_v13 = vpack.c.bf16 %v955_v54, %v955_v54  ;;  %v672_v9 = vpop.f32.mrf.mxu2 }
 0x146   :  { %1115 = vst.msk [vmem:[%s2338_s2 + $0xcc] sm:$0xf] %vm1063_vm1, %v1050_v36  ;;  %v842_v3 = vadd.f32 %v841_v45, %v672_v9  ;;  %v594_v16 = vpop.f32.mrf.mxu0 }
 0x147   :  { %1084 = vst.msk [vmem:[%s2338_s2 + $0x50] sm:$0xf] %vm1063_vm1, %v1019_v13  ;;  %v764_v17 = vadd.f32 %v763_v35, %v594_v16 }
 0x148   :  { %v923_v63 = vmul.f32 0.1, %v842_v3 }
 0x149   :  { %v892_v18 = vmul.f32 0.1, %v764_v17 }
 0x14a   :  { %v987_v14 = vmax.f32 %v842_v3, %v923_v63 }
 0x14b   :  { %v956_v40 = vmax.f32 %v764_v17, %v892_v18  ;;  %v773_v21 = vpop.f32.mrf.mxu1  ;;  %v856_v62 = vpop.f32.mrf.mxu3 }
 0x14c   :  { %v1051_v0 = vpack.c.bf16 %v987_v14, %v987_v14 }
 0x14d   :  { %v1020_v23 = vpack.c.bf16 %v956_v40, %v956_v40  ;;  %v674_v10 = vpop.f32.mrf.mxu2 }
 0x14e   :  { %1116 = vst.msk [vmem:[%s2338_s2 + $0xd0] sm:$0xf] %vm1063_vm1, %v1051_v0  ;;  %v844_v22 = vadd.f32 %v843_v59, %v674_v10  ;;  %v597_v27 = vpop.f32.mrf.mxu0 }
 0x14f   :  { %1085 = vst.msk [vmem:[%s2338_s2 + $0x54] sm:$0xf] %vm1063_vm1, %v1020_v23  ;;  %v767_v30 = vadd.f32 %v766_v48, %v597_v27 }
 0x150   :  { %v924_v20 = vmul.f32 0.1, %v844_v22 }
 0x151   :  { %v893_v52 = vmul.f32 0.1, %v767_v30 }
 0x152   :  { %v988_v31 = vmax.f32 %v844_v22, %v924_v20 }
 0x153   :  { %v957_v32 = vmax.f32 %v767_v30, %v893_v52  ;;  %v776_v33 = vpop.f32.mrf.mxu1  ;;  %v858_v0 = vpop.f32.mrf.mxu3 }
 0x154   :  { %v1052_v34 = vpack.c.bf16 %v988_v31, %v988_v31 }
 0x155   :  { %v1021_v61 = vpack.c.bf16 %v957_v32, %v957_v32  ;;  %v677_v35 = vpop.f32.mrf.mxu2 }
 0x156   :  { %1117 = vst.msk [vmem:[%s2338_s2 + $0xd4] sm:$0xf] %vm1063_vm1, %v1052_v34  ;;  %v847_v24 = vadd.f32 %v846_v8, %v677_v35  ;;  %v599_v39 = vpop.f32.mrf.mxu0 }
 0x157   :  { %1086 = vst.msk [vmem:[%s2338_s2 + $0x58] sm:$0xf] %vm1063_vm1, %v1021_v61  ;;  %v769_v41 = vadd.f32 %v768_v28, %v599_v39 }
 0x158   :  { %v925_v42 = vmul.f32 0.1, %v847_v24 }
 0x159   :  { %v894_v44 = vmul.f32 0.1, %v769_v41 }
 0x15a   :  { %v989_v45 = vmax.f32 %v847_v24, %v925_v42 }
 0x15b   :  { %v958_v46 = vmax.f32 %v769_v41, %v894_v44  ;;  %v778_v19 = vpop.f32.mrf.mxu1  ;;  %v861_v35 = vpop.f32.mrf.mxu3 }
 0x15c   :  { %v1053_v12 = vpack.c.bf16 %v989_v45, %v989_v45 }
 0x15d   :  { %v1022_v47 = vpack.c.bf16 %v958_v46, %v958_v46  ;;  %v679_v48 = vpop.f32.mrf.mxu2 }
 0x15e   :  { %1118 = vst.msk [vmem:[%s2338_s2 + $0xd8] sm:$0xf] %vm1063_vm1, %v1053_v12  ;;  %v849_v43 = vadd.f32 %v848_v25, %v679_v48  ;;  %v602_v50 = vpop.f32.mrf.mxu0 }
 0x15f   :  { %1087 = vst.msk [vmem:[%s2338_s2 + $0x5c] sm:$0xf] %vm1063_vm1, %v1022_v47  ;;  %v772_v51 = vadd.f32 %v771_v7, %v602_v50 }
 0x160   :  { %v926_v37 = vmul.f32 0.1, %v849_v43 }
 0x161   :  { %v895_v55 = vmul.f32 0.1, %v772_v51 }
 0x162   :  { %v990_v57 = vmax.f32 %v849_v43, %v926_v37 }
 0x163   :  { %v959_v58 = vmax.f32 %v772_v51, %v895_v55  ;;  %v781_v59 = vpop.f32.mrf.mxu1  ;;  %v863_v55 = vpop.f32.mrf.mxu3 }
 0x164   :  { %v1054_v15 = vpack.c.bf16 %v990_v57, %v990_v57 }
 0x165   :  { %v1023_v60 = vpack.c.bf16 %v959_v58, %v959_v58  ;;  %v682_v28 = vpop.f32.mrf.mxu2 }
 0x166   :  { %1119 = vst.msk [vmem:[%s2338_s2 + $0xdc] sm:$0xf] %vm1063_vm1, %v1054_v15  ;;  %v852_v49 = vadd.f32 %v851_v29, %v682_v28  ;;  %v604_v1 = vpop.f32.mrf.mxu0 }
 0x167   :  { %1088 = vst.msk [vmem:[%s2338_s2 + $0x60] sm:$0xf] %vm1063_vm1, %v1023_v60  ;;  %v774_v53 = vadd.f32 %v773_v21, %v604_v1 }
 0x168   :  { %v927_v2 = vmul.f32 0.1, %v852_v49 }
 0x169   :  { %v896_v4 = vmul.f32 0.1, %v774_v53 }
 0x16a   :  { %v991_v38 = vmax.f32 %v852_v49, %v927_v2 }
 0x16b   :  { %v960_v5 = vmax.f32 %v774_v53, %v896_v4  ;;  %v783_v6 = vpop.f32.mrf.mxu1 }
 0x16c   :  { %v1055_v54 = vpack.c.bf16 %v991_v38, %v991_v38 }
 0x16d   :  { %v1024_v7 = vpack.c.bf16 %v960_v5, %v960_v5  ;;  %v684_v8 = vpop.f32.mrf.mxu2 }
 0x16e   :  { %1120 = vst.msk [vmem:[%s2338_s2 + $0xe0] sm:$0xf] %vm1063_vm1, %v1055_v54  ;;  %v854_v36 = vadd.f32 %v853_v56, %v684_v8  ;;  %v607_v13 = vpop.f32.mrf.mxu0  ;;  %v866_v54 = vpop.f32.mrf.mxu3 }
 0x16f   :  { %1089 = vst.msk [vmem:[%s2338_s2 + $0x64] sm:$0xf] %vm1063_vm1, %v1024_v7  ;;  %v777_v9 = vadd.f32 %v776_v33, %v607_v13 }
 0x170   :  { %v928_v3 = vmul.f32 0.1, %v854_v36 }
 0x171   :  { %v897_v16 = vmul.f32 0.1, %v777_v9 }
 0x172   :  { %v992_v17 = vmax.f32 %v854_v36, %v928_v3 }
 0x173   :  { %v961_v63 = vmax.f32 %v777_v9, %v897_v16  ;;  %v786_v18 = vpop.f32.mrf.mxu1 }
 0x174   :  { %v1056_v14 = vpack.c.bf16 %v992_v17, %v992_v17 }
 0x175   :  { %v1025_v40 = vpack.c.bf16 %v961_v63, %v961_v63  ;;  %v687_v21 = vpop.f32.mrf.mxu2 }
 0x176   :  { %1121 = vst.msk [vmem:[%s2338_s2 + $0xe4] sm:$0xf] %vm1063_vm1, %v1056_v14  ;;  %v857_v23 = vadd.f32 %v856_v62, %v687_v21  ;;  %v609_v10 = vpop.f32.mrf.mxu0  ;;  %v868_v21 = vpop.f32.mrf.mxu3 }
 0x177   :  { %1090 = vst.msk [vmem:[%s2338_s2 + $0x68] sm:$0xf] %vm1063_vm1, %v1025_v40  ;;  %v779_v25 = vadd.f32 %v778_v19, %v609_v10 }
 0x178   :  { %v929_v22 = vmul.f32 0.1, %v857_v23 }
 0x179   :  { %v898_v27 = vmul.f32 0.1, %v779_v25 }
 0x17a   :  { %v993_v30 = vmax.f32 %v857_v23, %v929_v22 }
 0x17b   :  { %v962_v20 = vmax.f32 %v779_v25, %v898_v27  ;;  %v788_v52 = vpop.f32.mrf.mxu1 }
 0x17c   :  { %v1057_v31 = vpack.c.bf16 %v993_v30, %v993_v30 }
 0x17d   :  { %v1026_v32 = vpack.c.bf16 %v962_v20, %v962_v20  ;;  %v689_v33 = vpop.f32.mrf.mxu2 }
 0x17e   :  { %1122 = vst.msk [vmem:[%s2338_s2 + $0xe8] sm:$0xf] %vm1063_vm1, %v1057_v31  ;;  %v859_v34 = vadd.f32 %v858_v0, %v689_v33  ;;  %v612_v61 = vpop.f32.mrf.mxu0 }
 0x17f   :  { %1091 = vst.msk [vmem:[%s2338_s2 + $0x6c] sm:$0xf] %vm1063_vm1, %v1026_v32  ;;  %v782_v24 = vadd.f32 %v781_v59, %v612_v61 }
 0x180   :  { %v930_v39 = vmul.f32 0.1, %v859_v34 }
 0x181   :  { %v899_v41 = vmul.f32 0.1, %v782_v24 }
 0x182   :  { %v994_v29 = vmax.f32 %v859_v34, %v930_v39 }
 0x183   :  { %v963_v42 = vmax.f32 %v782_v24, %v899_v41  ;;  %v791_v44 = vpop.f32.mrf.mxu1 }
 0x184   :  { %v1058_v45 = vpack.c.bf16 %v994_v29, %v994_v29  ;;  %v792_v46 = vadd.f32 %v791_v44, %v1842_v11 }
 0x185   :  { %v1027_v19 = vpack.c.bf16 %v963_v42, %v963_v42  ;;  %v692_v12 = vpop.f32.mrf.mxu2 }
 0x186   :  { %1123 = vst.msk [vmem:[%s2338_s2 + $0xec] sm:$0xf] %vm1063_vm1, %v1058_v45  ;;  %v903_v47 = vmul.f32 0.1, %v792_v46  ;;  %v862_v48 = vadd.f32 %v861_v35, %v692_v12  ;;  %v614_v43 = vpop.f32.mrf.mxu0 }
 0x187   :  { %1092 = vst.msk [vmem:[%s2338_s2 + $0x70] sm:$0xf] %vm1063_vm1, %v1027_v19  ;;  %v784_v50 = vadd.f32 %v783_v6, %v614_v43 }
 0x188   :  { %v967_v51 = vmax.f32 %v792_v46, %v903_v47  ;;  %v931_v37 = vmul.f32 0.1, %v862_v48 }
 0x189   :  { %v900_v11 = vmul.f32 0.1, %v784_v50 }
 0x18a   :  { %v1031_v56 = vpack.c.bf16 %v967_v51, %v967_v51  ;;  %v995_v57 = vmax.f32 %v862_v48, %v931_v37 }
 0x18b   :  { %v964_v58 = vmax.f32 %v784_v50, %v900_v11  ;;  %v793_v59 = vpop.f32.mrf.mxu1 }
 0x18c   :  { %1096 = vst.msk [vmem:[%s2338_s2 + $0x80] sm:$0xf] %vm1063_vm1, %v1031_v56  ;;  %v1059_v15 = vpack.c.bf16 %v995_v57, %v995_v57  ;;  %v794_v60 = vadd.f32 %v793_v59, %v1872_v26 }
 0x18d   :  { %v1028_v28 = vpack.c.bf16 %v964_v58, %v964_v58  ;;  %v694_v49 = vpop.f32.mrf.mxu2 }
 0x18e   :  { %1124 = vst.msk [vmem:[%s2338_s2 + $0xf0] sm:$0xf] %vm1063_vm1, %v1059_v15  ;;  %v904_v1 = vmul.f32 0.1, %v794_v60  ;;  %v864_v53 = vadd.f32 %v863_v55, %v694_v49  ;;  %v617_v2 = vpop.f32.mrf.mxu0 }
 0x18f   :  { %1093 = vst.msk [vmem:[%s2338_s2 + $0x74] sm:$0xf] %vm1063_vm1, %v1028_v28  ;;  %v787_v4 = vadd.f32 %v786_v18, %v617_v2 }
 0x190   :  { %v968_v38 = vmax.f32 %v794_v60, %v904_v1  ;;  %v932_v5 = vmul.f32 0.1, %v864_v53 }
 0x191   :  { %v901_v6 = vmul.f32 0.1, %v787_v4 }
 0x192   :  { %v1032_v26 = vpack.c.bf16 %v968_v38, %v968_v38  ;;  %v996_v62 = vmax.f32 %v864_v53, %v932_v5 }
 0x193   :  { %v965_v7 = vmax.f32 %v787_v4, %v901_v6 }
 0x194   :  { %1097 = vst.msk [vmem:[%s2338_s2 + $0x84] sm:$0xf] %vm1063_vm1, %v1032_v26  ;;  %v1060_v8 = vpack.c.bf16 %v996_v62, %v996_v62 }
 0x195   :  { %v1029_v36 = vpack.c.bf16 %v965_v7, %v965_v7  ;;  %v697_v13 = vpop.f32.mrf.mxu2 }
 0x196   :  { %1125 = vst.msk [vmem:[%s2338_s2 + $0xf4] sm:$0xf] %vm1063_vm1, %v1060_v8  ;;  %v867_v9 = vadd.f32 %v866_v54, %v697_v13  ;;  %v619_v3 = vpop.f32.mrf.mxu0 }
 0x197   :  { %1094 = vst.msk [vmem:[%s2338_s2 + $0x78] sm:$0xf] %vm1063_vm1, %v1029_v36  ;;  %v789_v16 = vadd.f32 %v788_v52, %v619_v3 }
 0x198   :  { %v933_v17 = vmul.f32 0.1, %v867_v9 }
 0x199   :  { %v902_v63 = vmul.f32 0.1, %v789_v16 }
 0x19a   :  { %v997_v18 = vmax.f32 %v867_v9, %v933_v17 }
 0x19b   :  { %v966_v14 = vmax.f32 %v789_v16, %v902_v63 }
 0x19c   :  { %v1061_v40 = vpack.c.bf16 %v997_v18, %v997_v18 }
 0x19d   :  { %v1030_v0 = vpack.c.bf16 %v966_v14, %v966_v14  ;;  %v699_v23 = vpop.f32.mrf.mxu2 }
 0x19e   :  { %1126 = vst.msk [vmem:[%s2338_s2 + $0xf8] sm:$0xf] %vm1063_vm1, %v1061_v40  ;;  %v869_v10 = vadd.f32 %v868_v21, %v699_v23 }
 0x19f   :  { %1095 = vst.msk [vmem:[%s2338_s2 + $0x7c] sm:$0xf] %vm1063_vm1, %v1030_v0 }
 0x1a0   :  { %v934_v25 = vmul.f32 0.1, %v869_v10 }
 0x1a2   :  { %v998_v22 = vmax.f32 %v869_v10, %v934_v25 }
 0x1a4   :  { %v1062_v27 = vpack.c.bf16 %v998_v22, %v998_v22 }
 0x1a6   :  { %1127 = vst.msk [vmem:[%s2338_s2 + $0xfc] sm:$0xf] %vm1063_vm1, %v1062_v27 }

// kernel: net_forward.237
= control target key start
LH: loop header
LB: loop body
LE: loop exit
PB: predicated region body
PF: predicated region fallthrough
CT: control target
= control target key end

     0   :  { %vm275_vm0 = vcmask 523264   ;;  %vm541_vm1 = vcmask 31744   ;;  %s1320_s1 = inlined_call_operand.vmem [shape: bf16[64,4], index: 1, kind: input, shape index: {}]   ;;  %s1321_s2 = inlined_call_operand.vmem [shape: f32[1,4], index: 2, kind: input, shape index: {}]   ;;  %s1322_s0 = inlined_call_operand.vmem [shape: bf16[512,64], index: 0, kind: input, shape index: {}]   ;;  %s1323_s3 = inlined_call_operand.vmem [shape: f32[512,4], index: 3, kind: output, shape index: {}]  }
   0x1   :  { %v821_v0 = vld [vmem:[%s1320_s1 + $0x18] sm:$0xff]  ;;  %v820_v1 = vld [vmem:[%s1320_s1 + $0x10] sm:$0xff]  ;;  %v819_v2 = vld [vmem:[%s1320_s1 + $0x8] sm:$0xff] }
   0x2   :  { %376 = vmatpush.bf16.msra.mxu0 %v821_v0  ;;  %822 = vmatpush.bf16.msra.mxu1 %v821_v0  ;;  %v818_v3 = vld [vmem:[%s1320_s1] sm:$0xff]  ;;  %v787_v8 = vld [vmem:[%s1322_s0 + $0x8] sm:$0xff]  ;;  %v788_v12 = vld [vmem:[%s1322_s0 + $0x10] sm:$0xff] }
   0x3   :  { %823 = vmatpush.bf16.msra.mxu2 %v821_v0  ;;  %824 = vmatpush.bf16.msra.mxu3 %v821_v0  ;;  %v786_v4 = vld [vmem:[%s1322_s0] sm:$0xff]  ;;  %v795_v9 = vld [vmem:[%s1322_s0 + $0x48] sm:$0xff]  ;;  %v796_v13 = vld [vmem:[%s1322_s0 + $0x50] sm:$0xff] }
   0x4   :  { %v794_v5 = vld [vmem:[%s1322_s0 + $0x40] sm:$0xff]  ;;  %v803_v10 = vld [vmem:[%s1322_s0 + $0x88] sm:$0xff]  ;;  %v804_v14 = vld [vmem:[%s1322_s0 + $0x90] sm:$0xff] }
   0x5   :  { %v802_v6 = vld [vmem:[%s1322_s0 + $0x80] sm:$0xff]  ;;  %v811_v11 = vld [vmem:[%s1322_s0 + $0xc8] sm:$0xff]  ;;  %v812_v15 = vld [vmem:[%s1322_s0 + $0xd0] sm:$0xff] }
   0x6   :  { %377 = vmatpush.bf16.msra.mxu0 %v820_v1  ;;  %825 = vmatpush.bf16.msra.mxu1 %v820_v1  ;;  %v810_v7 = vld [vmem:[%s1322_s0 + $0xc0] sm:$0xff]  ;;  %v789_v16 = vld [vmem:[%s1322_s0 + $0x18] sm:$0xff]  ;;  %v791_v24 = vld [vmem:[%s1322_s0 + $0x28] sm:$0xff] }
   0x7   :  { %826 = vmatpush.bf16.msra.mxu2 %v820_v1  ;;  %827 = vmatpush.bf16.msra.mxu3 %v820_v1  ;;  %v797_v17 = vld [vmem:[%s1322_s0 + $0x58] sm:$0xff]  ;;  %v790_v20 = vld [vmem:[%s1322_s0 + $0x20] sm:$0xff]  ;;  %v799_v25 = vld [vmem:[%s1322_s0 + $0x68] sm:$0xff] }
   0x8   :  { %v805_v18 = vld [vmem:[%s1322_s0 + $0x98] sm:$0xff]  ;;  %v798_v21 = vld [vmem:[%s1322_s0 + $0x60] sm:$0xff]  ;;  %v807_v26 = vld [vmem:[%s1322_s0 + $0xa8] sm:$0xff] }
   0x9   :  { %v813_v19 = vld [vmem:[%s1322_s0 + $0xd8] sm:$0xff]  ;;  %v806_v22 = vld [vmem:[%s1322_s0 + $0xa0] sm:$0xff]  ;;  %v815_v27 = vld [vmem:[%s1322_s0 + $0xe8] sm:$0xff] }
   0xa   :  { %378 = vmatpush.bf16.msra.mxu0 %v819_v2  ;;  %828 = vmatpush.bf16.msra.mxu1 %v819_v2  ;;  %v814_v23 = vld [vmem:[%s1322_s0 + $0xe0] sm:$0xff]  ;;  %v792_v28 = vld [vmem:[%s1322_s0 + $0x30] sm:$0xff]  ;;  %v793_v32 = vld [vmem:[%s1322_s0 + $0x38] sm:$0xff] }
   0xb   :  { %829 = vmatpush.bf16.msra.mxu2 %v819_v2  ;;  %830 = vmatpush.bf16.msra.mxu3 %v819_v2  ;;  %v800_v29 = vld [vmem:[%s1322_s0 + $0x70] sm:$0xff]  ;;  %v801_v33 = vld [vmem:[%s1322_s0 + $0x78] sm:$0xff]  ;;  %v998_v36 = vld [vmem:[%s1321_s2] ss:$0 sm:$0xff] }
   0xc   :  { %v808_v30 = vld [vmem:[%s1322_s0 + $0xb0] sm:$0xff]  ;;  %v809_v34 = vld [vmem:[%s1322_s0 + $0xb8] sm:$0xff] }
   0xd   :  { %v816_v31 = vld [vmem:[%s1322_s0 + $0xf0] sm:$0xff]  ;;  %v817_v35 = vld [vmem:[%s1322_s0 + $0xf8] sm:$0xff] }
   0xe   :  { %379 = vmatpush.bf16.msra.mxu0 %v818_v3  ;;  %831 = vmatpush.bf16.msra.mxu1 %v818_v3 }
   0xf   :  { %832 = vmatpush.bf16.msra.mxu2 %v818_v3  ;;  %833 = vmatpush.bf16.msra.mxu3 %v818_v3 }
  0x11   :  { %754 = vmatmul.msk.bf16.vlgmr.msra.gmra.mxu0 %vm275_vm0, %v786_v4  ;;  %762 = vmatmul.msk.bf16.vlgmr.msra.gmra.mxu1 %vm275_vm0, %v794_v5 }
  0x12   :  { %770 = vmatmul.msk.bf16.vlgmr.msra.gmra.mxu2 %vm275_vm0, %v802_v6  ;;  %778 = vmatmul.msk.bf16.vlgmr.msra.gmra.mxu3 %vm275_vm0, %v810_v7 }
  0x21   :  { %755 = vmatmul.msk.bf16.gmra.mxu0 %vm275_vm0, %v787_v8  ;;  %763 = vmatmul.msk.bf16.gmra.mxu1 %vm275_vm0, %v795_v9 }
  0x22   :  { %771 = vmatmul.msk.bf16.gmra.mxu2 %vm275_vm0, %v803_v10  ;;  %779 = vmatmul.msk.bf16.gmra.mxu3 %vm275_vm0, %v811_v11 }
  0x31   :  { %756 = vmatmul.msk.bf16.gmra.mxu0 %vm275_vm0, %v788_v12  ;;  %764 = vmatmul.msk.bf16.gmra.mxu1 %vm275_vm0, %v796_v13 }
  0x32   :  { %772 = vmatmul.msk.bf16.gmra.mxu2 %vm275_vm0, %v804_v14  ;;  %780 = vmatmul.msk.bf16.gmra.mxu3 %vm275_vm0, %v812_v15 }
  0x41   :  { %757 = vmatmul.msk.bf16.gmra.mxu0 %vm275_vm0, %v789_v16  ;;  %765 = vmatmul.msk.bf16.gmra.mxu1 %vm275_vm0, %v797_v17 }
  0x42   :  { %773 = vmatmul.msk.bf16.gmra.mxu2 %vm275_vm0, %v805_v18  ;;  %781 = vmatmul.msk.bf16.gmra.mxu3 %vm275_vm0, %v813_v19 }
  0x51   :  { %758 = vmatmul.msk.bf16.gmra.mxu0 %vm275_vm0, %v790_v20  ;;  %766 = vmatmul.msk.bf16.gmra.mxu1 %vm275_vm0, %v798_v21 }
  0x52   :  { %774 = vmatmul.msk.bf16.gmra.mxu2 %vm275_vm0, %v806_v22  ;;  %782 = vmatmul.msk.bf16.gmra.mxu3 %vm275_vm0, %v814_v23 }
  0x61   :  { %759 = vmatmul.msk.bf16.gmra.mxu0 %vm275_vm0, %v791_v24  ;;  %767 = vmatmul.msk.bf16.gmra.mxu1 %vm275_vm0, %v799_v25 }
  0x62   :  { %775 = vmatmul.msk.bf16.gmra.mxu2 %vm275_vm0, %v807_v26  ;;  %783 = vmatmul.msk.bf16.gmra.mxu3 %vm275_vm0, %v815_v27 }
  0x71   :  { %760 = vmatmul.msk.bf16.gmra.mxu0 %vm275_vm0, %v792_v28  ;;  %768 = vmatmul.msk.bf16.gmra.mxu1 %vm275_vm0, %v800_v29 }
  0x72   :  { %776 = vmatmul.msk.bf16.gmra.mxu2 %vm275_vm0, %v808_v30  ;;  %784 = vmatmul.msk.bf16.gmra.mxu3 %vm275_vm0, %v816_v31 }
  0x81   :  { %761 = vmatmul.msk.bf16.gmra.mxu0 %vm275_vm0, %v793_v32  ;;  %769 = vmatmul.msk.bf16.gmra.mxu1 %vm275_vm0, %v801_v33 }
  0x82   :  { %777 = vmatmul.msk.bf16.gmra.mxu2 %vm275_vm0, %v809_v34  ;;  %785 = vmatmul.msk.bf16.gmra.mxu3 %vm275_vm0, %v817_v35 }
  0x8e   :  { %v381_v37 = vpop.f32.mrf.mxu0  ;;  %v421_v38 = vpop.f32.mrf.mxu1 }
  0x8f   :  { %v382_v39 = vadd.f32 %v998_v36, %v381_v37  ;;  %v422_v40 = vadd.f32 %v998_v36, %v421_v38 }
  0x91   :  { %542 = vst.msk [vmem:[%s1323_s3] sm:$0xff] %vm541_vm1, %v382_v39 }
  0x92   :  { %558 = vst.msk [vmem:[%s1323_s3 + $0x80] sm:$0xff] %vm541_vm1, %v422_v40 }
  0x95   :  { %v461_v41 = vpop.f32.mrf.mxu2  ;;  %v501_v42 = vpop.f32.mrf.mxu3 }
  0x96   :  { %v462_v43 = vadd.f32 %v998_v36, %v461_v41  ;;  %v502_v44 = vadd.f32 %v998_v36, %v501_v42  ;;  %v383_v45 = vpop.f32.mrf.mxu0  ;;  %v423_v46 = vpop.f32.mrf.mxu1 }
  0x97   :  { %v384_v47 = vadd.f32 %v998_v36, %v383_v45  ;;  %v424_v48 = vadd.f32 %v998_v36, %v423_v46 }
  0x98   :  { %574 = vst.msk [vmem:[%s1323_s3 + $0x100] sm:$0xff] %vm541_vm1, %v462_v43 }
  0x99   :  { %590 = vst.msk [vmem:[%s1323_s3 + $0x180] sm:$0xff] %vm541_vm1, %v502_v44 }
  0x9a   :  { %543 = vst.msk [vmem:[%s1323_s3 + $0x8] sm:$0xff] %vm541_vm1, %v384_v47 }
  0x9b   :  { %559 = vst.msk [vmem:[%s1323_s3 + $0x88] sm:$0xff] %vm541_vm1, %v424_v48 }
  0x9d   :  { %v463_v49 = vpop.f32.mrf.mxu2  ;;  %v503_v50 = vpop.f32.mrf.mxu3 }
  0x9e   :  { %v464_v51 = vadd.f32 %v998_v36, %v463_v49  ;;  %v504_v52 = vadd.f32 %v998_v36, %v503_v50  ;;  %v386_v53 = vpop.f32.mrf.mxu0  ;;  %v426_v54 = vpop.f32.mrf.mxu1 }
  0x9f   :  { %v387_v55 = vadd.f32 %v998_v36, %v386_v53  ;;  %v427_v56 = vadd.f32 %v998_v36, %v426_v54 }
  0xa0   :  { %575 = vst.msk [vmem:[%s1323_s3 + $0x108] sm:$0xff] %vm541_vm1, %v464_v51 }
  0xa1   :  { %591 = vst.msk [vmem:[%s1323_s3 + $0x188] sm:$0xff] %vm541_vm1, %v504_v52 }
  0xa2   :  { %544 = vst.msk [vmem:[%s1323_s3 + $0x10] sm:$0xff] %vm541_vm1, %v387_v55 }
  0xa3   :  { %560 = vst.msk [vmem:[%s1323_s3 + $0x90] sm:$0xff] %vm541_vm1, %v427_v56 }
  0xa5   :  { %v466_v57 = vpop.f32.mrf.mxu2  ;;  %v506_v58 = vpop.f32.mrf.mxu3 }
  0xa6   :  { %v467_v59 = vadd.f32 %v998_v36, %v466_v57  ;;  %v507_v60 = vadd.f32 %v998_v36, %v506_v58  ;;  %v388_v61 = vpop.f32.mrf.mxu0  ;;  %v428_v62 = vpop.f32.mrf.mxu1 }
  0xa7   :  { %v389_v63 = vadd.f32 %v998_v36, %v388_v61  ;;  %v429_v0 = vadd.f32 %v998_v36, %v428_v62 }
  0xa8   :  { %576 = vst.msk [vmem:[%s1323_s3 + $0x110] sm:$0xff] %vm541_vm1, %v467_v59 }
  0xa9   :  { %592 = vst.msk [vmem:[%s1323_s3 + $0x190] sm:$0xff] %vm541_vm1, %v507_v60 }
  0xaa   :  { %545 = vst.msk [vmem:[%s1323_s3 + $0x18] sm:$0xff] %vm541_vm1, %v389_v63 }
  0xab   :  { %561 = vst.msk [vmem:[%s1323_s3 + $0x98] sm:$0xff] %vm541_vm1, %v429_v0 }
  0xad   :  { %v468_v1 = vpop.f32.mrf.mxu2  ;;  %v508_v2 = vpop.f32.mrf.mxu3 }
  0xae   :  { %v469_v3 = vadd.f32 %v998_v36, %v468_v1  ;;  %v509_v4 = vadd.f32 %v998_v36, %v508_v2  ;;  %v391_v5 = vpop.f32.mrf.mxu0  ;;  %v431_v6 = vpop.f32.mrf.mxu1 }
  0xaf   :  { %v392_v7 = vadd.f32 %v998_v36, %v391_v5  ;;  %v432_v8 = vadd.f32 %v998_v36, %v431_v6 }
  0xb0   :  { %577 = vst.msk [vmem:[%s1323_s3 + $0x118] sm:$0xff] %vm541_vm1, %v469_v3 }
  0xb1   :  { %593 = vst.msk [vmem:[%s1323_s3 + $0x198] sm:$0xff] %vm541_vm1, %v509_v4 }
  0xb2   :  { %546 = vst.msk [vmem:[%s1323_s3 + $0x20] sm:$0xff] %vm541_vm1, %v392_v7 }
  0xb3   :  { %562 = vst.msk [vmem:[%s1323_s3 + $0xa0] sm:$0xff] %vm541_vm1, %v432_v8 }
  0xb5   :  { %v471_v9 = vpop.f32.mrf.mxu2  ;;  %v511_v10 = vpop.f32.mrf.mxu3 }
  0xb6   :  { %v472_v11 = vadd.f32 %v998_v36, %v471_v9  ;;  %v512_v12 = vadd.f32 %v998_v36, %v511_v10  ;;  %v393_v13 = vpop.f32.mrf.mxu0  ;;  %v433_v14 = vpop.f32.mrf.mxu1 }
  0xb7   :  { %v394_v15 = vadd.f32 %v998_v36, %v393_v13  ;;  %v434_v16 = vadd.f32 %v998_v36, %v433_v14 }
  0xb8   :  { %578 = vst.msk [vmem:[%s1323_s3 + $0x120] sm:$0xff] %vm541_vm1, %v472_v11 }
  0xb9   :  { %594 = vst.msk [vmem:[%s1323_s3 + $0x1a0] sm:$0xff] %vm541_vm1, %v512_v12 }
  0xba   :  { %547 = vst.msk [vmem:[%s1323_s3 + $0x28] sm:$0xff] %vm541_vm1, %v394_v15 }
  0xbb   :  { %563 = vst.msk [vmem:[%s1323_s3 + $0xa8] sm:$0xff] %vm541_vm1, %v434_v16 }
  0xbd   :  { %v473_v17 = vpop.f32.mrf.mxu2  ;;  %v513_v18 = vpop.f32.mrf.mxu3 }
  0xbe   :  { %v474_v19 = vadd.f32 %v998_v36, %v473_v17  ;;  %v514_v20 = vadd.f32 %v998_v36, %v513_v18  ;;  %v396_v21 = vpop.f32.mrf.mxu0  ;;  %v436_v22 = vpop.f32.mrf.mxu1 }
  0xbf   :  { %v397_v23 = vadd.f32 %v998_v36, %v396_v21  ;;  %v437_v24 = vadd.f32 %v998_v36, %v436_v22 }
  0xc0   :  { %579 = vst.msk [vmem:[%s1323_s3 + $0x128] sm:$0xff] %vm541_vm1, %v474_v19 }
  0xc1   :  { %595 = vst.msk [vmem:[%s1323_s3 + $0x1a8] sm:$0xff] %vm541_vm1, %v514_v20 }
  0xc2   :  { %548 = vst.msk [vmem:[%s1323_s3 + $0x30] sm:$0xff] %vm541_vm1, %v397_v23 }
  0xc3   :  { %564 = vst.msk [vmem:[%s1323_s3 + $0xb0] sm:$0xff] %vm541_vm1, %v437_v24 }
  0xc5   :  { %v476_v25 = vpop.f32.mrf.mxu2  ;;  %v516_v26 = vpop.f32.mrf.mxu3 }
  0xc6   :  { %v477_v27 = vadd.f32 %v998_v36, %v476_v25  ;;  %v517_v28 = vadd.f32 %v998_v36, %v516_v26  ;;  %v398_v29 = vpop.f32.mrf.mxu0  ;;  %v438_v30 = vpop.f32.mrf.mxu1 }
  0xc7   :  { %v399_v31 = vadd.f32 %v998_v36, %v398_v29  ;;  %v439_v32 = vadd.f32 %v998_v36, %v438_v30 }
  0xc8   :  { %580 = vst.msk [vmem:[%s1323_s3 + $0x130] sm:$0xff] %vm541_vm1, %v477_v27 }
  0xc9   :  { %596 = vst.msk [vmem:[%s1323_s3 + $0x1b0] sm:$0xff] %vm541_vm1, %v517_v28 }
  0xca   :  { %549 = vst.msk [vmem:[%s1323_s3 + $0x38] sm:$0xff] %vm541_vm1, %v399_v31 }
  0xcb   :  { %565 = vst.msk [vmem:[%s1323_s3 + $0xb8] sm:$0xff] %vm541_vm1, %v439_v32 }
  0xcd   :  { %v478_v33 = vpop.f32.mrf.mxu2  ;;  %v518_v34 = vpop.f32.mrf.mxu3 }
  0xce   :  { %v479_v35 = vadd.f32 %v998_v36, %v478_v33  ;;  %v519_v37 = vadd.f32 %v998_v36, %v518_v34  ;;  %v401_v38 = vpop.f32.mrf.mxu0  ;;  %v441_v39 = vpop.f32.mrf.mxu1 }
  0xcf   :  { %v402_v40 = vadd.f32 %v998_v36, %v401_v38  ;;  %v442_v41 = vadd.f32 %v998_v36, %v441_v39 }
  0xd0   :  { %581 = vst.msk [vmem:[%s1323_s3 + $0x138] sm:$0xff] %vm541_vm1, %v479_v35 }
  0xd1   :  { %597 = vst.msk [vmem:[%s1323_s3 + $0x1b8] sm:$0xff] %vm541_vm1, %v519_v37 }
  0xd2   :  { %550 = vst.msk [vmem:[%s1323_s3 + $0x40] sm:$0xff] %vm541_vm1, %v402_v40 }
  0xd3   :  { %566 = vst.msk [vmem:[%s1323_s3 + $0xc0] sm:$0xff] %vm541_vm1, %v442_v41 }
  0xd5   :  { %v481_v42 = vpop.f32.mrf.mxu2  ;;  %v521_v43 = vpop.f32.mrf.mxu3 }
  0xd6   :  { %v482_v44 = vadd.f32 %v998_v36, %v481_v42  ;;  %v522_v45 = vadd.f32 %v998_v36, %v521_v43  ;;  %v403_v46 = vpop.f32.mrf.mxu0  ;;  %v443_v47 = vpop.f32.mrf.mxu1 }
  0xd7   :  { %v404_v48 = vadd.f32 %v998_v36, %v403_v46  ;;  %v444_v49 = vadd.f32 %v998_v36, %v443_v47 }
  0xd8   :  { %582 = vst.msk [vmem:[%s1323_s3 + $0x140] sm:$0xff] %vm541_vm1, %v482_v44 }
  0xd9   :  { %598 = vst.msk [vmem:[%s1323_s3 + $0x1c0] sm:$0xff] %vm541_vm1, %v522_v45 }
  0xda   :  { %551 = vst.msk [vmem:[%s1323_s3 + $0x48] sm:$0xff] %vm541_vm1, %v404_v48 }
  0xdb   :  { %567 = vst.msk [vmem:[%s1323_s3 + $0xc8] sm:$0xff] %vm541_vm1, %v444_v49 }
  0xdd   :  { %v483_v50 = vpop.f32.mrf.mxu2  ;;  %v523_v51 = vpop.f32.mrf.mxu3 }
  0xde   :  { %v484_v52 = vadd.f32 %v998_v36, %v483_v50  ;;  %v524_v53 = vadd.f32 %v998_v36, %v523_v51  ;;  %v406_v54 = vpop.f32.mrf.mxu0  ;;  %v446_v55 = vpop.f32.mrf.mxu1 }
  0xdf   :  { %v407_v56 = vadd.f32 %v998_v36, %v406_v54  ;;  %v447_v57 = vadd.f32 %v998_v36, %v446_v55 }
  0xe0   :  { %583 = vst.msk [vmem:[%s1323_s3 + $0x148] sm:$0xff] %vm541_vm1, %v484_v52 }
  0xe1   :  { %599 = vst.msk [vmem:[%s1323_s3 + $0x1c8] sm:$0xff] %vm541_vm1, %v524_v53 }
  0xe2   :  { %552 = vst.msk [vmem:[%s1323_s3 + $0x50] sm:$0xff] %vm541_vm1, %v407_v56 }
  0xe3   :  { %568 = vst.msk [vmem:[%s1323_s3 + $0xd0] sm:$0xff] %vm541_vm1, %v447_v57 }
  0xe5   :  { %v486_v58 = vpop.f32.mrf.mxu2  ;;  %v526_v59 = vpop.f32.mrf.mxu3 }
  0xe6   :  { %v487_v60 = vadd.f32 %v998_v36, %v486_v58  ;;  %v527_v61 = vadd.f32 %v998_v36, %v526_v59  ;;  %v408_v62 = vpop.f32.mrf.mxu0  ;;  %v448_v63 = vpop.f32.mrf.mxu1 }
  0xe7   :  { %v409_v0 = vadd.f32 %v998_v36, %v408_v62  ;;  %v449_v1 = vadd.f32 %v998_v36, %v448_v63 }
  0xe8   :  { %584 = vst.msk [vmem:[%s1323_s3 + $0x150] sm:$0xff] %vm541_vm1, %v487_v60 }
  0xe9   :  { %600 = vst.msk [vmem:[%s1323_s3 + $0x1d0] sm:$0xff] %vm541_vm1, %v527_v61 }
  0xea   :  { %553 = vst.msk [vmem:[%s1323_s3 + $0x58] sm:$0xff] %vm541_vm1, %v409_v0 }
  0xeb   :  { %569 = vst.msk [vmem:[%s1323_s3 + $0xd8] sm:$0xff] %vm541_vm1, %v449_v1 }
  0xed   :  { %v488_v2 = vpop.f32.mrf.mxu2  ;;  %v528_v3 = vpop.f32.mrf.mxu3 }
  0xee   :  { %v489_v4 = vadd.f32 %v998_v36, %v488_v2  ;;  %v529_v5 = vadd.f32 %v998_v36, %v528_v3  ;;  %v411_v6 = vpop.f32.mrf.mxu0  ;;  %v451_v7 = vpop.f32.mrf.mxu1 }
  0xef   :  { %v412_v8 = vadd.f32 %v998_v36, %v411_v6  ;;  %v452_v9 = vadd.f32 %v998_v36, %v451_v7 }
  0xf0   :  { %585 = vst.msk [vmem:[%s1323_s3 + $0x158] sm:$0xff] %vm541_vm1, %v489_v4 }
  0xf1   :  { %601 = vst.msk [vmem:[%s1323_s3 + $0x1d8] sm:$0xff] %vm541_vm1, %v529_v5 }
  0xf2   :  { %554 = vst.msk [vmem:[%s1323_s3 + $0x60] sm:$0xff] %vm541_vm1, %v412_v8 }
  0xf3   :  { %570 = vst.msk [vmem:[%s1323_s3 + $0xe0] sm:$0xff] %vm541_vm1, %v452_v9 }
  0xf5   :  { %v491_v10 = vpop.f32.mrf.mxu2  ;;  %v531_v11 = vpop.f32.mrf.mxu3 }
  0xf6   :  { %v492_v12 = vadd.f32 %v998_v36, %v491_v10  ;;  %v532_v13 = vadd.f32 %v998_v36, %v531_v11  ;;  %v413_v14 = vpop.f32.mrf.mxu0  ;;  %v453_v15 = vpop.f32.mrf.mxu1 }
  0xf7   :  { %v414_v16 = vadd.f32 %v998_v36, %v413_v14  ;;  %v454_v17 = vadd.f32 %v998_v36, %v453_v15 }
  0xf8   :  { %586 = vst.msk [vmem:[%s1323_s3 + $0x160] sm:$0xff] %vm541_vm1, %v492_v12 }
  0xf9   :  { %602 = vst.msk [vmem:[%s1323_s3 + $0x1e0] sm:$0xff] %vm541_vm1, %v532_v13 }
  0xfa   :  { %555 = vst.msk [vmem:[%s1323_s3 + $0x68] sm:$0xff] %vm541_vm1, %v414_v16 }
  0xfb   :  { %571 = vst.msk [vmem:[%s1323_s3 + $0xe8] sm:$0xff] %vm541_vm1, %v454_v17 }
  0xfd   :  { %v493_v18 = vpop.f32.mrf.mxu2  ;;  %v533_v19 = vpop.f32.mrf.mxu3 }
  0xfe   :  { %v494_v20 = vadd.f32 %v998_v36, %v493_v18  ;;  %v534_v21 = vadd.f32 %v998_v36, %v533_v19  ;;  %v416_v22 = vpop.f32.mrf.mxu0  ;;  %v456_v23 = vpop.f32.mrf.mxu1 }
  0xff   :  { %v417_v24 = vadd.f32 %v998_v36, %v416_v22  ;;  %v457_v25 = vadd.f32 %v998_v36, %v456_v23 }
 0x100   :  { %587 = vst.msk [vmem:[%s1323_s3 + $0x168] sm:$0xff] %vm541_vm1, %v494_v20 }
 0x101   :  { %603 = vst.msk [vmem:[%s1323_s3 + $0x1e8] sm:$0xff] %vm541_vm1, %v534_v21 }
 0x102   :  { %556 = vst.msk [vmem:[%s1323_s3 + $0x70] sm:$0xff] %vm541_vm1, %v417_v24 }
 0x103   :  { %572 = vst.msk [vmem:[%s1323_s3 + $0xf0] sm:$0xff] %vm541_vm1, %v457_v25 }
 0x105   :  { %v496_v26 = vpop.f32.mrf.mxu2  ;;  %v536_v27 = vpop.f32.mrf.mxu3 }
 0x106   :  { %v497_v28 = vadd.f32 %v998_v36, %v496_v26  ;;  %v537_v29 = vadd.f32 %v998_v36, %v536_v27  ;;  %v418_v30 = vpop.f32.mrf.mxu0  ;;  %v458_v31 = vpop.f32.mrf.mxu1 }
 0x107   :  { %v419_v32 = vadd.f32 %v998_v36, %v418_v30  ;;  %v459_v33 = vadd.f32 %v998_v36, %v458_v31 }
 0x108   :  { %588 = vst.msk [vmem:[%s1323_s3 + $0x170] sm:$0xff] %vm541_vm1, %v497_v28 }
 0x109   :  { %604 = vst.msk [vmem:[%s1323_s3 + $0x1f0] sm:$0xff] %vm541_vm1, %v537_v29 }
 0x10a   :  { %557 = vst.msk [vmem:[%s1323_s3 + $0x78] sm:$0xff] %vm541_vm1, %v419_v32 }
 0x10b   :  { %573 = vst.msk [vmem:[%s1323_s3 + $0xf8] sm:$0xff] %vm541_vm1, %v459_v33 }
 0x10d   :  { %v498_v34 = vpop.f32.mrf.mxu2  ;;  %v538_v35 = vpop.f32.mrf.mxu3 }
 0x10e   :  { %v499_v37 = vadd.f32 %v998_v36, %v498_v34  ;;  %v539_v38 = vadd.f32 %v998_v36, %v538_v35 }
 0x110   :  { %589 = vst.msk [vmem:[%s1323_s3 + $0x178] sm:$0xff] %vm541_vm1, %v499_v37 }
 0x111   :  { %605 = vst.msk [vmem:[%s1323_s3 + $0x1f8] sm:$0xff] %vm541_vm1, %v539_v38 }

// kernel: net_forward.126
= control target key start
LH: loop header
LB: loop body
LE: loop exit
PB: predicated region body
PF: predicated region fallthrough
CT: control target
= control target key end

     0   :  { %s3078_s12 = smov 0   ;;  %s3080_s13 = smov 0   ;;  %s3878_s0 = inlined_call_operand.vmem [shape: bf16[2,20,20,64], index: 0, kind: input, shape index: {}]   ;;  %s3879_s1 = inlined_call_operand.vmem [shape: bf16[9,64,64], index: 1, kind: input, shape index: {}]   ;;  %s3880_s2 = inlined_call_operand.vmem [shape: f32[2,256,64], index: 2, kind: input, shape index: {}]   ;;  %s3881_s3 = inlined_call_operand.vmem [shape: f32[2,256,64], index: 3, kind: output, shape index: {}]  }
   0x1   :  { %s3082_s14 = smov 0   ;;  %s3084_s15 = smov 0  }
   0x2   :  { %s3086_s16 = smov 0  }
   0x3 LB: > { %s22_s17 = sadd.s32 1, %s3048_s14  ;;  %s25_s18 = sadd.s32 1, %s3052_s15  ;;  %s3056_s16 = sphi %s3086_s16, %s13_s16   ;;  %s3052_s15 = sphi %s3084_s15, %s3889_s15   ;;  %s3048_s14 = sphi %s3082_s14, %s3888_s14   ;;  %s3044_s13 = sphi %s3080_s13, %s3887_s13   ;;  %s3040_s12 = sphi %s3078_s12, %s3886_s12  }
   0x4   : > { %p23_p0 = scmp.ge.s32.totalorder %s22_s17, 2  ;;  %p2351_p1 = scmp.ge.s32.totalorder %s3056_s16, 1 }
   0x5   : > { %p168_p2 = scmp.lt.s32.totalorder %s3056_s16, 5 }
   0x6   : > { %s3891_s17 = smov (%p23_p0, %s22_s17), 0  ;;  %s3893_s18 = smov (!%p23_p0, %s25_s18), %s3052_s15 }
   0x7   : > { %p169_p3 = pnand %p2351_p1, %p168_p2  ;;  %p27_p4 = scmp.ge.s32.totalorder %s3893_s18, 2 }
   0x8   : > { %p205_p5 = scmp.lt.s32.totalorder (!%p169_p3), %s3044_s13, 1  ;;  %s2904_s23 = smul.u32 (!%p169_p3), 96, %s3040_s12 }
   0x9   : > { %s3895_s18 = smov (%p27_p4, %s3893_s18), 0  ;;  %172 = sbr.rel (%p169_p3) target bundleno = 452 (0x1c4), region = 32 }
   0xe   : > { %v2920_v0 = vld [vmem:[%s3879_s1 + $0x38] sm:$0xff]  ;;  %v2919_v1 = vld [vmem:[%s3879_s1 + $0x30] sm:$0xff]  ;;  %s3897_s13 = smov (!%p205_p5, %s3044_s13), 1  ;;  %vm299_vm0 = vcmask 1042432   ;;  %vm300_vm1 = vcmask 1046532   ;;  %v2918_v2 = vld [vmem:[%s3879_s1 + $0x28] sm:$0xff] }
   0xf   : > { %2965 = vmatpush.bf16.msra.mxu1 %v2920_v0  ;;  %2966 = vmatpush.bf16.msra.mxu2 %v2920_v0  ;;  %s2977_s24 = smul.u32 240, %s3897_s13  ;;  %vm3128_vm2 = vmor %vm299_vm0, %vm300_vm1  ;;  %v2917_v4 = vld [vmem:[%s3879_s1 + $0x20] sm:$0xff]  ;;  %vm415_vm3 = vcmask 523264   ;;  %v2924_v15 = vld [vmem:[%s3879_s1 + $0x58] sm:$0xff]  ;;  %vm650_vm4 = vcmask 1041408   ;;  %vm651_vm5 = vcmask 1045508  }
  0x10   : > { %2967 = vmatpush.bf16.msra.mxu3 %v2920_v0  ;;  %444 = vmatpush.bf16.msra.mxu0 %v2920_v0  ;;  %v2936_v16 = vld [vmem:[%s3879_s1 + $0x78] sm:$0xff]  ;;  %v2923_v44 = vld [vmem:[%s3879_s1 + $0x50] sm:$0xff]  ;;  %vm3288_vm6 = vmor %vm650_vm4, %vm651_vm5  ;;  %s2354_s20 = sshll.u32 %s3897_s13, 5 }
  0x11   : > { %s209_s29 = scalar_lea.vmem %s3878_s0, %s2977_s24  ;;  %v2916_v22 = vld [vmem:[%s3879_s1 + $0x18] sm:$0xff]  ;;  %v2935_v50 = vld [vmem:[%s3879_s1 + $0x70] sm:$0xff] }
  0x12   : > { %s3126_s30 = scalar_lea.vmem %s209_s29, %s2904_s23  ;;  %v2940_v23 = vld [vmem:[%s3879_s1 + $0x98] sm:$0xff]  ;;  %v2915_v57 = vld [vmem:[%s3879_s1 + $0x10] sm:$0xff] }
  0x13   : > { %2968 = vmatpush.bf16.msra.mxu1 %v2919_v1  ;;  %2969 = vmatpush.bf16.msra.mxu2 %v2919_v1  ;;  %v3136_v5 = vld [vmem:[%s3126_s30 + $0x1c] sm:$0xf]  ;;  %v263_v6 = vld [vmem:[%s3126_s30 + $0x18] sm:$0xe]  ;;  %v264_v7 = vld [vmem:[%s3126_s30 + $0x20] sm:$0x1] }
  0x14   : > { %2970 = vmatpush.bf16.msra.mxu3 %v2919_v1  ;;  %445 = vmatpush.bf16.msra.mxu0 %v2919_v1  ;;  %v2364_v8 = vrot.slane %v263_v6, 9  ;;  %v318_v9 = vrot.slane %v3136_v5, 5  ;;  %v321_v10 = vrot.slane %v264_v7, 5  ;;  %v3142_v11 = vld [vmem:[%s3126_s30 + $0x34] sm:$0xf]  ;;  %v2952_v3 = vld [vmem:[%s3126_s30 + $0x84] sm:$0xff] }
  0x15   : > { %v267_v12 = vld [vmem:[%s3126_s30 + $0x30] sm:$0xe]  ;;  %v268_v13 = vld [vmem:[%s3126_s30 + $0x38] sm:$0x1]  ;;  %v332_v14 = vrot.slane %v3142_v11, 5 }
  0x16   : > { %v319_v17 = vsel %vm3128_vm2, %v2364_v8, %v318_v9  ;;  %v320_v18 = vrot.slane %v318_v9, 4  ;;  %v2366_v19 = vrot.slane %v267_v12, 9  ;;  %v335_v20 = vrot.slane %v268_v13, 5  ;;  %v3156_v21 = vld [vmem:[%s3126_s30 + $0x4c] sm:$0xf]  ;;  %v2939_v0 = vld [vmem:[%s3879_s1 + $0x90] sm:$0xff] }
  0x17   : > { %2971 = vmatpush.bf16.msra.mxu1 %v2918_v2  ;;  %2972 = vmatpush.bf16.msra.mxu2 %v2918_v2  ;;  %v371_v24 = vunpack.c.l.b16 %v319_v17  ;;  %v334_v25 = vrot.slane %v332_v14, 4  ;;  %v271_v26 = vld [vmem:[%s3126_s30 + $0x48] sm:$0xe]  ;;  %v272_v27 = vld [vmem:[%s3126_s30 + $0x50] sm:$0x1]  ;;  %v346_v28 = vrot.slane %v3156_v21, 5 }
  0x18   : > { %2973 = vmatpush.bf16.msra.mxu3 %v2918_v2  ;;  %446 = vmatpush.bf16.msra.mxu0 %v2918_v2  ;;  %v322_v29 = vsel %vm3128_vm2, %v320_v18, %v321_v10  ;;  %v333_v30 = vsel %vm3128_vm2, %v2366_v19, %v332_v14  ;;  %v2368_v31 = vrot.slane %v271_v26, 9  ;;  %v349_v32 = vrot.slane %v272_v27, 5  ;;  %v3172_v33 = vld [vmem:[%s3126_s30 + $0x4] sm:$0xf]  ;;  %v259_v34 = vld [vmem:[%s3126_s30] sm:$0xe] }
  0x19   : > { %v372_v35 = vunpack.c.l.b16 %v322_v29  ;;  %v336_v36 = vsel %vm3128_vm2, %v334_v25, %v335_v20  ;;  %v375_v37 = vunpack.c.l.b16 %v333_v30  ;;  %v348_v38 = vrot.slane %v346_v28, 4  ;;  %v260_v39 = vld [vmem:[%s3126_s30 + $0x8] sm:$0x1]  ;;  %v265_v51 = vld [vmem:[%s3126_s30 + $0x24] sm:$0xe] }
  0x1a   : > { %v376_v40 = vunpack.c.l.b16 %v336_v36  ;;  %v347_v41 = vsel %vm3128_vm2, %v2368_v31, %v346_v28  ;;  %v2362_v42 = vrot.slane %v259_v34, 9  ;;  %v304_v43 = vrot.slane %v3172_v33, 5  ;;  %v3185_v45 = vld [vmem:[%s3126_s30 + $0x28] sm:$0xf]  ;;  %v266_v52 = vld [vmem:[%s3126_s30 + $0x2c] sm:$0x1] }
  0x1b   : > { %2974 = vmatpush.bf16.msra.mxu1 %v2917_v4  ;;  %2975 = vmatpush.bf16.msra.mxu2 %v2917_v4  ;;  %v385_v46 = vpack.c.b16 %v372_v35, %v371_v24  ;;  %v350_v47 = vsel %vm3128_vm2, %v348_v38, %v349_v32  ;;  %v379_v48 = vunpack.c.l.b16 %v347_v41  ;;  %v307_v49 = vrot.slane %v260_v39, 5  ;;  %v3200_v58 = vld [vmem:[%s3126_s30 + $0x40] sm:$0xf]  ;;  %v269_v59 = vld [vmem:[%s3126_s30 + $0x3c] sm:$0xe]  ;;  %v2922_v8 = vld [vmem:[%s3879_s1 + $0x48] sm:$0xff] }
  0x1c   : > { %2976 = vmatpush.bf16.msra.mxu3 %v2917_v4  ;;  %447 = vmatpush.bf16.msra.mxu0 %v2917_v4  ;;  %v387_v53 = vpack.c.b16 %v376_v40, %v375_v37  ;;  %v380_v54 = vunpack.c.l.b16 %v350_v47  ;;  %v305_v55 = vsel %vm3128_vm2, %v2362_v42, %v304_v43  ;;  %v306_v56 = vrot.slane %v304_v43, 4  ;;  %v270_v62 = vld [vmem:[%s3126_s30 + $0x44] sm:$0x1]  ;;  %v3207_v63 = vld [vmem:[%s3126_s30 + $0x58] sm:$0xf]  ;;  %v2934_v14 = vld [vmem:[%s3879_s1 + $0x68] sm:$0xff] }
  0x1d   : > { %v367_v60 = vunpack.c.l.b16 %v305_v55  ;;  %v325_v61 = vrot.slane %v3185_v45, 5  ;;  %v2365_v4 = vrot.slane %v265_v51, 9  ;;  %v328_v6 = vrot.slane %v266_v52, 5  ;;  %v273_v7 = vld [vmem:[%s3126_s30 + $0x54] sm:$0xe]  ;;  %v2921_v34 = vld [vmem:[%s3879_s1 + $0x40] sm:$0xff] }
  0x1e   : > { %2396 = vmatmul.msk.bf16.vlgmr.msra.gmra.mxu1 %vm415_vm3, %v385_v46  ;;  %2398 = vmatmul.msk.bf16.vlgmr.msra.gmra.mxu2 %vm415_vm3, %v387_v53  ;;  %v389_v1 = vpack.c.b16 %v380_v54, %v379_v48  ;;  %v308_v2 = vsel %vm3128_vm2, %v306_v56, %v307_v49  ;;  %v2367_v12 = vrot.slane %v269_v59, 9  ;;  %v339_v13 = vrot.slane %v3200_v58, 5  ;;  %v274_v18 = vld [vmem:[%s3126_s30 + $0x5c] sm:$0x1]  ;;  %v3233_v20 = vld [vmem:[%s3126_s30 + $0x10] sm:$0xf] }
  0x1f   : > { %794 = vmatpush.bf16.msrb.mxu2 %v2924_v15  ;;  %573 = vmatpush.bf16.msrb.mxu1 %v2916_v22  ;;  %v368_v9 = vunpack.c.l.b16 %v308_v2  ;;  %v327_v10 = vrot.slane %v325_v61, 4  ;;  %v2914_v15 = vld [vmem:[%s3879_s1 + $0x8] sm:$0xff]  ;;  %v342_v17 = vrot.slane %v270_v62, 5  ;;  %v353_v19 = vrot.slane %v3207_v63, 5  ;;  %v262_v26 = vld [vmem:[%s3126_s30 + $0x14] sm:$0x1] }
  0x20   : > { %976 = vmatpush.bf16.msrb.mxu3 %v2936_v16  ;;  %1226 = vmatpush.bf16.msrb.mxu0 %v2940_v23  ;;  %v2938_v16 = vld [vmem:[%s3879_s1 + $0x88] sm:$0xff]  ;;  %v341_v23 = vrot.slane %v339_v13, 4  ;;  %v2369_v24 = vrot.slane %v273_v7, 9  ;;  %v326_v27 = vsel %vm3128_vm2, %v2365_v4, %v325_v61  ;;  %v340_v30 = vsel %vm3128_vm2, %v2367_v12, %v339_v13  ;;  %v2933_v38 = vld [vmem:[%s3879_s1 + $0x60] sm:$0xff]  ;;  %v2956_v46 = vld [vmem:[%s3879_s1 + $0xd8] sm:$0xff] }
  0x21   : > { %2400 = vmatmul.msk.bf16.vlgmr.msra.gmra.mxu3 %vm415_vm3, %v389_v1  ;;  %v383_v22 = vpack.c.b16 %v368_v9, %v367_v60  ;;  %v261_v25 = vld [vmem:[%s3126_s30 + $0xc] sm:$0xe]  ;;  %v329_v28 = vsel %vm3128_vm2, %v327_v10, %v328_v6  ;;  %v355_v29 = vrot.slane %v353_v19, 4  ;;  %v356_v32 = vrot.slane %v274_v18, 5  ;;  %v2913_v39 = vld [vmem:[%s3879_s1] sm:$0xff]  ;;  %v2944_v51 = vld [vmem:[%s3879_s1 + $0xb8] sm:$0xff] }
  0x22   : > { %v343_v31 = vsel %vm3128_vm2, %v341_v23, %v342_v17  ;;  %v2363_v35 = vrot.slane %v261_v25, 9  ;;  %v311_v36 = vrot.slane %v3233_v20, 5  ;;  %v314_v37 = vrot.slane %v262_v26, 5  ;;  %v2964_v52 = vld [vmem:[%s3879_s1 + $0x118] sm:$0xff]  ;;  %v618_v1 = vld [vmem:[%s3126_s30] sm:$0xc] }
  0x23   : > { %795 = vmatpush.bf16.msrb.mxu2 %v2923_v44  ;;  %574 = vmatpush.bf16.msrb.mxu1 %v2915_v57  ;;  %v373_v40 = vunpack.c.l.b16 %v326_v27  ;;  %v374_v41 = vunpack.c.l.b16 %v329_v28  ;;  %v354_v42 = vsel %vm3128_vm2, %v2369_v24, %v353_v19  ;;  %v357_v43 = vsel %vm3128_vm2, %v355_v29, %v356_v32  ;;  %v2937_v44 = vld [vmem:[%s3879_s1 + $0x80] sm:$0xff]  ;;  %v619_v2 = vld [vmem:[%s3126_s30 + $0x8] sm:$0x3]  ;;  %v3284_v4 = vld [vmem:[%s3126_s30 + $0x1c] sm:$0xf] }
  0x24   : > { %977 = vmatpush.bf16.msrb.mxu3 %v2935_v50  ;;  %1227 = vmatpush.bf16.msrb.mxu0 %v2939_v0  ;;  %v377_v47 = vunpack.c.l.b16 %v340_v30  ;;  %v378_v48 = vunpack.c.l.b16 %v343_v31  ;;  %v313_v49 = vrot.slane %v311_v36, 4  ;;  %v2960_v50 = vld [vmem:[%s3879_s1 + $0xf8] sm:$0xff]  ;;  %v381_v53 = vunpack.c.l.b16 %v354_v42  ;;  %v2582_v13 = vld [vmem:[%s3126_s30 + $0x20] sm:$0x1]  ;;  %v620_v31 = vld [vmem:[%s3126_s30 + $0xc] sm:$0xc] }
  0x25   : > { %2394 = vmatmul.msk.bf16.vlgmr.msra.gmra.mxu0 %vm415_vm3, %v383_v22  ;;  %v382_v54 = vunpack.c.l.b16 %v357_v43  ;;  %v312_v55 = vsel %vm3128_vm2, %v2363_v35, %v311_v36  ;;  %v386_v57 = vpack.c.b16 %v374_v41, %v373_v40  ;;  %v655_v60 = vrot.slane %v3172_v33, 6  ;;  %v2580_v12 = vld [vmem:[%s3126_s30 + $0x18] sm:$0xe]  ;;  %v2905_v25 = vld [vmem:[%s3126_s30] sm:$0xff]  ;;  %v621_v32 = vld [vmem:[%s3126_s30 + $0x14] sm:$0x3] }
  0x26   : > { %v315_v56 = vsel %vm3128_vm2, %v313_v49, %v314_v37  ;;  %v388_v59 = vpack.c.b16 %v378_v48, %v377_v47  ;;  %v369_v61 = vunpack.c.l.b16 %v312_v55  ;;  %v2458_v7 = vrot.slane %v618_v1, 10  ;;  %v2925_v30 = vld [vmem:[%s3126_s30 + $0x18] sm:$0xff]  ;;  %v2583_v40 = vld [vmem:[%s3126_s30 + $0x24] sm:$0xe]  ;;  %v2585_v41 = vld [vmem:[%s3126_s30 + $0x2c] sm:$0x1] }
  0x27   : > { %796 = vmatpush.bf16.msrb.mxu2 %v2922_v8  ;;  %575 = vmatpush.bf16.msrb.mxu1 %v2914_v15  ;;  %v370_v62 = vunpack.c.l.b16 %v315_v56  ;;  %v390_v0 = vpack.c.b16 %v382_v54, %v381_v53  ;;  %v657_v8 = vrot.slane %v655_v60, 4  ;;  %v658_v33 = vrot.slane %v619_v2, 6  ;;  %v2963_v47 = vld [vmem:[%s3879_s1 + $0x110] sm:$0xff] }
  0x28   : > { %978 = vmatpush.bf16.msrb.mxu3 %v2934_v14  ;;  %1228 = vmatpush.bf16.msrb.mxu0 %v2938_v16  ;;  %v1087_v10 = vrot.slane %v3284_v4, 5  ;;  %v656_v14 = vsel %vm3288_vm6, %v2458_v7, %v655_v60  ;;  %v2604_v16 = vrot.slane %v2580_v12, 9  ;;  %v1090_v18 = vrot.slane %v2582_v13, 5  ;;  %v2906_v55 = vld [vmem:[%s3126_s30 + $0xc] sm:$0xff]  ;;  %v3346_v1 = vld [vmem:[%s3126_s30 + $0x34] sm:$0xf] }
  0x29   : > { %v384_v6 = vpack.c.b16 %v370_v62, %v369_v61  ;;  %v659_v15 = vsel %vm3288_vm6, %v657_v8, %v658_v33  ;;  %v718_v19 = vunpack.c.l.b16 %v656_v14  ;;  %v662_v29 = vrot.slane %v3233_v20, 6  ;;  %v2955_v20 = vld [vmem:[%s3879_s1 + $0xd0] sm:$0xff]  ;;  %v2926_v61 = vld [vmem:[%s3126_s30 + $0x24] sm:$0xff]  ;;  %v622_v62 = vld [vmem:[%s3126_s30 + $0x18] sm:$0xc] }
  0x2a   : > { %v1089_v17 = vrot.slane %v1087_v10, 4  ;;  %v719_v22 = vunpack.c.l.b16 %v659_v15  ;;  %v1088_v23 = vsel %vm3128_vm2, %v2604_v16, %v1087_v10  ;;  %v2459_v36 = vrot.slane %v620_v31, 10  ;;  %v2586_v10 = vld [vmem:[%s3126_s30 + $0x30] sm:$0xe]  ;;  %v3369_v31 = vld [vmem:[%s3126_s30 + $0x40] sm:$0xf] }
  0x2b   : > { %797 = vmatpush.bf16.msrb.mxu2 %v2921_v34  ;;  %576 = vmatpush.bf16.msrb.mxu1 %v2913_v39  ;;  %v1150_v27 = vunpack.c.l.b16 %v1088_v23  ;;  %v3311_v34 = vld [vmem:[%s3126_s30 + $0x28] sm:$0xf]  ;;  %v664_v37 = vrot.slane %v662_v29, 4  ;;  %v2605_v48 = vrot.slane %v2583_v40, 9  ;;  %v669_v60 = vrot.slane %v3136_v5, 6  ;;  %v2907_v23 = vld [vmem:[%s3126_s30 + $0x18] sm:$0xff] }
  0x2c   : > { %979 = vmatpush.bf16.msrb.mxu3 %v2933_v38  ;;  %1229 = vmatpush.bf16.msrb.mxu0 %v2937_v44  ;;  %v1091_v24 = vsel %vm3128_vm2, %v1089_v17, %v1090_v18  ;;  %v734_v26 = vpack.c.b16 %v719_v22, %v718_v19  ;;  %v665_v38 = vrot.slane %v621_v32, 6  ;;  %v1094_v39 = vrot.slane %v3311_v34, 5  ;;  %v2959_v44 = vld [vmem:[%s3879_s1 + $0xf0] sm:$0xff]  ;;  %v2588_v5 = vld [vmem:[%s3126_s30 + $0x38] sm:$0x1] }
  0x2d   : > { %v1151_v28 = vunpack.c.l.b16 %v1091_v24  ;;  %v663_v42 = vsel %vm3288_vm6, %v2459_v36, %v662_v29  ;;  %v671_v7 = vrot.slane %v669_v60, 4  ;;  %v1101_v33 = vrot.slane %v3346_v1, 5  ;;  %v624_v29 = vld [vmem:[%s3126_s30 + $0x24] sm:$0xc] }
  0x2e   : > { %2397 = vmatmul.msk.bf16.gmra.mxu1 %vm415_vm3, %v386_v57  ;;  %2399 = vmatmul.msk.bf16.gmra.mxu2 %vm415_vm3, %v388_v59  ;;  %v666_v43 = vsel %vm3288_vm6, %v664_v37, %v665_v38  ;;  %v1096_v49 = vrot.slane %v1094_v39, 4  ;;  %v1095_v53 = vsel %vm3128_vm2, %v2605_v48, %v1094_v39  ;;  %v2606_v14 = vrot.slane %v2586_v10, 9  ;;  %v2589_v39 = vld [vmem:[%s3126_s30 + $0x3c] sm:$0xe] }
  0x2f   : > { %1642 = vmatpush.bf16.msra.mxu2 %v2956_v46  ;;  %1460 = vmatpush.bf16.msra.mxu1 %v2944_v51  ;;  %v1166_v35 = vpack.c.b16 %v1151_v28, %v1150_v27  ;;  %v2943_v46 = vld [vmem:[%s3879_s1 + $0xb0] sm:$0xff]  ;;  %v720_v51 = vunpack.c.l.b16 %v663_v42  ;;  %v1152_v57 = vunpack.c.l.b16 %v1095_v53  ;;  %v1103_v15 = vrot.slane %v1101_v33, 4  ;;  %v2958_v42 = vld [vmem:[%s3879_s1 + $0xe8] sm:$0xff] }
  0x30   : > { %1892 = vmatpush.bf16.msra.mxu3 %v2960_v50  ;;  %2126 = vmatpush.bf16.msra.mxu0 %v2964_v52  ;;  %v1097_v50 = vrot.slane %v2585_v41, 5  ;;  %v721_v52 = vunpack.c.l.b16 %v666_v43  ;;  %v1104_v16 = vrot.slane %v2588_v5, 5  ;;  %v1102_v19 = vsel %vm3128_vm2, %v2606_v14, %v1101_v33  ;;  %v2927_v28 = vld [vmem:[%s3126_s30 + $0x30] sm:$0xff]  ;;  %v2942_v43 = vld [vmem:[%s3879_s1 + $0xa8] sm:$0xff] }
  0x31   : > { %2401 = vmatmul.msk.bf16.gmra.mxu3 %vm415_vm3, %v390_v0  ;;  %v623_v0 = vld [vmem:[%s3126_s30 + $0x20] sm:$0x3]  ;;  %v676_v27 = vrot.slane %v3185_v45, 6  ;;  %v1108_v38 = vrot.slane %v3369_v31, 5  ;;  %v2954_v45 = vld [vmem:[%s3879_s1 + $0xc8] sm:$0xff] }
  0x32   : > { %v1098_v54 = vsel %vm3128_vm2, %v1096_v49, %v1097_v50  ;;  %v735_v56 = vpack.c.b16 %v721_v52, %v720_v51  ;;  %v672_v8 = vrot.slane %v623_v0, 6  ;;  %v1105_v22 = vsel %vm3128_vm2, %v1103_v15, %v1104_v16  ;;  %v2908_v53 = vld [vmem:[%s3126_s30 + $0x24] sm:$0xff] }
  0x33   : > { %1643 = vmatpush.bf16.msra.mxu2 %v2955_v20  ;;  %1461 = vmatpush.bf16.msra.mxu1 %v2943_v46  ;;  %v1153_v59 = vunpack.c.l.b16 %v1098_v54  ;;  %v678_v36 = vrot.slane %v676_v27, 4  ;;  %v2591_v20 = vld [vmem:[%s3126_s30 + $0x44] sm:$0x1]  ;;  %v2607_v46 = vrot.slane %v2589_v39, 9  ;;  %v2592_v33 = vld [vmem:[%s3126_s30 + $0x48] sm:$0xe] }
  0x34   : > { %1893 = vmatpush.bf16.msra.mxu3 %v2959_v44  ;;  %2127 = vmatpush.bf16.msra.mxu0 %v2963_v47  ;;  %v673_v13 = vsel %vm3288_vm6, %v671_v7, %v672_v8  ;;  %v2962_v44 = vld [vmem:[%s3879_s1 + $0x108] sm:$0xff]  ;;  %v1110_v47 = vrot.slane %v1108_v38, 4  ;;  %v1111_v48 = vrot.slane %v2591_v20, 5 }
  0x35   : > { %2395 = vmatmul.msk.bf16.gmra.mxu0 %vm415_vm3, %v384_v6  ;;  %v1167_v2 = vpack.c.b16 %v1153_v59, %v1152_v57  ;;  %v2460_v6 = vrot.slane %v622_v62, 10  ;;  %v723_v18 = vunpack.c.l.b16 %v673_v13  ;;  %v1109_v51 = vsel %vm3128_vm2, %v2607_v46, %v1108_v38  ;;  %v2928_v59 = vld [vmem:[%s3126_s30 + $0x3c] sm:$0xff]  ;;  %v3404_v62 = vld [vmem:[%s3126_s30 + $0x4c] sm:$0xf]  ;;  %v2595_v38 = vld [vmem:[%s3126_s30 + $0x54] sm:$0xe] }
  0x36   : > { %v1112_v52 = vsel %vm3128_vm2, %v1110_v47, %v1111_v48  ;;  %v683_v57 = vrot.slane %v3142_v11, 6  ;;  %v1115_v8 = vrot.slane %v3404_v62, 5  ;;  %v2594_v11 = vld [vmem:[%s3126_s30 + $0x50] sm:$0x1] }
  0x37   : > { %v670_v12 = vsel %vm3288_vm6, %v2460_v6, %v669_v60  ;;  %1644 = vmatpush.bf16.msra.mxu2 %v2954_v45  ;;  %1462 = vmatpush.bf16.msra.mxu1 %v2942_v43  ;;  %v626_v60 = vld [vmem:[%s3126_s30 + $0x30] sm:$0xc]  ;;  %v1118_v14 = vrot.slane %v2594_v11, 5  ;;  %v2597_v45 = vld [vmem:[%s3126_s30 + $0x5c] sm:$0x1] }
  0x38   : > { %v722_v17 = vunpack.c.l.b16 %v670_v12  ;;  %1894 = vmatpush.bf16.msra.mxu3 %v2958_v42  ;;  %2128 = vmatpush.bf16.msra.mxu0 %v2962_v44  ;;  %v685_v6 = vrot.slane %v683_v57, 4  ;;  %v2608_v12 = vrot.slane %v2592_v33, 9  ;;  %v1117_v13 = vrot.slane %v1115_v8, 4 }
  0x39   : > { %v2609_v42 = vrot.slane %v2595_v38, 9  ;;  %v1125_v44 = vrot.slane %v2597_v45, 5  ;;  %v2601_v38 = vld [vmem:[%s3126_s30 + $0x6c] sm:$0xe]  ;;  %v2603_v45 = vld [vmem:[%s3126_s30 + $0x74] sm:$0x1] }
  0x3a   : > { %v736_v24 = vpack.c.b16 %v723_v18, %v722_v17  ;;  %v1116_v17 = vsel %vm3128_vm2, %v2608_v12, %v1115_v8  ;;  %v1119_v18 = vsel %vm3128_vm2, %v1117_v13, %v1118_v14  ;;  %v2598_v8 = vld [vmem:[%s3126_s30 + $0x60] sm:$0xe] }
  0x3e   : > { %2450 = vmatmul.msk.bf16.vlgmr.msrb.gmra.mxu1 %vm415_vm3, %v2905_v25  ;;  %2490 = vmatmul.msk.bf16.vlgmr.msrb.gmra.mxu2 %vm415_vm3, %v734_v26  ;;  %v1154_v25 = vunpack.c.l.b16 %v1102_v19  ;;  %v1155_v26 = vunpack.c.l.b16 %v1105_v22  ;;  %v2909_v19 = vld [vmem:[%s3126_s30 + $0x30] sm:$0xff] }
  0x40   : > { %v1168_v32 = vpack.c.b16 %v1155_v26, %v1154_v25  ;;  %v690_v25 = vrot.slane %v3200_v58, 6  ;;  %v2929_v26 = vld [vmem:[%s3126_s30 + $0x48] sm:$0xff]  ;;  %v2953_v58 = vld [vmem:[%s3879_s1 + $0xc0] sm:$0xff] }
  0x41   : > { %2572 = vmatmul.msk.bf16.vlgmr.msrb.gmra.mxu3 %vm415_vm3, %v2925_v30  ;;  %v625_v30 = vld [vmem:[%s3126_s30 + $0x2c] sm:$0x3]  ;;  %1645 = vmatpush.bf16.msra.mxu2 %v2953_v58 }
  0x42   : > { %v679_v37 = vrot.slane %v625_v30, 6 }
  0x44   : > { %v680_v41 = vsel %vm3288_vm6, %v678_v36, %v679_v37 }
  0x45   : > { %2636 = vmatmul.msk.bf16.vlgmr.msrb.gmra.mxu0 %vm415_vm3, %v1166_v35  ;;  %v2461_v35 = vrot.slane %v624_v29, 10  ;;  %v725_v50 = vunpack.c.l.b16 %v680_v41  ;;  %v3427_v29 = vld [vmem:[%s3126_s30 + $0x58] sm:$0xf]  ;;  %v2941_v41 = vld [vmem:[%s3879_s1 + $0xa0] sm:$0xff] }
  0x46   : > { %v1122_v37 = vrot.slane %v3427_v29, 5  ;;  %1463 = vmatpush.bf16.msra.mxu1 %v2941_v41 }
  0x47   : > { %v677_v40 = vsel %vm3288_vm6, %v2461_v35, %v676_v27  ;;  %v628_v27 = vld [vmem:[%s3126_s30 + $0x3c] sm:$0xc]  ;;  %v692_v35 = vrot.slane %v690_v25, 4 }
  0x48   : > { %v724_v49 = vunpack.c.l.b16 %v677_v40  ;;  %v2957_v40 = vld [vmem:[%s3879_s1 + $0xe0] sm:$0xff]  ;;  %v1124_v43 = vrot.slane %v1122_v37, 4  ;;  %v1123_v48 = vsel %vm3128_vm2, %v2609_v42, %v1122_v37  ;;  %v2611_v42 = vrot.slane %v2601_v38, 9 }
  0x49   : > { %1895 = vmatpush.bf16.msra.mxu3 %v2957_v40 }
  0x4a   : > { %v737_v54 = vpack.c.b16 %v725_v50, %v724_v49  ;;  %v1126_v49 = vsel %vm3128_vm2, %v1124_v43, %v1125_v44  ;;  %v2961_v50 = vld [vmem:[%s3879_s1 + $0x100] sm:$0xff]  ;;  %v1139_v44 = vrot.slane %v2603_v45, 5 }
  0x4b   : > { %2129 = vmatpush.bf16.msra.mxu0 %v2961_v50 }
  0x4e   : > { %2451 = vmatmul.msk.bf16.gmra.mxu1 %vm415_vm3, %v2906_v55  ;;  %2491 = vmatmul.msk.bf16.gmra.mxu2 %vm415_vm3, %v735_v56  ;;  %v1156_v55 = vunpack.c.l.b16 %v1109_v51  ;;  %v1157_v56 = vunpack.c.l.b16 %v1112_v52  ;;  %v2910_v51 = vld [vmem:[%s3126_s30 + $0x3c] sm:$0xff] }
  0x50   : > { %v1169_v0 = vpack.c.b16 %v1157_v56, %v1156_v55  ;;  %v697_v55 = vrot.slane %v3156_v21, 6  ;;  %v2930_v56 = vld [vmem:[%s3126_s30 + $0x54] sm:$0xff]  ;;  %v2600_v21 = vld [vmem:[%s3126_s30 + $0x68] sm:$0x1] }
  0x51   : > { %2573 = vmatmul.msk.bf16.gmra.mxu3 %vm415_vm3, %v2926_v61  ;;  %v627_v61 = vld [vmem:[%s3126_s30 + $0x38] sm:$0x3]  ;;  %v1132_v12 = vrot.slane %v2600_v21, 5 }
  0x52   : > { %v686_v7 = vrot.slane %v627_v61, 6 }
  0x54   : > { %v687_v5 = vsel %vm3288_vm6, %v685_v6, %v686_v7 }
  0x55   : > { %2637 = vmatmul.msk.bf16.gmra.mxu0 %vm415_vm3, %v1167_v2  ;;  %v2462_v2 = vrot.slane %v626_v60, 10  ;;  %v727_v16 = vunpack.c.l.b16 %v687_v5  ;;  %v3462_v60 = vld [vmem:[%s3126_s30 + $0x64] sm:$0xf] }
  0x56   : > { %v1129_v7 = vrot.slane %v3462_v60, 5 }
  0x57   : > { %v684_v10 = vsel %vm3288_vm6, %v2462_v2, %v683_v57  ;;  %v630_v57 = vld [vmem:[%s3126_s30 + $0x48] sm:$0xc]  ;;  %v699_v2 = vrot.slane %v697_v55, 4 }
  0x58   : > { %v726_v15 = vunpack.c.l.b16 %v684_v10  ;;  %v2610_v10 = vrot.slane %v2598_v8, 9  ;;  %v1131_v5 = vrot.slane %v1129_v7, 4 }
  0x5a   : > { %v738_v22 = vpack.c.b16 %v727_v16, %v726_v15  ;;  %v1130_v15 = vsel %vm3128_vm2, %v2610_v10, %v1129_v7  ;;  %v1133_v16 = vsel %vm3128_vm2, %v1131_v5, %v1132_v12  ;;  %v2782_v7 = vld [vmem:[%s3126_s30 + $0x30] sm:$0xe] }
  0x5b   : > { %v2806_v12 = vrot.slane %v2782_v7, 9 }
  0x5e   : > { %2452 = vmatmul.msk.bf16.gmra.mxu1 %vm415_vm3, %v2907_v23  ;;  %2492 = vmatmul.msk.bf16.gmra.mxu2 %vm415_vm3, %v736_v24  ;;  %v1158_v23 = vunpack.c.l.b16 %v1116_v17  ;;  %v1159_v24 = vunpack.c.l.b16 %v1119_v18  ;;  %v2911_v17 = vld [vmem:[%s3126_s30 + $0x48] sm:$0xff] }
  0x60   : > { %v1170_v30 = vpack.c.b16 %v1159_v24, %v1158_v23  ;;  %v1163_v23 = vunpack.c.l.b16 %v1133_v16  ;;  %v704_v24 = vrot.slane %v3207_v63, 6 }
  0x61   : > { %2574 = vmatmul.msk.bf16.gmra.mxu3 %vm415_vm3, %v2927_v28  ;;  %v629_v28 = vld [vmem:[%s3126_s30 + $0x44] sm:$0x3] }
  0x62   : > { %v693_v36 = vrot.slane %v629_v28, 6  ;;  %v3487_v28 = vld [vmem:[%s3126_s30 + $0x70] sm:$0xf] }
  0x63   : > { %v1136_v63 = vrot.slane %v3487_v28, 5 }
  0x64   : > { %v694_v20 = vsel %vm3288_vm6, %v692_v35, %v693_v36  ;;  %v706_v35 = vrot.slane %v704_v24, 4 }
  0x65   : > { %2638 = vmatmul.msk.bf16.gmra.mxu0 %vm415_vm3, %v1168_v32  ;;  %v2463_v32 = vrot.slane %v628_v27, 10  ;;  %v729_v47 = vunpack.c.l.b16 %v694_v20  ;;  %v633_v27 = vld [vmem:[%s3126_s30 + $0x5c] sm:$0x3]  ;;  %v1138_v43 = vrot.slane %v1136_v63, 4 }
  0x66   : > { %v707_v36 = vrot.slane %v633_v27, 6 }
  0x67   : > { %v691_v39 = vsel %vm3288_vm6, %v2463_v32, %v690_v25  ;;  %v2931_v25 = vld [vmem:[%s3126_s30 + $0x60] sm:$0xff]  ;;  %v1140_v50 = vsel %vm3128_vm2, %v1138_v43, %v1139_v44 }
  0x68   : > { %v728_v46 = vunpack.c.l.b16 %v691_v39  ;;  %v708_v41 = vsel %vm3288_vm6, %v706_v35, %v707_v36 }
  0x6a   : > { %v739_v52 = vpack.c.b16 %v729_v47, %v728_v46  ;;  %v733_v47 = vunpack.c.l.b16 %v708_v41 }
  0x6e   : > { %2453 = vmatmul.msk.bf16.gmra.mxu1 %vm415_vm3, %v2908_v53  ;;  %2493 = vmatmul.msk.bf16.gmra.mxu2 %vm415_vm3, %v737_v54  ;;  %v1160_v53 = vunpack.c.l.b16 %v1123_v48  ;;  %v1161_v54 = vunpack.c.l.b16 %v1126_v49  ;;  %v1137_v49 = vsel %vm3128_vm2, %v2611_v42, %v1136_v63 }
  0x70   : > { %v1171_v61 = vpack.c.b16 %v1161_v54, %v1160_v53  ;;  %v1321_v53 = vrot.slane %v3284_v4, 6 }
  0x71   : > { %2575 = vmatmul.msk.bf16.gmra.mxu3 %vm415_vm3, %v2928_v59  ;;  %v631_v59 = vld [vmem:[%s3126_s30 + $0x50] sm:$0x3] }
  0x72   : > { %v700_v6 = vrot.slane %v631_v59, 6  ;;  %v1164_v59 = vunpack.c.l.b16 %v1137_v49  ;;  %v1323_v21 = vrot.slane %v1321_v53, 4  ;;  %v1328_v49 = vrot.slane %v3311_v34, 6 }
  0x74   : > { %v701_v11 = vsel %vm3288_vm6, %v699_v2, %v700_v6  ;;  %v2645_v2 = vld [vmem:[%s3126_s30 + $0x20] sm:$0x3]  ;;  %v2932_v6 = vld [vmem:[%s3126_s30 + $0x6c] sm:$0xff]  ;;  %v1330_v7 = vrot.slane %v1328_v49, 4 }
  0x75   : > { %2639 = vmatmul.msk.bf16.gmra.mxu0 %vm415_vm3, %v1169_v0  ;;  %v2464_v0 = vrot.slane %v630_v57, 10  ;;  %v731_v14 = vunpack.c.l.b16 %v701_v11  ;;  %v2784_v11 = vld [vmem:[%s3126_s30 + $0x38] sm:$0x1] }
  0x76   : > { %v1756_v16 = vrot.slane %v2784_v11, 5 }
  0x77   : > { %v698_v33 = vsel %vm3288_vm6, %v2464_v0, %v697_v55  ;;  %v2644_v0 = vld [vmem:[%s3126_s30 + $0x18] sm:$0xc] }
  0x78   : > { %v730_v13 = vunpack.c.l.b16 %v698_v33  ;;  %v2660_v4 = vrot.slane %v2644_v0, 10  ;;  %v1324_v33 = vrot.slane %v2645_v2, 6  ;;  %v2785_v2 = vld [vmem:[%s3126_s30 + $0x3c] sm:$0xe] }
  0x7e   : > { %2454 = vmatmul.msk.bf16.gmra.mxu1 %vm415_vm3, %v2909_v19  ;;  %2494 = vmatmul.msk.bf16.gmra.mxu2 %vm415_vm3, %v738_v22  ;;  %v740_v19 = vpack.c.b16 %v731_v14, %v730_v13  ;;  %v1162_v22 = vunpack.c.l.b16 %v1130_v15 }
  0x81   : > { %2576 = vmatmul.msk.bf16.gmra.mxu3 %vm415_vm3, %v2929_v26  ;;  %v632_v26 = vld [vmem:[%s3126_s30 + $0x54] sm:$0xc] }
  0x82   : > { %v2465_v32 = vrot.slane %v632_v26, 10 }
  0x84   : > { %v705_v40 = vsel %vm3288_vm6, %v2465_v32, %v704_v24  ;;  %v1325_v24 = vsel %vm3288_vm6, %v1323_v21, %v1324_v33  ;;  %v2787_v21 = vld [vmem:[%s3126_s30 + $0x44] sm:$0x1] }
  0x85   : > { %2640 = vmatmul.msk.bf16.gmra.mxu0 %vm415_vm3, %v1170_v30  ;;  %v1172_v30 = vpack.c.b16 %v1163_v23, %v1162_v22  ;;  %v732_v46 = vunpack.c.l.b16 %v705_v40  ;;  %v1322_v23 = vsel %vm3288_vm6, %v2660_v4, %v1321_v53  ;;  %v1385_v35 = vunpack.c.l.b16 %v1325_v24 }
  0x86   : > { %v1384_v32 = vunpack.c.l.b16 %v1322_v23 }
  0x87   : > { %v741_v55 = vpack.c.b16 %v733_v47, %v732_v46  ;;  %v2945_v47 = vld [vmem:[%s3126_s30 + $0x30] sm:$0xff] }
  0x88   : > { %v1400_v44 = vpack.c.b16 %v1385_v35, %v1384_v32 }
  0x8e   : > { %2455 = vmatmul.msk.bf16.gmra.mxu1 %vm415_vm3, %v2910_v51  ;;  %2495 = vmatmul.msk.bf16.gmra.mxu2 %vm415_vm3, %v739_v52  ;;  %v2912_v52 = vld [vmem:[%s3126_s30 + $0x54] sm:$0xff] }
  0x91   : > { %2577 = vmatmul.msk.bf16.gmra.mxu3 %vm415_vm3, %v2930_v56  ;;  %v2783_v56 = vld [vmem:[%s3126_s30 + $0x34] sm:$0xf] }
  0x92   : > { %v1753_v8 = vrot.slane %v2783_v56, 5  ;;  %v1987_v13 = vrot.slane %v2783_v56, 6 }
  0x94   : > { %v1755_v15 = vrot.slane %v1753_v8, 4  ;;  %v1989_v27 = vrot.slane %v1987_v13, 4  ;;  %v1754_v36 = vsel %vm3128_vm2, %v2806_v12, %v1753_v8 }
  0x95   : > { %2641 = vmatmul.msk.bf16.gmra.mxu0 %vm415_vm3, %v1171_v61  ;;  %v1165_v61 = vunpack.c.l.b16 %v1140_v50  ;;  %v1816_v45 = vunpack.c.l.b16 %v1754_v36  ;;  %v2786_v50 = vld [vmem:[%s3126_s30 + $0x40] sm:$0xf] }
  0x96   : > { %v1757_v63 = vsel %vm3128_vm2, %v1755_v15, %v1756_v16  ;;  %v1994_v11 = vrot.slane %v2786_v50, 6  ;;  %v2848_v15 = vld [vmem:[%s3126_s30 + $0x3c] sm:$0xc]  ;;  %v2849_v16 = vld [vmem:[%s3126_s30 + $0x44] sm:$0x3] }
  0x97   : > { %v1173_v10 = vpack.c.b16 %v1165_v61, %v1164_v59  ;;  %v1817_v40 = vunpack.c.l.b16 %v1757_v63  ;;  %v2646_v59 = vld [vmem:[%s3126_s30 + $0x24] sm:$0xc]  ;;  %v2647_v61 = vld [vmem:[%s3126_s30 + $0x2c] sm:$0x3]  ;;  %v2863_v32 = vrot.slane %v2848_v15, 10  ;;  %v1997_v36 = vrot.slane %v2849_v16, 6 }
  0x98   : > { %v2661_v34 = vrot.slane %v2646_v59, 10  ;;  %v1331_v8 = vrot.slane %v2647_v61, 6  ;;  %v1996_v35 = vrot.slane %v1994_v11, 4  ;;  %v2946_v61 = vld [vmem:[%s3126_s30 + $0x3c] sm:$0xff] }
  0x99   : > { %v1832_v0 = vpack.c.b16 %v1817_v40, %v1816_v45 }
  0x9a   : > { %v1329_v23 = vsel %vm3288_vm6, %v2661_v34, %v1328_v49  ;;  %v1332_v24 = vsel %vm3288_vm6, %v1330_v7, %v1331_v8  ;;  %v1998_v49 = vsel %vm3288_vm6, %v1996_v35, %v1997_v36  ;;  %v2648_v8 = vld [vmem:[%s3126_s30 + $0x30] sm:$0xc] }
  0x9b   : > { %v3479_v18 = vpop.f32.mrf.mxu1  ;;  %v1386_v63 = vunpack.c.l.b16 %v1329_v23  ;;  %v1387_v45 = vunpack.c.l.b16 %v1332_v24  ;;  %v2053_v7 = vunpack.c.l.b16 %v1998_v49 }
  0x9e   : > { %2456 = vmatmul.msk.bf16.gmra.mxu1 %vm415_vm3, %v2911_v17  ;;  %2496 = vmatmul.msk.bf16.gmra.mxu2 %vm415_vm3, %v740_v19  ;;  %v2846_v17 = vld [vmem:[%s3126_s30 + $0x30] sm:$0xc]  ;;  %v2847_v19 = vld [vmem:[%s3126_s30 + $0x38] sm:$0x3] }
  0x9f   : > { %v2862_v26 = vrot.slane %v2846_v17, 10 }
  0xa1   : > { %2578 = vmatmul.msk.bf16.gmra.mxu3 %vm415_vm3, %v2931_v25  ;;  %v3494_v58 = vpop.f32.mrf.mxu2  ;;  %v1988_v41 = vsel %vm3288_vm6, %v2862_v26, %v1987_v13  ;;  %v1763_v13 = vrot.slane %v2787_v21, 5  ;;  %v2649_v21 = vld [vmem:[%s3126_s30 + $0x38] sm:$0x3] }
  0xa2   : > { %v3490_v37 = vpop.f32.mrf.mxu0 }
  0xa3   : > { %v3498_v39 = vpop.f32.mrf.mxu1 }
  0xa4   : > { %v3501_v20 = vpop.f32.mrf.mxu3 }
  0xa5   : > { %2642 = vmatmul.msk.bf16.gmra.mxu0 %vm415_vm3, %v1172_v30  ;;  %v1990_v30 = vrot.slane %v2847_v19, 6 }
  0xa7   : > { %v1991_v42 = vsel %vm3288_vm6, %v1989_v27, %v1990_v30 }
  0xa8   : > { %v2051_v56 = vunpack.c.l.b16 %v1991_v42 }
  0xa9   : > { %v3513_v51 = vpop.f32.mrf.mxu2 }
  0xaa   : > { %v3507_v48 = vpop.f32.mrf.mxu0 }
  0xab   : > { %v3517_v54 = vpop.f32.mrf.mxu1 }
  0xac   : > { %v3520_v57 = vpop.f32.mrf.mxu3 }
  0xae   : > { %2457 = vmatmul.msk.bf16.gmra.mxu1 %vm415_vm3, %v2912_v52  ;;  %2497 = vmatmul.msk.bf16.gmra.mxu2 %vm415_vm3, %v741_v55  ;;  %v2050_v55 = vunpack.c.l.b16 %v1988_v41 }
  0xb0   : > { %v2066_v4 = vpack.c.b16 %v2051_v56, %v2050_v55  ;;  %v1335_v55 = vrot.slane %v3346_v1, 6  ;;  %v2662_v1 = vrot.slane %v2648_v8, 10 }
  0xb1   : > { %2579 = vmatmul.msk.bf16.gmra.mxu3 %vm415_vm3, %v2932_v6  ;;  %v3532_v14 = vpop.f32.mrf.mxu2  ;;  %v1760_v6 = vrot.slane %v2786_v50, 5 }
  0xb2   : > { %v3529_v5 = vpop.f32.mrf.mxu0  ;;  %v1336_v36 = vsel %vm3288_vm6, %v2662_v1, %v1335_v55 }
  0xb3   : > { %v3536_v22 = vpop.f32.mrf.mxu1  ;;  %v1762_v12 = vrot.slane %v1760_v6, 4 }
  0xb4   : > { %v3543_v25 = vpop.f32.mrf.mxu3 }
  0xb5   : > { %2643 = vmatmul.msk.bf16.gmra.mxu0 %vm415_vm3, %v1173_v10  ;;  %v1764_v41 = vsel %vm3128_vm2, %v1762_v12, %v1763_v13  ;;  %v1338_v12 = vrot.slane %v2649_v21, 6  ;;  %v2790_v13 = vld [vmem:[%s3126_s30 + $0x50] sm:$0x1]  ;;  %v2947_v21 = vld [vmem:[%s3126_s30 + $0x48] sm:$0xff] }
  0xb9   : > { %v3555_v43 = vpop.f32.mrf.mxu2 }
  0xba   : > { %v3549_v38 = vpop.f32.mrf.mxu0 }
  0xbb   : > { %v578_v46 = vpop.f32.mrf.mxu1 }
  0xbc   : > { %v3560_v52 = vpop.f32.mrf.mxu3  ;;  %v579_v53 = vadd.f32 %v578_v46, %v3490_v37  ;;  %v2807_v37 = vrot.slane %v2785_v2, 9 }
  0xbe   : > { %2692 = vmatmul.msk.bf16.vlgmr.msra.gmra.mxu1 %vm415_vm3, %v1400_v44  ;;  %2774 = vmatmul.msk.bf16.vlgmr.msra.gmra.mxu2 %vm415_vm3, %v2945_v47  ;;  %v1761_v40 = vsel %vm3128_vm2, %v2807_v37, %v1760_v6  ;;  %v1995_v47 = vsel %vm3288_vm6, %v2863_v32, %v1994_v11  ;;  %v2788_v37 = vld [vmem:[%s3126_s30 + $0x48] sm:$0xe] }
  0xbf   : > { %v1818_v46 = vunpack.c.l.b16 %v1761_v40  ;;  %v2052_v34 = vunpack.c.l.b16 %v1995_v47  ;;  %v1388_v47 = vunpack.c.l.b16 %v1336_v36 }
  0xc1   : > { %2838 = vmatmul.msk.bf16.vlgmr.msra.gmra.mxu3 %vm415_vm3, %v1832_v0  ;;  %v799_v10 = vpop.f32.mrf.mxu2  ;;  %v2789_v0 = vld [vmem:[%s3126_s30 + $0x4c] sm:$0xf]  ;;  %v2067_v15 = vpack.c.b16 %v2053_v7, %v2052_v34  ;;  %v1342_v34 = vrot.slane %v3369_v31, 6 }
  0xc2   : > { %v1231_v33 = vpop.f32.mrf.mxu0  ;;  %v839_v17 = vadd.f32 %v799_v10, %v579_v53  ;;  %v1401_v53 = vpack.c.b16 %v1387_v45, %v1386_v63  ;;  %v1767_v11 = vrot.slane %v2789_v0, 5  ;;  %v1337_v10 = vrot.slane %v1335_v55, 4 }
  0xc3   : > { %v580_v19 = vpop.f32.mrf.mxu1 }
  0xc4   : > { %v981_v26 = vpop.f32.mrf.mxu3  ;;  %v581_v27 = vadd.f32 %v580_v19, %v3507_v48  ;;  %v1819_v48 = vunpack.c.l.b16 %v1764_v41  ;;  %v2001_v19 = vrot.slane %v2789_v0, 6  ;;  %v1769_v24 = vrot.slane %v1767_v11, 4 }
  0xc5   : > { %2894 = vmatmul.msk.bf16.vlgmr.msra.gmra.mxu0 %vm415_vm3, %v2066_v4  ;;  %v1021_v30 = vadd.f32 %v981_v26, %v839_v17  ;;  %v2808_v17 = vrot.slane %v2788_v37, 9  ;;  %v1770_v26 = vrot.slane %v2790_v13, 5  ;;  %v1339_v63 = vsel %vm3288_vm6, %v1337_v10, %v1338_v12  ;;  %v2650_v10 = vld [vmem:[%s3126_s30 + $0x3c] sm:$0xc]  ;;  %v2651_v12 = vld [vmem:[%s3126_s30 + $0x44] sm:$0x3] }
  0xc6   : > { %v1389_v49 = vunpack.c.l.b16 %v1339_v63  ;;  %v2663_v31 = vrot.slane %v2650_v10, 10  ;;  %v2948_v10 = vld [vmem:[%s3126_s30 + $0x54] sm:$0xff] }
  0xc7   : > { %v3582_v42 = vadd.f32 %v1231_v33, %v1021_v30  ;;  %v1833_v33 = vpack.c.b16 %v1819_v48, %v1818_v46  ;;  %v2851_v30 = vld [vmem:[%s3126_s30 + $0x50] sm:$0x3]  ;;  %v2003_v46 = vrot.slane %v2001_v19, 4 }
  0xc8   : > { %v2004_v48 = vrot.slane %v2851_v30, 6 }
  0xc9   : > { %v801_v50 = vpop.f32.mrf.mxu2 }
  0xca   : > { %v1233_v44 = vpop.f32.mrf.mxu0  ;;  %v840_v56 = vadd.f32 %v801_v50, %v581_v27  ;;  %v2850_v27 = vld [vmem:[%s3126_s30 + $0x48] sm:$0xc]  ;;  %v1768_v50 = vsel %vm3128_vm2, %v2808_v17, %v1767_v11  ;;  %v2005_v0 = vsel %vm3288_vm6, %v2003_v46, %v2004_v48  ;;  %v1343_v46 = vsel %vm3288_vm6, %v2663_v31, %v1342_v34 }
  0xcb   : > { %v583_v59 = vpop.f32.mrf.mxu1  ;;  %v2055_v1 = vunpack.c.l.b16 %v2005_v0  ;;  %v2652_v31 = vld [vmem:[%s3126_s30 + $0x48] sm:$0xc] }
  0xcc   : > { %v983_v2 = vpop.f32.mrf.mxu3  ;;  %v584_v6 = vadd.f32 %v583_v59, %v3529_v5  ;;  %v1820_v59 = vunpack.c.l.b16 %v1768_v50 }
  0xcd   : > { %v1022_v4 = vadd.f32 %v983_v2, %v840_v56 }
  0xce   : > { %2693 = vmatmul.msk.bf16.gmra.mxu1 %vm415_vm3, %v1401_v53  ;;  %2775 = vmatmul.msk.bf16.gmra.mxu2 %vm415_vm3, %v2946_v61  ;;  %v1771_v53 = vsel %vm3128_vm2, %v1769_v24, %v1770_v26  ;;  %v2793_v24 = vld [vmem:[%s3126_s30 + $0x5c] sm:$0x1] }
  0xcf   : > { %v3598_v5 = vadd.f32 %v1233_v44, %v1022_v4  ;;  %v2864_v44 = vrot.slane %v2850_v27, 10  ;;  %v2792_v4 = vld [vmem:[%s3126_s30 + $0x58] sm:$0xf]  ;;  %v1777_v63 = vrot.slane %v2793_v24, 5 }
  0xd0   : > { %v1774_v17 = vrot.slane %v2792_v4, 5 }
  0xd1   : > { %2839 = vmatmul.msk.bf16.gmra.mxu3 %vm415_vm3, %v1833_v33  ;;  %v804_v23 = vpop.f32.mrf.mxu2  ;;  %v2002_v61 = vsel %vm3288_vm6, %v2864_v44, %v2001_v19  ;;  %v1344_v19 = vrot.slane %v1342_v34, 4 }
  0xd2   : > { %v1236_v16 = vpop.f32.mrf.mxu0  ;;  %v841_v32 = vadd.f32 %v804_v23, %v584_v6  ;;  %v1402_v6 = vpack.c.b16 %v1389_v49, %v1388_v47  ;;  %v2054_v11 = vunpack.c.l.b16 %v2002_v61  ;;  %v1345_v23 = vrot.slane %v2651_v12, 6  ;;  %v2795_v12 = vld [vmem:[%s3126_s30 + $0x64] sm:$0xf] }
  0xd3   : > { %v585_v35 = vpop.f32.mrf.mxu1  ;;  %v1776_v36 = vrot.slane %v1774_v17, 4 }
  0xd4   : > { %v986_v45 = vpop.f32.mrf.mxu3  ;;  %v586_v40 = vadd.f32 %v585_v35, %v3549_v38  ;;  %v1821_v38 = vunpack.c.l.b16 %v1771_v53  ;;  %v2068_v26 = vpack.c.b16 %v2055_v1, %v2054_v11  ;;  %v1346_v48 = vsel %vm3288_vm6, %v1344_v19, %v1345_v23  ;;  %v2653_v19 = vld [vmem:[%s3126_s30 + $0x50] sm:$0x3] }
  0xd5   : > { %2895 = vmatmul.msk.bf16.gmra.mxu0 %vm415_vm3, %v2067_v15  ;;  %v1023_v41 = vadd.f32 %v986_v45, %v841_v32  ;;  %v2008_v32 = vrot.slane %v2792_v4, 6  ;;  %v2852_v45 = vld [vmem:[%s3126_s30 + $0x54] sm:$0xc]  ;;  %v1391_v61 = vunpack.c.l.b16 %v1346_v48  ;;  %v2854_v48 = vld [vmem:[%s3126_s30 + $0x60] sm:$0xc] }
  0xd6   : > { %v1834_v15 = vpack.c.b16 %v1821_v38, %v1820_v59  ;;  %v2865_v53 = vrot.slane %v2852_v45, 10  ;;  %v1390_v38 = vunpack.c.l.b16 %v1343_v46 }
  0xd7   : > { %v3613_v55 = vadd.f32 %v1236_v16, %v1023_v41  ;;  %v2791_v16 = vld [vmem:[%s3126_s30 + $0x54] sm:$0xe] }
  0xd8   : > { %v2809_v30 = vrot.slane %v2791_v16, 9 }
  0xd9   : > { %v806_v2 = vpop.f32.mrf.mxu2 }
  0xda   : > { %v1238_v56 = vpop.f32.mrf.mxu0  ;;  %v842_v7 = vadd.f32 %v806_v2, %v586_v40  ;;  %v2853_v40 = vld [vmem:[%s3126_s30 + $0x5c] sm:$0x3]  ;;  %v1775_v0 = vsel %vm3128_vm2, %v2809_v30, %v1774_v17  ;;  %v1778_v2 = vsel %vm3128_vm2, %v1776_v36, %v1777_v63 }
  0xdb   : > { %v588_v8 = vpop.f32.mrf.mxu1  ;;  %v2011_v59 = vrot.slane %v2853_v40, 6  ;;  %v2015_v40 = vrot.slane %v2795_v12, 6 }
  0xdc   : > { %v988_v33 = vpop.f32.mrf.mxu3  ;;  %v589_v37 = vadd.f32 %v588_v8, %v3479_v18  ;;  %v2009_v8 = vsel %vm3288_vm6, %v2865_v53, %v2008_v32 }
  0xdd   : > { %v1024_v13 = vadd.f32 %v988_v33, %v842_v7  ;;  %v1822_v7 = vunpack.c.l.b16 %v1775_v0  ;;  %v1403_v33 = vpack.c.b16 %v1391_v61, %v1390_v38  ;;  %v2056_v16 = vunpack.c.l.b16 %v2009_v8 }
  0xde   : > { %2694 = vmatmul.msk.bf16.gmra.mxu1 %vm415_vm3, %v1402_v6  ;;  %2776 = vmatmul.msk.bf16.gmra.mxu2 %vm415_vm3, %v2947_v21  ;;  %v2866_v0 = vrot.slane %v2854_v48, 10 }
  0xdf   : > { %v3629_v18 = vadd.f32 %v1238_v56, %v1024_v13  ;;  %v2010_v56 = vrot.slane %v2008_v32, 4  ;;  %v1352_v32 = vrot.slane %v2653_v19, 6 }
  0xe1   : > { %2840 = vmatmul.msk.bf16.gmra.mxu3 %vm415_vm3, %v1834_v15  ;;  %v809_v35 = vpop.f32.mrf.mxu2  ;;  %v2012_v21 = vsel %vm3288_vm6, %v2010_v56, %v2011_v59 }
  0xe2   : > { %v1241_v27 = vpop.f32.mrf.mxu0  ;;  %v843_v41 = vadd.f32 %v809_v35, %v589_v37  ;;  %v1349_v37 = vrot.slane %v3404_v62, 6  ;;  %v2057_v17 = vunpack.c.l.b16 %v2012_v21  ;;  %v2664_v62 = vrot.slane %v2652_v31, 10  ;;  %v2796_v35 = vld [vmem:[%s3126_s30 + $0x68] sm:$0x1]  ;;  %v2798_v31 = vld [vmem:[%s3126_s30 + $0x70] sm:$0xf] }
  0xe3   : > { %v590_v44 = vpop.f32.mrf.mxu1  ;;  %v1784_v46 = vrot.slane %v2796_v35, 5  ;;  %v1788_v35 = vrot.slane %v2798_v31, 5 }
  0xe4   : > { %v991_v47 = vpop.f32.mrf.mxu3  ;;  %v591_v49 = vadd.f32 %v590_v44, %v3498_v39  ;;  %v1823_v39 = vunpack.c.l.b16 %v1778_v2  ;;  %v1351_v30 = vrot.slane %v1349_v37, 4  ;;  %v2069_v36 = vpack.c.b16 %v2057_v17, %v2056_v16  ;;  %v2949_v17 = vld [vmem:[%s3126_s30 + $0x60] sm:$0xff] }
  0xe5   : > { %2896 = vmatmul.msk.bf16.gmra.mxu0 %vm415_vm3, %v2068_v26  ;;  %v1025_v50 = vadd.f32 %v991_v47, %v843_v41  ;;  %v2794_v26 = vld [vmem:[%s3126_s30 + $0x60] sm:$0xe]  ;;  %v2855_v47 = vld [vmem:[%s3126_s30 + $0x68] sm:$0x3]  ;;  %v1350_v53 = vsel %vm3288_vm6, %v2664_v62, %v1349_v37  ;;  %v2017_v2 = vrot.slane %v2015_v40, 4 }
  0xe6   : > { %v1835_v24 = vpack.c.b16 %v1823_v39, %v1822_v7  ;;  %v2810_v45 = vrot.slane %v2794_v26, 9  ;;  %v1353_v56 = vsel %vm3288_vm6, %v1351_v30, %v1352_v32  ;;  %v1392_v7 = vunpack.c.l.b16 %v1350_v53  ;;  %v2654_v26 = vld [vmem:[%s3126_s30 + $0x54] sm:$0xc]  ;;  %v2797_v32 = vld [vmem:[%s3126_s30 + $0x6c] sm:$0xe] }
  0xe7   : > { %v3644_v6 = vadd.f32 %v1241_v27, %v1025_v50  ;;  %v1781_v27 = vrot.slane %v2795_v12, 5  ;;  %v1393_v39 = vunpack.c.l.b16 %v1353_v56  ;;  %v2811_v48 = vrot.slane %v2797_v32, 9  ;;  %v2656_v32 = vld [vmem:[%s3126_s30 + $0x60] sm:$0xc] }
  0xe8   : > { %v1790_v53 = vrot.slane %v1788_v35, 4 }
  0xe9   : > { %v811_v4 = vpop.f32.mrf.mxu2  ;;  %v1783_v44 = vrot.slane %v1781_v27, 4  ;;  %v1782_v8 = vsel %vm3128_vm2, %v2810_v45, %v1781_v27  ;;  %v1404_v12 = vpack.c.b16 %v1393_v39, %v1392_v7  ;;  %v2655_v27 = vld [vmem:[%s3126_s30 + $0x5c] sm:$0x3]  ;;  %v2799_v45 = vld [vmem:[%s3126_s30 + $0x74] sm:$0x1]  ;;  %v1789_v39 = vsel %vm3128_vm2, %v2811_v48, %v1788_v35 }
  0xea   : > { %v1243_v34 = vpop.f32.mrf.mxu0  ;;  %v844_v11 = vadd.f32 %v811_v4, %v591_v49  ;;  %v1791_v56 = vrot.slane %v2799_v45, 5  ;;  %v2657_v35 = vld [vmem:[%s3126_s30 + $0x68] sm:$0x3] }
  0xeb   : > { %v593_v1 = vpop.f32.mrf.mxu1  ;;  %v1785_v21 = vsel %vm3128_vm2, %v1783_v44, %v1784_v46 }
  0xec   : > { %v993_v13 = vpop.f32.mrf.mxu3  ;;  %v594_v15 = vadd.f32 %v593_v1, %v3517_v54  ;;  %v1825_v37 = vunpack.c.l.b16 %v1785_v21 }
  0xed   : > { %v1026_v23 = vadd.f32 %v993_v13, %v844_v11  ;;  %v2016_v11 = vsel %vm3288_vm6, %v2866_v0, %v2015_v40  ;;  %v1356_v13 = vrot.slane %v3427_v29, 6  ;;  %v2665_v29 = vrot.slane %v2654_v26, 10  ;;  %v2950_v26 = vld [vmem:[%s3126_s30 + $0x6c] sm:$0xff] }
  0xee   : > { %2695 = vmatmul.msk.bf16.gmra.mxu1 %vm415_vm3, %v1403_v33  ;;  %2777 = vmatmul.msk.bf16.gmra.mxu2 %vm415_vm3, %v2948_v10 }
  0xef   : > { %v3660_v54 = vadd.f32 %v1243_v34, %v1026_v23  ;;  %v2018_v34 = vrot.slane %v2855_v47, 6  ;;  %v2058_v23 = vunpack.c.l.b16 %v2016_v11  ;;  %v2856_v47 = vld [vmem:[%s3126_s30 + $0x6c] sm:$0xc]  ;;  %v1357_v0 = vsel %vm3288_vm6, %v2665_v29, %v1356_v13 }
  0xf1   : > { %2841 = vmatmul.msk.bf16.gmra.mxu3 %vm415_vm3, %v1835_v24  ;;  %v814_v41 = vpop.f32.mrf.mxu2  ;;  %v2019_v1 = vsel %vm3288_vm6, %v2017_v2, %v2018_v34  ;;  %v2867_v34 = vrot.slane %v2856_v47, 10 }
  0xf2   : > { %v1246_v63 = vpop.f32.mrf.mxu0  ;;  %v845_v49 = vadd.f32 %v814_v41, %v594_v15  ;;  %v2059_v24 = vunpack.c.l.b16 %v2019_v1  ;;  %v1826_v1 = vunpack.c.l.b16 %v1789_v39 }
  0xf3   : > { %v595_v50 = vpop.f32.mrf.mxu1 }
  0xf4   : > { %v996_v59 = vpop.f32.mrf.mxu3  ;;  %v596_v38 = vadd.f32 %v595_v50, %v3536_v22  ;;  %v1824_v22 = vunpack.c.l.b16 %v1782_v8  ;;  %v2070_v40 = vpack.c.b16 %v2059_v24, %v2058_v23 }
  0xf5   : > { %2897 = vmatmul.msk.bf16.gmra.mxu0 %vm415_vm3, %v2069_v36  ;;  %v1027_v61 = vadd.f32 %v996_v59, %v845_v49  ;;  %v1358_v36 = vrot.slane %v1356_v13, 4  ;;  %v2022_v49 = vrot.slane %v2798_v31, 6  ;;  %v2857_v59 = vld [vmem:[%s3126_s30 + $0x74] sm:$0x3] }
  0xf6   : > { %v1836_v30 = vpack.c.b16 %v1825_v37, %v1824_v22  ;;  %v2025_v21 = vrot.slane %v2857_v59, 6  ;;  %v1792_v37 = vsel %vm3128_vm2, %v1790_v53, %v1791_v56  ;;  %v2858_v56 = vld [vmem:[%s3126_s30 + $0x78] sm:$0xc] }
  0xf7   : > { %v3675_v4 = vadd.f32 %v1246_v63, %v1027_v61  ;;  %v1359_v63 = vrot.slane %v2655_v27, 6  ;;  %v2024_v8 = vrot.slane %v2022_v49, 4  ;;  %v1827_v13 = vunpack.c.l.b16 %v1792_v37  ;;  %v2801_v27 = vld [vmem:[%s3126_s30 + $0x7c] sm:$0xf] }
  0xf8   : > { %v1795_v45 = vrot.slane %v2801_v27, 5  ;;  %v2029_v59 = vrot.slane %v2801_v27, 6  ;;  %v1370_v27 = vrot.slane %v3487_v28, 6 }
  0xf9   : > { %v816_v10 = vpop.f32.mrf.mxu2  ;;  %v1360_v2 = vsel %vm3288_vm6, %v1358_v36, %v1359_v63  ;;  %v1837_v36 = vpack.c.b16 %v1827_v13, %v1826_v1  ;;  %v2800_v63 = vld [vmem:[%s3126_s30 + $0x78] sm:$0xe] }
  0xfa   : > { %v1248_v33 = vpop.f32.mrf.mxu0  ;;  %v846_v15 = vadd.f32 %v816_v10, %v596_v38  ;;  %v1395_v22 = vunpack.c.l.b16 %v1360_v2  ;;  %v2812_v53 = vrot.slane %v2800_v63, 9  ;;  %v2859_v2 = vld [vmem:[%s3126_s30 + $0x80] sm:$0x3]  ;;  %v2659_v63 = vld [vmem:[%s3126_s30 + $0x74] sm:$0x3] }
  0xfb   : > { %v598_v16 = vpop.f32.mrf.mxu1  ;;  %v2032_v37 = vrot.slane %v2859_v2, 6 }
  0xfc   : > { %v998_v19 = vpop.f32.mrf.mxu3  ;;  %v599_v44 = vadd.f32 %v598_v16, %v3494_v58  ;;  %v2026_v16 = vsel %vm3288_vm6, %v2024_v8, %v2025_v21  ;;  %v2868_v8 = vrot.slane %v2858_v56, 10 }
  0xfd   : > { %v1028_v62 = vadd.f32 %v998_v19, %v846_v15  ;;  %v2023_v15 = vsel %vm3288_vm6, %v2867_v34, %v2022_v49  ;;  %v1363_v19 = vrot.slane %v3462_v60, 6  ;;  %v2666_v60 = vrot.slane %v2656_v32, 10  ;;  %v2804_v32 = vld [vmem:[%s3126_s30 + $0x88] sm:$0xf] }
  0xfe   : > { %2696 = vmatmul.msk.bf16.gmra.mxu1 %vm415_vm3, %v1404_v12  ;;  %2778 = vmatmul.msk.bf16.gmra.mxu2 %vm415_vm3, %v2949_v17 }
  0xff   : > { %v3690_v41 = vadd.f32 %v1248_v33, %v1028_v62  ;;  %v1394_v33 = vunpack.c.l.b16 %v1357_v0  ;;  %v2060_v62 = vunpack.c.l.b16 %v2023_v15 }
 0x101   : > { %2842 = vmatmul.msk.bf16.gmra.mxu3 %vm415_vm3, %v1836_v30  ;;  %v819_v50 = vpop.f32.mrf.mxu2  ;;  %v1405_v31 = vpack.c.b16 %v1395_v22, %v1394_v33  ;;  %v2061_v30 = vunpack.c.l.b16 %v2026_v16  ;;  %v1796_v33 = vsel %vm3128_vm2, %v2812_v53, %v1795_v45  ;;  %v2031_v22 = vrot.slane %v2029_v59, 4 }
 0x102   : > { %v1251_v46 = vpop.f32.mrf.mxu0  ;;  %v847_v38 = vadd.f32 %v819_v50, %v599_v44  ;;  %v1366_v44 = vrot.slane %v2657_v35, 6  ;;  %v1828_v15 = vunpack.c.l.b16 %v1796_v33 }
 0x103   : > { %v600_v61 = vpop.f32.mrf.mxu1  ;;  %v2071_v48 = vpack.c.b16 %v2061_v30, %v2060_v62  ;;  %v2951_v30 = vld [vmem:[%s3126_s30 + $0x78] sm:$0xff] }
 0x104   : > { %v1001_v58 = vpop.f32.mrf.mxu3  ;;  %v601_v10 = vadd.f32 %v600_v61, %v3513_v51  ;;  %v1797_v61 = vrot.slane %v1795_v45, 4 }
 0x105   : > { %2898 = vmatmul.msk.bf16.gmra.mxu0 %vm415_vm3, %v2070_v40  ;;  %v1029_v7 = vadd.f32 %v1001_v58, %v847_v38  ;;  %v1365_v40 = vrot.slane %v1363_v19, 4 }
 0x107   : > { %v3705_v11 = vadd.f32 %v1251_v46, %v1029_v7  ;;  %v2802_v46 = vld [vmem:[%s3126_s30 + $0x80] sm:$0x1]  ;;  %v1364_v7 = vsel %vm3288_vm6, %v2666_v60, %v1363_v19  ;;  %v1367_v39 = vsel %vm3288_vm6, %v1365_v40, %v1366_v44  ;;  %v2030_v19 = vsel %vm3288_vm6, %v2868_v8, %v2029_v59  ;;  %v2803_v40 = vld [vmem:[%s3126_s30 + $0x84] sm:$0xe] }
 0x108   : > { %v1798_v0 = vrot.slane %v2802_v46, 5  ;;  %v1396_v1 = vunpack.c.l.b16 %v1364_v7  ;;  %v2062_v35 = vunpack.c.l.b16 %v2030_v19  ;;  %v1802_v44 = vrot.slane %v2804_v32, 5  ;;  %v2861_v7 = vld [vmem:[%s3126_s30 + $0x8c] sm:$0x3] }
 0x109   : > { %v821_v17 = vpop.f32.mrf.mxu2  ;;  %v1372_v46 = vrot.slane %v1370_v27, 4 }
 0x10a   : > { %v1253_v12 = vpop.f32.mrf.mxu0  ;;  %v848_v23 = vadd.f32 %v821_v17, %v601_v10  ;;  %v1397_v10 = vunpack.c.l.b16 %v1367_v39 }
 0x10b   : > { %v603_v24 = vpop.f32.mrf.mxu1 }
 0x10c   : > { %v1003_v51 = vpop.f32.mrf.mxu3  ;;  %v604_v49 = vadd.f32 %v603_v24, %v3532_v14 }
 0x10d   : > { %v1030_v29 = vadd.f32 %v1003_v51, %v848_v23  ;;  %v2033_v23 = vsel %vm3288_vm6, %v2031_v22, %v2032_v37 }
 0x10e   : > { %2697 = vmatmul.msk.bf16.gmra.mxu1 %vm415_vm3, %v1405_v31  ;;  %2779 = vmatmul.msk.bf16.gmra.mxu2 %vm415_vm3, %v2950_v26  ;;  %v1406_v26 = vpack.c.b16 %v1397_v10, %v1396_v1  ;;  %v2039_v10 = vrot.slane %v2861_v7, 6 }
 0x10f   : > { %v3721_v47 = vadd.f32 %v1253_v12, %v1030_v29  ;;  %v1799_v12 = vsel %vm3128_vm2, %v1797_v61, %v1798_v0  ;;  %v2063_v29 = vunpack.c.l.b16 %v2033_v23  ;;  %v2860_v61 = vld [vmem:[%s3126_s30 + $0x84] sm:$0xc]  ;;  %v2036_v0 = vrot.slane %v2804_v32, 6 }
 0x110   : > { %v1829_v31 = vunpack.c.l.b16 %v1799_v12  ;;  %v2869_v33 = vrot.slane %v2860_v61, 10 }
 0x111   : > { %2843 = vmatmul.msk.bf16.gmra.mxu3 %vm415_vm3, %v1837_v36  ;;  %v824_v38 = vpop.f32.mrf.mxu2  ;;  %v2658_v36 = vld [vmem:[%s3126_s30 + $0x6c] sm:$0xc]  ;;  %v2072_v53 = vpack.c.b16 %v2063_v29, %v2062_v35  ;;  %v2038_v1 = vrot.slane %v2036_v0, 4 }
 0x112   : > { %v1256_v50 = vpop.f32.mrf.mxu0  ;;  %v849_v58 = vadd.f32 %v824_v38, %v604_v49  ;;  %v1838_v60 = vpack.c.b16 %v1829_v31, %v1828_v15  ;;  %v2667_v28 = vrot.slane %v2658_v36, 10  ;;  %v2805_v49 = vld [vmem:[%s3126_s30 + $0x8c] sm:$0x1]  ;;  %v2813_v38 = vrot.slane %v2803_v40, 9  ;;  %s2353_s30 = sshll.u32 %s3040_s12, 4 }
 0x113   : > { %v605_v34 = vpop.f32.mrf.mxu1  ;;  %p213_p6 = scmp.lt.s32.totalorder %s2353_s30, 31 }
 0x114   : > { %v1006_v14 = vpop.f32.mrf.mxu3  ;;  %v606_v16 = vadd.f32 %v605_v34, %v3555_v43  ;;  %v1805_v34 = vrot.slane %v2805_v49, 5  ;;  %v1371_v8 = vsel %vm3288_vm6, %v2667_v28, %v1370_v27  ;;  %v1803_v37 = vsel %vm3128_vm2, %v2813_v38, %v1802_v44 }
 0x115   : > { %2899 = vmatmul.msk.bf16.gmra.mxu0 %vm415_vm3, %v2071_v48  ;;  %v1031_v21 = vadd.f32 %v1006_v14, %v849_v58  ;;  %v1373_v48 = vrot.slane %v2659_v63, 6  ;;  %v1804_v58 = vrot.slane %v1802_v44, 4  ;;  %v1398_v12 = vunpack.c.l.b16 %v1371_v8  ;;  %s3899_s30 = smov (!%p213_p6, %s2353_s30), 31 }
 0x116   : > { %v1830_v31 = vunpack.c.l.b16 %v1803_v37  ;;  %v2040_v27 = vsel %vm3288_vm6, %v2038_v1, %v2039_v10  ;;  %s216_s12 = sadd.s32 %s2354_s20, %s3899_s30 }
 0x117   : > { %v3736_v13 = vadd.f32 %v1256_v50, %v1031_v21  ;;  %v1374_v21 = vsel %vm3288_vm6, %v1372_v46, %v1373_v48  ;;  %v2065_v29 = vunpack.c.l.b16 %v2040_v27  ;;  %s2355_s21 = sshll.u32 %s216_s12, 3 }
 0x118   : > { %v1399_v15 = vunpack.c.l.b16 %v1374_v21  ;;  %s3793_s24 = scalar_lea.vmem %s3880_s2, %s2355_s21  ;;  %s3799_s26 = scalar_lea.vmem %s3881_s3, %s2355_s21 }
 0x119   : > { %v826_v24 = vpop.f32.mrf.mxu2  ;;  %v2187_v21 = vld [vmem:[%s3793_s24] sm:$0xff] }
 0x11a   : > { %v1258_v17 = vpop.f32.mrf.mxu0  ;;  %v850_v51 = vadd.f32 %v826_v24, %v606_v16  ;;  %v1806_v16 = vsel %vm3128_vm2, %v1804_v58, %v1805_v34 }
 0x11b   : > { %v608_v62 = vpop.f32.mrf.mxu1  ;;  %v1831_v24 = vunpack.c.l.b16 %v1806_v16  ;;  %v2188_v16 = vld [vmem:[%s3793_s24 + $0x8] sm:$0xff] }
 0x11c   : > { %v1008_v43 = vpop.f32.mrf.mxu3  ;;  %v609_v56 = vadd.f32 %v608_v62, %v3501_v20  ;;  %v1407_v62 = vpack.c.b16 %v1399_v15, %v1398_v12 }
 0x11d   : > { %v1032_v45 = vadd.f32 %v1008_v43, %v850_v51  ;;  %v1839_v63 = vpack.c.b16 %v1831_v24, %v1830_v31 }
 0x11e   : > { %2698 = vmatmul.msk.bf16.gmra.mxu1 %vm415_vm3, %v1406_v26  ;;  %2780 = vmatmul.msk.bf16.gmra.mxu2 %vm415_vm3, %v2951_v30  ;;  %v2037_v26 = vsel %vm3288_vm6, %v2869_v33, %v2036_v0 }
 0x11f   : > { %v3752_v50 = vadd.f32 %v1258_v17, %v1032_v45  ;;  %v2064_v35 = vunpack.c.l.b16 %v2037_v26 }
 0x121   : > { %2844 = vmatmul.msk.bf16.gmra.mxu3 %vm415_vm3, %v1838_v60  ;;  %v829_v2 = vpop.f32.mrf.mxu2  ;;  %v2073_v45 = vpack.c.b16 %v2065_v29, %v2064_v35 }
 0x122   : > { %v1261_v59 = vpop.f32.mrf.mxu0  ;;  %v851_v39 = vadd.f32 %v829_v2, %v609_v56 }
 0x123   : > { %v610_v14 = vpop.f32.mrf.mxu1 }
 0x124   : > { %v1011_v20 = vpop.f32.mrf.mxu3  ;;  %v611_v19 = vadd.f32 %v610_v14, %v3520_v57 }
 0x125   : > { %2900 = vmatmul.msk.bf16.gmra.mxu0 %vm415_vm3, %v2072_v53  ;;  %v1033_v22 = vadd.f32 %v1011_v20, %v851_v39 }
 0x127   : > { %v3767_v17 = vadd.f32 %v1261_v59, %v1033_v22 }
 0x129   : > { %v831_v51 = vpop.f32.mrf.mxu2 }
 0x12a   : > { %v1263_v23 = vpop.f32.mrf.mxu0  ;;  %v852_v30 = vadd.f32 %v831_v51, %v611_v19 }
 0x12b   : > { %v613_v32 = vpop.f32.mrf.mxu1 }
 0x12c   : > { %v1013_v43 = vpop.f32.mrf.mxu3  ;;  %v614_v9 = vadd.f32 %v613_v32, %v3543_v25 }
 0x12d   : > { %v1034_v36 = vadd.f32 %v1013_v43, %v852_v30  ;;  %v2189_v30 = vld [vmem:[%s3793_s24 + $0x10] sm:$0xff] }
 0x12e   : > { %2699 = vmatmul.msk.bf16.gmra.mxu1 %vm415_vm3, %v1407_v62  ;;  %2781 = vmatmul.msk.bf16.gmra.mxu2 %vm415_vm3, %v2952_v3 }
 0x12f   : > { %v3777_v57 = vadd.f32 %v1263_v23, %v1034_v36 }
 0x131   : > { %2845 = vmatmul.msk.bf16.gmra.mxu3 %vm415_vm3, %v1839_v63  ;;  %v834_v40 = vpop.f32.mrf.mxu2 }
 0x132   : > { %v1266_v60 = vpop.f32.mrf.mxu0  ;;  %v853_v44 = vadd.f32 %v834_v40, %v614_v9  ;;  %v2190_v9 = vld [vmem:[%s3793_s24 + $0x18] sm:$0xff] }
 0x133   : > { %v615_v28 = vpop.f32.mrf.mxu1 }
 0x134   : > { %v1016_v46 = vpop.f32.mrf.mxu3  ;;  %v616_v53 = vadd.f32 %v615_v28, %v3560_v52 }
 0x135   : > { %2901 = vmatmul.msk.bf16.gmra.mxu0 %vm415_vm3, %v2073_v45  ;;  %v1035_v48 = vadd.f32 %v1016_v46, %v853_v44 }
 0x137   : > { %v3783_v49 = vadd.f32 %v1266_v60, %v1035_v48 }
 0x139   : > { %v836_v25 = vpop.f32.mrf.mxu2 }
 0x13a   : > { %v1268_v56 = vpop.f32.mrf.mxu0  ;;  %v854_v59 = vadd.f32 %v836_v25, %v616_v53  ;;  %v2191_v25 = vld [vmem:[%s3793_s24 + $0x20] sm:$0xff] }
 0x13b   : > { %v1465_v38 = vpop.f32.mrf.mxu1 }
 0x13c   : > { %v1018_v61 = vpop.f32.mrf.mxu3  ;;  %v1505_v58 = vadd.f32 %v1465_v38, %v3582_v42 }
 0x13d   : > { %v1036_v0 = vadd.f32 %v1018_v61, %v854_v59 }
 0x13f   : > { %v3787_v2 = vadd.f32 %v1268_v56, %v1036_v0 }
 0x141   : > { %v1647_v7 = vpop.f32.mrf.mxu2 }
 0x142   : > { %v2131_v34 = vpop.f32.mrf.mxu0  ;;  %v1687_v39 = vadd.f32 %v1647_v7, %v1505_v58 }
 0x143   : > { %v1467_v52 = vpop.f32.mrf.mxu1 }
 0x144   : > { %v1897_v14 = vpop.f32.mrf.mxu3  ;;  %v1506_v33 = vadd.f32 %v1467_v52, %v3598_v5  ;;  %v2192_v52 = vld [vmem:[%s3793_s24 + $0x28] sm:$0xff] }
 0x145   : > { %v1937_v8 = vadd.f32 %v1897_v14, %v1687_v39 }
 0x147   : > { %v2171_v20 = vadd.f32 %v2131_v34, %v1937_v8 }
 0x149   : > { %v2203_v42 = vadd.f32 %v2187_v21, %v2171_v20  ;;  %v1649_v37 = vpop.f32.mrf.mxu2 }
 0x14a   : > { %v2133_v22 = vpop.f32.mrf.mxu0  ;;  %v1688_v1 = vadd.f32 %v1649_v37, %v1506_v33 }
 0x14b   : > { %2219 = vst.msk [vmem:[%s3799_s26] sm:$0xff] %vm415_vm3, %v2203_v42  ;;  %v1470_v10 = vpop.f32.mrf.mxu1 }
 0x14c   : > { %v1899_v12 = vpop.f32.mrf.mxu3  ;;  %v1507_v23 = vadd.f32 %v1470_v10, %v3613_v55 }
 0x14d   : > { %v1938_v15 = vadd.f32 %v1899_v12, %v1688_v1  ;;  %v2193_v1 = vld [vmem:[%s3793_s24 + $0x30] sm:$0xff] }
 0x14f   : > { %v2172_v31 = vadd.f32 %v2133_v22, %v1938_v15 }
 0x151   : > { %v2204_v19 = vadd.f32 %v2188_v16, %v2172_v31  ;;  %v1652_v26 = vpop.f32.mrf.mxu2 }
 0x152   : > { %v2136_v24 = vpop.f32.mrf.mxu0  ;;  %v1689_v5 = vadd.f32 %v1652_v26, %v1507_v23  ;;  %v2194_v26 = vld [vmem:[%s3793_s24 + $0x38] sm:$0xff] }
 0x153   : > { %2220 = vst.msk [vmem:[%s3799_s26 + $0x8] sm:$0xff] %vm415_vm3, %v2204_v19  ;;  %v1472_v27 = vpop.f32.mrf.mxu1 }
 0x154   : > { %v1902_v51 = vpop.f32.mrf.mxu3  ;;  %v1508_v43 = vadd.f32 %v1472_v27, %v3629_v18 }
 0x155   : > { %v1939_v62 = vadd.f32 %v1902_v51, %v1689_v5 }
 0x157   : > { %v2173_v32 = vadd.f32 %v2136_v24, %v1939_v62 }
 0x159   : > { %v2205_v3 = vadd.f32 %v2189_v30, %v2173_v32  ;;  %v1654_v29 = vpop.f32.mrf.mxu2 }
 0x15a   : > { %v2138_v35 = vpop.f32.mrf.mxu0  ;;  %v1690_v55 = vadd.f32 %v1654_v29, %v1508_v43 }
 0x15b   : > { %2221 = vst.msk [vmem:[%s3799_s26 + $0x10] sm:$0xff] %vm415_vm3, %v2205_v3  ;;  %v1475_v36 = vpop.f32.mrf.mxu1 }
 0x15c   : > { %v1904_v63 = vpop.f32.mrf.mxu3  ;;  %v1509_v44 = vadd.f32 %v1475_v36, %v3644_v6 }
 0x15d   : > { %v1940_v45 = vadd.f32 %v1904_v63, %v1690_v55 }
 0x15f   : > { %v2174_v60 = vadd.f32 %v2138_v35, %v1940_v45  ;;  %v2195_v35 = vld [vmem:[%s3793_s24 + $0x40] sm:$0xff] }
 0x161   : > { %v2206_v40 = vadd.f32 %v2190_v9, %v2174_v60  ;;  %v1657_v46 = vpop.f32.mrf.mxu2 }
 0x162   : > { %v2141_v28 = vpop.f32.mrf.mxu0  ;;  %v1691_v18 = vadd.f32 %v1657_v46, %v1509_v44  ;;  %v2196_v44 = vld [vmem:[%s3793_s24 + $0x48] sm:$0xff] }
 0x163   : > { %2222 = vst.msk [vmem:[%s3799_s26 + $0x18] sm:$0xff] %vm415_vm3, %v2206_v40  ;;  %v1477_v48 = vpop.f32.mrf.mxu1 }
 0x164   : > { %v1907_v53 = vpop.f32.mrf.mxu3  ;;  %v1510_v61 = vadd.f32 %v1477_v48, %v3660_v54 }
 0x165   : > { %v1941_v56 = vadd.f32 %v1907_v53, %v1691_v18 }
 0x167   : > { %v2175_v59 = vadd.f32 %v2141_v28, %v1941_v56 }
 0x169   : > { %v2207_v38 = vadd.f32 %v2191_v25, %v2175_v59  ;;  %v1659_v58 = vpop.f32.mrf.mxu2 }
 0x16a   : > { %v2143_v0 = vpop.f32.mrf.mxu0  ;;  %v1692_v6 = vadd.f32 %v1659_v58, %v1510_v61 }
 0x16b   : > { %2223 = vst.msk [vmem:[%s3799_s26 + $0x20] sm:$0xff] %vm415_vm3, %v2207_v38  ;;  %v1480_v34 = vpop.f32.mrf.mxu1  ;;  %v2197_v38 = vld [vmem:[%s3793_s24 + $0x50] sm:$0xff] }
 0x16c   : > { %v1909_v7 = vpop.f32.mrf.mxu3  ;;  %v1511_v21 = vadd.f32 %v1480_v34, %v3675_v4 }
 0x16d   : > { %v1942_v39 = vadd.f32 %v1909_v7, %v1692_v6 }
 0x16f   : > { %v2176_v14 = vadd.f32 %v2143_v0, %v1942_v39 }
 0x171   : > { %v2208_v8 = vadd.f32 %v2192_v52, %v2176_v14  ;;  %v1662_v42 = vpop.f32.mrf.mxu2  ;;  %v2198_v14 = vld [vmem:[%s3793_s24 + $0x58] sm:$0xff] }
 0x172   : > { %v2146_v20 = vpop.f32.mrf.mxu0  ;;  %v1693_v54 = vadd.f32 %v1662_v42, %v1511_v21 }
 0x173   : > { %2224 = vst.msk [vmem:[%s3799_s26 + $0x28] sm:$0xff] %vm415_vm3, %v2208_v8  ;;  %v1482_v33 = vpop.f32.mrf.mxu1 }
 0x174   : > { %v1912_v22 = vpop.f32.mrf.mxu3  ;;  %v1512_v15 = vadd.f32 %v1482_v33, %v3690_v41 }
 0x175   : > { %v1943_v37 = vadd.f32 %v1912_v22, %v1693_v54 }
 0x177   : > { %v2177_v10 = vadd.f32 %v2146_v20, %v1943_v37 }
 0x179   : > { %v2209_v12 = vadd.f32 %v2193_v1, %v2177_v10  ;;  %v1664_v31 = vpop.f32.mrf.mxu2  ;;  %v2199_v1 = vld [vmem:[%s3793_s24 + $0x60] sm:$0xff] }
 0x17a   : > { %v2148_v16 = vpop.f32.mrf.mxu0  ;;  %v1694_v4 = vadd.f32 %v1664_v31, %v1512_v15 }
 0x17b   : > { %2225 = vst.msk [vmem:[%s3799_s26 + $0x30] sm:$0xff] %vm415_vm3, %v2209_v12  ;;  %v1485_v19 = vpop.f32.mrf.mxu1 }
 0x17c   : > { %v1914_v23 = vpop.f32.mrf.mxu3  ;;  %v1513_v51 = vadd.f32 %v1485_v19, %v3705_v11 }
 0x17d   : > { %v1944_v24 = vadd.f32 %v1914_v23, %v1694_v4 }
 0x17f   : > { %v2178_v5 = vadd.f32 %v2148_v16, %v1944_v24  ;;  %v2200_v24 = vld [vmem:[%s3793_s24 + $0x68] sm:$0xff] }
 0x181   : > { %v2210_v27 = vadd.f32 %v2194_v26, %v2178_v5  ;;  %v1667_v30 = vpop.f32.mrf.mxu2 }
 0x182   : > { %v2151_v62 = vpop.f32.mrf.mxu0  ;;  %v1695_v41 = vadd.f32 %v1667_v30, %v1513_v51 }
 0x183   : > { %2226 = vst.msk [vmem:[%s3799_s26 + $0x38] sm:$0xff] %vm415_vm3, %v2210_v27  ;;  %v1487_v32 = vpop.f32.mrf.mxu1 }
 0x184   : > { %v1917_v3 = vpop.f32.mrf.mxu3  ;;  %v1514_v36 = vadd.f32 %v1487_v32, %v3721_v47  ;;  %v2201_v32 = vld [vmem:[%s3793_s24 + $0x70] sm:$0xff] }
 0x185   : > { %v1945_v43 = vadd.f32 %v1917_v3, %v1695_v41 }
 0x187   : > { %v2179_v29 = vadd.f32 %v2151_v62, %v1945_v43 }
 0x189   : > { %v2211_v55 = vadd.f32 %v2195_v35, %v2179_v29  ;;  %v1669_v45 = vpop.f32.mrf.mxu2 }
 0x18a   : > { %v2153_v63 = vpop.f32.mrf.mxu0  ;;  %v1696_v11 = vadd.f32 %v1669_v45, %v1514_v36 }
 0x18b   : > { %2227 = vst.msk [vmem:[%s3799_s26 + $0x40] sm:$0xff] %vm415_vm3, %v2211_v55  ;;  %v1490_v9 = vpop.f32.mrf.mxu1 }
 0x18c   : > { %v1919_v60 = vpop.f32.mrf.mxu3  ;;  %v1515_v18 = vadd.f32 %v1490_v9, %v3736_v13 }
 0x18d   : > { %v1946_v40 = vadd.f32 %v1919_v60, %v1696_v11  ;;  %v2202_v11 = vld [vmem:[%s3793_s24 + $0x78] sm:$0xff] }
 0x18f   : > { %v2180_v28 = vadd.f32 %v2153_v63, %v1946_v40 }
 0x191   : > { %v2212_v46 = vadd.f32 %v2196_v44, %v2180_v28  ;;  %v1672_v53 = vpop.f32.mrf.mxu2 }
 0x192   : > { %v2156_v48 = vpop.f32.mrf.mxu0  ;;  %v1697_v47 = vadd.f32 %v1672_v53, %v1515_v18 }
 0x193   : > { %2228 = vst.msk [vmem:[%s3799_s26 + $0x48] sm:$0xff] %vm415_vm3, %v2212_v46  ;;  %v1492_v56 = vpop.f32.mrf.mxu1 }
 0x194   : > { %v1922_v25 = vpop.f32.mrf.mxu3  ;;  %v1516_v58 = vadd.f32 %v1492_v56, %v3752_v50 }
 0x195   : > { %v1947_v59 = vadd.f32 %v1922_v25, %v1697_v47 }
 0x197   : > { %v2181_v61 = vadd.f32 %v2156_v48, %v1947_v59 }
 0x199   : > { %v2213_v0 = vadd.f32 %v2197_v38, %v2181_v61  ;;  %v1674_v34 = vpop.f32.mrf.mxu2 }
 0x19a   : > { %v2158_v6 = vpop.f32.mrf.mxu0  ;;  %v1698_v13 = vadd.f32 %v1674_v34, %v1516_v58 }
 0x19b   : > { %2229 = vst.msk [vmem:[%s3799_s26 + $0x50] sm:$0xff] %vm415_vm3, %v2213_v0  ;;  %v1495_v7 = vpop.f32.mrf.mxu1 }
 0x19c   : > { %v1924_v39 = vpop.f32.mrf.mxu3  ;;  %v1517_v20 = vadd.f32 %v1495_v7, %v3767_v17 }
 0x19d   : > { %v1948_v52 = vadd.f32 %v1924_v39, %v1698_v13 }
 0x19f   : > { %v2182_v8 = vadd.f32 %v2158_v6, %v1948_v52 }
 0x1a1   : > { %v2214_v21 = vadd.f32 %v2198_v14, %v2182_v8  ;;  %v1677_v54 = vpop.f32.mrf.mxu2 }
 0x1a2   : > { %v2161_v42 = vpop.f32.mrf.mxu0  ;;  %v1699_v50 = vadd.f32 %v1677_v54, %v1517_v20 }
 0x1a3   : > { %2230 = vst.msk [vmem:[%s3799_s26 + $0x58] sm:$0xff] %vm415_vm3, %v2214_v21  ;;  %v1497_v33 = vpop.f32.mrf.mxu1 }
 0x1a4   : > { %v1927_v22 = vpop.f32.mrf.mxu3  ;;  %v1518_v15 = vadd.f32 %v1497_v33, %v3777_v57 }
 0x1a5   : > { %v1949_v37 = vadd.f32 %v1927_v22, %v1699_v50 }
 0x1a7   : > { %v2183_v10 = vadd.f32 %v2161_v42, %v1949_v37 }
 0x1a9   : > { %v2215_v12 = vadd.f32 %v2199_v1, %v2183_v10  ;;  %v1679_v31 = vpop.f32.mrf.mxu2 }
 0x1aa   : > { %v2163_v16 = vpop.f32.mrf.mxu0  ;;  %v1700_v17 = vadd.f32 %v1679_v31, %v1518_v15 }
 0x1ab   : > { %2231 = vst.msk [vmem:[%s3799_s26 + $0x60] sm:$0xff] %vm415_vm3, %v2215_v12  ;;  %v1500_v19 = vpop.f32.mrf.mxu1 }
 0x1ac   : > { %v1929_v4 = vpop.f32.mrf.mxu3  ;;  %v1519_v27 = vadd.f32 %v1500_v19, %v3783_v49 }
 0x1ad   : > { %v1950_v23 = vadd.f32 %v1929_v4, %v1700_v17 }
 0x1af   : > { %v2184_v26 = vadd.f32 %v2163_v16, %v1950_v23 }
 0x1b1   : > { %v2216_v5 = vadd.f32 %v2200_v24, %v2184_v26  ;;  %v1682_v51 = vpop.f32.mrf.mxu2 }
 0x1b2   : > { %v1701_v57 = vadd.f32 %v1682_v51, %v1519_v27  ;;  %v2166_v62 = vpop.f32.mrf.mxu0 }
 0x1b3   : > { %2232 = vst.msk [vmem:[%s3799_s26 + $0x68] sm:$0xff] %vm415_vm3, %v2216_v5  ;;  %v1502_v3 = vpop.f32.mrf.mxu1 }
 0x1b4   : > { %v1932_v30 = vpop.f32.mrf.mxu3  ;;  %v1520_v29 = vadd.f32 %v1502_v3, %v3787_v2 }
 0x1b5   : > { %v1951_v41 = vadd.f32 %v1932_v30, %v1701_v57 }
 0x1b7   : > { %v2185_v43 = vadd.f32 %v2166_v62, %v1951_v41 }
 0x1b9   : > { %v2217_v35 = vadd.f32 %v2201_v32, %v2185_v43  ;;  %v1684_v55 = vpop.f32.mrf.mxu2 }
 0x1ba   : > { %v1702_v36 = vadd.f32 %v1684_v55, %v1520_v29  ;;  %v2168_v45 = vpop.f32.mrf.mxu0 }
 0x1bb   : > { %2233 = vst.msk [vmem:[%s3799_s26 + $0x70] sm:$0xff] %vm415_vm3, %v2217_v35 }
 0x1bc   : > { %v1934_v49 = vpop.f32.mrf.mxu3 }
 0x1bd   : > { %v1952_v63 = vadd.f32 %v1934_v49, %v1702_v36 }
 0x1bf   : > { %v2186_v9 = vadd.f32 %v2168_v45, %v1952_v63 }
 0x1c1   : > { %v2218_v60 = vadd.f32 %v2202_v11, %v2186_v9 }
 0x1c3   : > { %2234 = vst.msk [vmem:[%s3799_s26 + $0x78] sm:$0xff] %vm415_vm3, %v2218_v60 }
 0x1c4 PF: > { %s13_s16 = sadd.s32 1, %s3056_s16   ;;  %s3886_s12 = smov %s3048_s14 }
 0x1c5   : > { %p10_p7 = scmp.ge.s32.totalorder %s13_s16, 6   ;;  %s3887_s13 = smov %s3052_s15 }
 0x1c6   : > { %s3888_s14 = smov %s3891_s17  ;;  %s3889_s15 = smov %s3895_s18 }
 0x1c7   :  { %12 = sbr.rel (!%p10_p7) target bundleno = 3 (0x3), region = 76 }

</bundles_post_ra>
